<compile_context>
chip_gen: v7x
topology: tpu7x:2x2x1
jax: 0.10.0
libtpu: 0.0.40
codegen_flags: <defaults>
</compile_context>

<pallas_src>
import jax
import jax.numpy as jnp
from jax.experimental import pallas as pl
from jax.experimental.pallas import tpu as pltpu

GROUPS = 32
EPS = 1e-5           # torch.nn.GroupNorm default
PAD_OFF = 8          # 8-aligned sublane offset of the conv interior inside the padded scratch


def _round_up(x, m):
    return (x + m - 1) // m * m


def _pick_block_rows(H, W):
    # smallest divisor of H giving >= 128 output pixels per im2col/matmul row block
    for d in range(1, H + 1):
        if H % d == 0 and d * W >= 128:
            return d
    return H


def _vmem_limit_bytes(est_bytes):
    cap = 64 * 1024 * 1024          # conservative default (v7x per-TC VMEM)
    try:
        cap = int(pltpu.get_tpu_info().vmem_capacity_bytes)
    except Exception:
        pass
    # leave headroom for compiler-internal scratch
    return int(min(max(est_bytes, 32 * 1024 * 1024), int(cap * 0.85)))


def _make_kernel(H, W, Cin, Cout, use_proj, Wp, TH):
    taps = [(dy, dx) for dy in range(3) for dx in range(3)]
    HW = H * W
    THW = TH * W
    NBLK = H // TH
    Cmax = max(Cin, Cout)

    def group_norm(hf, gamma, beta, M, MT, cpg):
        # hf: (HW, C) f32; gamma/beta: (1, C); M: (C, G); MT: (G, C)
        # two-pass: centre first, then sum of squares (no E[x^2]-E[x]^2 cancellation)
        cnt = float(HW * cpg)
        s = jnp.sum(hf, axis=0, keepdims=True)                                # (1, C)
        mean_g = jnp.dot(s, M, preferred_element_type=jnp.float32) / cnt      # (1, G)
        mean_c = jnp.dot(mean_g, MT, preferred_element_type=jnp.float32)      # (1, C)
        d = hf - mean_c
        ss = jnp.sum(d * d, axis=0, keepdims=True)                            # (1, C)
        var_g = jnp.dot(ss, M, preferred_element_type=jnp.float32) / cnt      # (1, G)
        inv_g = jax.lax.rsqrt(jnp.maximum(var_g, 0.0) + EPS)
        inv_c = jnp.dot(inv_g, MT, preferred_element_type=jnp.float32)        # (1, C)
        return d * (inv_c * gamma) + beta                                     # folded affine

    def silu(h):
        # sigmoid(x) = 0.5*(tanh(0.5x)+1): one EUP op per element instead of exp+recip
        return h * (0.5 * jnp.tanh(0.5 * h) + 0.5)

    def kernel(*refs):
        if use_proj:
            (x_ref, g1_ref, b1_ref, m1_ref, mt1_ref, w1_ref, bi1_ref,
             g2_ref, b2_ref, m2_ref, mt2_ref, w2_ref, bi2_ref,
             wr_ref, br_ref, o_ref, pad_ref) = refs
        else:
            (x_ref, g1_ref, b1_ref, m1_ref, mt1_ref, w1_ref, bi1_ref,
             g2_ref, b2_ref, m2_ref, mt2_ref, w2_ref, bi2_ref,
             o_ref, pad_ref) = refs
            wr_ref = br_ref = None

        # ---- zero the 1-pixel conv halo ONCE (shared by both convs): interior writes
        # never touch it, and each conv's taps only read lanes [0, Ci) that the same
        # conv wrote, so stale lanes beyond Ci are never read.
        zrow = jnp.zeros((1, Wp, Cmax), jnp.bfloat16)
        pad_ref[0:1, :, :] = zrow
        pad_ref[H + 1:H + 2, :, :] = zrow
        zcol = jnp.zeros((H, 1, Cmax), jnp.bfloat16)
        pad_ref[1:H + 1, PAD_OFF - 1:PAD_OFF, :] = zcol
        pad_ref[1:H + 1, PAD_OFF + W:PAD_OFF + W + 1, :] = zcol

        def write_interior(h, Ci):
            # interior at an 8-aligned sublane offset -> unmasked stores (W % 8 == 0),
            # cast once to bf16 (the matmul operand dtype)
            pad_ref[1:H + 1, PAD_OFF:PAD_OFF + W, 0:Ci] = (
                h.reshape(H, W, Ci).astype(jnp.bfloat16))

        def conv_block(r0, Ci, w_ref):
            # nine shifted taps concatenated along the lane axis in registers
            # (lane-dense even for Ci < 128); one K = 9*Ci bf16 MXU matmul per block
            cols = []
            for dy, dx in taps:
                patch = pad_ref[r0 + dy:r0 + dy + TH,
                                PAD_OFF - 1 + dx:PAD_OFF - 1 + dx + W, 0:Ci]
                cols.append(patch.reshape(THW, Ci))
            col = cols[0] if len(cols) == 1 else jnp.concatenate(cols, axis=-1)
            return jnp.dot(col, w_ref[...], preferred_element_type=jnp.float32)

        x = x_ref[0].astype(jnp.float32).reshape(HW, Cin)

        # GroupNorm1 + SiLU, then stage conv1's input in the shared bf16 padded scratch
        h = silu(group_norm(x, g1_ref[...], b1_ref[...], m1_ref[...], mt1_ref[...],
                            Cin // GROUPS))
        write_interior(h, Cin)

        # conv1, row-blocked (no full im2col buffer).
        # TODO(synk): for production shapes (C>=256, H=W>=64) h1 belongs in a VMEM
        # scratch and the block needs spatial tiling (grid=(B, H/th) with a 1-row halo)
        # plus a per-tile partial-sum GroupNorm pass; whole-image residency is only for
        # small decoder stages / this test.
        bias1 = jnp.broadcast_to(bi1_ref[...], (THW, Cout))
        h1_blocks = [conv_block(rb * TH, Cin, w1_ref) + bias1 for rb in range(NBLK)]
        h1 = h1_blocks[0] if NBLK == 1 else jnp.concatenate(h1_blocks, axis=0)

        # GroupNorm2 + SiLU, reuse the SAME padded scratch for conv2's input
        h2 = silu(group_norm(h1, g2_ref[...], b2_ref[...], m2_ref[...], mt2_ref[...],
                             Cout // GROUPS))
        write_interior(h2, Cout)

        # residual path (1x1 projection on the MXU, or identity)
        if use_proj:
            res = jnp.dot(x.astype(jnp.bfloat16), wr_ref[...],
                          preferred_element_type=jnp.float32) + br_ref[...]
        else:
            res = x

        # conv2 + residual, stored row block by row block.
        # TODO(synk): with Cout < 128 (test shapes) the output store is lane-masked;
        # production VAE channel counts (>=128) give lane-dense stores.
        bias2 = jnp.broadcast_to(bi2_ref[...], (THW, Cout))
        for rb in range(NBLK):
            acc = conv_block(rb * TH, Cout, w2_ref) + bias2
            out_blk = acc + res[rb * THW:(rb + 1) * THW, :]
            o_ref[0:1, rb * TH:(rb + 1) * TH, :, :] = (
                out_blk.reshape(1, TH, W, Cout).astype(o_ref.dtype))

    return kernel


def vae_residual_block(x, params, *, channels_last=False):
    """Pallas implementation of VAE_ResidualBlock.forward.

    channels_last=False: NCHW in / NCHW out (PyTorch parity; costs two wrapper
        transposes = one extra HBM round trip of the activation each way).
    channels_last=True : NHWC in / NHWC out (no wrapper transposes; use when the
        surrounding model runs channels-last end-to-end).
    """
    x_nhwc = x if channels_last else jnp.transpose(x, (0, 2, 3, 1))
    B, H, W, Cin = x_nhwc.shape
    Cout = params['w1'].shape[0]
    use_proj = Cin != Cout
    assert W % 8 == 0, "kernel assumes W is a multiple of 8 (sublane-aligned stores)"
    assert Cin % GROUPS == 0 and Cout % GROUPS == 0

    def repack(w):  # PyTorch OIHW (Co, Ci, 3, 3) -> (9*Ci, Co), tap-major / channel-minor
        Co, Ci = w.shape[0], w.shape[1]
        return jnp.transpose(w, (2, 3, 1, 0)).reshape(9 * Ci, Co).astype(jnp.bfloat16)

    def membership(C):  # group-membership matrices, hoisted out of the kernel
        cpg = C // GROUPS
        m = (jnp.arange(C)[:, None] // cpg == jnp.arange(GROUPS)[None, :])
        m = m.astype(jnp.float32)
        return m, m.T

    M1, MT1 = membership(Cin)
    M2, MT2 = membership(Cout)

    g1 = params['gn1_w'].reshape(1, Cin).astype(jnp.float32)
    b1 = params['gn1_b'].reshape(1, Cin).astype(jnp.float32)
    w1 = repack(params['w1'])
    bi1 = params['b1'].reshape(1, Cout).astype(jnp.float32)
    g2 = params['gn2_w'].reshape(1, Cout).astype(jnp.float32)
    b2 = params['gn2_b'].reshape(1, Cout).astype(jnp.float32)
    w2 = repack(params['w2'])
    bi2 = params['b2'].reshape(1, Cout).astype(jnp.float32)

    def full(shape):
        n = len(shape)
        return pl.BlockSpec(shape, lambda b, n=n: (0,) * n)

    inputs = [x_nhwc, g1, b1, M1, MT1, w1, bi1, g2, b2, M2, MT2, w2, bi2]
    in_specs = [
        pl.BlockSpec((1, H, W, Cin), lambda b: (b, 0, 0, 0)),
        full((1, Cin)), full((1, Cin)),
        full((Cin, GROUPS)), full((GROUPS, Cin)),
        full((9 * Cin, Cout)), full((1, Cout)),
        full((1, Cout)), full((1, Cout)),
        full((Cout, GROUPS)), full((GROUPS, Cout)),
        full((9 * Cout, Cout)), full((1, Cout)),
    ]
    if use_proj:
        wr = jnp.transpose(params['wr'][:, :, 0, 0], (1, 0)).astype(jnp.bfloat16)
        br = params['br'].reshape(1, Cout).astype(jnp.float32)
        inputs += [wr, br]
        in_specs += [full((Cin, Cout)), full((1, Cout))]

    Cmax = max(Cin, Cout)
    HW = H * W
    Wp = _round_up(W + PAD_OFF + 1, 8)      # padded scratch width, 8-aligned
    TH = _pick_block_rows(H, W)             # rows per im2col/matmul block (>=128 pixels)
    kernel = _make_kernel(H, W, Cin, Cout, use_proj, Wp, TH)

    # VMEM budget: shared bf16 pad scratch + double-buffered in/out blocks + small
    # params + headroom for the f32 intermediates (x, h1, h2, res) and spills.
    itemsize = jnp.dtype(x_nhwc.dtype).itemsize
    est = (H + 2) * Wp * Cmax * 2                              # bf16 pad scratch
    est += 2 * (HW * Cin + HW * Cout) * itemsize               # in/out blocks (2-buffered)
    for a in inputs[1:]:
        est += 2 * a.size * a.dtype.itemsize                   # small param blocks
    est += 6 * HW * Cmax * 4                                   # f32 live values + slack
    vmem_limit = _vmem_limit_bytes(est + (8 << 20))

    out = pl.pallas_call(
        kernel,
        out_shape=jax.ShapeDtypeStruct((B, H, W, Cout), x_nhwc.dtype),
        grid_spec=pltpu.PrefetchScalarGridSpec(
            num_scalar_prefetch=0,
            grid=(B,),
            in_specs=in_specs,
            out_specs=pl.BlockSpec((1, H, W, Cout), lambda b: (b, 0, 0, 0)),
            scratch_shapes=[
                # single shared padded conv-input scratch, bf16, reused by both convs
                pltpu.VMEM((H + 2, Wp, Cmax), jnp.bfloat16),
            ],
        ),
        compiler_params=pltpu.CompilerParams(
            dimension_semantics=("parallel",),   # batch elements independent (v7x 2 TCs)
            vmem_limit_bytes=vmem_limit,
        ),
    )(*inputs)
    return out if channels_last else jnp.transpose(out, (0, 3, 1, 2))


# ---------------- pure-JAX reference (NCHW, mirrors the PyTorch forward) ---------------
def ref_forward(x, params):
    def gn(h, gamma, beta):
        N, C, H, W = h.shape
        hg = h.reshape(N, GROUPS, C // GROUPS, H, W)
        mean = hg.mean(axis=(2, 3, 4), keepdims=True)
        var = hg.var(axis=(2, 3, 4), keepdims=True)
        hn = ((hg - mean) / jnp.sqrt(var + EPS)).reshape(N, C, H, W)
        return hn * gamma[None, :, None, None] + beta[None, :, None, None]

    def conv(h, w, b, pad):
        y = jax.lax.conv_general_dilated(
            h, w, (1, 1), [(pad, pad), (pad, pad)],
            dimension_numbers=('NCHW', 'OIHW', 'NCHW'))
        return y + b[None, :, None, None]

    def silu(h):
        return h * jax.nn.sigmoid(h)

    res = x
    h = gn(x, params['gn1_w'], params['gn1_b'])
    h = silu(h)
    h = conv(h, params['w1'], params['b1'], 1)
    h = gn(h, params['gn2_w'], params['gn2_b'])
    h = silu(h)
    h = conv(h, params['w2'], params['b2'], 1)
    if 'wr' in params:
        res = conv(res, params['wr'], params['br'], 0)
    return h + res


def make_params(key, Cin, Cout, with_proj):
    ks = jax.random.split(key, 12)
    p = {
        'gn1_w': 1.0 + 0.1 * jax.random.normal(ks[1], (Cin,), jnp.float32),
        'gn1_b': 0.1 * jax.random.normal(ks[2], (Cin,), jnp.float32),
        'w1': 0.1 * jax.random.normal(ks[3], (Cout, Cin, 3, 3), jnp.float32),
        'b1': 0.1 * jax.random.normal(ks[4], (Cout,), jnp.float32),
        'gn2_w': 1.0 + 0.1 * jax.random.normal(ks[5], (Cout,), jnp.float32),
        'gn2_b': 0.1 * jax.random.normal(ks[6], (Cout,), jnp.float32),
        'w2': 0.1 * jax.random.normal(ks[7], (Cout, Cout, 3, 3), jnp.float32),
        'b2': 0.1 * jax.random.normal(ks[8], (Cout,), jnp.float32),
    }
    if with_proj:
        p['wr'] = 0.1 * jax.random.normal(ks[9], (Cout, Cin, 1, 1), jnp.float32)
        p['br'] = 0.1 * jax.random.normal(ks[10], (Cout,), jnp.float32)
    return p


if __name__ == "__main__":
    key = jax.random.PRNGKey(0)
    B, H, W = 2, 16, 16

    def check(out, ref, name):
        # bf16 MXU operands with f32 accumulation vs. a pure-f32 reference
        # -> allow ~1% relative error plus a small absolute slack.
        err = float(jnp.max(jnp.abs(out - ref)))
        scale = float(jnp.max(jnp.abs(ref)))
        assert err <= 1e-2 * scale + 3e-2, \
            f"mismatch ({name}): max abs err {err}, ref scale {scale}"

    # case 1: in_channels != out_channels (1x1 conv residual path), NCHW API
    Cin, Cout = 32, 64
    k0, k1, k2 = jax.random.split(key, 3)
    x = jax.random.normal(k0, (B, Cin, H, W), jnp.float32)
    params = make_params(k1, Cin, Cout, with_proj=True)
    out = jax.block_until_ready(vae_residual_block(x, params))
    ref = jax.block_until_ready(ref_forward(x, params))
    assert out.shape == (B, Cout, H, W)
    check(out, ref, "proj case")

    # case 1b: same weights via the channels-last API (no wrapper transposes)
    out_nhwc = jax.block_until_ready(
        vae_residual_block(jnp.transpose(x, (0, 2, 3, 1)), params, channels_last=True))
    assert out_nhwc.shape == (B, H, W, Cout)
    check(jnp.transpose(out_nhwc, (0, 3, 1, 2)), ref, "proj case / channels_last")

    # case 2: in_channels == out_channels (identity residual path)
    Cin2 = Cout2 = 32
    x2 = jax.random.normal(k2, (B, Cin2, H, W), jnp.float32)
    params2 = make_params(k1, Cin2, Cout2, with_proj=False)
    out2 = jax.block_until_ready(vae_residual_block(x2, params2))
    ref2 = jax.block_until_ready(ref_forward(x2, params2))
    assert out2.shape == (B, Cout2, H, W)
    check(out2, ref2, "identity case")

    print("KERNEL_OK")
</pallas_src>

<mosaic_0001>
module attributes {stable_mosaic.version = 11 : i64} {
  func.func @kernel(%arg0: i32, %arg1: memref<1x16x16x32xf32, #tpu.memory_space<vmem>>, %arg2: memref<1x32xf32, #tpu.memory_space<vmem>>, %arg3: memref<1x32xf32, #tpu.memory_space<vmem>>, %arg4: memref<32x32xf32, #tpu.memory_space<vmem>>, %arg5: memref<32x32xf32, #tpu.memory_space<vmem>>, %arg6: memref<288x64xbf16, #tpu.memory_space<vmem>>, %arg7: memref<1x64xf32, #tpu.memory_space<vmem>>, %arg8: memref<1x64xf32, #tpu.memory_space<vmem>>, %arg9: memref<1x64xf32, #tpu.memory_space<vmem>>, %arg10: memref<64x32xf32, #tpu.memory_space<vmem>>, %arg11: memref<32x64xf32, #tpu.memory_space<vmem>>, %arg12: memref<576x64xbf16, #tpu.memory_space<vmem>>, %arg13: memref<1x64xf32, #tpu.memory_space<vmem>>, %arg14: memref<32x64xbf16, #tpu.memory_space<vmem>>, %arg15: memref<1x64xf32, #tpu.memory_space<vmem>>, %arg16: memref<1x16x16x64xf32, #tpu.memory_space<vmem>>, %arg17: memref<18x32x64xbf16, #tpu.memory_space<vmem>>) attributes {dimension_semantics = [#tpu.dimension_semantics<parallel>], iteration_bounds = array<i64: 2>, scalar_prefetch = 0 : i64, scratch_operands = 1 : i64, tpu.core_type = #tpu.core_type<tc>, window_params = [{transform_indices = @transform_0, window_bounds = array<i64: 1, 16, 16, 32>}, {pipeline_mode = #tpu.pipeline_mode<synchronous>, transform_indices = @transform_1, window_bounds = array<i64: 1, 32>}, {pipeline_mode = #tpu.pipeline_mode<synchronous>, transform_indices = @transform_2, window_bounds = array<i64: 1, 32>}, {pipeline_mode = #tpu.pipeline_mode<synchronous>, transform_indices = @transform_3, window_bounds = array<i64: 32, 32>}, {pipeline_mode = #tpu.pipeline_mode<synchronous>, transform_indices = @transform_4, window_bounds = array<i64: 32, 32>}, {pipeline_mode = #tpu.pipeline_mode<synchronous>, transform_indices = @transform_5, window_bounds = array<i64: 288, 64>}, {pipeline_mode = #tpu.pipeline_mode<synchronous>, transform_indices = @transform_6, window_bounds = array<i64: 1, 64>}, {pipeline_mode = #tpu.pipeline_mode<synchronous>, transform_indices = @transform_7, window_bounds = array<i64: 1, 64>}, {pipeline_mode = #tpu.pipeline_mode<synchronous>, transform_indices = @transform_8, window_bounds = array<i64: 1, 64>}, {pipeline_mode = #tpu.pipeline_mode<synchronous>, transform_indices = @transform_9, window_bounds = array<i64: 64, 32>}, {pipeline_mode = #tpu.pipeline_mode<synchronous>, transform_indices = @transform_10, window_bounds = array<i64: 32, 64>}, {pipeline_mode = #tpu.pipeline_mode<synchronous>, transform_indices = @transform_11, window_bounds = array<i64: 576, 64>}, {pipeline_mode = #tpu.pipeline_mode<synchronous>, transform_indices = @transform_12, window_bounds = array<i64: 1, 64>}, {pipeline_mode = #tpu.pipeline_mode<synchronous>, transform_indices = @transform_13, window_bounds = array<i64: 32, 64>}, {pipeline_mode = #tpu.pipeline_mode<synchronous>, transform_indices = @transform_14, window_bounds = array<i64: 1, 64>}, {transform_indices = @transform_15, window_bounds = array<i64: 1, 16, 16, 64>}]} {
    %cst = arith.constant 0.000000e+00 : bf16
    %0 = vector.broadcast %cst : bf16 to vector<1x32x64xbf16>
    %c0 = arith.constant 0 : index
    %c0_0 = arith.constant 0 : index
    %c0_1 = arith.constant 0 : index
    %1 = vector.load %arg17[%c0, %c0_0, %c0_1] : memref<18x32x64xbf16, #tpu.memory_space<vmem>>, vector<1x32x64xbf16>
    tpu.vector_store %arg17[%c0, %c0_0, %c0_1], %0 {strides = array<i32>} : memref<18x32x64xbf16, #tpu.memory_space<vmem>>, vector<1x32x64xbf16>,
    %c17 = arith.constant 17 : index
    %c0_2 = arith.constant 0 : index
    %c0_3 = arith.constant 0 : index
    %2 = vector.load %arg17[%c17, %c0_2, %c0_3] : memref<18x32x64xbf16, #tpu.memory_space<vmem>>, vector<1x32x64xbf16>
    tpu.vector_store %arg17[%c17, %c0_2, %c0_3], %0 {strides = array<i32>} : memref<18x32x64xbf16, #tpu.memory_space<vmem>>, vector<1x32x64xbf16>,
    %cst_4 = arith.constant 0.000000e+00 : bf16
    %3 = vector.broadcast %cst_4 : bf16 to vector<16x1x64xbf16>
    %c1 = arith.constant 1 : index
    %c7 = arith.constant 7 : index
    %c0_5 = arith.constant 0 : index
    %4 = vector.load %arg17[%c1, %c7, %c0_5] : memref<18x32x64xbf16, #tpu.memory_space<vmem>>, vector<16x1x64xbf16>
    tpu.vector_store %arg17[%c1, %c7, %c0_5], %3 {strides = array<i32>} : memref<18x32x64xbf16, #tpu.memory_space<vmem>>, vector<16x1x64xbf16>,
    %c1_6 = arith.constant 1 : index
    %c24 = arith.constant 24 : index
    %c0_7 = arith.constant 0 : index
    %5 = vector.load %arg17[%c1_6, %c24, %c0_7] : memref<18x32x64xbf16, #tpu.memory_space<vmem>>, vector<16x1x64xbf16>
    tpu.vector_store %arg17[%c1_6, %c24, %c0_7], %3 {strides = array<i32>} : memref<18x32x64xbf16, #tpu.memory_space<vmem>>, vector<16x1x64xbf16>,
    %c0_8 = arith.constant 0 : index
    %c0_9 = arith.constant 0 : index
    %c0_10 = arith.constant 0 : index
    %c0_11 = arith.constant 0 : index
    %6 = vector.load %arg1[%c0_8, %c0_9, %c0_10, %c0_11] : memref<1x16x16x32xf32, #tpu.memory_space<vmem>>, vector<1x16x16x32xf32>
    %7 = vector.shape_cast %6 : vector<1x16x16x32xf32> to vector<16x16x32xf32>
    %8 = vector.shape_cast %7 : vector<16x16x32xf32> to vector<256x32xf32>
    %c0_12 = arith.constant 0 : index
    %c0_13 = arith.constant 0 : index
    %9 = vector.load %arg2[%c0_12, %c0_13] : memref<1x32xf32, #tpu.memory_space<vmem>>, vector<1x32xf32>
    %c0_14 = arith.constant 0 : index
    %c0_15 = arith.constant 0 : index
    %10 = vector.load %arg3[%c0_14, %c0_15] : memref<1x32xf32, #tpu.memory_space<vmem>>, vector<1x32xf32>
    %c0_16 = arith.constant 0 : index
    %c0_17 = arith.constant 0 : index
    %11 = vector.load %arg4[%c0_16, %c0_17] : memref<32x32xf32, #tpu.memory_space<vmem>>, vector<32x32xf32>
    %c0_18 = arith.constant 0 : index
    %c0_19 = arith.constant 0 : index
    %12 = vector.load %arg5[%c0_18, %c0_19] : memref<32x32xf32, #tpu.memory_space<vmem>>, vector<32x32xf32>
    %cst_20 = arith.constant dense<0.000000e+00> : vector<32xf32>
    %13 = vector.multi_reduction <add>, %8, %cst_20 [0] : vector<256x32xf32> to vector<32xf32>
    %14 = vector.shape_cast %13 : vector<32xf32> to vector<1x32xf32>
    %cst_21 = arith.constant dense<0.000000e+00> : vector<1x32xf32>
    %15 = tpu.matmul %14, %11, %cst_21 {dimension_numbers = #tpu.dot_dimension_numbers<[1], [0], [0], [1], [0, 0, 1, 1], [], []>} : vector<1x32xf32>, vector<32x32xf32>, vector<1x32xf32> -> vector<1x32xf32>
    %cst_22 = arith.constant 2.560000e+02 : f32
    %16 = vector.broadcast %cst_22 : f32 to vector<1x32xf32>
    %17 = arith.divf %15, %16 : vector<1x32xf32>
    %cst_23 = arith.constant dense<0.000000e+00> : vector<1x32xf32>
    %18 = tpu.matmul %17, %12, %cst_23 {dimension_numbers = #tpu.dot_dimension_numbers<[1], [0], [0], [1], [0, 0, 1, 1], [], []>} : vector<1x32xf32>, vector<32x32xf32>, vector<1x32xf32> -> vector<1x32xf32>
    %19 = vector.broadcast %18 : vector<1x32xf32> to vector<256x32xf32>
    %20 = arith.subf %8, %19 : vector<256x32xf32>
    %21 = arith.mulf %20, %20 : vector<256x32xf32>
    %cst_24 = arith.constant dense<0.000000e+00> : vector<32xf32>
    %22 = vector.multi_reduction <add>, %21, %cst_24 [0] : vector<256x32xf32> to vector<32xf32>
    %23 = vector.shape_cast %22 : vector<32xf32> to vector<1x32xf32>
    %cst_25 = arith.constant dense<0.000000e+00> : vector<1x32xf32>
    %24 = tpu.matmul %23, %11, %cst_25 {dimension_numbers = #tpu.dot_dimension_numbers<[1], [0], [0], [1], [0, 0, 1, 1], [], []>} : vector<1x32xf32>, vector<32x32xf32>, vector<1x32xf32> -> vector<1x32xf32>
    %cst_26 = arith.constant 2.560000e+02 : f32
    %25 = vector.broadcast %cst_26 : f32 to vector<1x32xf32>
    %26 = arith.divf %24, %25 : vector<1x32xf32>
    %cst_27 = arith.constant 0.000000e+00 : f32
    %27 = vector.broadcast %cst_27 : f32 to vector<1x32xf32>
    %28 = arith.maximumf %26, %27 : vector<1x32xf32>
    %cst_28 = arith.constant 9.99999974E-6 : f32
    %29 = vector.broadcast %cst_28 : f32 to vector<1x32xf32>
    %30 = arith.addf %28, %29 : vector<1x32xf32>
    %31 = math.rsqrt %30 : vector<1x32xf32>
    %cst_29 = arith.constant dense<0.000000e+00> : vector<1x32xf32>
    %32 = tpu.matmul %31, %12, %cst_29 {dimension_numbers = #tpu.dot_dimension_numbers<[1], [0], [0], [1], [0, 0, 1, 1], [], []>} : vector<1x32xf32>, vector<32x32xf32>, vector<1x32xf32> -> vector<1x32xf32>
    %33 = arith.mulf %32, %9 : vector<1x32xf32>
    %34 = vector.broadcast %33 : vector<1x32xf32> to vector<256x32xf32>
    %35 = arith.mulf %20, %34 : vector<256x32xf32>
    %36 = vector.broadcast %10 : vector<1x32xf32> to vector<256x32xf32>
    %37 = arith.addf %35, %36 : vector<256x32xf32>
    %cst_30 = arith.constant 5.000000e-01 : f32
    %38 = vector.broadcast %cst_30 : f32 to vector<256x32xf32>
    %39 = arith.mulf %38, %37 : vector<256x32xf32>
    %40 = math.tanh %39 : vector<256x32xf32>
    %cst_31 = arith.constant 5.000000e-01 : f32
    %41 = vector.broadcast %cst_31 : f32 to vector<256x32xf32>
    %42 = arith.mulf %41, %40 : vector<256x32xf32>
    %cst_32 = arith.constant 5.000000e-01 : f32
    %43 = vector.broadcast %cst_32 : f32 to vector<256x32xf32>
    %44 = arith.addf %42, %43 : vector<256x32xf32>
    %45 = arith.mulf %37, %44 : vector<256x32xf32>
    %46 = vector.shape_cast %45 : vector<256x32xf32> to vector<16x16x32xf32>
    %47 = arith.truncf %46 : vector<16x16x32xf32> to vector<16x16x32xbf16>
    %c1_33 = arith.constant 1 : index
    %c8 = arith.constant 8 : index
    %c0_34 = arith.constant 0 : index
    %48 = vector.load %arg17[%c1_33, %c8, %c0_34] : memref<18x32x64xbf16, #tpu.memory_space<vmem>>, vector<16x16x32xbf16>
    tpu.vector_store %arg17[%c1_33, %c8, %c0_34], %47 {strides = array<i32>} : memref<18x32x64xbf16, #tpu.memory_space<vmem>>, vector<16x16x32xbf16>,
    %c0_35 = arith.constant 0 : index
    %c0_36 = arith.constant 0 : index
    %49 = vector.load %arg7[%c0_35, %c0_36] : memref<1x64xf32, #tpu.memory_space<vmem>>, vector<1x64xf32>
    %50 = vector.shape_cast %49 : vector<1x64xf32> to vector<1x64xf32>
    %51 = vector.broadcast %50 : vector<1x64xf32> to vector<128x64xf32>
    %c0_37 = arith.constant 0 : index
    %c7_38 = arith.constant 7 : index
    %c0_39 = arith.constant 0 : index
    %52 = vector.load %arg17[%c0_37, %c7_38, %c0_39] : memref<18x32x64xbf16, #tpu.memory_space<vmem>>, vector<8x16x32xbf16>
    %53 = vector.shape_cast %52 : vector<8x16x32xbf16> to vector<128x32xbf16>
    %c0_40 = arith.constant 0 : index
    %c8_41 = arith.constant 8 : index
    %c0_42 = arith.constant 0 : index
    %54 = vector.load %arg17[%c0_40, %c8_41, %c0_42] : memref<18x32x64xbf16, #tpu.memory_space<vmem>>, vector<8x16x32xbf16>
    %55 = vector.shape_cast %54 : vector<8x16x32xbf16> to vector<128x32xbf16>
    %c0_43 = arith.constant 0 : index
    %c9 = arith.constant 9 : index
    %c0_44 = arith.constant 0 : index
    %56 = vector.load %arg17[%c0_43, %c9, %c0_44] : memref<18x32x64xbf16, #tpu.memory_space<vmem>>, vector<8x16x32xbf16>
    %57 = vector.shape_cast %56 : vector<8x16x32xbf16> to vector<128x32xbf16>
    %c1_45 = arith.constant 1 : index
    %c7_46 = arith.constant 7 : index
    %c0_47 = arith.constant 0 : index
    %58 = vector.load %arg17[%c1_45, %c7_46, %c0_47] : memref<18x32x64xbf16, #tpu.memory_space<vmem>>, vector<8x16x32xbf16>
    %59 = vector.shape_cast %58 : vector<8x16x32xbf16> to vector<128x32xbf16>
    %c1_48 = arith.constant 1 : index
    %c8_49 = arith.constant 8 : index
    %c0_50 = arith.constant 0 : index
    %60 = vector.load %arg17[%c1_48, %c8_49, %c0_50] : memref<18x32x64xbf16, #tpu.memory_space<vmem>>, vector<8x16x32xbf16>
    %61 = vector.shape_cast %60 : vector<8x16x32xbf16> to vector<128x32xbf16>
    %c1_51 = arith.constant 1 : index
    %c9_52 = arith.constant 9 : index
    %c0_53 = arith.constant 0 : index
    %62 = vector.load %arg17[%c1_51, %c9_52, %c0_53] : memref<18x32x64xbf16, #tpu.memory_space<vmem>>, vector<8x16x32xbf16>
    %63 = vector.shape_cast %62 : vector<8x16x32xbf16> to vector<128x32xbf16>
    %c2 = arith.constant 2 : index
    %c7_54 = arith.constant 7 : index
    %c0_55 = arith.constant 0 : index
    %64 = vector.load %arg17[%c2, %c7_54, %c0_55] : memref<18x32x64xbf16, #tpu.memory_space<vmem>>, vector<8x16x32xbf16>
    %65 = vector.shape_cast %64 : vector<8x16x32xbf16> to vector<128x32xbf16>
    %c2_56 = arith.constant 2 : index
    %c8_57 = arith.constant 8 : index
    %c0_58 = arith.constant 0 : index
    %66 = vector.load %arg17[%c2_56, %c8_57, %c0_58] : memref<18x32x64xbf16, #tpu.memory_space<vmem>>, vector<8x16x32xbf16>
    %67 = vector.shape_cast %66 : vector<8x16x32xbf16> to vector<128x32xbf16>
    %c2_59 = arith.constant 2 : index
    %c9_60 = arith.constant 9 : index
    %c0_61 = arith.constant 0 : index
    %68 = vector.load %arg17[%c2_59, %c9_60, %c0_61] : memref<18x32x64xbf16, #tpu.memory_space<vmem>>, vector<8x16x32xbf16>
    %69 = vector.shape_cast %68 : vector<8x16x32xbf16> to vector<128x32xbf16>
    %70 = tpu.concatenate %53, %55, %57, %59, %61, %63, %65, %67, %69 in 1 : vector<128x32xbf16>, vector<128x32xbf16>, vector<128x32xbf16>, vector<128x32xbf16>, vector<128x32xbf16>, vector<128x32xbf16>, vector<128x32xbf16>, vector<128x32xbf16>, vector<128x32xbf16> -> vector<128x288xbf16>
    %c0_62 = arith.constant 0 : index
    %c0_63 = arith.constant 0 : index
    %71 = vector.load %arg6[%c0_62, %c0_63] : memref<288x64xbf16, #tpu.memory_space<vmem>>, vector<288x64xbf16>
    %cst_64 = arith.constant dense<0.000000e+00> : vector<128x64xf32>
    %72 = tpu.matmul %70, %71, %cst_64 {dimension_numbers = #tpu.dot_dimension_numbers<[1], [0], [0], [1], [0, 0, 1, 1], [], []>} : vector<128x288xbf16>, vector<288x64xbf16>, vector<128x64xf32> -> vector<128x64xf32>
    %73 = arith.addf %72, %51 : vector<128x64xf32>
    %c8_65 = arith.constant 8 : index
    %c7_66 = arith.constant 7 : index
    %c0_67 = arith.constant 0 : index
    %74 = vector.load %arg17[%c8_65, %c7_66, %c0_67] : memref<18x32x64xbf16, #tpu.memory_space<vmem>>, vector<8x16x32xbf16>
    %75 = vector.shape_cast %74 : vector<8x16x32xbf16> to vector<128x32xbf16>
    %c8_68 = arith.constant 8 : index
    %c8_69 = arith.constant 8 : index
    %c0_70 = arith.constant 0 : index
    %76 = vector.load %arg17[%c8_68, %c8_69, %c0_70] : memref<18x32x64xbf16, #tpu.memory_space<vmem>>, vector<8x16x32xbf16>
    %77 = vector.shape_cast %76 : vector<8x16x32xbf16> to vector<128x32xbf16>
    %c8_71 = arith.constant 8 : index
    %c9_72 = arith.constant 9 : index
    %c0_73 = arith.constant 0 : index
    %78 = vector.load %arg17[%c8_71, %c9_72, %c0_73] : memref<18x32x64xbf16, #tpu.memory_space<vmem>>, vector<8x16x32xbf16>
    %79 = vector.shape_cast %78 : vector<8x16x32xbf16> to vector<128x32xbf16>
    %c9_74 = arith.constant 9 : index
    %c7_75 = arith.constant 7 : index
    %c0_76 = arith.constant 0 : index
    %80 = vector.load %arg17[%c9_74, %c7_75, %c0_76] : memref<18x32x64xbf16, #tpu.memory_space<vmem>>, vector<8x16x32xbf16>
    %81 = vector.shape_cast %80 : vector<8x16x32xbf16> to vector<128x32xbf16>
    %c9_77 = arith.constant 9 : index
    %c8_78 = arith.constant 8 : index
    %c0_79 = arith.constant 0 : index
    %82 = vector.load %arg17[%c9_77, %c8_78, %c0_79] : memref<18x32x64xbf16, #tpu.memory_space<vmem>>, vector<8x16x32xbf16>
    %83 = vector.shape_cast %82 : vector<8x16x32xbf16> to vector<128x32xbf16>
    %c9_80 = arith.constant 9 : index
    %c9_81 = arith.constant 9 : index
    %c0_82 = arith.constant 0 : index
    %84 = vector.load %arg17[%c9_80, %c9_81, %c0_82] : memref<18x32x64xbf16, #tpu.memory_space<vmem>>, vector<8x16x32xbf16>
    %85 = vector.shape_cast %84 : vector<8x16x32xbf16> to vector<128x32xbf16>
    %c10 = arith.constant 10 : index
    %c7_83 = arith.constant 7 : index
    %c0_84 = arith.constant 0 : index
    %86 = vector.load %arg17[%c10, %c7_83, %c0_84] : memref<18x32x64xbf16, #tpu.memory_space<vmem>>, vector<8x16x32xbf16>
    %87 = vector.shape_cast %86 : vector<8x16x32xbf16> to vector<128x32xbf16>
    %c10_85 = arith.constant 10 : index
    %c8_86 = arith.constant 8 : index
    %c0_87 = arith.constant 0 : index
    %88 = vector.load %arg17[%c10_85, %c8_86, %c0_87] : memref<18x32x64xbf16, #tpu.memory_space<vmem>>, vector<8x16x32xbf16>
    %89 = vector.shape_cast %88 : vector<8x16x32xbf16> to vector<128x32xbf16>
    %c10_88 = arith.constant 10 : index
    %c9_89 = arith.constant 9 : index
    %c0_90 = arith.constant 0 : index
    %90 = vector.load %arg17[%c10_88, %c9_89, %c0_90] : memref<18x32x64xbf16, #tpu.memory_space<vmem>>, vector<8x16x32xbf16>
    %91 = vector.shape_cast %90 : vector<8x16x32xbf16> to vector<128x32xbf16>
    %92 = tpu.concatenate %75, %77, %79, %81, %83, %85, %87, %89, %91 in 1 : vector<128x32xbf16>, vector<128x32xbf16>, vector<128x32xbf16>, vector<128x32xbf16>, vector<128x32xbf16>, vector<128x32xbf16>, vector<128x32xbf16>, vector<128x32xbf16>, vector<128x32xbf16> -> vector<128x288xbf16>
    %c0_91 = arith.constant 0 : index
    %c0_92 = arith.constant 0 : index
    %93 = vector.load %arg6[%c0_91, %c0_92] : memref<288x64xbf16, #tpu.memory_space<vmem>>, vector<288x64xbf16>
    %cst_93 = arith.constant dense<0.000000e+00> : vector<128x64xf32>
    %94 = tpu.matmul %92, %93, %cst_93 {dimension_numbers = #tpu.dot_dimension_numbers<[1], [0], [0], [1], [0, 0, 1, 1], [], []>} : vector<128x288xbf16>, vector<288x64xbf16>, vector<128x64xf32> -> vector<128x64xf32>
    %95 = arith.addf %94, %51 : vector<128x64xf32>
    %96 = tpu.concatenate %73, %95 in 0 : vector<128x64xf32>, vector<128x64xf32> -> vector<256x64xf32>
    %c0_94 = arith.constant 0 : index
    %c0_95 = arith.constant 0 : index
    %97 = vector.load %arg8[%c0_94, %c0_95] : memref<1x64xf32, #tpu.memory_space<vmem>>, vector<1x64xf32>
    %c0_96 = arith.constant 0 : index
    %c0_97 = arith.constant 0 : index
    %98 = vector.load %arg9[%c0_96, %c0_97] : memref<1x64xf32, #tpu.memory_space<vmem>>, vector<1x64xf32>
    %c0_98 = arith.constant 0 : index
    %c0_99 = arith.constant 0 : index
    %99 = vector.load %arg10[%c0_98, %c0_99] : memref<64x32xf32, #tpu.memory_space<vmem>>, vector<64x32xf32>
    %c0_100 = arith.constant 0 : index
    %c0_101 = arith.constant 0 : index
    %100 = vector.load %arg11[%c0_100, %c0_101] : memref<32x64xf32, #tpu.memory_space<vmem>>, vector<32x64xf32>
    %cst_102 = arith.constant dense<0.000000e+00> : vector<64xf32>
    %101 = vector.multi_reduction <add>, %96, %cst_102 [0] : vector<256x64xf32> to vector<64xf32>
    %102 = vector.shape_cast %101 : vector<64xf32> to vector<1x64xf32>
    %cst_103 = arith.constant dense<0.000000e+00> : vector<1x32xf32>
    %103 = tpu.matmul %102, %99, %cst_103 {dimension_numbers = #tpu.dot_dimension_numbers<[1], [0], [0], [1], [0, 0, 1, 1], [], []>} : vector<1x64xf32>, vector<64x32xf32>, vector<1x32xf32> -> vector<1x32xf32>
    %cst_104 = arith.constant 5.120000e+02 : f32
    %104 = vector.broadcast %cst_104 : f32 to vector<1x32xf32>
    %105 = arith.divf %103, %104 : vector<1x32xf32>
    %cst_105 = arith.constant dense<0.000000e+00> : vector<1x64xf32>
    %106 = tpu.matmul %105, %100, %cst_105 {dimension_numbers = #tpu.dot_dimension_numbers<[1], [0], [0], [1], [0, 0, 1, 1], [], []>} : vector<1x32xf32>, vector<32x64xf32>, vector<1x64xf32> -> vector<1x64xf32>
    %107 = vector.broadcast %106 : vector<1x64xf32> to vector<256x64xf32>
    %108 = arith.subf %96, %107 : vector<256x64xf32>
    %109 = arith.mulf %108, %108 : vector<256x64xf32>
    %cst_106 = arith.constant dense<0.000000e+00> : vector<64xf32>
    %110 = vector.multi_reduction <add>, %109, %cst_106 [0] : vector<256x64xf32> to vector<64xf32>
    %111 = vector.shape_cast %110 : vector<64xf32> to vector<1x64xf32>
    %cst_107 = arith.constant dense<0.000000e+00> : vector<1x32xf32>
    %112 = tpu.matmul %111, %99, %cst_107 {dimension_numbers = #tpu.dot_dimension_numbers<[1], [0], [0], [1], [0, 0, 1, 1], [], []>} : vector<1x64xf32>, vector<64x32xf32>, vector<1x32xf32> -> vector<1x32xf32>
    %cst_108 = arith.constant 5.120000e+02 : f32
    %113 = vector.broadcast %cst_108 : f32 to vector<1x32xf32>
    %114 = arith.divf %112, %113 : vector<1x32xf32>
    %cst_109 = arith.constant 0.000000e+00 : f32
    %115 = vector.broadcast %cst_109 : f32 to vector<1x32xf32>
    %116 = arith.maximumf %114, %115 : vector<1x32xf32>
    %cst_110 = arith.constant 9.99999974E-6 : f32
    %117 = vector.broadcast %cst_110 : f32 to vector<1x32xf32>
    %118 = arith.addf %116, %117 : vector<1x32xf32>
    %119 = math.rsqrt %118 : vector<1x32xf32>
    %cst_111 = arith.constant dense<0.000000e+00> : vector<1x64xf32>
    %120 = tpu.matmul %119, %100, %cst_111 {dimension_numbers = #tpu.dot_dimension_numbers<[1], [0], [0], [1], [0, 0, 1, 1], [], []>} : vector<1x32xf32>, vector<32x64xf32>, vector<1x64xf32> -> vector<1x64xf32>
    %121 = arith.mulf %120, %97 : vector<1x64xf32>
    %122 = vector.broadcast %121 : vector<1x64xf32> to vector<256x64xf32>
    %123 = arith.mulf %108, %122 : vector<256x64xf32>
    %124 = vector.broadcast %98 : vector<1x64xf32> to vector<256x64xf32>
    %125 = arith.addf %123, %124 : vector<256x64xf32>
    %cst_112 = arith.constant 5.000000e-01 : f32
    %126 = vector.broadcast %cst_112 : f32 to vector<256x64xf32>
    %127 = arith.mulf %126, %125 : vector<256x64xf32>
    %128 = math.tanh %127 : vector<256x64xf32>
    %cst_113 = arith.constant 5.000000e-01 : f32
    %129 = vector.broadcast %cst_113 : f32 to vector<256x64xf32>
    %130 = arith.mulf %129, %128 : vector<256x64xf32>
    %cst_114 = arith.constant 5.000000e-01 : f32
    %131 = vector.broadcast %cst_114 : f32 to vector<256x64xf32>
    %132 = arith.addf %130, %131 : vector<256x64xf32>
    %133 = arith.mulf %125, %132 : vector<256x64xf32>
    %134 = vector.shape_cast %133 : vector<256x64xf32> to vector<16x16x64xf32>
    %135 = arith.truncf %134 : vector<16x16x64xf32> to vector<16x16x64xbf16>
    %c1_115 = arith.constant 1 : index
    %c8_116 = arith.constant 8 : index
    %c0_117 = arith.constant 0 : index
    %136 = vector.load %arg17[%c1_115, %c8_116, %c0_117] : memref<18x32x64xbf16, #tpu.memory_space<vmem>>, vector<16x16x64xbf16>
    tpu.vector_store %arg17[%c1_115, %c8_116, %c0_117], %135 {strides = array<i32>} : memref<18x32x64xbf16, #tpu.memory_space<vmem>>, vector<16x16x64xbf16>,
    %137 = arith.truncf %8 : vector<256x32xf32> to vector<256x32xbf16>
    %c0_118 = arith.constant 0 : index
    %c0_119 = arith.constant 0 : index
    %138 = vector.load %arg14[%c0_118, %c0_119] : memref<32x64xbf16, #tpu.memory_space<vmem>>, vector<32x64xbf16>
    %cst_120 = arith.constant dense<0.000000e+00> : vector<256x64xf32>
    %139 = tpu.matmul %137, %138, %cst_120 {dimension_numbers = #tpu.dot_dimension_numbers<[1], [0], [0], [1], [0, 0, 1, 1], [], []>} : vector<256x32xbf16>, vector<32x64xbf16>, vector<256x64xf32> -> vector<256x64xf32>
    %c0_121 = arith.constant 0 : index
    %c0_122 = arith.constant 0 : index
    %140 = vector.load %arg15[%c0_121, %c0_122] : memref<1x64xf32, #tpu.memory_space<vmem>>, vector<1x64xf32>
    %141 = vector.broadcast %140 : vector<1x64xf32> to vector<256x64xf32>
    %142 = arith.addf %139, %141 : vector<256x64xf32>
    %c0_123 = arith.constant 0 : index
    %c0_124 = arith.constant 0 : index
    %143 = vector.load %arg13[%c0_123, %c0_124] : memref<1x64xf32, #tpu.memory_space<vmem>>, vector<1x64xf32>
    %144 = vector.shape_cast %143 : vector<1x64xf32> to vector<1x64xf32>
    %145 = vector.broadcast %144 : vector<1x64xf32> to vector<128x64xf32>
    %c0_125 = arith.constant 0 : index
    %c7_126 = arith.constant 7 : index
    %c0_127 = arith.constant 0 : index
    %146 = vector.load %arg17[%c0_125, %c7_126, %c0_127] : memref<18x32x64xbf16, #tpu.memory_space<vmem>>, vector<8x16x64xbf16>
    %147 = vector.shape_cast %146 : vector<8x16x64xbf16> to vector<128x64xbf16>
    %c0_128 = arith.constant 0 : index
    %c8_129 = arith.constant 8 : index
    %c0_130 = arith.constant 0 : index
    %148 = vector.load %arg17[%c0_128, %c8_129, %c0_130] : memref<18x32x64xbf16, #tpu.memory_space<vmem>>, vector<8x16x64xbf16>
    %149 = vector.shape_cast %148 : vector<8x16x64xbf16> to vector<128x64xbf16>
    %c0_131 = arith.constant 0 : index
    %c9_132 = arith.constant 9 : index
    %c0_133 = arith.constant 0 : index
    %150 = vector.load %arg17[%c0_131, %c9_132, %c0_133] : memref<18x32x64xbf16, #tpu.memory_space<vmem>>, vector<8x16x64xbf16>
    %151 = vector.shape_cast %150 : vector<8x16x64xbf16> to vector<128x64xbf16>
    %c1_134 = arith.constant 1 : index
    %c7_135 = arith.constant 7 : index
    %c0_136 = arith.constant 0 : index
    %152 = vector.load %arg17[%c1_134, %c7_135, %c0_136] : memref<18x32x64xbf16, #tpu.memory_space<vmem>>, vector<8x16x64xbf16>
    %153 = vector.shape_cast %152 : vector<8x16x64xbf16> to vector<128x64xbf16>
    %c1_137 = arith.constant 1 : index
    %c8_138 = arith.constant 8 : index
    %c0_139 = arith.constant 0 : index
    %154 = vector.load %arg17[%c1_137, %c8_138, %c0_139] : memref<18x32x64xbf16, #tpu.memory_space<vmem>>, vector<8x16x64xbf16>
    %155 = vector.shape_cast %154 : vector<8x16x64xbf16> to vector<128x64xbf16>
    %c1_140 = arith.constant 1 : index
    %c9_141 = arith.constant 9 : index
    %c0_142 = arith.constant 0 : index
    %156 = vector.load %arg17[%c1_140, %c9_141, %c0_142] : memref<18x32x64xbf16, #tpu.memory_space<vmem>>, vector<8x16x64xbf16>
    %157 = vector.shape_cast %156 : vector<8x16x64xbf16> to vector<128x64xbf16>
    %c2_143 = arith.constant 2 : index
    %c7_144 = arith.constant 7 : index
    %c0_145 = arith.constant 0 : index
    %158 = vector.load %arg17[%c2_143, %c7_144, %c0_145] : memref<18x32x64xbf16, #tpu.memory_space<vmem>>, vector<8x16x64xbf16>
    %159 = vector.shape_cast %158 : vector<8x16x64xbf16> to vector<128x64xbf16>
    %c2_146 = arith.constant 2 : index
    %c8_147 = arith.constant 8 : index
    %c0_148 = arith.constant 0 : index
    %160 = vector.load %arg17[%c2_146, %c8_147, %c0_148] : memref<18x32x64xbf16, #tpu.memory_space<vmem>>, vector<8x16x64xbf16>
    %161 = vector.shape_cast %160 : vector<8x16x64xbf16> to vector<128x64xbf16>
    %c2_149 = arith.constant 2 : index
    %c9_150 = arith.constant 9 : index
    %c0_151 = arith.constant 0 : index
    %162 = vector.load %arg17[%c2_149, %c9_150, %c0_151] : memref<18x32x64xbf16, #tpu.memory_space<vmem>>, vector<8x16x64xbf16>
    %163 = vector.shape_cast %162 : vector<8x16x64xbf16> to vector<128x64xbf16>
    %164 = tpu.concatenate %147, %149, %151, %153, %155, %157, %159, %161, %163 in 1 : vector<128x64xbf16>, vector<128x64xbf16>, vector<128x64xbf16>, vector<128x64xbf16>, vector<128x64xbf16>, vector<128x64xbf16>, vector<128x64xbf16>, vector<128x64xbf16>, vector<128x64xbf16> -> vector<128x576xbf16>
    %c0_152 = arith.constant 0 : index
    %c0_153 = arith.constant 0 : index
    %165 = vector.load %arg12[%c0_152, %c0_153] : memref<576x64xbf16, #tpu.memory_space<vmem>>, vector<576x64xbf16>
    %cst_154 = arith.constant dense<0.000000e+00> : vector<128x64xf32>
    %166 = tpu.matmul %164, %165, %cst_154 {dimension_numbers = #tpu.dot_dimension_numbers<[1], [0], [0], [1], [0, 0, 1, 1], [], []>} : vector<128x576xbf16>, vector<576x64xbf16>, vector<128x64xf32> -> vector<128x64xf32>
    %167 = arith.addf %166, %145 : vector<128x64xf32>
    %168 = vector.extract_strided_slice %142 {offsets = [0, 0], sizes = [128, 64], strides = [1, 1]} : vector<256x64xf32> to vector<128x64xf32>
    %169 = arith.addf %167, %168 : vector<128x64xf32>
    %170 = vector.shape_cast %169 : vector<128x64xf32> to vector<1x8x16x64xf32>
    %c0_155 = arith.constant 0 : index
    %c0_156 = arith.constant 0 : index
    %c0_157 = arith.constant 0 : index
    %c0_158 = arith.constant 0 : index
    %171 = vector.load %arg16[%c0_155, %c0_156, %c0_157, %c0_158] : memref<1x16x16x64xf32, #tpu.memory_space<vmem>>, vector<1x8x16x64xf32>
    tpu.vector_store %arg16[%c0_155, %c0_156, %c0_157, %c0_158], %170 {strides = array<i32>} : memref<1x16x16x64xf32, #tpu.memory_space<vmem>>, vector<1x8x16x64xf32>,
    %c8_159 = arith.constant 8 : index
    %c7_160 = arith.constant 7 : index
    %c0_161 = arith.constant 0 : index
    %172 = vector.load %arg17[%c8_159, %c7_160, %c0_161] : memref<18x32x64xbf16, #tpu.memory_space<vmem>>, vector<8x16x64xbf16>
    %173 = vector.shape_cast %172 : vector<8x16x64xbf16> to vector<128x64xbf16>
    %c8_162 = arith.constant 8 : index
    %c8_163 = arith.constant 8 : index
    %c0_164 = arith.constant 0 : index
    %174 = vector.load %arg17[%c8_162, %c8_163, %c0_164] : memref<18x32x64xbf16, #tpu.memory_space<vmem>>, vector<8x16x64xbf16>
    %175 = vector.shape_cast %174 : vector<8x16x64xbf16> to vector<128x64xbf16>
    %c8_165 = arith.constant 8 : index
    %c9_166 = arith.constant 9 : index
    %c0_167 = arith.constant 0 : index
    %176 = vector.load %arg17[%c8_165, %c9_166, %c0_167] : memref<18x32x64xbf16, #tpu.memory_space<vmem>>, vector<8x16x64xbf16>
    %177 = vector.shape_cast %176 : vector<8x16x64xbf16> to vector<128x64xbf16>
    %c9_168 = arith.constant 9 : index
    %c7_169 = arith.constant 7 : index
    %c0_170 = arith.constant 0 : index
    %178 = vector.load %arg17[%c9_168, %c7_169, %c0_170] : memref<18x32x64xbf16, #tpu.memory_space<vmem>>, vector<8x16x64xbf16>
    %179 = vector.shape_cast %178 : vector<8x16x64xbf16> to vector<128x64xbf16>
    %c9_171 = arith.constant 9 : index
    %c8_172 = arith.constant 8 : index
    %c0_173 = arith.constant 0 : index
    %180 = vector.load %arg17[%c9_171, %c8_172, %c0_173] : memref<18x32x64xbf16, #tpu.memory_space<vmem>>, vector<8x16x64xbf16>
    %181 = vector.shape_cast %180 : vector<8x16x64xbf16> to vector<128x64xbf16>
    %c9_174 = arith.constant 9 : index
    %c9_175 = arith.constant 9 : index
    %c0_176 = arith.constant 0 : index
    %182 = vector.load %arg17[%c9_174, %c9_175, %c0_176] : memref<18x32x64xbf16, #tpu.memory_space<vmem>>, vector<8x16x64xbf16>
    %183 = vector.shape_cast %182 : vector<8x16x64xbf16> to vector<128x64xbf16>
    %c10_177 = arith.constant 10 : index
    %c7_178 = arith.constant 7 : index
    %c0_179 = arith.constant 0 : index
    %184 = vector.load %arg17[%c10_177, %c7_178, %c0_179] : memref<18x32x64xbf16, #tpu.memory_space<vmem>>, vector<8x16x64xbf16>
    %185 = vector.shape_cast %184 : vector<8x16x64xbf16> to vector<128x64xbf16>
    %c10_180 = arith.constant 10 : index
    %c8_181 = arith.constant 8 : index
    %c0_182 = arith.constant 0 : index
    %186 = vector.load %arg17[%c10_180, %c8_181, %c0_182] : memref<18x32x64xbf16, #tpu.memory_space<vmem>>, vector<8x16x64xbf16>
    %187 = vector.shape_cast %186 : vector<8x16x64xbf16> to vector<128x64xbf16>
    %c10_183 = arith.constant 10 : index
    %c9_184 = arith.constant 9 : index
    %c0_185 = arith.constant 0 : index
    %188 = vector.load %arg17[%c10_183, %c9_184, %c0_185] : memref<18x32x64xbf16, #tpu.memory_space<vmem>>, vector<8x16x64xbf16>
    %189 = vector.shape_cast %188 : vector<8x16x64xbf16> to vector<128x64xbf16>
    %190 = tpu.concatenate %173, %175, %177, %179, %181, %183, %185, %187, %189 in 1 : vector<128x64xbf16>, vector<128x64xbf16>, vector<128x64xbf16>, vector<128x64xbf16>, vector<128x64xbf16>, vector<128x64xbf16>, vector<128x64xbf16>, vector<128x64xbf16>, vector<128x64xbf16> -> vector<128x576xbf16>
    %c0_186 = arith.constant 0 : index
    %c0_187 = arith.constant 0 : index
    %191 = vector.load %arg12[%c0_186, %c0_187] : memref<576x64xbf16, #tpu.memory_space<vmem>>, vector<576x64xbf16>
    %cst_188 = arith.constant dense<0.000000e+00> : vector<128x64xf32>
    %192 = tpu.matmul %190, %191, %cst_188 {dimension_numbers = #tpu.dot_dimension_numbers<[1], [0], [0], [1], [0, 0, 1, 1], [], []>} : vector<128x576xbf16>, vector<576x64xbf16>, vector<128x64xf32> -> vector<128x64xf32>
    %193 = arith.addf %192, %145 : vector<128x64xf32>
    %194 = vector.extract_strided_slice %142 {offsets = [128, 0], sizes = [128, 64], strides = [1, 1]} : vector<256x64xf32> to vector<128x64xf32>
    %195 = arith.addf %193, %194 : vector<128x64xf32>
    %196 = vector.shape_cast %195 : vector<128x64xf32> to vector<1x8x16x64xf32>
    %c0_189 = arith.constant 0 : index
    %c8_190 = arith.constant 8 : index
    %c0_191 = arith.constant 0 : index
    %c0_192 = arith.constant 0 : index
    %197 = vector.load %arg16[%c0_189, %c8_190, %c0_191, %c0_192] : memref<1x16x16x64xf32, #tpu.memory_space<vmem>>, vector<1x8x16x64xf32>
    tpu.vector_store %arg16[%c0_189, %c8_190, %c0_191, %c0_192], %196 {strides = array<i32>} : memref<1x16x16x64xf32, #tpu.memory_space<vmem>>, vector<1x8x16x64xf32>,
    return
  }
  func.func @transform_0(%arg0: i32) -> (i32, i32, i32, i32) {
    %c0_i32 = arith.constant 0 : i32
    %c0_i32_0 = arith.constant 0 : i32
    %c0_i32_1 = arith.constant 0 : i32
    %c0_i32_2 = arith.constant 0 : i32
    return %arg0, %c0_i32, %c0_i32_0, %c0_i32_1 : i32, i32, i32, i32
  }
  func.func @transform_1(%arg0: i32) -> (i32, i32) {
    %c0_i32 = arith.constant 0 : i32
    %c0_i32_0 = arith.constant 0 : i32
    %c0_i32_1 = arith.constant 0 : i32
    return %c0_i32, %c0_i32_0 : i32, i32
  }
  func.func @transform_2(%arg0: i32) -> (i32, i32) {
    %c0_i32 = arith.constant 0 : i32
    %c0_i32_0 = arith.constant 0 : i32
    %c0_i32_1 = arith.constant 0 : i32
    return %c0_i32, %c0_i32_0 : i32, i32
  }
  func.func @transform_3(%arg0: i32) -> (i32, i32) {
    %c0_i32 = arith.constant 0 : i32
    %c0_i32_0 = arith.constant 0 : i32
    %c0_i32_1 = arith.constant 0 : i32
    return %c0_i32, %c0_i32_0 : i32, i32
  }
  func.func @transform_4(%arg0: i32) -> (i32, i32) {
    %c0_i32 = arith.constant 0 : i32
    %c0_i32_0 = arith.constant 0 : i32
    %c0_i32_1 = arith.constant 0 : i32
    return %c0_i32, %c0_i32_0 : i32, i32
  }
  func.func @transform_5(%arg0: i32) -> (i32, i32) {
    %c0_i32 = arith.constant 0 : i32
    %c0_i32_0 = arith.constant 0 : i32
    %c0_i32_1 = arith.constant 0 : i32
    return %c0_i32, %c0_i32_0 : i32, i32
  }
  func.func @transform_6(%arg0: i32) -> (i32, i32) {
    %c0_i32 = arith.constant 0 : i32
    %c0_i32_0 = arith.constant 0 : i32
    %c0_i32_1 = arith.constant 0 : i32
    return %c0_i32, %c0_i32_0 : i32, i32
  }
  func.func @transform_7(%arg0: i32) -> (i32, i32) {
    %c0_i32 = arith.constant 0 : i32
    %c0_i32_0 = arith.constant 0 : i32
    %c0_i32_1 = arith.constant 0 : i32
    return %c0_i32, %c0_i32_0 : i32, i32
  }
  func.func @transform_8(%arg0: i32) -> (i32, i32) {
    %c0_i32 = arith.constant 0 : i32
    %c0_i32_0 = arith.constant 0 : i32
    %c0_i32_1 = arith.constant 0 : i32
    return %c0_i32, %c0_i32_0 : i32, i32
  }
  func.func @transform_9(%arg0: i32) -> (i32, i32) {
    %c0_i32 = arith.constant 0 : i32
    %c0_i32_0 = arith.constant 0 : i32
    %c0_i32_1 = arith.constant 0 : i32
    return %c0_i32, %c0_i32_0 : i32, i32
  }
  func.func @transform_10(%arg0: i32) -> (i32, i32) {
    %c0_i32 = arith.constant 0 : i32
    %c0_i32_0 = arith.constant 0 : i32
    %c0_i32_1 = arith.constant 0 : i32
    return %c0_i32, %c0_i32_0 : i32, i32
  }
  func.func @transform_11(%arg0: i32) -> (i32, i32) {
    %c0_i32 = arith.constant 0 : i32
    %c0_i32_0 = arith.constant 0 : i32
    %c0_i32_1 = arith.constant 0 : i32
    return %c0_i32, %c0_i32_0 : i32, i32
  }
  func.func @transform_12(%arg0: i32) -> (i32, i32) {
    %c0_i32 = arith.constant 0 : i32
    %c0_i32_0 = arith.constant 0 : i32
    %c0_i32_1 = arith.constant 0 : i32
    return %c0_i32, %c0_i32_0 : i32, i32
  }
  func.func @transform_13(%arg0: i32) -> (i32, i32) {
    %c0_i32 = arith.constant 0 : i32
    %c0_i32_0 = arith.constant 0 : i32
    %c0_i32_1 = arith.constant 0 : i32
    return %c0_i32, %c0_i32_0 : i32, i32
  }
  func.func @transform_14(%arg0: i32) -> (i32, i32) {
    %c0_i32 = arith.constant 0 : i32
    %c0_i32_0 = arith.constant 0 : i32
    %c0_i32_1 = arith.constant 0 : i32
    return %c0_i32, %c0_i32_0 : i32, i32
  }
  func.func @transform_15(%arg0: i32) -> (i32, i32, i32, i32) {
    %c0_i32 = arith.constant 0 : i32
    %c0_i32_0 = arith.constant 0 : i32
    %c0_i32_1 = arith.constant 0 : i32
    %c0_i32_2 = arith.constant 0 : i32
    return %arg0, %c0_i32, %c0_i32_0, %c0_i32_1 : i32, i32, i32, i32
  }
}

</mosaic_0001>

<bundles_post_ra>
// kernel: tpu_custom_call.1
= control target key start
LH: loop header
LB: loop body
LE: loop exit
PB: predicated region body
PF: predicated region fallthrough
CT: control target
= control target key end

     0   :  { %s15720_s0 = inlined_call_operand.vmem [shape: f32[2,16,16,32], index: 0, kind: input, shape index: {}]   ;;  %s15721_s1 = inlined_call_operand.vmem [shape: f32[1,32], index: 1, kind: input, shape index: {}]   ;;  %s15722_s2 = inlined_call_operand.vmem [shape: f32[1,32], index: 2, kind: input, shape index: {}]   ;;  %s15723_s3 = inlined_call_operand.hbm [shape: f32[32,32], index: 3, kind: input, shape index: {}]   ;;  %s15724_s4 = inlined_call_operand.hbm [shape: f32[32,32], index: 4, kind: input, shape index: {}]   ;;  %s15725_s5 = inlined_call_operand.vmem [shape: bf16[288,64], index: 5, kind: input, shape index: {}]   ;;  %s15726_s6 = inlined_call_operand.hbm [shape: f32[1,64], index: 6, kind: input, shape index: {}]   ;;  %s15727_s7 = inlined_call_operand.hbm [shape: f32[1,64], index: 7, kind: input, shape index: {}]   ;;  %s15728_s8 = inlined_call_operand.hbm [shape: f32[1,64], index: 8, kind: input, shape index: {}]   ;;  %s15729_s9 = inlined_call_operand.vmem [shape: f32[64,32], index: 9, kind: input, shape index: {}]   ;;  %s15730_s10 = inlined_call_operand.hbm [shape: f32[32,64], index: 10, kind: input, shape index: {}]   ;;  %s15731_s11 = inlined_call_operand.vmem [shape: bf16[576,64], index: 11, kind: input, shape index: {}]   ;;  %s15732_s12 = inlined_call_operand.vmem [shape: f32[1,64], index: 12, kind: input, shape index: {}]   ;;  %s15733_s13 = inlined_call_operand.vmem [shape: bf16[32,64], index: 13, kind: input, shape index: {}]   ;;  %s15734_s14 = inlined_call_operand.vmem [shape: f32[1,64], index: 14, kind: input, shape index: {}]   ;;  %s15735_s15 = inlined_call_operand.hbm [shape: f32[2,16,16,64], index: 15, kind: output, shape index: {}]  }
   0x1   :  { %15791 = sst [smem:[#allocation76_spill]] %s15724_s4 }
   0x2   :  { %15792 = sst [smem:[#allocation77_spill]] %s15732_s12 }
   0x3   :  { %15793 = sst [smem:[#allocation78_spill]] %s15734_s14 }
   0x4   :  { %15794 = sst [smem:[#allocation79_spill]] %s15735_s15 }
   0x5   :  { %20 = vsyncpa [#allocation4], 0 }
   0x6   :  { %21 = vsyncpa [#allocation7], 0 }
   0x7   :  { %22 = vsyncpa [#allocation10], 0 }
   0x8   :  { %23 = vsyncpa [#allocation13], 0 }
   0x9   :  { %24 = vsyncpa [#allocation5], 0 }
   0xa   :  { %26 = vsyncpa [#allocation5 + $0x1], 0  ;;  %s11587_s18 = smov 0   ;;  %s11589_s19 = smov 0  }
   0xb   :  { %s11591_s20 = smov 0   ;;  %s11593_s21 = smov 0  }
   0xc LB: > { %15795 = sst [smem:[#allocation20_spill]] %s11475_s18  ;;  %s11608_s22 = sadd.s32 4294967295, %s11487_s21   ;;  %s11487_s21 = sphi %s11593_s21, %s15989_s21   ;;  %s11483_s20 = sphi %s11591_s20, %s15992_s20   ;;  %s11479_s19 = sphi %s11589_s19, %s15991_s19   ;;  %s11475_s18 = sphi %s11587_s18, %s15990_s18  }
   0xd   : > { %15796 = sst [smem:[#allocation21_spill]] %s11479_s19  ;;  %s9632_s23 = sadd.s32 4294967294, %s11487_s21  }
   0xe   : > { %15797 = sst [smem:[#allocation22_spill]] %s11483_s20  ;;  %s11612_s24 = sadd.s32 1, %s11487_s21  }
   0xf   : > { %15798 = sst [smem:[#allocation23_spill]] %s11487_s21  ;;  %s359_s25 = sadd.s32 1, %s11483_s20 }
  0x10   : > { %15799 = sst [smem:[#allocation24_spill]] %s11612_s24  ;;  %s356_s26 = ssub.s32 %s11487_s21, %s11612_s24 }
  0x11   : > { %p369_p0 = scmp.ne.s32.totalorder %s11483_s20, %s11479_s19  ;;  %p357_p1 = scmp.eq.s32.totalorder %s356_s26, 0 }
  0x12   : > { %p370_p2 = scmp.eq.s32.totalorder %s11608_s22, 1  ;;  %p375_p3 = scmp.ne.s32.totalorder %s11479_s19, %s11475_s18 }
  0x13   : > { %p376_p4 = scmp.eq.s32.totalorder %s9632_s23, 1  ;;  %p9633_p7 = scmp.ge.s32.totalorder %s11487_s21, 1 }
  0x14   : > { %s11623_s27 = scalar_select %p357_p1, %s11483_s20, %s359_s25  }
  0x15   : > { %p11625_p5 = por %p370_p2, %p369_p0  ;;  %p11629_p6 = por %p376_p4, %p375_p3 }
  0x16   : > { %15800 = sst [smem:[#allocation25_spill]] %s11623_s27  ;;  %p383_p8 = scmp.lt.s32.totalorder %s11487_s21, 3 }
  0x17   : > { %s15801_s28 = scalar_select %p11625_p5, 1, 0 }
  0x18   : > { %s15803_s29 = scalar_select %p11629_p6, 1, 0 }
  0x19   : > { %15802 = sst [smem:[#allocation26_spill]] %s15801_s28  ;;  %p15743_p9 = scmp.eq.s32.totalorder %s11608_s22, 0 }
  0x1a   : > { %15804 = sst [smem:[#allocation27_spill]] %s15803_s29  ;;  %p11636_p10 = pnand %p9633_p7, %p383_p8 }
  0x1b   : > { %s11489_s16 = smov [#allocation6]   ;;  %s11490_s25 = smov [#allocation9]  }
  0x1c   : > { %s15805_s30 = scalar_select %p11636_p10, 1, 0 }
  0x1d   : > { %p10735_p11 = pneg %p11636_p10  ;;  %s414_s17 = sshll.u32 %s11489_s16, 4  ;;  %s11642_s17 = int_to_ptr.vmem [resolvable:$true] %s414_s17 }
  0x1e   : > { %s442_s26 = sshll.u32 %s11490_s25, 4  ;;  %s11491_s27 = smov [#allocation3]   ;;  %s11650_s26 = int_to_ptr.vmem [resolvable:$true] %s442_s26 }
  0x1f   : > { %p11646_p12 = pnand %p15743_p9, %p10735_p11  ;;  %s11652_s20 = sshll.u32 %s11491_s27, 4  ;;  %s402_s20 = int_to_ptr.vmem [resolvable:$true] %s11652_s20 }
  0x20   : > { %s15807_s4 = sld [smem:[#allocation76_spill]] }
  0x21   : > { %p11662_p0 = pneg %p11646_p12 }
  0x26   : > { %s11241_s18 = scalar_lea.hbm %s15807_s4, 512 }
  0x27   : > { %p11242_p13 = scmp.ne.s32.totalorder %s15807_s4, %s11241_s18  ;;  %p11248_p3 = scmp.lt.u32.totalorder %s11241_s18, %s15807_s4 }
  0x29   : > { %p11244_p1 = pnand %p11662_p0, %p11242_p13 }
  0x2b   : > { %p11245_p2 = pneg %p11244_p1 }
  0x2d   : > { %p11250_p4 = pnand %p11248_p3, %p11245_p2 }
  0x2f   : > { %11253 = shalt.err (!%p11250_p4)
}
  0x30   : > { %s11254_s21 = scalar_lea.vmem %s11642_s17, 512  ;;  %p11262_p9 = scmp.lt.s32.totalorder %s11642_s17, %s11642_s17 }
  0x31   : > { %p11255_p7 = scmp.ne.s32.totalorder %s11642_s17, %s11254_s21  ;;  %p11263_p6 = scmp.lt.s32.totalorder %s11254_s21, %s11254_s21 }
  0x33   : > { %p11257_p8 = pnand %p11255_p7, %p11662_p0  ;;  %p11264_p13 = por %p11263_p6, %p11262_p9 }
  0x35   : > { %p11258_p11 = pneg %p11257_p8 }
  0x37   : > { %p11265_p1 = pnand %p11264_p13, %p11258_p11 }
  0x39   : > { %11268 = shalt.err (!%p11265_p1)
}
  0x3a   : > { %s11492_s24 = smov 128   ;;  %s11493_s18 = smov 8  }
  0x3b   : > { %10741 = dma.hbm_to_vmem [thread:$0]  (!%p11646_p12), %s15807_s4, 512, %s11642_s17, [#allocation7], %s11492_s24, %s11492_s24, %s11493_s18  }
  0x3c   : > { %s11269_s21 = scalar_lea.hbm %s15727_s7, 16 }
  0x3d   : > { %p11270_p6 = scmp.ne.s32.totalorder %s15727_s7, %s11269_s21  ;;  %p11276_p3 = scmp.lt.u32.totalorder %s11269_s21, %s15727_s7 }
  0x3f   : > { %p11272_p9 = pnand %p11270_p6, %p11662_p0 }
  0x41   : > { %p11273_p2 = pneg %p11272_p9 }
  0x43   : > { %p11278_p4 = pnand %p11276_p3, %p11273_p2 }
  0x45   : > { %11281 = shalt.err (!%p11278_p4)
}
  0x46   : > { %s11282_s17 = scalar_lea.vmem %s11650_s26, 16  ;;  %s11289_s14 = scalar_lea.vmem %s11650_s26, 32 }
  0x47   : > { %p11283_p7 = scmp.ne.s32.totalorder %s11650_s26, %s11282_s17  ;;  %p11290_p13 = scmp.lt.s32.totalorder %s11650_s26, %s11650_s26 }
  0x48   : > { %p11291_p1 = scmp.lt.s32.totalorder %s11289_s14, %s11282_s17 }
  0x49   : > { %p11285_p8 = pnand %p11283_p7, %p11662_p0 }
  0x4a   : > { %p11292_p6 = por %p11291_p1, %p11290_p13 }
  0x4b   : > { %p11286_p11 = pneg %p11285_p8 }
  0x4d   : > { %p11293_p9 = pnand %p11292_p6, %p11286_p11 }
  0x4f   : > { %11296 = shalt.err (!%p11293_p9)
}
  0x50   : > { %10747 = dma.hbm_to_vmem [thread:$0]  (!%p11646_p12), %s15727_s7, 16, %s11650_s26, [#allocation10]  }
  0x51   : > { %s11297_s16 = scalar_lea.hbm %s15723_s3, 512 }
  0x52   : > { %p11298_p2 = scmp.ne.s32.totalorder %s15723_s3, %s11297_s16  ;;  %p11304_p7 = scmp.lt.u32.totalorder %s11297_s16, %s15723_s3 }
  0x54   : > { %p11300_p3 = pnand %p11298_p2, %p11662_p0 }
  0x56   : > { %p11301_p4 = pneg %p11300_p3 }
  0x58   : > { %p11306_p8 = pnand %p11304_p7, %p11301_p4 }
  0x5a   : > { %11309 = shalt.err (!%p11306_p8)
}
  0x5b   : > { %s11310_s14 = scalar_lea.vmem %s402_s20, 512  ;;  %p11318_p6 = scmp.lt.s32.totalorder %s402_s20, %s402_s20 }
  0x5c   : > { %p11311_p11 = scmp.ne.s32.totalorder %s402_s20, %s11310_s14  ;;  %p11319_p9 = scmp.lt.s32.totalorder %s11310_s14, %s11310_s14 }
  0x5e   : > { %p11313_p13 = pnand %p11311_p11, %p11662_p0  ;;  %p11320_p5 = por %p11319_p9, %p11318_p6 }
  0x60   : > { %p11314_p1 = pneg %p11313_p13 }
  0x62   : > { %p11321_p10 = pnand %p11320_p5, %p11314_p1 }
  0x64   : > { %11324 = shalt.err (!%p11321_p10)
}
  0x65   : > { %10738 = dma.hbm_to_vmem [thread:$0]  (!%p11646_p12), %s15723_s3, 512, %s402_s20, [#allocation4], %s11492_s24, %s11492_s24, %s11493_s18  }
  0x66   : > { %s11494_s19 = smov [#allocation8]   ;;  %s11495_s29 = smov [#allocation11]  }
  0x67   : > { %s431_s28 = sshll.u32 %s11494_s19, 4  ;;  %s453_s16 = sshll.u32 %s11495_s29, 4  ;;  %s432_s28 = int_to_ptr.vmem [resolvable:$true] %s431_s28  ;;  %s454_s16 = int_to_ptr.vmem [resolvable:$true] %s453_s16 }
  0x68   : > { %s11325_s21 = scalar_lea.hbm %s15726_s6, 16 }
  0x69   : > { %p11326_p5 = scmp.ne.s32.totalorder %s15726_s6, %s11325_s21  ;;  %p11332_p3 = scmp.lt.u32.totalorder %s11325_s21, %s15726_s6 }
  0x6b   : > { %p11328_p10 = pnand %p11326_p5, %p11662_p0 }
  0x6d   : > { %p11329_p2 = pneg %p11328_p10 }
  0x6f   : > { %p11334_p4 = pnand %p11332_p3, %p11329_p2 }
  0x71   : > { %11337 = shalt.err (!%p11334_p4)
}
  0x72   : > { %s11338_s20 = scalar_lea.vmem %s432_s28, 16  ;;  %s11345_s12 = scalar_lea.vmem %s432_s28, 32 }
  0x73   : > { %p11339_p7 = scmp.ne.s32.totalorder %s432_s28, %s11338_s20  ;;  %p11346_p13 = scmp.lt.s32.totalorder %s432_s28, %s432_s28 }
  0x74   : > { %p11347_p1 = scmp.lt.s32.totalorder %s11345_s12, %s11338_s20 }
  0x75   : > { %p11341_p8 = pnand %p11339_p7, %p11662_p0 }
  0x76   : > { %p11348_p6 = por %p11347_p1, %p11346_p13 }
  0x77   : > { %p11342_p11 = pneg %p11341_p8 }
  0x79   : > { %p11349_p9 = pnand %p11348_p6, %p11342_p11 }
  0x7b   : > { %11352 = shalt.err (!%p11349_p9)
}
  0x7c   : > { %10744 = dma.hbm_to_vmem [thread:$0]  (!%p11646_p12), %s15726_s6, 16, %s432_s28, [#allocation7]  }
  0x7d   : > { %s11353_s27 = scalar_lea.hbm %s15728_s8, 16 }
  0x7e   : > { %p11354_p5 = scmp.ne.s32.totalorder %s15728_s8, %s11353_s27  ;;  %p11360_p3 = scmp.lt.u32.totalorder %s11353_s27, %s15728_s8 }
  0x80   : > { %p11356_p10 = pnand %p11354_p5, %p11662_p0 }
  0x82   : > { %p11357_p2 = pneg %p11356_p10 }
  0x84   : > { %p11362_p4 = pnand %p11360_p3, %p11357_p2 }
  0x86   : > { %11365 = shalt.err (!%p11362_p4)
}
  0x87   : > { %s11366_s20 = scalar_lea.vmem %s454_s16, 16  ;;  %s11373_s28 = scalar_lea.vmem %s454_s16, 32 }
  0x88   : > { %p11367_p7 = scmp.ne.s32.totalorder %s454_s16, %s11366_s20  ;;  %p11374_p13 = scmp.lt.s32.totalorder %s454_s16, %s454_s16 }
  0x89   : > { %p11375_p1 = scmp.lt.s32.totalorder %s11373_s28, %s11366_s20 }
  0x8a   : > { %p11369_p8 = pnand %p11367_p7, %p11662_p0 }
  0x8b   : > { %p11376_p6 = por %p11375_p1, %p11374_p13 }
  0x8c   : > { %p11370_p11 = pneg %p11369_p8 }
  0x8e   : > { %p11377_p9 = pnand %p11376_p6, %p11370_p11 }
  0x90   : > { %11380 = shalt.err (!%p11377_p9)
}
  0x91   : > { %10750 = dma.hbm_to_vmem [thread:$0]  (!%p11646_p12), %s15728_s8, 16, %s454_s16, [#allocation10]  }
  0x92   : > { %s11496_s29 = smov [#allocation12]   ;;  %s11381_s21 = scalar_lea.hbm %s15730_s10, 512 }
  0x93   : > { %s466_s4 = sshll.u32 %s11496_s29, 4  ;;  %p11382_p5 = scmp.ne.s32.totalorder %s15730_s10, %s11381_s21  ;;  %s467_s4 = int_to_ptr.vmem [resolvable:$true] %s466_s4 }
  0x94   : > { %p11388_p3 = scmp.lt.u32.totalorder %s11381_s21, %s15730_s10 }
  0x95   : > { %p11384_p10 = pnand %p11382_p5, %p11662_p0 }
  0x97   : > { %p11385_p2 = pneg %p11384_p10 }
  0x99   : > { %p11390_p4 = pnand %p11388_p3, %p11385_p2 }
  0x9b   : > { %11393 = shalt.err (!%p11390_p4)
}
  0x9c   : > { %s11394_s16 = scalar_lea.vmem %s467_s4, 512  ;;  %p11402_p13 = scmp.lt.s32.totalorder %s467_s4, %s467_s4 }
  0x9d   : > { %p11395_p7 = scmp.ne.s32.totalorder %s467_s4, %s11394_s16  ;;  %p11403_p1 = scmp.lt.s32.totalorder %s11394_s16, %s11394_s16 }
  0x9f   : > { %p11397_p8 = pnand %p11395_p7, %p11662_p0  ;;  %p11404_p6 = por %p11403_p1, %p11402_p13 }
  0xa1   : > { %p11398_p11 = pneg %p11397_p8 }
  0xa3   : > { %p11405_p9 = pnand %p11404_p6, %p11398_p11 }
  0xa5   : > { %11408 = shalt.err (!%p11405_p9)
}
  0xa6   : > { %10753 = dma.hbm_to_vmem [thread:$0]  (!%p11646_p12), %s15730_s10, 512, %s467_s4, [#allocation13], %s11492_s24, %s11492_s24, %s11493_s18  }
  0xa7   : > { %p15809_p5 = scmp.ne.s32.totalorder %s15805_s30, 0 }
  0xa9   : > { %502 = sbr.rel (%p15809_p5) target bundleno = 3540 (0xdd4), region = 80 }
  0xb0   : > { %p15810_p0 = scmp.eq.s32.totalorder %s11608_s22, 0 }
  0xb2   : > { %11454 = dma.done.wait (%p15810_p0), [#allocation4], 512   ;;  %p15811_p10 = pmov %p15810_p0 }
  0xb3   : > { %p15812_p2 = pmov %p15810_p0 }
  0xb4   : > { %11456 = vsyncadd (%p15811_p10), [#allocation4], 4294966784 }
  0xb5   : > { %11458 = dma.done.wait (%p15812_p2), [#allocation7], 528   ;;  %p15813_p3 = pmov %p15810_p0 }
  0xb6   : > { %p15814_p4 = pmov %p15810_p0 }
  0xb7   : > { %11460 = vsyncadd (%p15813_p3), [#allocation7], 4294966768 }
  0xb8   : > { %11462 = dma.done.wait (%p15814_p4), [#allocation10], 32   ;;  %p15815_p12 = pmov %p15810_p0 }
  0xb9   : > { %p15816_p7 = pmov %p15810_p0 }
  0xba   : > { %11464 = vsyncadd (%p15815_p12), [#allocation10], 4294967264 }
  0xbb   : > { %11466 = dma.done.wait (%p15816_p7), [#allocation13], 512   ;;  %p15817_p8 = pmov %p15810_p0 }
  0xbc   : > { %p570_p11 = scmp.lt.s32.totalorder %s11608_s22, 1  ;;  %v15752_v0 = vmov 0.0|0.0   ;;  %vm11498_vm0 = vmmov 0   ;;  %v15750_v1 = vmov 0.0   ;;  %vm727_vm1 = vcmask 261120   ;;  %v719_v2 = vld [vmem:[#allocation3] sm:$0xff] }
  0xbd   : > { %11468 = vsyncadd (%p15817_p8), [#allocation13], 4294966784  ;;  %10549 = vmatprep.subr.bf16.mxu0 %v15752_v0  ;;  %10329 = vmatprep.mubr.msk.f32.mxu0 %vm11498_vm0, %v15750_v1  ;;  %v720_v3 = vld [vmem:[#allocation3 + $0x8] sm:$0xff]  ;;  %v721_v4 = vld [vmem:[#allocation3 + $0x10] sm:$0xff]  ;;  %vm576_vm2 = vcmask 523264   ;;  %vm1748_vm3 = vcmask 1043456  }
  0xbe   : > { %s571_s15 = scalar_select %p570_p11, %s11608_s22, 1  ;;  %10555 = vmatprep.subr.bf16.mxu1 %v15752_v0  ;;  %10340 = vmatprep.mubr.msk.f32.mxu1 %vm11498_vm0, %v15750_v1  ;;  %v11820_v5 = vpack.c.bf16 %v720_v3, %v719_v2  ;;  %v722_v6 = vld [vmem:[#allocation3 + $0x18] sm:$0xff]  ;;  %vm1781_vm4 = vsmask.f32 3328  ;;  %vm634_vm5 = vcmask 520196   ;;  %vm583_vm8 = vcmask 519171  }
  0xbf   : > { %v11842_v14 = vpack.c.bf16 %v722_v6, %v721_v4  ;;  %s11501_s19 = smov 32   ;;  %s11502_s29 = smov 64   ;;  %vm635_vm6 = vsmask.f32 4352  ;;  %vm584_vm9 = vsmask.f32 7950 }
  0xc0   : > { %s9825_s30 = sshll.u32 %s571_s15, 8  ;;  %10551 = vmatpush3.bf16.msra.mxu0 %v11820_v5  ;;  %vm12243_vm7 = vmand %vm634_vm5, %vm635_vm6  ;;  %vm1531_vm11 = vcmask 261124   ;;  %vm1533_vm12 = vcmask 257024   ;;  %s11503_s16 = smov 96   ;;  %vm2743_vm13 = vcmask 785408   ;;  %vm5488_vm14 = vcmask 523268  }
  0xc1   : > { %s11818_s18 = scalar_lea.vmem %s15720_s0, %s9825_s30  ;;  %10552 = vmatprep.subr.bf16.mxu0 %v15752_v0  ;;  %vm12266_vm10 = vmand %vm583_vm8, %vm584_vm9  ;;  %vm5490_vm15 = vcmask 519168   ;;  %s15979_s17 = sld [smem:[#allocation77_spill]] }
  0xc2   : > { %v11823_v7 = vld [vmem:[%s11818_s18] sm:$0xff]  ;;  %v11826_v8 = vld [vmem:[%s11818_s18 + $0x8] sm:$0xff]  ;;  %v11829_v9 = vld [vmem:[%s11818_s18 + $0x10] sm:$0xff]  ;;  %s15980_s14 = sld [smem:[#allocation21_spill]]  ;;  %s15981_s12 = sld [smem:[#allocation78_spill]] }
  0xc3   : > { %v11832_v10 = vld [vmem:[%s11818_s18 + $0x18] sm:$0xff]  ;;  %v11835_v11 = vld [vmem:[%s11818_s18 + $0x20] sm:$0xff]  ;;  %v728_v12 = vsel %vm727_vm1, %v11823_v7, 0.0  ;;  %v729_v13 = vsel %vm727_vm1, %v11826_v8, 0.0  ;;  %v11845_v15 = vld [vmem:[%s11818_s18 + $0x28] sm:$0xff]  ;;  %v731_v19 = vsel %vm727_vm1, %v11829_v9, 0.0 }
  0xc4   : > { %v11848_v16 = vld [vmem:[%s11818_s18 + $0x30] sm:$0xff]  ;;  %v11851_v17 = vld [vmem:[%s11818_s18 + $0x38] sm:$0xff]  ;;  %v730_v18 = vadd.f32 %v729_v13, %v728_v12  ;;  %v11857_v20 = vld [vmem:[%s11818_s18 + $0x40] sm:$0xff]  ;;  %v733_v23 = vsel %vm727_vm1, %v11832_v10, 0.0  ;;  %v735_v24 = vsel %vm727_vm1, %v11835_v11, 0.0  ;;  %v737_v25 = vsel %vm727_vm1, %v11845_v15, 0.0  ;;  %10554 = vmatpush3.bf16.msra.mxu0 %v11842_v14 }
  0xc5   : > { %v11860_v21 = vld [vmem:[%s11818_s18 + $0x48] sm:$0xff]  ;;  %v11863_v22 = vld [vmem:[%s11818_s18 + $0x50] sm:$0xff]  ;;  %v11872_v26 = vld [vmem:[%s11818_s18 + $0x58] sm:$0xff]  ;;  %v739_v30 = vsel %vm727_vm1, %v11848_v16, 0.0  ;;  %v741_v31 = vsel %vm727_vm1, %v11851_v17, 0.0  ;;  %v743_v32 = vsel %vm727_vm1, %v11857_v20, 0.0  ;;  %10561 = vmatprep.subr.bf16.mxu0 %v15752_v0 }
  0xc6   : > { %v11875_v27 = vld [vmem:[%s11818_s18 + $0x60] sm:$0xff]  ;;  %v11878_v28 = vld [vmem:[%s11818_s18 + $0x68] sm:$0xff]  ;;  %v732_v29 = vadd.f32 %v731_v19, %v730_v18  ;;  %v11887_v33 = vld [vmem:[%s11818_s18 + $0x70] sm:$0xff]  ;;  %v745_v36 = vsel %vm727_vm1, %v11860_v21, 0.0  ;;  %v747_v37 = vsel %vm727_vm1, %v11863_v22, 0.0  ;;  %v749_v38 = vsel %vm727_vm1, %v11872_v26, 0.0 }
  0xc7   : > { %v11890_v34 = vld [vmem:[%s11818_s18 + $0x78] sm:$0xff]  ;;  %v11893_v35 = vld [vmem:[%s11818_s18 + $0x80] sm:$0xff]  ;;  %v11903_v39 = vld [vmem:[%s11818_s18 + $0x88] sm:$0xff]  ;;  %v751_v43 = vsel %vm727_vm1, %v11875_v27, 0.0  ;;  %v753_v44 = vsel %vm727_vm1, %v11878_v28, 0.0  ;;  %v755_v45 = vsel %vm727_vm1, %v11887_v33, 0.0 }
  0xc8   : > { %15818 = vst [vmem:[#allocation28_spill] sm:$0xff] %v11893_v35  ;;  %15819 = vst [vmem:[#allocation29_spill] sm:$0xff] %v11903_v39  ;;  %v11906_v40 = vld [vmem:[%s11818_s18 + $0x90] sm:$0xff]  ;;  %v11909_v41 = vld [vmem:[%s11818_s18 + $0x98] sm:$0xff]  ;;  %v734_v42 = vadd.f32 %v733_v23, %v732_v29  ;;  %v757_v49 = vsel %vm727_vm1, %v11890_v34, 0.0  ;;  %v759_v50 = vsel %vm727_vm1, %v11893_v35, 0.0 }
  0xc9   : > { %15820 = vst [vmem:[#allocation30_spill] sm:$0xff] %v11906_v40  ;;  %15821 = vst [vmem:[#allocation31_spill] sm:$0xff] %v11909_v41  ;;  %v11918_v46 = vld [vmem:[%s11818_s18 + $0xa0] sm:$0xff]  ;;  %v11921_v47 = vld [vmem:[%s11818_s18 + $0xa8] sm:$0xff]  ;;  %v761_v51 = vsel %vm727_vm1, %v11903_v39, 0.0  ;;  %v763_v56 = vsel %vm727_vm1, %v11906_v40, 0.0 }
  0xca   : > { %15822 = vst [vmem:[#allocation32_spill] sm:$0xff] %v11918_v46  ;;  %15823 = vst [vmem:[#allocation33_spill] sm:$0xff] %v11921_v47  ;;  %v11924_v48 = vld [vmem:[%s11818_s18 + $0xb0] sm:$0xff]  ;;  %v11934_v52 = vld [vmem:[%s11818_s18 + $0xb8] sm:$0xff]  ;;  %v736_v55 = vadd.f32 %v735_v24, %v734_v42  ;;  %v765_v57 = vsel %vm727_vm1, %v11909_v41, 0.0  ;;  %v767_v58 = vsel %vm727_vm1, %v11918_v46, 0.0 }
  0xcb   : > { %15824 = vst [vmem:[#allocation34_spill] sm:$0xff] %v11924_v48  ;;  %15825 = vst [vmem:[#allocation35_spill] sm:$0xff] %v11934_v52  ;;  %v11937_v53 = vld [vmem:[%s11818_s18 + $0xc0] sm:$0xff]  ;;  %v11940_v54 = vld [vmem:[%s11818_s18 + $0xc8] sm:$0xff]  ;;  %v769_v62 = vsel %vm727_vm1, %v11921_v47, 0.0  ;;  %v771_v63 = vsel %vm727_vm1, %v11924_v48, 0.0 }
  0xcc   : > { %15826 = vst [vmem:[#allocation36_spill] sm:$0xff] %v11937_v53  ;;  %15827 = vst [vmem:[#allocation37_spill] sm:$0xff] %v11940_v54  ;;  %v11949_v59 = vld [vmem:[%s11818_s18 + $0xd0] sm:$0xff]  ;;  %v11952_v60 = vld [vmem:[%s11818_s18 + $0xd8] sm:$0xff]  ;;  %v773_v2 = vsel %vm727_vm1, %v11934_v52, 0.0  ;;  %v738_v12 = vadd.f32 %v737_v25, %v736_v55  ;;  %v775_v13 = vsel %vm727_vm1, %v11937_v53, 0.0 }
  0xcd   : > { %15828 = vst [vmem:[#allocation38_spill] sm:$0xff] %v11949_v59  ;;  %15829 = vst [vmem:[#allocation39_spill] sm:$0xff] %v11952_v60  ;;  %v11955_v61 = vld [vmem:[%s11818_s18 + $0xe0] sm:$0xff]  ;;  %v11964_v3 = vld [vmem:[%s11818_s18 + $0xe8] sm:$0xff]  ;;  %v777_v18 = vsel %vm727_vm1, %v11940_v54, 0.0  ;;  %v779_v19 = vsel %vm727_vm1, %v11949_v59, 0.0 }
  0xce   : > { %15830 = vst [vmem:[#allocation40_spill] sm:$0xff] %v11955_v61  ;;  %15831 = vst [vmem:[#allocation41_spill] sm:$0xff] %v11964_v3  ;;  %v11967_v4 = vld [vmem:[%s11818_s18 + $0xf0] sm:$0xff]  ;;  %v11970_v6 = vld [vmem:[%s11818_s18 + $0xf8] sm:$0xff]  ;;  %v781_v23 = vsel %vm727_vm1, %v11952_v60, 0.0  ;;  %v783_v24 = vsel %vm727_vm1, %v11955_v61, 0.0  ;;  %v740_v55 = vadd.f32 %v739_v30, %v738_v12 }
  0xcf   : > { %15832 = vst [vmem:[#allocation42_spill] sm:$0xff] %v11967_v4  ;;  %15833 = vst [vmem:[#allocation43_spill] sm:$0xff] %v11970_v6  ;;  %v785_v29 = vsel %vm727_vm1, %v11964_v3, 0.0  ;;  %v787_v25 = vsel %vm727_vm1, %v11967_v4, 0.0  ;;  %v723_v42 = vld [vmem:[#allocation6] sm:$0xff]  ;;  %v789_v1 = vsel %vm727_vm1, %v11970_v6, 0.0 }
  0xd0   : > { %v724_v0 = vld [vmem:[#allocation6 + $0x8] sm:$0xff]  ;;  %v742_v59 = vadd.f32 %v741_v31, %v740_v55  ;;  %v15834_v60 = vmov 0.0|0.0   ;;  %s567_s26 = sand.u32 1, %s15980_s14   ;;  %s15982_s30 = sld [smem:[#allocation26_spill]] }
  0xd1   : > { %v10556_v54 = vpack.c.bf16 %v724_v0, %v723_v42  ;;  %s9648_s20 = sshll.u32 %s567_s26, 8  ;;  %s9826_s23 = sshll.u32 %s11608_s22, 12 }
  0xd2   : > { %v744_v53 = vadd.f32 %v743_v32, %v742_v59  ;;  %s15512_s15 = scalar_lea.vmem [#allocation14], %s9648_s20  ;;  %s15983_s27 = sld [smem:[#allocation79_spill]] }
  0xd3   : > { %10557 = vmatpush3.bf16.msra.mxu1 %v10556_v54  ;;  %s9510_s24 = sshll.u32 %s15512_s15, 4  ;;  %s15679_s22 = scalar_lea.sflag [#allocation5], %s567_s26  ;;  %s15670_s24 = int_to_ptr.vmem [resolvable:$true] %s9510_s24 }
  0xd4   : > { %10558 = vmatprep.subr.bf16.mxu1 %v15834_v60  ;;  %v746_v52 = vadd.f32 %v745_v36, %v744_v53 }
  0xd6   : > { %v748_v61 = vadd.f32 %v747_v37, %v746_v52  ;;  %p15984_p1 = scmp.ne.s32.totalorder %s15982_s30, 0 }
  0xd8   : > { %v750_v48 = vadd.f32 %v749_v38, %v748_v61  ;;  %s15668_s21 = scalar_lea.hbm %s15983_s27, %s9826_s23 }
  0xda   : > { %v752_v47 = vadd.f32 %v751_v43, %v750_v48 }
  0xdc   : > { %v754_v3 = vadd.f32 %v753_v44, %v752_v47 }
  0xde   : > { %v756_v46 = vadd.f32 %v755_v45, %v754_v3 }
  0xe0   : > { %v758_v41 = vadd.f32 %v757_v49, %v756_v46 }
  0xe2   : > { %v760_v4 = vadd.f32 %v759_v50, %v758_v41 }
  0xe4   : > { %v762_v40 = vadd.f32 %v761_v51, %v760_v4 }
  0xe6   : > { %v764_v30 = vadd.f32 %v763_v56, %v762_v40  ;;  %v726_v40 = vld [vmem:[#allocation6 + $0x18] sm:$0xff] }
  0xe8   : > { %v766_v12 = vadd.f32 %v765_v57, %v764_v30 }
  0xea   : > { %v768_v39 = vadd.f32 %v767_v58, %v766_v12 }
  0xec   : > { %v770_v6 = vadd.f32 %v769_v62, %v768_v39  ;;  %v15835_v39 = vmov 0.0  }
  0xee   : > { %v772_v35 = vadd.f32 %v771_v63, %v770_v6 }
  0xf0   : > { %v774_v0 = vadd.f32 %v773_v2, %v772_v35  ;;  %v725_v35 = vld [vmem:[#allocation6 + $0x10] sm:$0xff] }
  0xf2   : > { %v776_v31 = vadd.f32 %v775_v13, %v774_v0 }
  0xf4   : > { %v778_v42 = vadd.f32 %v777_v18, %v776_v31 }
  0xf6   : > { %v780_v32 = vadd.f32 %v779_v19, %v778_v42 }
  0xf8   : > { %v782_v59 = vadd.f32 %v781_v23, %v780_v32 }
  0xfa   : > { %v784_v55 = vadd.f32 %v783_v24, %v782_v59 }
  0xfc   : > { %v786_v36 = vadd.f32 %v785_v29, %v784_v55 }
  0xfe   : > { %v788_v37 = vadd.f32 %v787_v25, %v786_v36 }
 0x100   : > { %v790_v38 = vadd.f32 %v789_v1, %v788_v37  ;;  %v10559_v1 = vpack.c.bf16 %v726_v40, %v725_v35 }
 0x102   : > { %v791_v43 = vrot.slane %v790_v38, 4  ;;  %10560 = vmatpush3.bf16.msra.mxu1 %v10559_v1 }
 0x103   : > { %10567 = vmatprep.subr.bf16.mxu1 %v15834_v60 }
 0x104   : > { %v792_v44 = vadd.f32 %v791_v43, %v790_v38 }
 0x106   : > { %v793_v45 = vrot.slane %v792_v44, 2 }
 0x108   : > { %v794_v46 = vadd.f32 %v793_v45, %v792_v44 }
 0x10a   : > { %v795_v41 = vrot.slane %v794_v46, 1 }
 0x10c   : > { %v796_v47 = vadd.f32 %v795_v41, %v794_v46 }
 0x10e   : > { %10330 = vmatmul.mubr.msk.f32.vlgmr.msra.gmra.mrb[0].mxu0 %vm727_vm1, %v796_v47 }
 0x10f   : > { %10563 = vmatpush3.bf16.msra.mxu0 %v11820_v5  ;;  %10351 = vmatprep.mubr.msk.f32.mxu0 %vm11498_vm0, %v15835_v39  ;;  %v945_v5 = vlaneseq }
 0x110   : > { %10564 = vmatprep.subr.bf16.mxu0 %v15834_v60 }
 0x113   : > { %10566 = vmatpush3.bf16.msra.mxu0 %v11842_v14  ;;  %v946_v14 = vshrl.u32 %v945_v5, 7 }
 0x115   : > { %v12000_v53 = vsub.s32 0, %v946_v14 }
 0x117   : > { %15836 = vst [vmem:[#allocation44_spill] sm:$0xff] %v12000_v53 }
 0x1e1   : > { %v866_v48 = vpop.f32.mrb[0].mxu0 }
 0x1e2   : > { %v871_v49 = vmul.f32 0.00390625, %v866_v48  ;;  %v10331_v50 = vpop.f32.mrb[1].mxu0 }
 0x1e3   : > { %v15837_v50 = vld [vmem:[#allocation28_spill] sm:$0xff] }
 0x1e4   : > { %10341 = vmatmul.mubr.msk.f32.vlgmr.msra.gmra.mrb[0].mxu1 %vm727_vm1, %v871_v49 }
 0x1e5   : > { %10569 = vmatpush3.bf16.msra.mxu1 %v10556_v54  ;;  %10362 = vmatprep.mubr.msk.f32.mxu1 %vm11498_vm0, %v15835_v39 }
 0x1e6   : > { %10570 = vmatprep.subr.bf16.mxu1 %v15834_v60 }
 0x1e9   : > { %10572 = vmatpush3.bf16.msra.mxu1 %v10559_v1 }
 0x2b7   : > { %v941_v51 = vpop.f32.mrb[0].mxu1 }
 0x2b8   : > { %v10342_v52 = vpop.f32.mrb[1].mxu1  ;;  %v12003_v56 = vrot.slane %v941_v51, %v12000_v53 }
 0x2b9   : > { %v15838_v52 = vld [vmem:[#allocation29_spill] sm:$0xff] }
 0x2ba   : > { %v12007_v57 = vsub.f32 %v11823_v7, %v12003_v56  ;;  %v12011_v54 = vsub.f32 %v11826_v8, %v12003_v56  ;;  %v12015_v58 = vsub.f32 %v11829_v9, %v12003_v56  ;;  %v12019_v61 = vsub.f32 %v11832_v10, %v12003_v56 }
 0x2bb   : > { %v12027_v7 = vsub.f32 %v11835_v11, %v12003_v56  ;;  %v12033_v9 = vsub.f32 %v11845_v15, %v12003_v56  ;;  %v12041_v6 = vsub.f32 %v11848_v16, %v12003_v56  ;;  %v12048_v15 = vsub.f32 %v11851_v17, %v12003_v56 }
 0x2bc   : > { %v981_v62 = vmul.f32 %v12007_v57, %v12007_v57  ;;  %v982_v63 = vmul.f32 %v12011_v54, %v12011_v54  ;;  %v983_v8 = vmul.f32 %v12015_v58, %v12015_v58  ;;  %v984_v10 = vmul.f32 %v12019_v61, %v12019_v61 }
 0x2bd   : > { %v985_v11 = vmul.f32 %v12027_v7, %v12027_v7  ;;  %v986_v19 = vmul.f32 %v12033_v9, %v12033_v9  ;;  %v12055_v16 = vsub.f32 %v11857_v20, %v12003_v56  ;;  %v987_v29 = vmul.f32 %v12041_v6, %v12041_v6 }
 0x2be   : > { %v1013_v2 = vsel %vm727_vm1, %v981_v62, 0.0  ;;  %v1014_v3 = vsel %vm727_vm1, %v982_v63, 0.0  ;;  %v1016_v13 = vsel %vm727_vm1, %v983_v8, 0.0  ;;  %v1018_v23 = vsel %vm727_vm1, %v984_v10, 0.0  ;;  %v15839_v10 = vld [vmem:[#allocation30_spill] sm:$0xff] }
 0x2bf   : > { %v1015_v4 = vadd.f32 %v1014_v3, %v1013_v2  ;;  %v1020_v25 = vsel %vm727_vm1, %v985_v11, 0.0  ;;  %v12062_v17 = vsub.f32 %v11860_v21, %v12003_v56  ;;  %v988_v12 = vmul.f32 %v12048_v15, %v12048_v15 }
 0x2c0   : > { %v1022_v0 = vsel %vm727_vm1, %v986_v19, 0.0  ;;  %v12069_v20 = vsub.f32 %v11863_v22, %v12003_v56  ;;  %v989_v42 = vmul.f32 %v12055_v16, %v12055_v16  ;;  %v1024_v32 = vsel %vm727_vm1, %v987_v29, 0.0  ;;  %v15841_v29 = vld [vmem:[#allocation32_spill] sm:$0xff] }
 0x2c1   : > { %v1017_v18 = vadd.f32 %v1016_v13, %v1015_v4  ;;  %v12076_v21 = vsub.f32 %v11872_v26, %v12003_v56  ;;  %v990_v55 = vmul.f32 %v12062_v17, %v12062_v17  ;;  %v1026_v36 = vsel %vm727_vm1, %v988_v12, 0.0  ;;  %v15840_v13 = vld [vmem:[#allocation31_spill] sm:$0xff] }
 0x2c2   : > { %v12083_v22 = vsub.f32 %v11875_v27, %v12003_v56  ;;  %v991_v38 = vmul.f32 %v12069_v20, %v12069_v20  ;;  %v1028_v43 = vsel %vm727_vm1, %v989_v42, 0.0  ;;  %v12090_v26 = vsub.f32 %v11878_v28, %v12003_v56 }
 0x2c3   : > { %v1019_v24 = vadd.f32 %v1018_v23, %v1017_v18  ;;  %v992_v45 = vmul.f32 %v12076_v21, %v12076_v21  ;;  %v1030_v46 = vsel %vm727_vm1, %v990_v55, 0.0  ;;  %v12097_v27 = vsub.f32 %v11887_v33, %v12003_v56 }
 0x2c4   : > { %v993_v47 = vmul.f32 %v12083_v22, %v12083_v22  ;;  %v1032_v35 = vsel %vm727_vm1, %v991_v38, 0.0  ;;  %v12104_v28 = vsub.f32 %v11890_v34, %v12003_v56  ;;  %v994_v1 = vmul.f32 %v12090_v26, %v12090_v26 }
 0x2c5   : > { %v1021_v30 = vadd.f32 %v1020_v25, %v1019_v24  ;;  %v1034_v48 = vsel %vm727_vm1, %v992_v45, 0.0  ;;  %v12111_v33 = vsub.f32 %v15837_v50, %v12003_v56  ;;  %v995_v5 = vmul.f32 %v12097_v27, %v12097_v27  ;;  %v15844_v45 = vld [vmem:[#allocation35_spill] sm:$0xff] }
 0x2c6   : > { %v1036_v14 = vsel %vm727_vm1, %v993_v47, 0.0  ;;  %v12118_v34 = vsub.f32 %v15838_v52, %v12003_v56  ;;  %v996_v62 = vmul.f32 %v12104_v28, %v12104_v28  ;;  %v1038_v63 = vsel %vm727_vm1, %v994_v1, 0.0 }
 0x2c7   : > { %v1023_v31 = vadd.f32 %v1022_v0, %v1021_v30  ;;  %v12125_v2 = vsub.f32 %v15839_v10, %v12003_v56  ;;  %v997_v3 = vmul.f32 %v12111_v33, %v12111_v33  ;;  %v1040_v4 = vsel %vm727_vm1, %v995_v5, 0.0  ;;  %v15846_v5 = vld [vmem:[#allocation37_spill] sm:$0xff] }
 0x2c8   : > { %v12132_v18 = vsub.f32 %v15840_v13, %v12003_v56  ;;  %v998_v19 = vmul.f32 %v12118_v34, %v12118_v34  ;;  %v1042_v23 = vsel %vm727_vm1, %v996_v62, 0.0  ;;  %v12139_v25 = vsub.f32 %v15841_v29, %v12003_v56  ;;  %v15849_v29 = vld [vmem:[#allocation40_spill] sm:$0xff] }
 0x2c9   : > { %v1025_v59 = vadd.f32 %v1024_v32, %v1023_v31  ;;  %v999_v30 = vmul.f32 %v12125_v2, %v12125_v2  ;;  %v1044_v12 = vsel %vm727_vm1, %v997_v3, 0.0  ;;  %v15842_v31 = vld [vmem:[#allocation33_spill] sm:$0xff] }
 0x2ca   : > { %v12146_v42 = vsub.f32 %v15842_v31, %v12003_v56  ;;  %v1000_v32 = vmul.f32 %v12132_v18, %v12132_v18  ;;  %v1001_v38 = vmul.f32 %v12139_v25, %v12139_v25 }
 0x2cb   : > { %v1027_v37 = vadd.f32 %v1026_v36, %v1025_v59  ;;  %v1046_v59 = vsel %vm727_vm1, %v998_v19, 0.0  ;;  %v15843_v36 = vld [vmem:[#allocation34_spill] sm:$0xff] }
 0x2cc   : > { %v1050_v47 = vsel %vm727_vm1, %v1000_v32, 0.0  ;;  %v15850_v32 = vld [vmem:[#allocation41_spill] sm:$0xff] }
 0x2cd   : > { %v1029_v44 = vadd.f32 %v1028_v43, %v1027_v37  ;;  %v12153_v37 = vsub.f32 %v15843_v36, %v12003_v56  ;;  %v1048_v43 = vsel %vm727_vm1, %v999_v30, 0.0  ;;  %v12195_v30 = vsub.f32 %v15849_v29, %v12003_v56 }
 0x2cf   : > { %v1031_v41 = vadd.f32 %v1030_v46, %v1029_v44  ;;  %v12160_v46 = vsub.f32 %v15844_v45, %v12003_v56  ;;  %v1009_v45 = vmul.f32 %v12195_v30, %v12195_v30 }
 0x2d1   : > { %v1033_v40 = vadd.f32 %v1032_v35, %v1031_v41  ;;  %v1002_v41 = vmul.f32 %v12146_v42, %v12146_v42 }
 0x2d3   : > { %v1035_v49 = vadd.f32 %v1034_v48, %v1033_v40  ;;  %v15845_v40 = vld [vmem:[#allocation36_spill] sm:$0xff]  ;;  %v1003_v48 = vmul.f32 %v12153_v37, %v12153_v37  ;;  %v1054_v52 = vsel %vm727_vm1, %v1002_v41, 0.0 }
 0x2d4   : > { %v12167_v1 = vsub.f32 %v15845_v40, %v12003_v56 }
 0x2d5   : > { %v1037_v51 = vadd.f32 %v1036_v14, %v1035_v49  ;;  %v1052_v49 = vsel %vm727_vm1, %v1001_v38, 0.0  ;;  %v12174_v14 = vsub.f32 %v15846_v5, %v12003_v56  ;;  %v1056_v3 = vsel %vm727_vm1, %v1003_v48, 0.0 }
 0x2d6   : > { %v1005_v10 = vmul.f32 %v12167_v1, %v12167_v1 }
 0x2d7   : > { %v1039_v8 = vadd.f32 %v1038_v63, %v1037_v51  ;;  %v1004_v51 = vmul.f32 %v12160_v46, %v12160_v46  ;;  %v15847_v63 = vld [vmem:[#allocation38_spill] sm:$0xff]  ;;  %v1006_v19 = vmul.f32 %v12174_v14, %v12174_v14 }
 0x2d9   : > { %v1041_v11 = vadd.f32 %v1040_v4, %v1039_v8  ;;  %v12181_v8 = vsub.f32 %v15847_v63, %v12003_v56  ;;  %v1062_v36 = vsel %vm727_vm1, %v1006_v19, 0.0 }
 0x2db   : > { %v1043_v24 = vadd.f32 %v1042_v23, %v1041_v11  ;;  %v15848_v11 = vld [vmem:[#allocation39_spill] sm:$0xff]  ;;  %v1058_v23 = vsel %vm727_vm1, %v1004_v51, 0.0  ;;  %v1068_v51 = vsel %vm727_vm1, %v1009_v45, 0.0  ;;  %v11500_v45 = vmov 0  }
 0x2dc   : > { %v12188_v13 = vsub.f32 %v15848_v11, %v12003_v56  ;;  %577 = vst.msk [vmem:[#allocation2] sm:$0xff] %vm576_vm2, %v11500_v45  ;;  %578 = vst.msk [vmem:[#allocation2 + $0x8] sm:$0xff] %vm576_vm2, %v11500_v45 }
 0x2dd   : > { %v1045_v0 = vadd.f32 %v1044_v12, %v1043_v24  ;;  %v1007_v12 = vmul.f32 %v12181_v8, %v12181_v8  ;;  %580 = vst.msk [vmem:[#allocation2 + $0x110] sm:$0xff] %vm576_vm2, %v11500_v45  ;;  %581 = vst.msk [vmem:[#allocation2 + $0x118] sm:$0xff] %vm576_vm2, %v11500_v45  ;;  %v652_v45 = vld [vmem:[#allocation2 + $0x68] sm:$0x10] }
 0x2df   : > { %v1047_v55 = vadd.f32 %v1046_v59, %v1045_v0  ;;  %v1060_v0 = vsel %vm727_vm1, %v1005_v10, 0.0  ;;  %v12202_v59 = vsub.f32 %v15850_v32, %v12003_v56  ;;  %v1064_v41 = vsel %vm727_vm1, %v1007_v12, 0.0 }
 0x2e1   : > { %v1049_v44 = vadd.f32 %v1048_v43, %v1047_v55  ;;  %v1008_v55 = vmul.f32 %v12188_v13, %v12188_v13  ;;  %v15851_v43 = vld [vmem:[#allocation42_spill] sm:$0xff]  ;;  %v1010_v48 = vmul.f32 %v12202_v59, %v12202_v59 }
 0x2e3   : > { %v1051_v35 = vadd.f32 %v1050_v47, %v1049_v44  ;;  %v12209_v44 = vsub.f32 %v15851_v43, %v12003_v56  ;;  %v1070_v63 = vsel %vm727_vm1, %v1010_v48, 0.0 }
 0x2e5   : > { %v1053_v50 = vadd.f32 %v1052_v49, %v1051_v35  ;;  %v15852_v35 = vld [vmem:[#allocation43_spill] sm:$0xff]  ;;  %v1066_v49 = vsel %vm727_vm1, %v1008_v55, 0.0  ;;  %v1011_v5 = vmul.f32 %v12209_v44, %v12209_v44 }
 0x2e6   : > { %v12216_v40 = vsub.f32 %v15852_v35, %v12003_v56  ;;  %v1573_v35 = vld [vmem:[#allocation2 + $0x8] sm:$0xf] }
 0x2e7   : > { %v1055_v62 = vadd.f32 %v1054_v52, %v1053_v50  ;;  %v1072_v56 = vsel %vm727_vm1, %v1011_v5, 0.0 }
 0x2e9   : > { %v1057_v4 = vadd.f32 %v1056_v3, %v1055_v62  ;;  %v1012_v62 = vmul.f32 %v12216_v40, %v12216_v40 }
 0x2eb   : > { %v1059_v24 = vadd.f32 %v1058_v23, %v1057_v4  ;;  %v1074_v4 = vsel %vm727_vm1, %v1012_v62, 0.0 }
 0x2ed   : > { %v1061_v31 = vadd.f32 %v1060_v0, %v1059_v24 }
 0x2ef   : > { %v1063_v38 = vadd.f32 %v1062_v36, %v1061_v31 }
 0x2f1   : > { %v1065_v47 = vadd.f32 %v1064_v41, %v1063_v38  ;;  %v1724_v41 = vld [vmem:[#allocation2] sm:$0xf0] }
 0x2f2   : > { %v1783_v48 = vshrl.u32 %v1724_v41, 16 }
 0x2f3   : > { %v1067_v50 = vadd.f32 %v1066_v49, %v1065_v47  ;;  %v1773_v47 = vld [vmem:[#allocation2 + $0x8] sm:$0x1f]  ;;  %v1786_v49 = vshll.u32 %v1724_v41, 16 }
 0x2f4   : > { %v1794_v5 = vshll.u32 %v1773_v47, 16  ;;  %v1785_v62 = vrot.slane %v1783_v48, 4  ;;  %v658_v48 = vld [vmem:[#allocation2 + $0x88] sm:$0x10] }
 0x2f5   : > { %v1069_v52 = vadd.f32 %v1068_v51, %v1067_v50  ;;  %v1791_v50 = vshrl.u32 %v1773_v47, 16  ;;  %v1749_v51 = vrot.slane %v1724_v41, 4  ;;  %v653_v41 = vsel %vm12243_vm7, 0, %v652_v45  ;;  %v655_v47 = vld [vmem:[#allocation2 + $0x78] sm:$0x10] }
 0x2f6   : > { %654 = vst [vmem:[#allocation2 + $0x68] sm:$0x10] %v653_v41 }
 0x2f7   : > { %v1071_v10 = vadd.f32 %v1070_v63, %v1069_v52  ;;  %v1750_v52 = vrot.slane %v1573_v35, 4  ;;  %v1788_v63 = vrot.slane %v1786_v49, 5  ;;  %v656_v35 = vsel %vm12243_vm7, 0, %v655_v47 }
 0x2f8   : > { %657 = vst [vmem:[#allocation2 + $0x78] sm:$0x10] %v656_v35  ;;  %v659_v49 = vsel %vm12243_vm7, 0, %v658_v48 }
 0x2f9   : > { %v1073_v3 = vadd.f32 %v1072_v56, %v1071_v10  ;;  %v1793_v10 = vrot.slane %v1791_v50, 4  ;;  %v1796_v56 = vrot.slane %v1794_v5, 5  ;;  %v661_v50 = vld [vmem:[#allocation2 + $0x98] sm:$0x10]  ;;  %660 = vst [vmem:[#allocation2 + $0x88] sm:$0x10] %v659_v49 }
 0x2fa   : > { %v662_v5 = vsel %vm12243_vm7, 0, %v661_v50 }
 0x2fb   : > { %v1075_v11 = vadd.f32 %v1074_v4, %v1073_v3  ;;  %v1751_v3 = vsel %vm1748_vm3, %v1749_v51, %v1750_v52  ;;  %v1789_v4 = vor.u32 %v1788_v63, %v1785_v62  ;;  %663 = vst [vmem:[#allocation2 + $0x98] sm:$0x10] %v662_v5  ;;  %v589_v52 = vld [vmem:[#allocation2 + $0x20] sm:$0x8]  ;;  %v637_v62 = vld [vmem:[#allocation2 + $0x18] sm:$0x10] }
 0x2fc   : > { %2607 = vrot.lane.b32.xlu0 %v1751_v3, %s11501_s19  ;;  %v590_v63 = vsel %vm12266_vm10, 0, %v589_v52 }
 0x2fd   : > { %v1076_v19 = vrot.slane %v1075_v11, 4  ;;  %591 = vst [vmem:[#allocation2 + $0x20] sm:$0x8] %v590_v63 }
 0x2ff   : > { %v1077_v23 = vadd.f32 %v1076_v19, %v1075_v11  ;;  %v1797_v11 = vor.u32 %v1796_v56, %v1793_v10  ;;  %v638_v10 = vsel %vm12243_vm7, 0, %v637_v62  ;;  %v586_v56 = vld [vmem:[#allocation2 + $0x10] sm:$0x8] }
 0x300   : > { %639 = vst [vmem:[#allocation2 + $0x18] sm:$0x10] %v638_v10  ;;  %v587_v3 = vsel %vm12266_vm10, 0, %v586_v56 }
 0x301   : > { %v1078_v24 = vrot.slane %v1077_v23, 2  ;;  %v1798_v19 = vsel %vm1781_vm4, %v1789_v4, %v1797_v11  ;;  %588 = vst [vmem:[#allocation2 + $0x10] sm:$0x8] %v587_v3  ;;  %v592_v4 = vld [vmem:[#allocation2 + $0x30] sm:$0x8] }
 0x302   : > { %2623 = vrot.lane.b32.xlu1 %v1798_v19, %s11502_s29  ;;  %v593_v11 = vsel %vm12266_vm10, 0, %v592_v4  ;;  %v717_v19 = vld [vmem:[%s15721_s1] sm:$0x1] }
 0x303   : > { %v1079_v29 = vadd.f32 %v1078_v24, %v1077_v23  ;;  %v10820_v23 = vld [vmem:[%s15725_s5 + $0x80] sm:$0xff]   ;;  %594 = vst [vmem:[#allocation2 + $0x30] sm:$0x8] %v593_v11 }
 0x304   : > { %10365 = vmatprep.subr.bf16.mxu1 %v10820_v23 }
 0x305   : > { %v1080_v12 = vrot.slane %v1079_v29, 1 }
 0x307   : > { %v1081_v0 = vadd.f32 %v1080_v12, %v1079_v29  ;;  %v640_v29 = vld [vmem:[#allocation2 + $0x28] sm:$0x10] }
 0x308   : > { %v641_v12 = vsel %vm12243_vm7, 0, %v640_v29 }
 0x309   : > { %10352 = vmatmul.mubr.msk.f32.vlgmr.msra.gmra.mrb[2].mxu0 %vm727_vm1, %v1081_v0  ;;  %642 = vst [vmem:[#allocation2 + $0x28] sm:$0x10] %v641_v12  ;;  %v643_v0 = vld [vmem:[#allocation2 + $0x38] sm:$0x10] }
 0x3dc   : > { %v1151_v31 = vpop.f32.mrb[2].mxu0 }
 0x3dd   : > { %v1155_v32 = vmul.f32 0.00390625, %v1151_v31  ;;  %v10353_v55 = vpop.f32.mrb[3].mxu0  ;;  %v644_v31 = vsel %vm12243_vm7, 0, %v643_v0 }
 0x3de   : > { %645 = vst [vmem:[#allocation2 + $0x38] sm:$0x10] %v644_v31 }
 0x3df   : > { %v1156_v36 = vmax.f32 %v1155_v32, 0.0  ;;  %v646_v32 = vld [vmem:[#allocation2 + $0x48] sm:$0x10] }
 0x3e0   : > { %v647_v55 = vsel %vm12243_vm7, 0, %v646_v32  ;;  %v12289_v32 = vld [vmem:[%s15722_s2] ss:$0 sm:$0xff] }
 0x3e1   : > { %v1157_v38 = vadd.f32 1e-05, %v1156_v36  ;;  %648 = vst [vmem:[#allocation2 + $0x48] sm:$0x10] %v647_v55  ;;  %v10821_v36 = vld [vmem:[%s15725_s5 + $0x88] sm:$0xff]  }
 0x3e3   : > { %10912 = vrsqrt.f32 %v1157_v38  ;;  %v649_v38 = vld [vmem:[#allocation2 + $0x58] sm:$0x10] }
 0x3ed   : > { %v10913_v43 = vpop.eup %10912 }
 0x3ee   : > { %10363 = vmatmul.mubr.msk.f32.vlgmr.msra.gmra.mrb[2].mxu1 %vm727_vm1, %v10913_v43  ;;  %v650_v43 = vsel %vm12243_vm7, 0, %v649_v38 }
 0x3ef   : > { %10366 = vmatpush3.bf16.msra.mxu1 %v10820_v23  ;;  %651 = vst [vmem:[#allocation2 + $0x58] sm:$0x10] %v650_v43 }
 0x3f0   : > { %10367 = vmatprep.subr.bf16.mxu1 %v10821_v36 }
 0x3f3   : > { %10368 = vmatpush3.bf16.msra.mxu1 %v10821_v36 }
 0x4c1   : > { %v1228_v23 = vpop.f32.mrb[2].mxu1 }
 0x4c2   : > { %v1232_v29 = vmul.f32 %v1228_v23, %v717_v19  ;;  %v10364_v12 = vpop.f32.mrb[3].mxu1 }
 0x4c4   : > { %v12282_v0 = vrot.slane %v1232_v29, %v12000_v53 }
 0x4c6   : > { %v1255_v31 = vmul.f32 %v12282_v0, %v12125_v2  ;;  %v1254_v55 = vmul.f32 %v12282_v0, %v12118_v34  ;;  %v1256_v36 = vmul.f32 %v12282_v0, %v12132_v18  ;;  %v1257_v38 = vmul.f32 %v12282_v0, %v12139_v25 }
 0x4c7   : > { %v1258_v43 = vmul.f32 %v12282_v0, %v12146_v42  ;;  %v1259_v2 = vmul.f32 %v12282_v0, %v12153_v37  ;;  %v1260_v45 = vmul.f32 %v12282_v0, %v12160_v46  ;;  %v1261_v41 = vmul.f32 %v12282_v0, %v12167_v1 }
 0x4c8   : > { %v1262_v34 = vmul.f32 %v12282_v0, %v12174_v14  ;;  %v1263_v18 = vmul.f32 %v12282_v0, %v12181_v8  ;;  %v1264_v25 = vmul.f32 %v12282_v0, %v12188_v13  ;;  %v1265_v42 = vmul.f32 %v12282_v0, %v12195_v30 }
 0x4c9   : > { %v12315_v37 = vmul.f32 %v12282_v0, %v12104_v28  ;;  %v1266_v46 = vmul.f32 %v12282_v0, %v12202_v59  ;;  %v1267_v1 = vmul.f32 %v12282_v0, %v12209_v44  ;;  %v12322_v14 = vadd.f32 %v12289_v32, %v1255_v31 }
 0x4ca   : > { %v1268_v8 = vmul.f32 %v12282_v0, %v12216_v40  ;;  %v12327_v13 = vadd.f32 %v12289_v32, %v1254_v55  ;;  %v12330_v30 = vadd.f32 %v12289_v32, %v1256_v36  ;;  %v12333_v28 = vadd.f32 %v12289_v32, %v1257_v38 }
 0x4cb   : > { %v12336_v59 = vadd.f32 %v12289_v32, %v1258_v43  ;;  %v12339_v44 = vadd.f32 %v12289_v32, %v1259_v2  ;;  %v12342_v47 = vadd.f32 %v12289_v32, %v1260_v45  ;;  %v12345_v40 = vadd.f32 %v12289_v32, %v1261_v41 }
 0x4cc   : > { %v12348_v35 = vadd.f32 %v12289_v32, %v1262_v34  ;;  %v12351_v48 = vadd.f32 %v12289_v32, %v1263_v18  ;;  %v12354_v49 = vadd.f32 %v12289_v32, %v1264_v25  ;;  %v12357_v50 = vadd.f32 %v12289_v32, %v1265_v42 }
 0x4cd   : > { %v12361_v5 = vmul.f32 %v12282_v0, %v12111_v33  ;;  %v12364_v52 = vadd.f32 %v12289_v32, %v1266_v46  ;;  %v12367_v62 = vadd.f32 %v12289_v32, %v1267_v1  ;;  %v1325_v63 = vmul.f32 0.5, %v12322_v14 }
 0x4ce   : > { %v12371_v10 = vadd.f32 %v12289_v32, %v1268_v8  ;;  %v12374_v56 = vmul.f32 0.5, %v12327_v13  ;;  %v1326_v3 = vmul.f32 0.5, %v12330_v30  ;;  %v1327_v4 = vmul.f32 0.5, %v12333_v28 }
 0x4cf   : > { %v1328_v33 = vmul.f32 0.5, %v12336_v59  ;;  %v1329_v11 = vmul.f32 0.5, %v12339_v44  ;;  %v1330_v19 = vmul.f32 0.5, %v12342_v47  ;;  %v1331_v23 = vmul.f32 0.5, %v12345_v40 }
 0x4d0   : > { %v1332_v29 = vmul.f32 0.5, %v12348_v35  ;;  %v1333_v12 = vmul.f32 0.5, %v12351_v48  ;;  %v1334_v31 = vmul.f32 0.5, %v12354_v49  ;;  %v1335_v55 = vmul.f32 0.5, %v12357_v50 }
 0x4d1   : > { %10914 = vtanh.f32 %v1325_v63  ;;  %v1237_v36 = vmul.f32 %v12282_v0, %v12007_v57  ;;  %v1238_v38 = vmul.f32 %v12282_v0, %v12011_v54  ;;  %v1239_v43 = vmul.f32 %v12282_v0, %v12015_v58 }
 0x4d2   : > { %10916 = vtanh.f32 %v1326_v3  ;;  %v1240_v2 = vmul.f32 %v12282_v0, %v12019_v61  ;;  %v1243_v45 = vmul.f32 %v12282_v0, %v12041_v6  ;;  %v1244_v41 = vmul.f32 %v12282_v0, %v12048_v15 }
 0x4d3   : > { %10918 = vtanh.f32 %v1327_v4  ;;  %v12399_v34 = vadd.f32 %v12289_v32, %v1237_v36  ;;  %v12402_v57 = vadd.f32 %v12289_v32, %v1238_v38  ;;  %v12405_v54 = vadd.f32 %v12289_v32, %v1239_v43 }
 0x4d4   : > { %v1336_v58 = vmul.f32 0.5, %v12364_v52  ;;  %v1337_v61 = vmul.f32 0.5, %v12367_v62  ;;  %10920 = vtanh.f32 %v1328_v33  ;;  %v12410_v6 = vadd.f32 %v12289_v32, %v1240_v2 }
 0x4d5   : > { %v1338_v15 = vmul.f32 0.5, %v12371_v10  ;;  %10922 = vtanh.f32 %v1329_v11  ;;  %v12414_v18 = vadd.f32 %v12289_v32, %v1243_v45  ;;  %v12417_v25 = vadd.f32 %v12289_v32, %v1244_v41 }
 0x4d6   : > { %10924 = vtanh.f32 %v1330_v19  ;;  %v1307_v42 = vmul.f32 0.5, %v12399_v34  ;;  %v1308_v46 = vmul.f32 0.5, %v12402_v57  ;;  %v1309_v1 = vmul.f32 0.5, %v12405_v54 }
 0x4d7   : > { %10926 = vtanh.f32 %v1331_v23  ;;  %v1241_v8 = vmul.f32 %v12282_v0, %v12027_v7  ;;  %v1242_v63 = vmul.f32 %v12282_v0, %v12033_v9  ;;  %v1245_v3 = vmul.f32 %v12282_v0, %v12055_v16 }
 0x4d8   : > { %10928 = vtanh.f32 %v1332_v29  ;;  %v1310_v4 = vmul.f32 0.5, %v12410_v6  ;;  %v1246_v33 = vmul.f32 %v12282_v0, %v12062_v17  ;;  %v1251_v11 = vmul.f32 %v12282_v0, %v12097_v27 }
 0x4d9   : > { %10930 = vtanh.f32 %v1333_v12  ;;  %v12434_v19 = vadd.f32 %v12289_v32, %v1241_v8  ;;  %v12437_v7 = vadd.f32 %v12289_v32, %v1242_v63  ;;  %v12440_v9 = vadd.f32 %v12289_v32, %v1245_v3 }
 0x4da   : > { %10932 = vtanh.f32 %v1334_v31  ;;  %v1313_v16 = vmul.f32 0.5, %v12414_v18  ;;  %v1314_v23 = vmul.f32 0.5, %v12417_v25  ;;  %v12445_v17 = vadd.f32 %v12289_v32, %v1246_v33 }
 0x4db   : > { %v10915_v29 = vpop.eup %10914  ;;  %10934 = vtanh.f32 %v1335_v55  ;;  %v1311_v27 = vmul.f32 0.5, %v12434_v19  ;;  %v12449_v12 = vadd.f32 %v12289_v32, %v1251_v11  ;;  %v12453_v36 = vadd.f32 %v12289_v32, %v12315_v37 }
 0x4dc   : > { %v10917_v38 = vpop.eup %10916  ;;  %10936 = vtanh.f32 %v1336_v58  ;;  %v12456_v31 = vmul.f32 0.5, %v12437_v7  ;;  %v1389_v43 = vmul.f32 0.5, %v10915_v29  ;;  %v12459_v2 = vmul.f32 0.5, %v12440_v9 }
 0x4dd   : > { %v10919_v45 = vpop.eup %10918  ;;  %10938 = vtanh.f32 %v1337_v61  ;;  %v1390_v55 = vmul.f32 0.5, %v10917_v38  ;;  %v12462_v41 = vmul.f32 0.5, %v12445_v17  ;;  %v1247_v8 = vmul.f32 %v12282_v0, %v12069_v20 }
 0x4de   : > { %v10921_v37 = vpop.eup %10920  ;;  %10940 = vtanh.f32 %v1338_v15  ;;  %v1391_v63 = vmul.f32 0.5, %v10919_v45  ;;  %v1421_v58 = vadd.f32 0.5, %v1389_v43  ;;  %v12468_v3 = vmul.f32 %v12282_v0, %v12076_v21 }
 0x4df   : > { %v10923_v33 = vpop.eup %10922  ;;  %v1392_v11 = vmul.f32 0.5, %v10921_v37  ;;  %v1422_v29 = vadd.f32 0.5, %v1390_v55  ;;  %10942 = vtanh.f32 %v1307_v42  ;;  %v12471_v61 = vadd.f32 %v12289_v32, %v1247_v8 }
 0x4e0   : > { %v10925_v38 = vpop.eup %10924  ;;  %v1393_v53 = vmul.f32 0.5, %v10923_v33  ;;  %v1423_v39 = vadd.f32 0.5, %v1391_v63  ;;  %10944 = vtanh.f32 %v1308_v46  ;;  %v12474_v20 = vmul.f32 %v1421_v58, %v12322_v14 }
 0x4e1   : > { %v10927_v15 = vpop.eup %10926  ;;  %v1394_v43 = vmul.f32 0.5, %v10925_v38  ;;  %v1424_v21 = vadd.f32 0.5, %v1392_v11  ;;  %v12477_v45 = vmul.f32 %v1422_v29, %v12330_v30  ;;  %10946 = vtanh.f32 %v1309_v1 }
 0x4e2   : > { %v10929_v42 = vpop.eup %10928  ;;  %v1395_v55 = vmul.f32 0.5, %v10927_v15  ;;  %v1425_v8 = vadd.f32 0.5, %v1393_v53  ;;  %v12480_v37 = vmul.f32 %v1423_v39, %v12333_v28  ;;  %10948 = vtanh.f32 %v1310_v4 }
 0x4e3   : > { %v10931_v46 = vpop.eup %10930  ;;  %v1396_v63 = vmul.f32 0.5, %v10929_v42  ;;  %v1426_v14 = vadd.f32 0.5, %v1394_v43  ;;  %v12483_v58 = vmul.f32 %v1424_v21, %v12336_v59  ;;  %10950 = vtanh.f32 %v1313_v16 }
 0x4e4   : > { %v10933_v33 = vpop.eup %10932  ;;  %v1397_v11 = vmul.f32 0.5, %v10931_v46  ;;  %v1427_v38 = vadd.f32 0.5, %v1395_v55  ;;  %v1457_v30 = vmul.f32 %v1425_v8, %v12339_v44  ;;  %10952 = vtanh.f32 %v1314_v23 }
 0x4e5   : > { %v10935_v1 = vpop.eup %10934  ;;  %v1398_v29 = vmul.f32 0.5, %v10933_v33  ;;  %v1428_v53 = vadd.f32 0.5, %v1396_v63  ;;  %v1458_v39 = vmul.f32 %v1426_v14, %v12342_v47  ;;  %v1477_v28 = vpack.c.bf16 %v12483_v58, %v12480_v37 }
 0x4e6   : > { %v10937_v4 = vpop.eup %10936  ;;  %v1399_v15 = vmul.f32 0.5, %v10935_v1  ;;  %v1429_v43 = vadd.f32 0.5, %v1397_v11  ;;  %v1459_v59 = vmul.f32 %v1427_v38, %v12345_v40  ;;  %10954 = vtanh.f32 %v1311_v27 }
 0x4e7   : > { %v10939_v16 = vpop.eup %10938  ;;  %v1400_v21 = vmul.f32 0.5, %v10937_v4  ;;  %v1430_v42 = vadd.f32 0.5, %v1398_v29  ;;  %v1460_v44 = vmul.f32 %v1428_v53, %v12348_v35  ;;  %v1478_v23 = vpack.c.bf16 %v1458_v39, %v1457_v30 }
 0x4e8   : > { %v10941_v55 = vpop.eup %10940  ;;  %v1401_v8 = vmul.f32 0.5, %v10939_v16  ;;  %v1431_v46 = vadd.f32 0.5, %v1399_v15  ;;  %v1461_v47 = vmul.f32 %v1429_v43, %v12351_v48  ;;  %10956 = vtanh.f32 %v12456_v31 }
 0x4e9   : > { %v10943_v63 = vpop.eup %10942  ;;  %v1402_v14 = vmul.f32 0.5, %v10941_v55  ;;  %v1432_v33 = vadd.f32 0.5, %v1400_v21  ;;  %v1462_v11 = vmul.f32 %v1430_v42, %v12354_v49  ;;  %v1479_v40 = vpack.c.bf16 %v1460_v44, %v1459_v59 }
 0x4ea   : > { %v10945_v27 = vpop.eup %10944  ;;  %v1433_v38 = vadd.f32 0.5, %v1401_v8  ;;  %v1371_v1 = vmul.f32 0.5, %v10943_v63  ;;  %v1463_v29 = vmul.f32 %v1431_v46, %v12357_v50  ;;  %v1510_v35 = vrot.slane %v1478_v23, 4 }
 0x4eb   : > { %v10947_v30 = vpop.eup %10946  ;;  %v1434_v53 = vadd.f32 0.5, %v1402_v14  ;;  %v1372_v39 = vmul.f32 0.5, %v10945_v27  ;;  %v1464_v4 = vmul.f32 %v1432_v33, %v12364_v52  ;;  %v1480_v48 = vpack.c.bf16 %v1462_v11, %v1461_v47 }
 0x4ec   : > { %v10949_v15 = vpop.eup %10948  ;;  %v1403_v31 = vadd.f32 0.5, %v1371_v1  ;;  %v1465_v43 = vmul.f32 %v1433_v38, %v12367_v62  ;;  %v1373_v16 = vmul.f32 0.5, %v10947_v30  ;;  %v1511_v21 = vrot.slane %v1479_v40, 4  ;;  %1555 = vst.msk [vmem:[#allocation2 + $0xc0] sm:$0xf0] %vm1531_vm11, %v1510_v35 }
 0x4ed   : > { %1556 = vst.msk [vmem:[#allocation2 + $0xc8] sm:$0xf] %vm1533_vm12, %v1510_v35  ;;  %v10951_v49 = vpop.eup %10950  ;;  %v1404_v59 = vadd.f32 0.5, %v1372_v39  ;;  %v1466_v50 = vmul.f32 %v1434_v53, %v12371_v10  ;;  %v1374_v42 = vmul.f32 0.5, %v10949_v15  ;;  %v1481_v44 = vpack.c.bf16 %v1464_v4, %v1463_v29 }
 0x4ee   : > { %v10953_v23 = vpop.eup %10952  ;;  %v1435_v52 = vmul.f32 %v1403_v31, %v12399_v34  ;;  %v1405_v55 = vadd.f32 0.5, %v1373_v16  ;;  %v1512_v8 = vrot.slane %v1480_v48, 4  ;;  %1557 = vst.msk [vmem:[#allocation2 + $0xd0] sm:$0xf0] %vm1531_vm11, %v1511_v21  ;;  %v1377_v62 = vmul.f32 0.5, %v10951_v49 }
 0x4ef   : > { %1558 = vst.msk [vmem:[#allocation2 + $0xd8] sm:$0xf] %vm1533_vm12, %v1511_v21  ;;  %v1436_v46 = vmul.f32 %v1404_v59, %v12402_v57  ;;  %v1406_v47 = vadd.f32 0.5, %v1374_v42  ;;  %v1482_v63 = vpack.c.bf16 %v1466_v50, %v1465_v43  ;;  %v1513_v14 = vrot.slane %v1481_v44, 4 }
 0x4f0   : > { %v10955_v33 = vpop.eup %10954  ;;  %v1437_v10 = vmul.f32 %v1405_v55, %v12405_v54  ;;  %1559 = vst.msk [vmem:[#allocation2 + $0xe0] sm:$0xf0] %vm1531_vm11, %v1512_v8  ;;  %v1378_v34 = vmul.f32 0.5, %v10953_v23  ;;  %v1409_v11 = vadd.f32 0.5, %v1377_v62  ;;  %v1476_v40 = vpack.c.bf16 %v12477_v45, %v12474_v20 }
 0x4f1   : > { %1560 = vst.msk [vmem:[#allocation2 + $0xe8] sm:$0xf] %vm1533_vm12, %v1512_v8  ;;  %v1467_v27 = vpack.c.bf16 %v1436_v46, %v1435_v52  ;;  %v1438_v38 = vmul.f32 %v1406_v47, %v12410_v6  ;;  %v1514_v1 = vrot.slane %v1482_v63, 4  ;;  %1562 = vst.msk [vmem:[#allocation2 + $0xf8] sm:$0xf] %vm1533_vm12, %v1513_v14  ;;  %v1375_v57 = vmul.f32 0.5, %v10955_v33 }
 0x4f2   : > { %1561 = vst.msk [vmem:[#allocation2 + $0xf0] sm:$0xf0] %vm1531_vm11, %v1513_v14  ;;  %v10957_v29 = vpop.eup %10956  ;;  %v1410_v54 = vadd.f32 0.5, %v1378_v34  ;;  %v1441_v35 = vmul.f32 %v1409_v11, %v12414_v18  ;;  %v1508_v30 = vrot.slane %v1476_v40, 4  ;;  %10958 = vtanh.f32 %v12459_v2 }
 0x4f3   : > { %v1499_v53 = vrot.slane %v1467_v27, 4  ;;  %v1468_v39 = vpack.c.bf16 %v1438_v38, %v1437_v10  ;;  %1563 = vst.msk [vmem:[#allocation2 + $0x100] sm:$0xf0] %vm1531_vm11, %v1514_v1  ;;  %v1376_v6 = vmul.f32 0.5, %v10957_v29  ;;  %v1407_v20 = vadd.f32 0.5, %v1375_v57 }
 0x4f4   : > { %1564 = vst.msk [vmem:[#allocation2 + $0x108] sm:$0xf] %vm1533_vm12, %v1514_v1  ;;  %10960 = vtanh.f32 %v12374_v56  ;;  %v1442_v45 = vmul.f32 %v1410_v54, %v12417_v25  ;;  %1552 = vst.msk [vmem:[#allocation2 + $0xa8] sm:$0xf] %vm1533_vm12, %v1508_v30  ;;  %v12522_v18 = vadd.f32 %v12289_v32, %v12468_v3  ;;  %v1321_v56 = vmul.f32 0.5, %v12449_v12 }
 0x4f5   : > { %1551 = vst.msk [vmem:[#allocation2 + $0xa0] sm:$0xf0] %vm1531_vm11, %v1508_v30  ;;  %1532 = vst.msk [vmem:[#allocation2 + $0x10] sm:$0xf0] %vm1531_vm11, %v1499_v53  ;;  %v1500_v2 = vrot.slane %v1468_v39, 4  ;;  %v1408_v4 = vadd.f32 0.5, %v1376_v6  ;;  %v1439_v48 = vmul.f32 %v1407_v20, %v12434_v19  ;;  %v12534_v3 = vadd.f32 %v12289_v32, %v12361_v5 }
 0x4f6   : > { %1534 = vst.msk [vmem:[#allocation2 + $0x18] sm:$0xf] %vm1533_vm12, %v1499_v53  ;;  %v1470_v15 = vpack.c.bf16 %v1442_v45, %v1441_v35  ;;  %v1322_v25 = vmul.f32 0.5, %v12453_v36  ;;  %v1509_v31 = vrot.slane %v1477_v28, 4  ;;  %10962 = vtanh.f32 %v12462_v41 }
 0x4f7   : > { %1535 = vst.msk [vmem:[#allocation2 + $0x20] sm:$0xf0] %vm1531_vm11, %v1500_v2  ;;  %v1440_v43 = vmul.f32 %v1408_v4, %v12437_v7  ;;  %v1317_v19 = vmul.f32 0.5, %v12471_v61  ;;  %v1318_v21 = vmul.f32 0.5, %v12522_v18  ;;  %v1249_v5 = vmul.f32 %v12282_v0, %v12083_v22 }
 0x4f8   : > { %1536 = vst.msk [vmem:[#allocation2 + $0x28] sm:$0xf] %vm1533_vm12, %v1500_v2  ;;  %v1502_v16 = vrot.slane %v1470_v15, 4  ;;  %1554 = vst.msk [vmem:[#allocation2 + $0xb8] sm:$0xf] %vm1533_vm12, %v1509_v31  ;;  %v1250_v37 = vmul.f32 %v12282_v0, %v12090_v26  ;;  %10964 = vtanh.f32 %v1321_v56  ;;  %v1323_v7 = vmul.f32 0.5, %v12534_v3 }
 0x4f9   : > { %1553 = vst.msk [vmem:[#allocation2 + $0xb0] sm:$0xf0] %vm1531_vm11, %v1509_v31  ;;  %v1469_v58 = vpack.c.bf16 %v1440_v43, %v1439_v48  ;;  %10966 = vtanh.f32 %v1322_v25  ;;  %v12552_v41 = vadd.f32 %v12289_v32, %v1249_v5 }
 0x4fa   : > { %1539 = vst.msk [vmem:[#allocation2 + $0x40] sm:$0xf0] %vm1531_vm11, %v1502_v16  ;;  %v12555_v28 = vadd.f32 %v12289_v32, %v1250_v37  ;;  %10968 = vtanh.f32 %v1317_v19 }
 0x4fb   : > { %1540 = vst.msk [vmem:[#allocation2 + $0x48] sm:$0xf] %vm1533_vm12, %v1502_v16  ;;  %v1501_v49 = vrot.slane %v1469_v58, 4  ;;  %v12557_v22 = vld [vmem:[#allocation2 + $0xa8] sm:$0xf]  ;;  %10970 = vtanh.f32 %v1318_v21  ;;  %v1319_v55 = vmul.f32 0.5, %v12552_v41 }
 0x4fc   : > { %v4037_v59 = vld [vmem:[#allocation2 + $0xa0] sm:$0xf0]  ;;  %v10959_v26 = vpop.eup %10958  ;;  %v12559_v50 = vld [vmem:[#allocation2 + $0x10] sm:$0xf0]  ;;  %v4062_v44 = vrot.slane %v12557_v22, 4  ;;  %10972 = vtanh.f32 %v1323_v7 }
 0x4fd   : > { %v1575_v0 = vld [vmem:[#allocation2 + $0x18] sm:$0xf]  ;;  %v4061_v42 = vrot.slane %v4037_v59, 4  ;;  %v1752_v23 = vrot.slane %v12559_v50, 4  ;;  %1537 = vst.msk [vmem:[#allocation2 + $0x30] sm:$0xf0] %vm1531_vm11, %v1501_v49  ;;  %10974 = vtanh.f32 %v1319_v55 }
 0x4fe   : > { %v1753_v52 = vrot.slane %v1575_v0, 4  ;;  %1538 = vst.msk [vmem:[#allocation2 + $0x38] sm:$0xf] %vm1533_vm12, %v1501_v49  ;;  %v12565_v32 = vmul.f32 0.5, %v10959_v26  ;;  %v12568_v8 = vpop.eup %10960  ;;  %v2415_v46 = vld [vmem:[#allocation2 + $0x20] sm:$0xf0] }
 0x4ff   : > { %v12570_v62 = vld [vmem:[#allocation2 + $0x28] sm:$0xf]  ;;  %v2439_v14 = vrot.slane %v2415_v46, 4  ;;  %v2472_v10 = vshrl.u32 %v2415_v46, 16  ;;  %v2475_v11 = vshll.u32 %v2415_v46, 16  ;;  %v4063_v53 = vsel %vm1748_vm3, %v4061_v42, %v4062_v44 }
 0x500   : > { %v2463_v47 = vld [vmem:[#allocation2 + $0x28] sm:$0x1f]  ;;  %v1754_v63 = vsel %vm1748_vm3, %v1752_v23, %v1753_v52  ;;  %v2440_v33 = vrot.slane %v12570_v62, 4  ;;  %v12575_v38 = vld [vmem:[#allocation2 + $0x20] sm:$0xf0]  ;;  %v10963_v57 = vpop.eup %10962 }
 0x501   : > { %v1577_v34 = vld [vmem:[#allocation2 + $0x28] sm:$0xf]  ;;  %2609 = vrot.lane.b32.xlu1 %v1754_v63, %s11501_s19  ;;  %v2480_v40 = vshrl.u32 %v2463_v47, 16  ;;  %v2483_v27 = vshll.u32 %v2463_v47, 16  ;;  %v2474_v54 = vrot.slane %v2472_v10, 4  ;;  %v1755_v39 = vrot.slane %v12575_v38, 4 }
 0x502   : > { %v1756_v1 = vrot.slane %v1577_v34, 4  ;;  %v2441_v29 = vsel %vm1748_vm3, %v2439_v14, %v2440_v33  ;;  %v12578_v35 = vld [vmem:[#allocation2 + $0x48] sm:$0xf]  ;;  %v2417_v30 = vld [vmem:[#allocation2 + $0x40] sm:$0xf0]  ;;  %v2477_v6 = vrot.slane %v2475_v11, 5  ;;  %v10965_v48 = vpop.eup %10964 }
 0x503   : > { %2687 = vrot.lane.b32.xlu0 %v2441_v29, %s11503_s16  ;;  %v2482_v20 = vrot.slane %v2480_v40, 4  ;;  %v2485_v45 = vrot.slane %v2483_v27, 5  ;;  %v2445_v2 = vrot.slane %v2417_v30, 4  ;;  %v2465_v4 = vld [vmem:[#allocation2 + $0x48] sm:$0x1f]  ;;  %v2446_v56 = vrot.slane %v12578_v35, 4  ;;  %v10967_v43 = vpop.eup %10966 }
 0x504   : > { %v2506_v15 = vshrl.u32 %v2417_v30, 16  ;;  %v2509_v25 = vshll.u32 %v2417_v30, 16  ;;  %v2514_v31 = vshrl.u32 %v2465_v4, 16  ;;  %v2478_v19 = vor.u32 %v2477_v6, %v2474_v54  ;;  %v2416_v5 = vld [vmem:[#allocation2 + $0x30] sm:$0xf0]  ;;  %v10969_v7 = vpop.eup %10968 }
 0x505   : > { %v2486_v16 = vor.u32 %v2485_v45, %v2482_v20  ;;  %v12584_v21 = vld [vmem:[#allocation2 + $0x38] sm:$0xf]  ;;  %v1757_v58 = vsel %vm1748_vm3, %v1755_v39, %v1756_v1  ;;  %v2447_v49 = vsel %vm1748_vm3, %v2445_v2, %v2446_v56  ;;  %v2442_v59 = vrot.slane %v2416_v5, 4  ;;  %v10971_v42 = vpop.eup %10970  ;;  %v11072_v51 = vld [vmem:[#allocation2 + $0x10] sm:$0xf0] }
 0x506   : > { %v2464_v37 = vld [vmem:[#allocation2 + $0x38] sm:$0x1f]  ;;  %v2443_v26 = vrot.slane %v12584_v21, 4  ;;  %v2489_v0 = vshrl.u32 %v2416_v5, 16  ;;  %2691 = vrot.lane.b32.xlu1 %v2447_v49, %s11503_s16  ;;  %v2492_v23 = vshll.u32 %v2416_v5, 16  ;;  %v2508_v63 = vrot.slane %v2506_v15, 4  ;;  %v10973_v33 = vpop.eup %10972 }
 0x507   : > { %v2487_v44 = vsel %vm1781_vm4, %v2478_v19, %v2486_v16  ;;  %v2497_v52 = vshrl.u32 %v2464_v37, 16  ;;  %v2500_v46 = vshll.u32 %v2464_v37, 16  ;;  %v2511_v14 = vrot.slane %v2509_v25, 5  ;;  %v4039_v37 = vld [vmem:[#allocation2 + $0xc0] sm:$0xf0] }
 0x508   : > { %10369 = vmatprep.mubr.msk.bf16.mxu1 %vm727_vm1, %v2487_v44  ;;  %v2444_v47 = vsel %vm1748_vm3, %v2442_v59, %v2443_v26  ;;  %v2491_v55 = vrot.slane %v2489_v0, 4  ;;  %v2494_v10 = vrot.slane %v2492_v23, 5  ;;  %v2516_v40 = vrot.slane %v2514_v31, 4  ;;  %v3890_v59 = vld [vmem:[#allocation2 + $0xc8] sm:$0xf] }
 0x509   : > { %2689 = vrot.lane.b32.xlu0 %v2444_v47, %s11503_s16  ;;  %v2499_v34 = vrot.slane %v2497_v52, 4  ;;  %v2502_v11 = vrot.slane %v2500_v46, 5  ;;  %v2512_v27 = vor.u32 %v2511_v14, %v2508_v63  ;;  %v2517_v1 = vshll.u32 %v2465_v4, 16  ;;  %v4040_v0 = vld [vmem:[#allocation2 + $0xd0] sm:$0xf0] }
 0x50a   : > { %v1380_v29 = vmul.f32 0.5, %v10963_v57  ;;  %v1411_v54 = vadd.f32 0.5, %v12565_v32  ;;  %v2495_v30 = vor.u32 %v2494_v10, %v2491_v55  ;;  %4309 = vrot.lane.b32.xlu1 %v4063_v53, %s11503_s16  ;;  %v1385_v6 = vmul.f32 0.5, %v10965_v48  ;;  %v3888_v52 = vld [vmem:[#allocation2 + $0xb8] sm:$0xf] }
 0x50b   : > { %v2503_v39 = vor.u32 %v2502_v11, %v2499_v34  ;;  %v1386_v20 = vmul.f32 0.5, %v10967_v43  ;;  %v2519_v45 = vrot.slane %v2517_v1, 5  ;;  %v1381_v15 = vmul.f32 0.5, %v10969_v7  ;;  %v10975_v43 = vpop.eup %10974  ;;  %v1579_v55 = vld [vmem:[#allocation2 + $0x38] sm:$0xf] }
 0x50c   : > { %v1412_v2 = vadd.f32 0.5, %v1380_v29  ;;  %v1443_v56 = vmul.f32 %v1411_v54, %v12440_v9  ;;  %v1417_v31 = vadd.f32 0.5, %v1385_v6  ;;  %v1382_v57 = vmul.f32 0.5, %v10971_v42  ;;  %v12613_v10 = vld [vmem:[#allocation2 + $0x30] sm:$0xf0] }
 0x50d   : > { %v2504_v25 = vsel %vm1781_vm4, %v2495_v30, %v2503_v39  ;;  %2611 = vrot.lane.b32.xlu0 %v1757_v58, %s11501_s19  ;;  %v1418_v4 = vadd.f32 0.5, %v1386_v20  ;;  %v2520_v32 = vor.u32 %v2519_v45, %v2516_v40  ;;  %v1413_v53 = vadd.f32 0.5, %v1381_v15  ;;  %v12615_v11 = vld [vmem:[#allocation2 + $0x48] sm:$0xf]  ;;  %v12617_v40 = vld [vmem:[#allocation2 + $0x40] sm:$0xf0] }
 0x50e   : > { %10370 = vmatmul.mubr.msk.bf16.vlgmr.msra.gmra.mrb[4].mxu1 %vm727_vm1, %v2504_v25  ;;  %v1444_v19 = vmul.f32 %v1412_v2, %v12445_v17  ;;  %v1388_v48 = vmul.f32 0.5, %v12568_v8  ;;  %v1449_v16 = vmul.f32 %v1417_v31, %v12449_v12  ;;  %v1414_v5 = vadd.f32 0.5, %v1382_v57  ;;  %v3892_v12 = vld [vmem:[#allocation2 + $0xd8] sm:$0xf]  ;;  %v12626_v54 = vld [vmem:[#allocation2 + $0xa8] sm:$0xf] }
 0x50f   : > { %v1450_v9 = vmul.f32 %v1418_v4, %v12453_v36  ;;  %v2521_v58 = vsel %vm1781_vm4, %v2512_v27, %v2520_v32  ;;  %v1445_v49 = vmul.f32 %v1413_v53, %v12471_v61  ;;  %v4067_v44 = vrot.slane %v4039_v37, 4  ;;  %v4038_v61 = vld [vmem:[#allocation2 + $0xb0] sm:$0xf0]  ;;  %v12619_v27 = vld [vmem:[#allocation2 + $0xa0] sm:$0xf0] }
 0x510   : > { %v1471_v7 = vpack.c.bf16 %v1444_v19, %v1443_v56  ;;  %10373 = vmatprep.mubr.msk.bf16.mxu1 %vm727_vm1, %v2521_v58  ;;  %v1446_v17 = vmul.f32 %v1414_v5, %v12522_v18  ;;  %v1420_v42 = vadd.f32 0.5, %v1388_v48  ;;  %v1387_v46 = vmul.f32 0.5, %v10973_v33  ;;  %v12628_v30 = vld [vmem:[#allocation2 + $0xb8] sm:$0xf]  ;;  %v12630_v39 = vld [vmem:[#allocation2 + $0xb0] sm:$0xf0] }
 0x511   : > { %v1474_v26 = vpack.c.bf16 %v1450_v9, %v1449_v16  ;;  %v4068_v47 = vrot.slane %v3890_v59, 4  ;;  %v1320_v63 = vmul.f32 0.5, %v12555_v28  ;;  %v4070_v14 = vrot.slane %v4040_v0, 4 }
 0x512   : > { %v1503_v8 = vrot.slane %v1471_v7, 4  ;;  %v1472_v36 = vpack.c.bf16 %v1446_v17, %v1445_v49  ;;  %v1383_v34 = vmul.f32 0.5, %v10975_v43  ;;  %v1419_v33 = vadd.f32 0.5, %v1387_v46 }
 0x513   : > { %v1506_v23 = vrot.slane %v1474_v26, 4  ;;  %10976 = vtanh.f32 %v1320_v63  ;;  %v4071_v1 = vrot.slane %v3892_v12, 4  ;;  %v12624_v29 = vmul.f32 %v1420_v42, %v12327_v13 }
 0x514   : > { %1541 = vst.msk [vmem:[#allocation2 + $0x50] sm:$0xf0] %vm1531_vm11, %v1503_v8  ;;  %v1504_v18 = vrot.slane %v1472_v36, 4  ;;  %v4064_v6 = vrot.slane %v4038_v61, 4  ;;  %v4065_v20 = vrot.slane %v3888_v52, 4  ;;  %v1758_v45 = vrot.slane %v12613_v10, 4 }
 0x515   : > { %1542 = vst.msk [vmem:[#allocation2 + $0x58] sm:$0xf] %vm1533_vm12, %v1503_v8  ;;  %1548 = vst.msk [vmem:[#allocation2 + $0x88] sm:$0xf] %vm1533_vm12, %v1506_v23  ;;  %v1759_v2 = vrot.slane %v1579_v55, 4  ;;  %v12633_v56 = vadd.f32 0.5, %v1383_v34  ;;  %v1451_v31 = vmul.f32 %v1419_v33, %v12534_v3  ;;  %v12645_v43 = vsel %vm1748_vm3, %v4067_v44, %v4068_v47 }
 0x516   : > { %1547 = vst.msk [vmem:[#allocation2 + $0x80] sm:$0xf0] %vm1531_vm11, %v1506_v23  ;;  %1543 = vst.msk [vmem:[#allocation2 + $0x60] sm:$0xf0] %vm1531_vm11, %v1504_v18  ;;  %v1761_v15 = vrot.slane %v12617_v40, 4  ;;  %v1762_v25 = vrot.slane %v12615_v11, 4  ;;  %v12648_v16 = vsel %vm1748_vm3, %v4070_v14, %v4071_v1  ;;  %v4066_v58 = vsel %vm1748_vm3, %v4064_v6, %v4065_v20 }
 0x517   : > { %1544 = vst.msk [vmem:[#allocation2 + $0x68] sm:$0xf] %vm1533_vm12, %v1504_v18  ;;  %v3377_v13 = vrot.slane %v12619_v27, 4  ;;  %v3378_v4 = vrot.slane %v12626_v54, 4  ;;  %v3380_v57 = vrot.slane %v12630_v39, 4  ;;  %v3381_v32 = vrot.slane %v12628_v30, 4 }
 0x518   : > { %v1760_v7 = vsel %vm1748_vm3, %v1758_v45, %v1759_v2  ;;  %v1475_v23 = vpack.c.bf16 %v12624_v29, %v1451_v31  ;;  %v12661_v33 = vld [vmem:[#allocation2 + $0xe0] sm:$0xf0] }
 0x519   : > { %v12665_v2 = vld [vmem:[#allocation2 + $0xc0] sm:$0xf0] }
 0x51b   : > { %v2418_v53 = vld [vmem:[#allocation2 + $0x50] sm:$0xf0] }
 0x51c   : > { %v12642_v19 = vld [vmem:[#allocation2 + $0x58] sm:$0xf]  ;;  %v2448_v9 = vrot.slane %v2418_v53, 4  ;;  %v3196_v3 = vld [vmem:[#allocation2 + $0x88] sm:$0xf]  ;;  %v2523_v26 = vshrl.u32 %v2418_v53, 16 }
 0x51d   : > { %v2466_v48 = vld [vmem:[#allocation2 + $0x58] sm:$0x1f]  ;;  %v2449_v5 = vrot.slane %v12642_v19, 4  ;;  %v12651_v37 = vld [vmem:[#allocation2 + $0x80] sm:$0xf0]  ;;  %v3372_v59 = vrot.slane %v3196_v3, 4  ;;  %v10977_v55 = vpop.eup %10976 }
 0x51e   : > { %v3371_v49 = vrot.slane %v12651_v37, 4  ;;  %v2526_v17 = vshll.u32 %v2418_v53, 16  ;;  %v2531_v8 = vshrl.u32 %v2466_v48, 16  ;;  %v2534_v42 = vshll.u32 %v2466_v48, 16  ;;  %v2419_v44 = vld [vmem:[#allocation2 + $0x60] sm:$0xf0] }
 0x51f   : > { %v2450_v0 = vsel %vm1748_vm3, %v2448_v9, %v2449_v5  ;;  %v2467_v12 = vld [vmem:[#allocation2 + $0x68] sm:$0x1f]  ;;  %v2525_v52 = vrot.slane %v2523_v26, 4  ;;  %v2540_v47 = vshrl.u32 %v2419_v44, 16  ;;  %v2543_v18 = vshll.u32 %v2419_v44, 16 }
 0x520   : > { %2693 = vrot.lane.b32.xlu1 %v2450_v0, %s11503_s16  ;;  %v3373_v36 = vsel %vm1748_vm3, %v3371_v49, %v3372_v59  ;;  %v2528_v46 = vrot.slane %v2526_v17, 5  ;;  %v2272_v61 = vld [vmem:[#allocation2 + $0x68] sm:$0xf]  ;;  %v2533_v63 = vrot.slane %v2531_v8, 4  ;;  %v2536_v14 = vrot.slane %v2534_v42, 5 }
 0x521   : > { %4229 = vrot.lane.b32.xlu0 %v3373_v36, %s11501_s19  ;;  %v2548_v34 = vshrl.u32 %v2467_v12, 16  ;;  %v2542_v6 = vrot.slane %v2540_v47, 4  ;;  %v2551_v29 = vshll.u32 %v2467_v12, 16  ;;  %v2451_v20 = vrot.slane %v2419_v44, 4  ;;  %v12663_v45 = vld [vmem:[#allocation2 + $0x80] sm:$0xf0] }
 0x522   : > { %v2529_v1 = vor.u32 %v2528_v46, %v2525_v52  ;;  %v2537_v31 = vor.u32 %v2536_v14, %v2533_v63  ;;  %v2545_v53 = vrot.slane %v2543_v18, 5  ;;  %v2452_v9 = vrot.slane %v2272_v61, 4  ;;  %v2469_v5 = vld [vmem:[#allocation2 + $0x88] sm:$0x1f]  ;;  %v12680_v46 = vld [vmem:[#allocation2 + $0xf8] sm:$0xf] }
 0x523   : > { %v2550_v48 = vrot.slane %v2548_v34, 4  ;;  %v2553_v3 = vrot.slane %v2551_v29, 5  ;;  %v1507_v49 = vrot.slane %v1475_v23, 4  ;;  %v1384_v59 = vmul.f32 0.5, %v10977_v55  ;;  %v3894_v26 = vld [vmem:[#allocation2 + $0xe8] sm:$0xf] }
 0x524   : > { %4311 = vrot.lane.b32.xlu1 %v4066_v58, %s11503_s16  ;;  %v4073_v17 = vrot.slane %v12661_v33, 4  ;;  %v2538_v0 = vsel %vm1781_vm4, %v2529_v1, %v2537_v31  ;;  %v2546_v8 = vor.u32 %v2545_v53, %v2542_v6  ;;  %v2574_v42 = vshrl.u32 %v12663_v45, 16  ;;  %v12673_v12 = vld [vmem:[#allocation2 + $0xc8] sm:$0xf]  ;;  %v12685_v55 = vld [vmem:[#allocation2 + $0x58] sm:$0xf] }
 0x525   : > { %2613 = vrot.lane.b32.xlu0 %v1760_v7, %s11501_s19  ;;  %v2577_v44 = vshll.u32 %v12663_v45, 16  ;;  %10374 = vmatmul.mubr.msk.bf16.gmra.mrb[8].mxu1 %vm727_vm1, %v2538_v0  ;;  %v2554_v36 = vor.u32 %v2553_v3, %v2550_v48  ;;  %1549 = vst.msk [vmem:[#allocation2 + $0x90] sm:$0xf0] %vm1531_vm11, %v1507_v49  ;;  %v1416_v58 = vadd.f32 0.5, %v1384_v59  ;;  %v1447_v23 = vmul.f32 %v12633_v56, %v12552_v41  ;;  %v12682_v7 = vld [vmem:[#allocation2 + $0xf0] sm:$0xf0] }
 0x526   : > { %1550 = vst.msk [vmem:[#allocation2 + $0x98] sm:$0xf] %vm1533_vm12, %v1507_v49  ;;  %v2582_v52 = vshrl.u32 %v2469_v5, 16  ;;  %v2453_v47 = vsel %vm1748_vm3, %v2451_v20, %v2452_v9  ;;  %v2585_v61 = vshll.u32 %v2469_v5, 16  ;;  %v4074_v63 = vrot.slane %v3894_v26, 4 }
 0x527   : > { %v3383_v14 = vrot.slane %v12665_v2, 4  ;;  %v12688_v18 = vld [vmem:[#allocation2 + $0xe0] sm:$0xf0]  ;;  %v2555_v34 = vsel %vm1781_vm4, %v2546_v8, %v2554_v36  ;;  %v1448_v41 = vmul.f32 %v1416_v58, %v12555_v28  ;;  %v12698_v56 = vsel %vm1748_vm3, %v1761_v15, %v1762_v25  ;;  %v1729_v1 = vld [vmem:[#allocation2 + $0x50] sm:$0xf0] }
 0x528   : > { %2695 = vrot.lane.b32.xlu1 %v2453_v47, %s11503_s16  ;;  %v12705_v33 = vsel %vm1748_vm3, %v3377_v13, %v3378_v4  ;;  %v2276_v6 = vld [vmem:[#allocation2 + $0x88] sm:$0xf]  ;;  %10377 = vmatprep.mubr.msk.bf16.mxu1 %vm727_vm1, %v2555_v34  ;;  %v2576_v28 = vrot.slane %v2574_v42, 4  ;;  %v2579_v20 = vrot.slane %v2577_v44, 5  ;;  %v2584_v11 = vrot.slane %v2582_v52, 4 }
 0x529   : > { %v1585_v29 = vld [vmem:[#allocation2 + $0x68] sm:$0xf]  ;;  %v2587_v31 = vrot.slane %v2585_v61, 5  ;;  %v1730_v40 = vld [vmem:[#allocation2 + $0x60] sm:$0xf0]  ;;  %v1473_v53 = vpack.c.bf16 %v1448_v41, %v1447_v23  ;;  %v3384_v15 = vrot.slane %v12673_v12, 4 }
 0x52a   : > { %v4076_v54 = vrot.slane %v12682_v7, 4  ;;  %v4077_v27 = vrot.slane %v12680_v46, 4  ;;  %v1764_v25 = vrot.slane %v1729_v1, 4  ;;  %v1765_v13 = vrot.slane %v12685_v55, 4  ;;  %v3208_v9 = vld [vmem:[#allocation2 + $0xe8] sm:$0xf] }
 0x52b   : > { %v2457_v4 = vrot.slane %v12663_v45, 4  ;;  %v2458_v48 = vrot.slane %v2276_v6, 4  ;;  %v1505_v5 = vrot.slane %v1473_v53, 4  ;;  %v1767_v3 = vrot.slane %v1730_v40, 4  ;;  %v3206_v26 = vld [vmem:[#allocation2 + $0xd8] sm:$0xf] }
 0x52c   : > { %4313 = vrot.lane.b32.xlu1 %v12645_v43, %s11503_s16  ;;  %v1768_v49 = vrot.slane %v1585_v29, 4  ;;  %v3389_v59 = vrot.slane %v12688_v18, 4  ;;  %v3352_v0 = vld [vmem:[#allocation2 + $0xd0] sm:$0xf0]  ;;  %v2580_v44 = vor.u32 %v2579_v20, %v2576_v28  ;;  %v2588_v12 = vor.u32 %v2587_v31, %v2584_v11  ;;  %v12736_v41 = vld [vmem:[#allocation2 + $0x100] sm:$0xf0] }
 0x52d   : > { %v3198_v8 = vld [vmem:[#allocation2 + $0x98] sm:$0xf]  ;;  %v12716_v42 = vld [vmem:[#allocation2 + $0x90] sm:$0xf0]  ;;  %v12723_v45 = vsel %vm1748_vm3, %v3380_v57, %v3381_v32  ;;  %v12726_v43 = vsel %vm1748_vm3, %v4073_v17, %v4074_v63  ;;  %1545 = vst.msk [vmem:[#allocation2 + $0x70] sm:$0xf0] %vm1531_vm11, %v1505_v5  ;;  %v1766_v11 = vsel %vm1748_vm3, %v1764_v25, %v1765_v13  ;;  %v12745_v31 = vsel %vm1748_vm3, %v2457_v4, %v2458_v48 }
 0x52e   : > { %v2422_v36 = vld [vmem:[#allocation2 + $0x90] sm:$0xf0]  ;;  %v3374_v58 = vrot.slane %v12716_v42, 4  ;;  %v3375_v23 = vrot.slane %v3198_v8, 4  ;;  %1546 = vst.msk [vmem:[#allocation2 + $0x78] sm:$0xf] %vm1533_vm12, %v1505_v5  ;;  %v12750_v40 = vsel %vm1748_vm3, %v3383_v14, %v3384_v15  ;;  %v12753_v53 = vsel %vm1748_vm3, %v4076_v54, %v4077_v27 }
 0x52f   : > { %v2470_v52 = vld [vmem:[#allocation2 + $0x98] sm:$0x1f]  ;;  %v2591_v46 = vshrl.u32 %v2422_v36, 16  ;;  %v2594_v7 = vshll.u32 %v2422_v36, 16  ;;  %v3354_v47 = vld [vmem:[#allocation2 + $0xf0] sm:$0xf0]  ;;  %v12757_v5 = vsel %vm1748_vm3, %v1767_v3, %v1768_v49 }
 0x530   : > { %v2599_v30 = vshrl.u32 %v2470_v52, 16  ;;  %v2602_v61 = vshll.u32 %v2470_v52, 16  ;;  %v2278_v39 = vld [vmem:[#allocation2 + $0x98] sm:$0xf]  ;;  %v3390_v55 = vrot.slane %v3208_v9, 4  ;;  %v3386_v57 = vrot.slane %v3352_v0, 4 }
 0x531   : > { %v3210_v32 = vld [vmem:[#allocation2 + $0xf8] sm:$0xf]  ;;  %v3376_v17 = vsel %vm1748_vm3, %v3374_v58, %v3375_v23  ;;  %v12732_v63 = vrot.slane %v2591_v46, 4  ;;  %v12734_v18 = vrot.slane %v2594_v7, 5  ;;  %v2460_v34 = vrot.slane %v2422_v36, 4 }
 0x532   : > { %4231 = vrot.lane.b32.xlu0 %v3376_v17, %s11501_s19  ;;  %v12739_v1 = vrot.slane %v2599_v30, 4  ;;  %v12741_v6 = vrot.slane %v2602_v61, 5  ;;  %v2461_v29 = vrot.slane %v2278_v39, 4  ;;  %v3387_v28 = vrot.slane %v3206_v26, 4  ;;  %v2263_v20 = vld [vmem:[#allocation2 + $0x20] sm:$0xf8] }
 0x533   : > { %v2589_v9 = vsel %vm1781_vm4, %v2580_v44, %v2588_v12  ;;  %v12760_v26 = vsel %vm1748_vm3, %v3389_v59, %v3390_v55  ;;  %v3392_v25 = vrot.slane %v3354_v47, 4  ;;  %v3393_v13 = vrot.slane %v3210_v32, 4  ;;  %v12762_v4 = vld [vmem:[#allocation2 + $0x108] sm:$0xf]  ;;  %v2070_v7 = vld [vmem:[#allocation2 + $0x10] sm:$0xf0] }
 0x534   : > { %v4079_v2 = vrot.slane %v12736_v41, 4  ;;  %v2280_v48 = vshrl.u32 %v2263_v20, 16  ;;  %v2283_v14 = vshll.u32 %v2263_v20, 16  ;;  %v2420_v15 = vld [vmem:[#allocation2 + $0x70] sm:$0xf0]  ;;  %v2597_v27 = vor.u32 %v12734_v18, %v12732_v63 }
 0x535   : > { %v2468_v0 = vld [vmem:[#allocation2 + $0x78] sm:$0x1f]  ;;  %v2605_v3 = vor.u32 %v12741_v6, %v12739_v1  ;;  %v12772_v49 = vsel %vm1748_vm3, %v2460_v34, %v2461_v29  ;;  %v12775_v59 = vsel %vm1748_vm3, %v3386_v57, %v3387_v28  ;;  %v2557_v8 = vshrl.u32 %v2420_v15, 16 }
 0x536   : > { %2615 = vrot.lane.b32.xlu0 %v12698_v56, %s11501_s19  ;;  %v2274_v54 = vld [vmem:[#allocation2 + $0x78] sm:$0xf]  ;;  %v2560_v44 = vshll.u32 %v2420_v15, 16  ;;  %v2565_v12 = vshrl.u32 %v2468_v0, 16  ;;  %v2568_v36 = vshll.u32 %v2468_v0, 16  ;;  %v2454_v56 = vrot.slane %v2420_v15, 4 }
 0x537   : > { %v12777_v58 = vld [vmem:[#allocation2 + $0x78] sm:$0xf]  ;;  %v2455_v23 = vrot.slane %v2274_v54, 4  ;;  %v2288_v52 = vshrl.u32 %v12570_v62, 16  ;;  %v2291_v46 = vshll.u32 %v12570_v62, 16  ;;  %v2559_v47 = vrot.slane %v2557_v8, 4 }
 0x538   : > { %v2562_v30 = vrot.slane %v2560_v44, 5  ;;  %v2567_v61 = vrot.slane %v2565_v12, 4  ;;  %v2570_v39 = vrot.slane %v2568_v36, 5  ;;  %v2118_v55 = vld [vmem:[#allocation2 + $0x18] sm:$0x1f]  ;;  %v1771_v32 = vrot.slane %v12777_v58, 4 }
 0x539   : > { %v2456_v57 = vsel %vm1748_vm3, %v2454_v56, %v2455_v23  ;;  %v12786_v17 = vsel %vm1748_vm3, %v3392_v25, %v3393_v13  ;;  %v4080_v34 = vrot.slane %v12762_v4, 4  ;;  %v2282_v28 = vrot.slane %v2280_v48, 3  ;;  %v1918_v15 = vld [vmem:[#allocation2 + $0x10] sm:$0xf8]  ;;  %v1919_v0 = vld [vmem:[#allocation2 + $0x18] sm:$0xf] }
 0x53a   : > { %4233 = vrot.lane.b32.xlu0 %v12705_v33, %s11501_s19  ;;  %v2563_v29 = vor.u32 %v2562_v30, %v2559_v47  ;;  %v2571_v62 = vor.u32 %v2570_v39, %v2567_v61  ;;  %2697 = vrot.lane.b32.xlu1 %v2456_v57, %s11503_s16  ;;  %v2127_v20 = vshrl.u32 %v2070_v7, 16  ;;  %v1731_v54 = vld [vmem:[#allocation2 + $0x70] sm:$0xf0]  ;;  %v2285_v8 = vrot.slane %v2283_v14, 4  ;;  %v2071_v23 = vld [vmem:[#allocation2 + $0x20] sm:$0xf0] }
 0x53b   : > { %v2290_v44 = vrot.slane %v2288_v52, 3  ;;  %v2130_v12 = vshll.u32 %v2070_v7, 16  ;;  %v2135_v33 = vshrl.u32 %v2118_v55, 16  ;;  %v2293_v56 = vrot.slane %v2291_v46, 4  ;;  %v2119_v61 = vld [vmem:[#allocation2 + $0x28] sm:$0x1f] }
 0x53c   : > { %v2572_v36 = vsel %vm1781_vm4, %v2563_v29, %v2571_v62  ;;  %v2129_v25 = vrot.slane %v2127_v20, 4  ;;  %v2138_v13 = vshll.u32 %v2118_v55, 16  ;;  %v1935_v47 = vshrl.u32 %v1918_v15, 16 }
 0x53d   : > { %10378 = vmatmul.mubr.msk.bf16.gmra.mrb[12].mxu1 %vm727_vm1, %v2572_v36  ;;  %v2132_v4 = vrot.slane %v2130_v12, 5  ;;  %v2137_v48 = vrot.slane %v2135_v33, 4  ;;  %v1938_v30 = vshll.u32 %v1918_v15, 16  ;;  %v1770_v14 = vrot.slane %v1731_v54, 4  ;;  %v1774_v54 = vld [vmem:[#allocation2 + $0x18] sm:$0x1f] }
 0x53e   : > { %2617 = vrot.lane.b32.xlu0 %v1766_v11, %s11501_s19  ;;  %10381 = vmatprep.mubr.msk.bf16.mxu1 %vm727_vm1, %v2589_v9  ;;  %v2140_v52 = vrot.slane %v2138_v13, 5  ;;  %v1943_v7 = vshrl.u32 %v1919_v0, 16  ;;  %v1946_v46 = vshll.u32 %v1919_v0, 16  ;;  %v2286_v39 = vor.u32 %v2285_v8, %v2282_v28 }
 0x53f   : > { %4315 = vrot.lane.b32.xlu1 %v12648_v16, %s11503_s16  ;;  %v1937_v55 = vrot.slane %v1935_v47, 3  ;;  %v1940_v57 = vrot.slane %v1938_v30, 4  ;;  %v2144_v29 = vshrl.u32 %v2071_v23, 16  ;;  %v2294_v62 = vor.u32 %v2293_v56, %v2290_v44  ;;  %v2072_v30 = vld [vmem:[#allocation2 + $0x30] sm:$0xf0] }
 0x540   : > { %v1945_v11 = vrot.slane %v1943_v7, 3  ;;  %v1948_v20 = vrot.slane %v1946_v46, 4  ;;  %v2147_v12 = vshll.u32 %v2071_v23, 16  ;;  %v2133_v9 = vor.u32 %v2132_v4, %v2129_v25  ;;  %v1921_v23 = vld [vmem:[#allocation2 + $0x28] sm:$0xf] }
 0x541   : > { %v2141_v15 = vor.u32 %v2140_v52, %v2137_v48  ;;  %v2152_v33 = vshrl.u32 %v2119_v61, 16  ;;  %v2155_v16 = vshll.u32 %v2119_v61, 16  ;;  %v2606_v28 = vsel %vm1781_vm4, %v2597_v27, %v2605_v3  ;;  %v1920_v27 = vld [vmem:[#allocation2 + $0x20] sm:$0xf8] }
 0x542   : > { %4235 = vrot.lane.b32.xlu0 %v12723_v45, %s11501_s19  ;;  %v1941_v0 = vor.u32 %v1940_v57, %v1937_v55  ;;  %v1949_v8 = vor.u32 %v1948_v20, %v1945_v11  ;;  %v12807_v44 = vrot.slane %v2144_v29, 4  ;;  %v2265_v45 = vld [vmem:[#allocation2 + $0x30] sm:$0xf8]  ;;  %v12809_v36 = vrot.slane %v2147_v12, 5  ;;  %v2120_v55 = vld [vmem:[#allocation2 + $0x38] sm:$0x1f] }
 0x543   : > { %2699 = vrot.lane.b32.xlu1 %v12745_v31, %s11503_s16  ;;  %v12811_v56 = vrot.slane %v2152_v33, 4  ;;  %v12813_v25 = vrot.slane %v2155_v16, 5  ;;  %v1800_v1 = vshrl.u32 %v12559_v50, 16  ;;  %v12819_v63 = vsel %vm1748_vm3, %v4079_v2, %v4080_v34  ;;  %v3692_v20 = vld [vmem:[#allocation2 + $0x90] sm:$0xf0] }
 0x544   : > { %v1803_v18 = vshll.u32 %v12559_v50, 16  ;;  %v1808_v6 = vshrl.u32 %v1774_v54, 16  ;;  %v1811_v31 = vshll.u32 %v1774_v54, 16  ;;  %v1772_v3 = vsel %vm1748_vm3, %v1770_v14, %v1771_v32  ;;  %v3740_v16 = vld [vmem:[#allocation2 + $0x98] sm:$0x1f] }
 0x545   : > { %10382 = vmatmul.mubr.msk.bf16.gmra.mrb[16].mxu1 %vm727_vm1, %v2606_v28  ;;  %v12829_v13 = vsel %vm635_vm6, %v2286_v39, %v2294_v62  ;;  %v12832_v41 = vsel %vm1781_vm4, %v2133_v9, %v2141_v15  ;;  %v2297_v2 = vshrl.u32 %v2265_v45, 16  ;;  %v12837_v50 = vsel %vm635_vm6, %v1941_v0, %v1949_v8 }
 0x546   : > { %2619 = vrot.lane.b32.xlu0 %v12757_v5, %s11501_s19  ;;  %v2300_v34 = vshll.u32 %v2265_v45, 16  ;;  %v2305_v5 = vshrl.u32 %v12584_v21, 16  ;;  %v2308_v58 = vshll.u32 %v12584_v21, 16  ;;  %v2150_v32 = vor.u32 %v12809_v36, %v12807_v44 }
 0x547   : > { %4317 = vrot.lane.b32.xlu1 %v12726_v43, %s11503_s16  ;;  %v2158_v4 = vor.u32 %v12813_v25, %v12811_v56  ;;  %v12845_v48 = vrot.slane %v1800_v1, 4  ;;  %v1952_v47 = vshrl.u32 %v1920_v27, 16  ;;  %v12847_v43 = vrot.slane %v1803_v18, 5  ;;  %v1775_v18 = vld [vmem:[#allocation2 + $0x28] sm:$0x1f] }
 0x548   : > { %v12849_v14 = vrot.slane %v1808_v6, 4  ;;  %v1813_v52 = vrot.slane %v1811_v31, 5  ;;  %v12851_v7 = vrot.slane %v2297_v2, 3  ;;  %v12855_v21 = vrot.slane %v2300_v34, 4 }
 0x549   : > { %v1955_v46 = vshll.u32 %v1920_v27, 16  ;;  %v1960_v61 = vshrl.u32 %v1921_v23, 16  ;;  %v1963_v39 = vshll.u32 %v1921_v23, 16  ;;  %v2307_v57 = vrot.slane %v2305_v5, 3 }
 0x54a   : > { %4237 = vrot.lane.b32.xlu0 %v12750_v40, %s11501_s19  ;;  %v2310_v29 = vrot.slane %v2308_v58, 4  ;;  %v1954_v62 = vrot.slane %v1952_v47, 3  ;;  %v2161_v11 = vshrl.u32 %v2072_v30, 16  ;;  %v2164_v33 = vshll.u32 %v2072_v30, 16 }
 0x54b   : > { %2701 = vrot.lane.b32.xlu1 %v12772_v49, %s11503_s16  ;;  %v1957_v12 = vrot.slane %v1955_v46, 4  ;;  %v1962_v9 = vrot.slane %v1960_v61, 3  ;;  %v1965_v15 = vrot.slane %v1963_v39, 4  ;;  %v1806_v40 = vor.u32 %v12847_v43, %v12845_v48 }
 0x54c   : > { %v2163_v54 = vrot.slane %v2161_v11, 4  ;;  %v2169_v28 = vshrl.u32 %v2120_v55, 16  ;;  %v2172_v0 = vshll.u32 %v2120_v55, 16  ;;  %v1814_v49 = vor.u32 %v1813_v52, %v12849_v14 }
 0x54d   : > { %v2303_v8 = vor.u32 %v12855_v21, %v12851_v7  ;;  %v2166_v44 = vrot.slane %v2164_v33, 5  ;;  %v3749_v45 = vshrl.u32 %v3692_v20, 16  ;;  %v3752_v25 = vshll.u32 %v3692_v20, 16  ;;  %v1923_v33 = vld [vmem:[#allocation2 + $0x38] sm:$0xf] }
 0x54e   : > { %2621 = vrot.lane.b32.xlu0 %v1772_v3, %s11501_s19  ;;  %v2171_v36 = vrot.slane %v2169_v28, 4  ;;  %v2174_v56 = vrot.slane %v2172_v0, 5  ;;  %v3757_v1 = vshrl.u32 %v3740_v16, 16  ;;  %v2311_v6 = vor.u32 %v2310_v29, %v2307_v57  ;;  %v595_v3 = vld [vmem:[#allocation2 + $0x40] sm:$0x8] }
 0x54f   : > { %4319 = vrot.lane.b32.xlu1 %v12753_v53, %s11503_s16  ;;  %v1958_v31 = vor.u32 %v1957_v12, %v1954_v62  ;;  %v1966_v27 = vor.u32 %v1965_v15, %v1962_v9  ;;  %v3760_v2 = vshll.u32 %v3740_v16, 16  ;;  %v2167_v34 = vor.u32 %v2166_v44, %v2163_v54  ;;  %v1922_v15 = vld [vmem:[#allocation2 + $0x30] sm:$0xf8] }
 0x550   : > { %v2175_v5 = vor.u32 %v2174_v56, %v2171_v36  ;;  %v12867_v58 = vrot.slane %v3749_v45, 4  ;;  %v1817_v23 = vshrl.u32 %v12575_v38, 16  ;;  %v12872_v53 = vrot.slane %v3752_v25, 5  ;;  %v610_v54 = vld [vmem:[#allocation2 + $0x90] sm:$0x8] }
 0x551   : > { %v1820_v48 = vshll.u32 %v12575_v38, 16  ;;  %v1825_v47 = vshrl.u32 %v1775_v18, 16  ;;  %v1828_v30 = vshll.u32 %v1775_v18, 16  ;;  %v3759_v43 = vrot.slane %v3757_v1, 4  ;;  %v3395_v38 = vld [vmem:[#allocation2 + $0x88] sm:$0x1f] }
 0x552   : > { %4239 = vrot.lane.b32.xlu0 %v12775_v59, %s11501_s19  ;;  %v3762_v14 = vrot.slane %v3760_v2, 5  ;;  %v12877_v52 = vrot.slane %v1817_v23, 4  ;;  %v596_v7 = vsel %vm12266_vm10, 0, %v595_v3  ;;  %v2159_v21 = vsel %vm1781_vm4, %v2150_v32, %v2158_v4  ;;  %v613_v4 = vld [vmem:[#allocation2 + $0xa0] sm:$0x8] }
 0x553   : > { %4241 = vrot.lane.b32.xlu1 %v12760_v26, %s11501_s19  ;;  %v12882_v46 = vrot.slane %v1820_v48, 5  ;;  %v12884_v59 = vrot.slane %v1825_v47, 4  ;;  %v12886_v61 = vrot.slane %v1828_v30, 5  ;;  %597 = vst [vmem:[#allocation2 + $0x40] sm:$0x8] %v596_v7  ;;  %v10822_v26 = vld [vmem:[%s15725_s5 + $0x40] sm:$0xff]   ;;  %v12892_v39 = vsel %vm1781_vm4, %v1806_v40, %v1814_v49 }
 0x554   : > { %v2322_v55 = vshrl.u32 %v12578_v35, 16  ;;  %v2325_v57 = vshll.u32 %v12578_v35, 16  ;;  %v3404_v32 = vshrl.u32 %v12651_v37, 16  ;;  %v12900_v29 = vsel %vm635_vm6, %v2303_v8, %v2311_v6  ;;  %9847 = vmatprep.subr.bf16.mxu0 %v10822_v26  ;;  %9921 = vmatprep.subr.bf16.mxu1 %v10822_v26  ;;  %v3541_v25 = vld [vmem:[#allocation2 + $0x98] sm:$0xf]  ;;  %v10823_v48 = vld [vmem:[%s15725_s5] sm:$0xff]  }
 0x555   : > { %v12903_v62 = vsel %vm635_vm6, %v1958_v31, %v1966_v27  ;;  %v12906_v11 = vsel %vm1781_vm4, %v2167_v34, %v2175_v5  ;;  %v3407_v20 = vshll.u32 %v12651_v37, 16  ;;  %v3755_v35 = vor.u32 %v12872_v53, %v12867_v58  ;;  %v2073_v34 = vld [vmem:[#allocation2 + $0x40] sm:$0xf0]  ;;  %v2121_v53 = vld [vmem:[#allocation2 + $0x48] sm:$0x1f]  ;;  %9848 = vmatpush3.bf16.msra.mxu0 %v10823_v48  ;;  %9922 = vmatpush3.bf16.msra.mxu1 %v10823_v48 }
 0x556   : > { %4321 = vrot.lane.b32.xlu0 %v12819_v63, %s11503_s16  ;;  %v3763_v12 = vor.u32 %v3762_v14, %v3759_v43  ;;  %v1823_v63 = vor.u32 %v12882_v46, %v12877_v52  ;;  %v3412_v9 = vshrl.u32 %v3395_v38, 16  ;;  %v1831_v16 = vor.u32 %v12886_v61, %v12884_v59  ;;  %v10824_v52 = vld [vmem:[%s15725_s5 + $0x48] sm:$0xff]   ;;  %v616_v48 = vld [vmem:[#allocation2 + $0xb0] sm:$0x8] }
 0x557   : > { %4243 = vrot.lane.b32.xlu1 %v12786_v17, %s11501_s19  ;;  %v12917_v40 = vrot.slane %v2322_v55, 3  ;;  %v3415_v37 = vshll.u32 %v3395_v38, 16  ;;  %v614_v17 = vsel %vm12266_vm10, 0, %v613_v4  ;;  %v12921_v28 = vrot.slane %v2325_v57, 4  ;;  %9849 = vmatprep.subr.bf16.mxu0 %v10824_v52 }
 0x558   : > { %v12923_v0 = vrot.slane %v3404_v32, 4  ;;  %615 = vst [vmem:[#allocation2 + $0xa0] sm:$0x8] %v614_v17  ;;  %v3910_v49 = vshrl.u32 %v12557_v22, 16  ;;  %v3913_v8 = vshll.u32 %v12557_v22, 16  ;;  %v12929_v44 = vrot.slane %v3407_v20, 5  ;;  %9923 = vmatprep.subr.bf16.mxu1 %v10824_v52 }
 0x559   : > { %v1969_v45 = vshrl.u32 %v1922_v15, 16  ;;  %v1972_v36 = vshll.u32 %v1922_v15, 16  ;;  %v1977_v56 = vshrl.u32 %v1923_v33, 16  ;;  %v3414_v18 = vrot.slane %v3412_v9, 4 }
 0x55a   : > { %2655 = vrot.lane.b32.xlu0 %v12832_v41, %s11501_s19  ;;  %v2267_v1 = vld [vmem:[#allocation2 + $0x40] sm:$0xf8]  ;;  %v3417_v6 = vrot.slane %v3415_v37, 5  ;;  %v1980_v31 = vshll.u32 %v1923_v33, 16  ;;  %v611_v27 = vsel %vm12266_vm10, 0, %v610_v54  ;;  %v12935_v3 = vrot.slane %v3910_v49, 3 }
 0x55b   : > { %2671 = vrot.lane.b32.xlu1 %v12829_v13, %s11502_s29  ;;  %v2314_v22 = vshrl.u32 %v2267_v1, 16  ;;  %v2317_v2 = vshll.u32 %v2267_v1, 16  ;;  %v12937_v41 = vrot.slane %v3913_v8, 4  ;;  %612 = vst [vmem:[#allocation2 + $0x90] sm:$0x8] %v611_v27  ;;  %v12940_v5 = vsel %vm1781_vm4, %v3755_v35, %v3763_v12  ;;  %v10825_v8 = vld [vmem:[%s15725_s5 + $0x8] sm:$0xff]  }
 0x55c   : > { %v12942_v58 = vrot.slane %v1969_v45, 3  ;;  %v12944_v13 = vrot.slane %v1972_v36, 4  ;;  %v12946_v23 = vrot.slane %v1977_v56, 3  ;;  %v1982_v43 = vrot.slane %v1980_v31, 4  ;;  %v664_v35 = vld [vmem:[#allocation2 + $0xa8] sm:$0x10]  ;;  %9850 = vmatpush3.bf16.msra.mxu0 %v10825_v8  ;;  %9924 = vmatpush3.bf16.msra.mxu1 %v10825_v8 }
 0x55d   : > { %v2316_v47 = vrot.slane %v2314_v22, 3  ;;  %v2319_v30 = vrot.slane %v2317_v2, 4  ;;  %v3565_v14 = vshrl.u32 %v3541_v25, 16  ;;  %v12958_v7 = vsel %vm1781_vm4, %v1823_v63, %v1831_v16  ;;  %v3693_v33 = vld [vmem:[#allocation2 + $0xa0] sm:$0xf0] }
 0x55e   : > { %2657 = vrot.lane.b32.xlu0 %v2159_v21, %s11501_s19  ;;  %v2328_v46 = vor.u32 %v12921_v28, %v12917_v40  ;;  %v3568_v59 = vshll.u32 %v3541_v25, 16  ;;  %v2178_v61 = vshrl.u32 %v2073_v34, 16  ;;  %v3410_v21 = vor.u32 %v12929_v44, %v12923_v0  ;;  %v1776_v56 = vld [vmem:[#allocation2 + $0x38] sm:$0x1f]  ;;  %v10826_v25 = vld [vmem:[%s15725_s5 + $0x50] sm:$0xff]  }
 0x55f   : > { %2639 = vrot.lane.b32.xlu1 %v12837_v50, %s11503_s16  ;;  %v3418_v38 = vor.u32 %v3417_v6, %v3414_v18  ;;  %v3885_v26 = vld [vmem:[#allocation2 + $0xa0] sm:$0xf8]  ;;  %v3916_v55 = vor.u32 %v12937_v41, %v12935_v3  ;;  %v2181_v57 = vshll.u32 %v2073_v34, 16  ;;  %v1975_v4 = vor.u32 %v12944_v13, %v12942_v58  ;;  %v598_v27 = vld [vmem:[#allocation2 + $0x50] sm:$0x8]  ;;  %9851 = vmatprep.subr.bf16.mxu0 %v10826_v25 }
 0x560   : > { %v3902_v50 = vshrl.u32 %v3885_v26, 16  ;;  %v3905_v32 = vshll.u32 %v3885_v26, 16  ;;  %v2186_v20 = vshrl.u32 %v2121_v53, 16  ;;  %v2320_v12 = vor.u32 %v2319_v30, %v2316_v47  ;;  %9925 = vmatprep.subr.bf16.mxu1 %v10826_v25 }
 0x561   : > { %v1983_v63 = vor.u32 %v1982_v43, %v12946_v23  ;;  %v12971_v9 = vrot.slane %v3565_v14, 3  ;;  %v12973_v15 = vrot.slane %v3568_v59, 4  ;;  %v12977_v17 = vrot.slane %v2178_v61, 4 }
 0x562   : > { %2673 = vrot.lane.b32.xlu0 %v12900_v29, %s11502_s29  ;;  %v3904_v16 = vrot.slane %v3902_v50, 3  ;;  %v3907_v40 = vrot.slane %v3905_v32, 4  ;;  %v3540_v37 = vld [vmem:[#allocation2 + $0x90] sm:$0xf8]  ;;  %v2189_v54 = vshll.u32 %v2121_v53, 16  ;;  %v12979_v29 = vrot.slane %v2181_v57, 5 }
 0x563   : > { %2625 = vrot.lane.b32.xlu1 %v12892_v39, %s11502_s29  ;;  %v3557_v28 = vshrl.u32 %v3540_v37, 16  ;;  %v3560_v0 = vshll.u32 %v3540_v37, 16  ;;  %v665_v49 = vsel %vm12243_vm7, 0, %v664_v35  ;;  %v3419_v44 = vsel %vm1781_vm4, %v3410_v21, %v3418_v38  ;;  %v3396_v53 = vld [vmem:[#allocation2 + $0x98] sm:$0x1f] }
 0x564   : > { %v3908_v39 = vor.u32 %v3907_v40, %v3904_v16  ;;  %v12987_v45 = vrot.slane %v2186_v20, 4  ;;  %v12989_v36 = vrot.slane %v2189_v54, 5  ;;  %666 = vst [vmem:[#allocation2 + $0xa8] sm:$0x10] %v665_v49  ;;  %v3766_v1 = vshrl.u32 %v3693_v33, 16 }
 0x565   : > { %v3769_v18 = vshll.u32 %v3693_v33, 16  ;;  %v1834_v6 = vshrl.u32 %v12613_v10, 16  ;;  %v1837_v31 = vshll.u32 %v12613_v10, 16  ;;  %v2329_v22 = vsel %vm635_vm6, %v2320_v12, %v2328_v46  ;;  %v10828_v33 = vld [vmem:[%s15725_s5 + $0x58] sm:$0xff]  }
 0x566   : > { %2659 = vrot.lane.b32.xlu0 %v12906_v11, %s11501_s19  ;;  %v13002_v2 = vsel %vm635_vm6, %v1975_v4, %v1983_v63  ;;  %v3571_v3 = vor.u32 %v12973_v15, %v12971_v9  ;;  %v13006_v11 = vrot.slane %v3557_v28, 3  ;;  %v13008_v41 = vrot.slane %v3560_v0, 4  ;;  %v1924_v4 = vld [vmem:[#allocation2 + $0x40] sm:$0xf8]  ;;  %v10827_v63 = vld [vmem:[%s15725_s5 + $0x10] sm:$0xff]  }
 0x567   : > { %2641 = vrot.lane.b32.xlu1 %v12903_v62, %s11503_s16  ;;  %v2184_v10 = vor.u32 %v12979_v29, %v12977_v17  ;;  %v1842_v34 = vshrl.u32 %v1776_v56, 16  ;;  %v3917_v62 = vsel %vm635_vm6, %v3908_v39, %v3916_v55  ;;  %v2192_v58 = vor.u32 %v12989_v36, %v12987_v45  ;;  %v11044_v0 = vld [vmem:[#allocation2 + $0xb8] sm:$0xf]  ;;  %9852 = vmatpush3.bf16.msra.mxu0 %v10827_v63  ;;  %v2074_v36 = vld [vmem:[#allocation2 + $0x50] sm:$0xf0]  ;;  %v10830_v29 = vld [vmem:[%s15725_s5 + $0x60] sm:$0xff]  }
 0x568   : > { %v1845_v13 = vshll.u32 %v1776_v56, 16  ;;  %v599_v23 = vsel %vm12266_vm10, 0, %v598_v27  ;;  %v13019_v47 = vrot.slane %v3766_v1, 4  ;;  %v13021_v30 = vrot.slane %v3769_v18, 5  ;;  %9926 = vmatpush3.bf16.msra.mxu1 %v10827_v63  ;;  %9853 = vmatprep.subr.bf16.mxu0 %v10828_v33  ;;  %v10829_v17 = vld [vmem:[%s15725_s5 + $0x18] sm:$0xff]  }
 0x569   : > { %v13023_v43 = vrot.slane %v1834_v6, 4  ;;  %v13025_v14 = vrot.slane %v1837_v31, 5  ;;  %600 = vst [vmem:[#allocation2 + $0x50] sm:$0x8] %v599_v23  ;;  %v13029_v52 = vrot.slane %v1842_v34, 4  ;;  %v2339_v46 = vshrl.u32 %v12642_v19, 16  ;;  %9927 = vmatprep.subr.bf16.mxu1 %v10828_v33 }
 0x56a   : > { %2627 = vrot.lane.b32.xlu0 %v12958_v7, %s11502_s29  ;;  %v3421_v59 = vshrl.u32 %v12716_v42, 16  ;;  %v3424_v7 = vshll.u32 %v12716_v42, 16  ;;  %v1847_v21 = vrot.slane %v1845_v13, 5  ;;  %v3429_v38 = vshrl.u32 %v3396_v53, 16  ;;  %v3542_v23 = vld [vmem:[#allocation2 + $0xa0] sm:$0xf8] }
 0x56b   : > { %4277 = vrot.lane.b32.xlu1 %v12940_v5, %s11501_s19  ;;  %v3741_v61 = vld [vmem:[#allocation2 + $0xa8] sm:$0x1f]  ;;  %v3432_v26 = vshll.u32 %v3396_v53, 16  ;;  %v617_v55 = vsel %vm12266_vm10, 0, %v616_v48  ;;  %v3563_v57 = vor.u32 %v13008_v41, %v13006_v11  ;;  %v2342_v32 = vshll.u32 %v12642_v19, 16  ;;  %9854 = vmatpush3.bf16.msra.mxu0 %v10829_v17 }
 0x56c   : > { %v3774_v50 = vshrl.u32 %v3741_v61, 16  ;;  %v3777_v5 = vshll.u32 %v3741_v61, 16  ;;  %618 = vst [vmem:[#allocation2 + $0xb0] sm:$0x8] %v617_v55  ;;  %v3423_v20 = vrot.slane %v3421_v59, 4  ;;  %v3426_v42 = vrot.slane %v3424_v7, 5  ;;  %9928 = vmatpush3.bf16.msra.mxu1 %v10829_v17  ;;  %9855 = vmatprep.subr.bf16.mxu0 %v10830_v29 }
 0x56d   : > { %v3431_v35 = vrot.slane %v3429_v38, 4  ;;  %v3434_v12 = vrot.slane %v3432_v26, 5  ;;  %v3772_v19 = vor.u32 %v13021_v30, %v13019_v47  ;;  %v1840_v37 = vor.u32 %v13025_v14, %v13023_v43  ;;  %9929 = vmatprep.subr.bf16.mxu1 %v10830_v29 }
 0x56e   : > { %4245 = vrot.lane.b32.xlu0 %v3419_v44, %s11502_s29  ;;  %v3776_v16 = vrot.slane %v3774_v50, 4  ;;  %v3779_v40 = vrot.slane %v3777_v5, 5  ;;  %v1848_v54 = vor.u32 %v1847_v21, %v13029_v52  ;;  %v13052_v28 = vrot.slane %v2339_v46, 3  ;;  %v1925_v44 = vld [vmem:[#allocation2 + $0x48] sm:$0xf] }
 0x56f   : > { %2675 = vrot.lane.b32.xlu1 %v2329_v22, %s11502_s29  ;;  %v3927_v49 = vshrl.u32 %v11044_v0, 16  ;;  %v3930_v8 = vshll.u32 %v11044_v0, 16  ;;  %v2344_v56 = vrot.slane %v2342_v32, 4  ;;  %v3427_v25 = vor.u32 %v3426_v42, %v3423_v20  ;;  %v3543_v52 = vld [vmem:[#allocation2 + $0xa8] sm:$0xf] }
 0x570   : > { %v2269_v39 = vld [vmem:[#allocation2 + $0x50] sm:$0xf8]  ;;  %v1986_v1 = vshrl.u32 %v1924_v4, 16  ;;  %v1989_v18 = vshll.u32 %v1924_v4, 16  ;;  %v3780_v6 = vor.u32 %v3779_v40, %v3776_v16  ;;  %v3435_v22 = vor.u32 %v3434_v12, %v3431_v35  ;;  %v667_v32 = vld [vmem:[#allocation2 + $0xb8] sm:$0x10] }
 0x571   : > { %v2331_v31 = vshrl.u32 %v2269_v39, 16  ;;  %v2334_v27 = vshll.u32 %v2269_v39, 16  ;;  %v13057_v11 = vrot.slane %v3927_v49, 3  ;;  %v13059_v41 = vrot.slane %v3930_v8, 4  ;;  %v3694_v12 = vld [vmem:[#allocation2 + $0xb0] sm:$0xf0] }
 0x572   : > { %2643 = vrot.lane.b32.xlu0 %v13002_v2, %s11503_s16  ;;  %v13061_v34 = vrot.slane %v1986_v1, 3  ;;  %v1994_v13 = vshrl.u32 %v1925_v44, 16  ;;  %v13063_v30 = vrot.slane %v1989_v18, 4  ;;  %v1997_v2 = vshll.u32 %v1925_v44, 16  ;;  %v1777_v40 = vld [vmem:[#allocation2 + $0x48] sm:$0x1f] }
 0x573   : > { %4293 = vrot.lane.b32.xlu1 %v3917_v62, %s11502_s29  ;;  %v2333_v53 = vrot.slane %v2331_v31, 3  ;;  %v2336_v48 = vrot.slane %v2334_v27, 4  ;;  %v3887_v47 = vld [vmem:[#allocation2 + $0xb0] sm:$0xf8]  ;;  %v2193_v62 = vsel %vm1781_vm4, %v2184_v10, %v2192_v58  ;;  %v3572_v46 = vsel %vm635_vm6, %v3563_v57, %v3571_v3  ;;  %v2122_v58 = vld [vmem:[#allocation2 + $0x58] sm:$0x1f] }
 0x574   : > { %v3919_v43 = vshrl.u32 %v3887_v47, 16  ;;  %v3922_v14 = vshll.u32 %v3887_v47, 16  ;;  %v1849_v59 = vsel %vm1781_vm4, %v1840_v37, %v1848_v54  ;;  %v2345_v45 = vor.u32 %v2344_v56, %v13052_v28  ;;  %v11045_v39 = vld [vmem:[#allocation2 + $0x40] sm:$0xf0]  ;;  %v601_v27 = vld [vmem:[#allocation2 + $0x60] sm:$0x8] }
 0x575   : > { %v2337_v7 = vor.u32 %v2336_v48, %v2333_v53  ;;  %v3436_v9 = vsel %vm1781_vm4, %v3427_v25, %v3435_v22  ;;  %v1996_v15 = vrot.slane %v1994_v13, 3  ;;  %v1999_v3 = vrot.slane %v1997_v2, 4  ;;  %v13099_v25 = vpop.permute.xlu1 %2623  ;;  %v13104_v53 = vpop.permute.xlu0 %2607  ;;  %v10831_v48 = vld [vmem:[%s15725_s5 + $0x20] sm:$0xff]  }
 0x576   : > { %2661 = vrot.lane.b32.xlu0 %v2193_v62, %s11501_s19  ;;  %v3574_v10 = vshrl.u32 %v3542_v23, 16  ;;  %v3781_v61 = vsel %vm1781_vm4, %v3772_v19, %v3780_v6  ;;  %v3933_v21 = vor.u32 %v13059_v41, %v13057_v11  ;;  %v1992_v38 = vor.u32 %v13063_v30, %v13061_v34  ;;  %9856 = vmatpush3.bf16.msra.mxu0 %v10831_v48 }
 0x577   : > { %4261 = vrot.lane.b32.xlu1 %v3572_v46, %s11503_s16  ;;  %v3577_v26 = vshll.u32 %v3542_v23, 16  ;;  %v3921_v55 = vrot.slane %v3919_v43, 3  ;;  %v3924_v57 = vrot.slane %v3922_v14, 4  ;;  %v3582_v50 = vshrl.u32 %v3543_v52, 16  ;;  %v3397_v43 = vld [vmem:[#allocation2 + $0xa8] sm:$0x1f]  ;;  %9930 = vmatpush3.bf16.msra.mxu1 %v10831_v48 }
 0x578   : > { %v2195_v5 = vshrl.u32 %v2074_v36, 16  ;;  %v2346_v4 = vsel %vm635_vm6, %v2337_v7, %v2345_v45  ;;  %v3585_v20 = vshll.u32 %v3543_v52, 16  ;;  %v2198_v42 = vshll.u32 %v2074_v36, 16  ;;  %v11046_v36 = vld [vmem:[#allocation2 + $0xa0] sm:$0xf0] }
 0x579   : > { %v2203_v35 = vshrl.u32 %v2122_v58, 16  ;;  %v2000_v63 = vor.u32 %v1999_v3, %v1996_v15  ;;  %v13095_v33 = vrot.slane %v3574_v10, 3  ;;  %v2206_v16 = vshll.u32 %v2122_v58, 16  ;;  %v10832_v15 = vld [vmem:[%s15725_s5 + $0x68] sm:$0xff]  }
 0x57a   : > { %2629 = vrot.lane.b32.xlu0 %v1849_v59, %s11502_s29  ;;  %v2197_v19 = vrot.slane %v2195_v5, 4  ;;  %v3579_v37 = vrot.slane %v3577_v26, 4  ;;  %v2200_v54 = vrot.slane %v2198_v42, 5  ;;  %v668_v0 = vsel %vm12243_vm7, 0, %v667_v32  ;;  %v11047_v10 = vld [vmem:[#allocation2 + $0x68] sm:$0xf]  ;;  %9857 = vmatprep.subr.bf16.mxu0 %v10832_v15  ;;  %v13123_v42 = vpop.permute.xlu0 %2687 }
 0x57b   : > { %4279 = vrot.lane.b32.xlu1 %v3781_v61, %s11501_s19  ;;  %v2205_v28 = vrot.slane %v2203_v35, 4  ;;  %v3925_v49 = vor.u32 %v3924_v57, %v3921_v55  ;;  %v3584_v8 = vrot.slane %v3582_v50, 3  ;;  %v2208_v44 = vrot.slane %v2206_v16, 5  ;;  %669 = vst [vmem:[#allocation2 + $0xb8] sm:$0x10] %v668_v0  ;;  %9931 = vmatprep.subr.bf16.mxu1 %v10832_v15 }
 0x57c   : > { %v1851_v56 = vshrl.u32 %v11045_v39, 16  ;;  %v3587_v1 = vrot.slane %v3585_v20, 4  ;;  %v3783_v18 = vshrl.u32 %v3694_v12, 16  ;;  %v1854_v6 = vshll.u32 %v11045_v39, 16  ;;  %v619_v35 = vld [vmem:[#allocation2 + $0xc0] sm:$0x8] }
 0x57d   : > { %v1859_v31 = vshrl.u32 %v1777_v40, 16  ;;  %v2201_v22 = vor.u32 %v2200_v54, %v2197_v19  ;;  %v2209_v11 = vor.u32 %v2208_v44, %v2205_v28  ;;  %v3786_v41 = vshll.u32 %v3694_v12, 16 }
 0x57e   : > { %4247 = vrot.lane.b32.xlu0 %v3436_v9, %s11502_s29  ;;  %v1862_v34 = vshll.u32 %v1777_v40, 16  ;;  %v2001_v13 = vsel %vm635_vm6, %v1992_v38, %v2000_v63  ;;  %v1853_v23 = vrot.slane %v1851_v56, 4  ;;  %v1856_v47 = vrot.slane %v1854_v6, 5  ;;  %v13116_v9 = vpop.permute.xlu1 %2609  ;;  %v1927_v6 = vld [vmem:[#allocation2 + $0x58] sm:$0xf] }
 0x57f   : > { %2677 = vrot.lane.b32.xlu1 %v2346_v4, %s11502_s29  ;;  %v1861_v30 = vrot.slane %v1859_v31, 4  ;;  %v602_v62 = vsel %vm12266_vm10, 0, %v601_v27  ;;  %v3934_v14 = vsel %vm635_vm6, %v3925_v49, %v3933_v21  ;;  %v3580_v52 = vor.u32 %v3579_v37, %v13095_v33 }
 0x580   : > { %v1864_v2 = vrot.slane %v1862_v34, 5  ;;  %v3588_v46 = vor.u32 %v3587_v1, %v3584_v8  ;;  %v3785_v59 = vrot.slane %v3783_v18, 4  ;;  %603 = vst [vmem:[#allocation2 + $0x60] sm:$0x8] %v602_v62  ;;  %v2210_v7 = vsel %vm1781_vm4, %v2201_v22, %v2209_v11  ;;  %v1926_v1 = vld [vmem:[#allocation2 + $0x50] sm:$0xf8]  ;;  %v13134_v34 = vpop.permute.xlu0 %2689 }
 0x581   : > { %v3788_v45 = vrot.slane %v3786_v41, 5  ;;  %v3438_v17 = vshrl.u32 %v11046_v36, 16  ;;  %v3441_v29 = vshll.u32 %v11046_v36, 16  ;;  %v2356_v58 = vshrl.u32 %v11047_v10, 16  ;;  %v11048_v11 = vld [vmem:[#allocation2 + $0xc8] sm:$0xf] }
 0x582   : > { %2645 = vrot.lane.b32.xlu0 %v2001_v13, %s11503_s16  ;;  %v3742_v3 = vld [vmem:[#allocation2 + $0xb8] sm:$0x1f]  ;;  %v2359_v61 = vshll.u32 %v11047_v10, 16  ;;  %v3446_v21 = vshrl.u32 %v3397_v43, 16  ;;  %v3449_v38 = vshll.u32 %v3397_v43, 16  ;;  %v1857_v57 = vor.u32 %v1856_v47, %v1853_v23  ;;  %v13129_v8 = vpop.permute.xlu1 %2691 }
 0x583   : > { %4295 = vrot.lane.b32.xlu1 %v3934_v14, %s11502_s29  ;;  %v3791_v26 = vshrl.u32 %v3742_v3, 16  ;;  %v3794_v55 = vshll.u32 %v3742_v3, 16  ;;  %v1865_v50 = vor.u32 %v1864_v2, %v1861_v30  ;;  %v3589_v5 = vsel %vm635_vm6, %v3580_v52, %v3588_v46  ;;  %v3544_v47 = vld [vmem:[#allocation2 + $0xb0] sm:$0xf8]  ;;  %v10833_v14 = vld [vmem:[%s15725_s5 + $0x28] sm:$0xff]  }
 0x584   : > { %v3440_v32 = vrot.slane %v3438_v17, 4  ;;  %v3443_v4 = vrot.slane %v3441_v29, 5  ;;  %v3448_v20 = vrot.slane %v3446_v21, 4  ;;  %v3789_v12 = vor.u32 %v3788_v45, %v3785_v59  ;;  %v10834_v52 = vld [vmem:[%s15725_s5 + $0x70] sm:$0xff]   ;;  %v3545_v45 = vld [vmem:[#allocation2 + $0xb8] sm:$0xf]  ;;  %9858 = vmatpush3.bf16.msra.mxu0 %v10833_v14  ;;  %9932 = vmatpush3.bf16.msra.mxu1 %v10833_v14 }
 0x585   : > { %v3793_v63 = vrot.slane %v3791_v26, 4  ;;  %v3796_v33 = vrot.slane %v3794_v55, 5  ;;  %v2358_v19 = vrot.slane %v2356_v58, 3  ;;  %v2361_v16 = vrot.slane %v2359_v61, 4  ;;  %v2075_v3 = vld [vmem:[#allocation2 + $0x60] sm:$0xf0]  ;;  %9859 = vmatprep.subr.bf16.mxu0 %v10834_v52  ;;  %9933 = vmatprep.subr.bf16.mxu1 %v10834_v52 }
 0x586   : > { %2663 = vrot.lane.b32.xlu0 %v2210_v7, %s11501_s19  ;;  %v3451_v40 = vrot.slane %v3449_v38, 5  ;;  %v1866_v54 = vsel %vm1781_vm4, %v1857_v57, %v1865_v50  ;;  %v3444_v0 = vor.u32 %v3443_v4, %v3440_v32  ;;  %v620_v49 = vsel %vm12266_vm10, 0, %v619_v35  ;;  %v13144_v36 = vpop.permute.xlu1 %4309  ;;  %v607_v52 = vld [vmem:[#allocation2 + $0x80] sm:$0x8] }
 0x587   : > { %4263 = vrot.lane.b32.xlu1 %v3589_v5, %s11503_s16  ;;  %v3797_v37 = vor.u32 %v3796_v33, %v3793_v63  ;;  %v2271_v28 = vld [vmem:[#allocation2 + $0x60] sm:$0xf8]  ;;  %621 = vst [vmem:[#allocation2 + $0xc0] sm:$0x8] %v620_v49  ;;  %v2362_v22 = vor.u32 %v2361_v16, %v2358_v19  ;;  %v3944_v41 = vshrl.u32 %v11048_v11, 16  ;;  %v3947_v23 = vshll.u32 %v11048_v11, 16  ;;  %v13148_v5 = vpop.permute.xlu0 %2611 }
 0x588   : > { %v2348_v44 = vshrl.u32 %v2271_v28, 16  ;;  %v2351_v39 = vshll.u32 %v2271_v28, 16  ;;  %v3452_v56 = vor.u32 %v3451_v40, %v3448_v20  ;;  %v2003_v48 = vshrl.u32 %v1926_v1, 16 }
 0x589   : > { %v3798_v18 = vsel %vm1781_vm4, %v3789_v12, %v3797_v37  ;;  %v3946_v2 = vrot.slane %v3944_v41, 3  ;;  %v2006_v62 = vshll.u32 %v1926_v1, 16  ;;  %v2011_v43 = vshrl.u32 %v1927_v6, 16  ;;  %v2123_v12 = vld [vmem:[#allocation2 + $0x68] sm:$0x1f]  ;;  %v10836_v1 = vld [vmem:[%s15725_s5 + $0x78] sm:$0xff]  }
 0x58a   : > { %2631 = vrot.lane.b32.xlu0 %v1866_v54, %s11502_s29  ;;  %v2350_v31 = vrot.slane %v2348_v44, 3  ;;  %v2353_v27 = vrot.slane %v2351_v39, 4  ;;  %v3453_v13 = vsel %vm1781_vm4, %v3444_v0, %v3452_v56  ;;  %v3949_v46 = vrot.slane %v3947_v23, 4  ;;  %v10835_v56 = vld [vmem:[%s15725_s5 + $0x30] sm:$0xff]  }
 0x58b   : > { %4281 = vrot.lane.b32.xlu1 %v3798_v18, %s11501_s19  ;;  %v2005_v59 = vrot.slane %v2003_v48, 3  ;;  %v2014_v7 = vshll.u32 %v1927_v6, 16  ;;  %v2008_v29 = vrot.slane %v2006_v62, 4  ;;  %v2013_v15 = vrot.slane %v2011_v43, 3  ;;  %9860 = vmatpush3.bf16.msra.mxu0 %v10835_v56  ;;  %v1778_v48 = vld [vmem:[#allocation2 + $0x58] sm:$0x1f] }
 0x58c   : > { %v2354_v30 = vor.u32 %v2353_v27, %v2350_v31  ;;  %v3950_v58 = vor.u32 %v3949_v46, %v3946_v2  ;;  %v3591_v21 = vshrl.u32 %v3544_v47, 16  ;;  %v3594_v38 = vshll.u32 %v3544_v47, 16  ;;  %v670_v31 = vld [vmem:[#allocation2 + $0xc8] sm:$0x10]  ;;  %9934 = vmatpush3.bf16.msra.mxu1 %v10835_v56  ;;  %9861 = vmatprep.subr.bf16.mxu0 %v10836_v1  ;;  %v3695_v2 = vld [vmem:[#allocation2 + $0xc0] sm:$0xf0] }
 0x58d   : > { %v2016_v61 = vrot.slane %v2014_v7, 4  ;;  %v2009_v57 = vor.u32 %v2008_v29, %v2005_v59  ;;  %v3599_v50 = vshrl.u32 %v3545_v45, 16  ;;  %v3602_v35 = vshll.u32 %v3545_v45, 16  ;;  %v10837_v62 = vld [vmem:[%s15725_s5 + $0x38] sm:$0xff]   ;;  %9935 = vmatprep.subr.bf16.mxu1 %v10836_v1  ;;  %v11049_v43 = vld [vmem:[#allocation2 + $0x50] sm:$0xf0] }
 0x58e   : > { %4249 = vrot.lane.b32.xlu0 %v3453_v13, %s11502_s29  ;;  %v2363_v17 = vsel %vm635_vm6, %v2354_v30, %v2362_v22  ;;  %v3889_v10 = vld [vmem:[#allocation2 + $0xc0] sm:$0xf8]  ;;  %v3593_v4 = vrot.slane %v3591_v21, 3  ;;  %v3596_v20 = vrot.slane %v3594_v38, 4  ;;  %v2212_v16 = vshrl.u32 %v2075_v3, 16 }
 0x58f   : > { %2679 = vrot.lane.b32.xlu1 %v2363_v17, %s11502_s29  ;;  %v3936_v26 = vshrl.u32 %v3889_v10, 16  ;;  %v3939_v55 = vshll.u32 %v3889_v10, 16  ;;  %v2017_v32 = vor.u32 %v2016_v61, %v2013_v15  ;;  %v3601_v19 = vrot.slane %v3599_v50, 3  ;;  %9862 = vmatpush3.bf16.msra.mxu0 %v10837_v62 }
 0x590   : > { %v3604_v37 = vrot.slane %v3602_v35, 4  ;;  %v2215_v54 = vshll.u32 %v2075_v3, 16  ;;  %v2214_v49 = vrot.slane %v2212_v16, 4  ;;  %v2220_v44 = vshrl.u32 %v2123_v12, 16  ;;  %9936 = vmatpush3.bf16.msra.mxu1 %v10837_v62 }
 0x591   : > { %v3938_v63 = vrot.slane %v3936_v26, 3  ;;  %v3941_v33 = vrot.slane %v3939_v55, 4  ;;  %v2018_v40 = vsel %vm635_vm6, %v2009_v57, %v2017_v32  ;;  %v2223_v39 = vshll.u32 %v2123_v12, 16  ;;  %v11050_v55 = vld [vmem:[%s15725_s5 + $0x80] sm:$0xff]   ;;  %v3398_v12 = vld [vmem:[#allocation2 + $0xb8] sm:$0x1f] }
 0x592   : > { %v13151_v28 = vpop.permute.xlu1 %2693  ;;  %2647 = vrot.lane.b32.xlu0 %v2018_v40, %s11503_s16  ;;  %v3597_v18 = vor.u32 %v3596_v20, %v3593_v4  ;;  %v2217_v6 = vrot.slane %v2215_v54, 5  ;;  %v3605_v22 = vor.u32 %v3604_v37, %v3601_v19  ;;  %v2222_v11 = vrot.slane %v2220_v44, 4  ;;  %10385 = vmatprep.subr.bf16.mxu0 %v11050_v55  ;;  %v11051_v19 = vld [vmem:[#allocation2 + $0xb0] sm:$0xf0] }
 0x593   : > { %15857 = vst [vmem:[#allocation28_spill] sm:$0xff] %v13151_v28  ;;  %v3942_v0 = vor.u32 %v3941_v33, %v3938_v63  ;;  %v2225_v41 = vrot.slane %v2223_v39, 5  ;;  %v13161_v13 = vpop.permute.xlu0 %4229  ;;  %v671_v30 = vsel %vm12243_vm7, 0, %v670_v31  ;;  %v1868_v14 = vshrl.u32 %v11049_v43, 16  ;;  %10609 = vmatprep.subr.bf16.mxu1 %v11050_v55  ;;  %v11053_v55 = vld [vmem:[#allocation2 + $0xd8] sm:$0xf] }
 0x594   : > { %v2218_v23 = vor.u32 %v2217_v6, %v2214_v49  ;;  %672 = vst [vmem:[#allocation2 + $0xc8] sm:$0x10] %v671_v30  ;;  %v3606_v59 = vsel %vm635_vm6, %v3597_v18, %v3605_v22  ;;  %v1871_v45 = vshll.u32 %v11049_v43, 16  ;;  %v1876_v17 = vshrl.u32 %v1778_v48, 16  ;;  %v11052_v49 = vld [vmem:[#allocation2 + $0x78] sm:$0xf] }
 0x595   : > { %v3951_v27 = vsel %vm635_vm6, %v3942_v0, %v3950_v58  ;;  %v2226_v47 = vor.u32 %v2225_v41, %v2222_v11  ;;  %v3800_v29 = vshrl.u32 %v3695_v2, 16  ;;  %v3803_v15 = vshll.u32 %v3695_v2, 16  ;;  %v604_v58 = vld [vmem:[#allocation2 + $0x70] sm:$0x8] }
 0x596   : > { %4297 = vrot.lane.b32.xlu1 %v3951_v27, %s11502_s29  ;;  %v13169_v46 = vpop.permute.xlu1 %4311  ;;  %v1870_v3 = vrot.slane %v1868_v14, 4  ;;  %v1879_v10 = vshll.u32 %v1778_v48, 16  ;;  %v1873_v61 = vrot.slane %v1871_v45, 5  ;;  %v1878_v21 = vrot.slane %v1876_v17, 4  ;;  %v622_v14 = vld [vmem:[#allocation2 + $0xd0] sm:$0x8] }
 0x597   : > { %15858 = vst [vmem:[#allocation29_spill] sm:$0xff] %v13169_v46  ;;  %v2227_v7 = vsel %vm1781_vm4, %v2218_v23, %v2226_v47  ;;  %v608_v38 = vsel %vm12266_vm10, 0, %v607_v52  ;;  %v13177_v26 = vpop.permute.xlu0 %2613  ;;  %v605_v32 = vsel %vm12266_vm10, 0, %v604_v58  ;;  %v3802_v4 = vrot.slane %v3800_v29, 4  ;;  %v1928_v29 = vld [vmem:[#allocation2 + $0x60] sm:$0xf8] }
 0x598   : > { %2665 = vrot.lane.b32.xlu0 %v2227_v7, %s11501_s19  ;;  %v1881_v57 = vrot.slane %v1879_v10, 5  ;;  %609 = vst [vmem:[#allocation2 + $0x80] sm:$0x8] %v608_v38  ;;  %v1874_v50 = vor.u32 %v1873_v61, %v1870_v3  ;;  %v3805_v20 = vrot.slane %v3803_v15, 5  ;;  %606 = vst [vmem:[#allocation2 + $0x70] sm:$0x8] %v605_v32 }
 0x599   : > { %v3455_v16 = vshrl.u32 %v11051_v19, 16  ;;  %v3458_v40 = vshll.u32 %v11051_v19, 16  ;;  %v2373_v44 = vshrl.u32 %v11052_v49, 16  ;;  %v2376_v39 = vshll.u32 %v11052_v49, 16 }
 0x59a   : > { %4265 = vrot.lane.b32.xlu1 %v3606_v59, %s11503_s16  ;;  %v1882_v35 = vor.u32 %v1881_v57, %v1878_v21  ;;  %v13184_v63 = vpop.permute.xlu1 %2695  ;;  %v3463_v18 = vshrl.u32 %v3398_v12, 16  ;;  %v3806_v31 = vor.u32 %v3805_v20, %v3802_v4  ;;  %v3466_v11 = vshll.u32 %v3398_v12, 16  ;;  %v1929_v21 = vld [vmem:[#allocation2 + $0x68] sm:$0xf] }
 0x59b   : > { %15859 = vst [vmem:[#allocation30_spill] sm:$0xff] %v13184_v63  ;;  %v3743_v33 = vld [vmem:[#allocation2 + $0xc8] sm:$0x1f]  ;;  %v3457_v56 = vrot.slane %v3455_v16, 4  ;;  %v3460_v1 = vrot.slane %v3458_v40, 5  ;;  %v2375_v2 = vrot.slane %v2373_v44, 3 }
 0x59c   : > { %v3808_v37 = vshrl.u32 %v3743_v33, 16  ;;  %v3811_v54 = vshll.u32 %v3743_v33, 16  ;;  %v1883_v0 = vsel %vm1781_vm4, %v1874_v50, %v1882_v35  ;;  %v3465_v41 = vrot.slane %v3463_v18, 4  ;;  %v3546_v16 = vld [vmem:[#allocation2 + $0xc0] sm:$0xf8] }
 0x59d   : > { %2633 = vrot.lane.b32.xlu0 %v1883_v0, %s11502_s29  ;;  %v3468_v48 = vrot.slane %v3466_v11, 5  ;;  %v2378_v62 = vrot.slane %v2376_v39, 4  ;;  %v3461_v43 = vor.u32 %v3460_v1, %v3457_v56  ;;  %v623_v3 = vsel %vm12266_vm10, 0, %v622_v14  ;;  %v2124_v14 = vld [vmem:[#allocation2 + $0x78] sm:$0x1f] }
 0x59e   : > { %v3810_v27 = vrot.slane %v3808_v37, 4  ;;  %v3813_v22 = vrot.slane %v3811_v54, 5  ;;  %v13190_v47 = vpop.permute.xlu1 %4313  ;;  %624 = vst [vmem:[#allocation2 + $0xd0] sm:$0x8] %v623_v3  ;;  %v3961_v57 = vshrl.u32 %v11053_v55, 16  ;;  %v3964_v50 = vshll.u32 %v11053_v55, 16 }
 0x59f   : > { %15860 = vst [vmem:[#allocation31_spill] sm:$0xff] %v13190_v47  ;;  %v2273_v30 = vld [vmem:[#allocation2 + $0x70] sm:$0xf8]  ;;  %v3469_v17 = vor.u32 %v3468_v48, %v3465_v41  ;;  %v2379_v58 = vor.u32 %v2378_v62, %v2375_v2  ;;  %v2020_v32 = vshrl.u32 %v1928_v29, 16  ;;  %v2023_v4 = vshll.u32 %v1928_v29, 16 }
 0x5a0   : > { %v3814_v23 = vor.u32 %v3813_v22, %v3810_v27  ;;  %v2365_v7 = vshrl.u32 %v2273_v30, 16  ;;  %v2368_v45 = vshll.u32 %v2273_v30, 16  ;;  %v2028_v19 = vshrl.u32 %v1929_v21, 16  ;;  %v3547_v54 = vld [vmem:[#allocation2 + $0xc8] sm:$0xf] }
 0x5a1   : > { %v3470_v61 = vsel %vm1781_vm4, %v3461_v43, %v3469_v17  ;;  %v2022_v12 = vrot.slane %v2020_v32, 3  ;;  %v2025_v33 = vrot.slane %v2023_v4, 4  ;;  %v2031_v37 = vshll.u32 %v1929_v21, 16  ;;  %v2076_v30 = vld [vmem:[#allocation2 + $0x70] sm:$0xf0] }
 0x5a2   : > { %v3815_v59 = vsel %vm1781_vm4, %v3806_v31, %v3814_v23  ;;  %v2367_v15 = vrot.slane %v2365_v7, 3  ;;  %v2370_v10 = vrot.slane %v2368_v45, 4  ;;  %4251 = vrot.lane.b32.xlu0 %v3470_v61, %s11502_s29  ;;  %v3963_v49 = vrot.slane %v3961_v57, 3  ;;  %v673_v4 = vld [vmem:[#allocation2 + $0xd8] sm:$0x10] }
 0x5a3   : > { %4283 = vrot.lane.b32.xlu1 %v3815_v59, %s11501_s19  ;;  %v3966_v44 = vrot.slane %v3964_v50, 4  ;;  %v2030_v39 = vrot.slane %v2028_v19, 3  ;;  %v2026_v1 = vor.u32 %v2025_v33, %v2022_v12  ;;  %v2033_v18 = vrot.slane %v2031_v37, 4 }
 0x5a4   : > { %v13188_v6 = vpop.permute.xlu0 %4231  ;;  %v2371_v35 = vor.u32 %v2370_v10, %v2367_v15  ;;  %v3608_v31 = vshrl.u32 %v3546_v16, 16  ;;  %v3611_v22 = vshll.u32 %v3546_v16, 16  ;;  %v3616_v11 = vshrl.u32 %v3547_v54, 16 }
 0x5a5   : > { %v3891_v27 = vld [vmem:[#allocation2 + $0xd0] sm:$0xf8]  ;;  %v2034_v48 = vor.u32 %v2033_v18, %v2030_v39  ;;  %v3967_v62 = vor.u32 %v3966_v44, %v3963_v49  ;;  %v3619_v3 = vshll.u32 %v3547_v54, 16  ;;  %v2229_v10 = vshrl.u32 %v2076_v30, 16  ;;  %v1779_v18 = vld [vmem:[#allocation2 + $0x68] sm:$0x1f] }
 0x5a6   : > { %v2380_v40 = vsel %vm635_vm6, %v2371_v35, %v2379_v58  ;;  %v3953_v41 = vshrl.u32 %v3891_v27, 16  ;;  %v3956_v23 = vshll.u32 %v3891_v27, 16  ;;  %v3610_v43 = vrot.slane %v3608_v31, 3  ;;  %v3696_v54 = vld [vmem:[#allocation2 + $0xd0] sm:$0xf0] }
 0x5a7   : > { %2681 = vrot.lane.b32.xlu1 %v2380_v40, %s11502_s29  ;;  %v2035_v17 = vsel %vm635_vm6, %v2026_v1, %v2034_v48  ;;  %v3613_v29 = vrot.slane %v3611_v22, 4  ;;  %v3618_v15 = vrot.slane %v3616_v11, 3  ;;  %v2232_v61 = vshll.u32 %v2076_v30, 16 }
 0x5a8   : > { %v13192_v52 = vpop.permute.xlu0 %2615  ;;  %v3955_v7 = vrot.slane %v3953_v41, 3  ;;  %v3958_v45 = vrot.slane %v3956_v23, 4  ;;  %2649 = vrot.lane.b32.xlu0 %v2035_v17, %s11503_s16  ;;  %v2237_v21 = vshrl.u32 %v2124_v14, 16  ;;  %v2240_v55 = vshll.u32 %v2124_v14, 16  ;;  %v11054_v41 = vld [vmem:[#allocation2 + $0x60] sm:$0xf0] }
 0x5a9   : > { %15861 = vst [vmem:[#allocation32_spill] sm:$0xff] %v13192_v52  ;;  %v3621_v50 = vrot.slane %v3619_v3, 4  ;;  %v2231_v32 = vrot.slane %v2229_v10, 4  ;;  %v3614_v33 = vor.u32 %v3613_v29, %v3610_v43  ;;  %v2234_v19 = vrot.slane %v2232_v61, 5  ;;  %v2275_v17 = vld [vmem:[#allocation2 + $0x80] sm:$0xf8] }
 0x5aa   : > { %v3959_v58 = vor.u32 %v3958_v45, %v3955_v7  ;;  %v2239_v16 = vrot.slane %v2237_v21, 4  ;;  %v2242_v37 = vrot.slane %v2240_v55, 5  ;;  %v674_v44 = vsel %vm12243_vm7, 0, %v673_v4 }
 0x5ab   : > { %v3622_v40 = vor.u32 %v3621_v50, %v3618_v15  ;;  %v2235_v49 = vor.u32 %v2234_v19, %v2231_v32  ;;  %675 = vst [vmem:[#allocation2 + $0xd8] sm:$0x10] %v674_v44  ;;  %v3817_v22 = vshrl.u32 %v3696_v54, 16  ;;  %v3820_v11 = vshll.u32 %v3696_v54, 16  ;;  %v1572_v44 = vld [vmem:[#allocation2] sm:$0xf8] }
 0x5ac   : > { %v13199_v38 = vpop.permute.xlu0 %4233  ;;  %v13202_v20 = vpop.permute.xlu1 %2697  ;;  %v3968_v12 = vsel %vm635_vm6, %v3959_v58, %v3967_v62  ;;  %v2243_v1 = vor.u32 %v2242_v37, %v2239_v16  ;;  %v1885_v23 = vshrl.u32 %v11054_v41, 16  ;;  %v1888_v30 = vshll.u32 %v11054_v41, 16  ;;  %v11055_v37 = vld [vmem:[#allocation2 + $0x88] sm:$0xf] }
 0x5ad   : > { %15862 = vst [vmem:[#allocation33_spill] sm:$0xff] %v13199_v38  ;;  %15863 = vst [vmem:[#allocation34_spill] sm:$0xff] %v13202_v20  ;;  %4299 = vrot.lane.b32.xlu1 %v3968_v12, %s11502_s29  ;;  %v3623_v27 = vsel %vm635_vm6, %v3614_v33, %v3622_v40  ;;  %v1893_v43 = vshrl.u32 %v1779_v18, 16  ;;  %v1896_v45 = vshll.u32 %v1779_v18, 16  ;;  %v3819_v15 = vrot.slane %v3817_v22, 4 }
 0x5ae   : > { %v2244_v48 = vsel %vm1781_vm4, %v2235_v49, %v2243_v1  ;;  %v1887_v62 = vrot.slane %v1885_v23, 4  ;;  %v1890_v7 = vrot.slane %v1888_v30, 5  ;;  %v3822_v3 = vrot.slane %v3820_v11, 5  ;;  %v3399_v49 = vld [vmem:[#allocation2 + $0xc8] sm:$0x1f] }
 0x5af   : > { %2667 = vrot.lane.b32.xlu0 %v2244_v48, %s11501_s19  ;;  %v1895_v10 = vrot.slane %v1893_v43, 4  ;;  %v1898_v61 = vrot.slane %v1896_v45, 5  ;;  %v2382_v55 = vshrl.u32 %v2275_v17, 16  ;;  %v2385_v33 = vshll.u32 %v2275_v17, 16  ;;  %v11056_v11 = vld [vmem:[#allocation2 + $0x8] sm:$0xf] }
 0x5b0   : > { %v13205_v0 = vpop.permute.xlu0 %2617  ;;  %v1891_v58 = vor.u32 %v1890_v7, %v1887_v62  ;;  %v3823_v16 = vor.u32 %v3822_v3, %v3819_v15  ;;  %v2390_v54 = vshrl.u32 %v11055_v37, 16  ;;  %v1597_v41 = vshrl.u32 %v11056_v11, 16  ;;  %v11057_v30 = vld [vmem:[#allocation2 + $0xc0] sm:$0xf0] }
 0x5b1   : > { %15864 = vst [vmem:[#allocation35_spill] sm:$0xff] %v13205_v0  ;;  %v13208_v56 = vpop.permute.xlu1 %4315  ;;  %4267 = vrot.lane.b32.xlu1 %v3623_v27, %s11503_s16  ;;  %v1899_v12 = vor.u32 %v1898_v61, %v1895_v10  ;;  %v2384_v40 = vrot.slane %v2382_v55, 3  ;;  %v2387_v22 = vrot.slane %v2385_v33, 4  ;;  %v2393_v48 = vshll.u32 %v11055_v37, 16  ;;  %v625_v55 = vld [vmem:[#allocation2 + $0xe0] sm:$0x8] }
 0x5b2   : > { %15865 = vst [vmem:[#allocation36_spill] sm:$0xff] %v13208_v56  ;;  %v3744_v21 = vld [vmem:[#allocation2 + $0xd8] sm:$0x1f]  ;;  %v2392_v23 = vrot.slane %v2390_v54, 3  ;;  %v3472_v62 = vshrl.u32 %v11057_v30, 16  ;;  %v1600_v7 = vshll.u32 %v11056_v11, 16 }
 0x5b3   : > { %v3825_v32 = vshrl.u32 %v3744_v21, 16  ;;  %v3828_v4 = vshll.u32 %v3744_v21, 16  ;;  %v1900_v27 = vsel %vm1781_vm4, %v1891_v58, %v1899_v12  ;;  %v3475_v17 = vshll.u32 %v11057_v30, 16 }
 0x5b4   : > { %v13210_v2 = vpop.permute.xlu0 %4235  ;;  %2635 = vrot.lane.b32.xlu0 %v1900_v27, %s11502_s29  ;;  %v3480_v15 = vshrl.u32 %v3399_v49, 16  ;;  %v1589_v10 = vshrl.u32 %v1572_v44, 16  ;;  %v2395_v61 = vrot.slane %v2393_v48, 4  ;;  %v3474_v58 = vrot.slane %v3472_v62, 4  ;;  %v1930_v48 = vld [vmem:[#allocation2 + $0x70] sm:$0xf8] }
 0x5b5   : > { %15866 = vst [vmem:[#allocation37_spill] sm:$0xff] %v13210_v2  ;;  %v13212_v59 = vpop.permute.xlu1 %2699  ;;  %v3827_v1 = vrot.slane %v3825_v32, 4  ;;  %v3830_v18 = vrot.slane %v3828_v4, 5  ;;  %v3483_v21 = vshll.u32 %v3399_v49, 16  ;;  %v2388_v4 = vor.u32 %v2387_v22, %v2384_v40  ;;  %v1574_v40 = vld [vmem:[#allocation2 + $0x10] sm:$0xf8] }
 0x5b6   : > { %15867 = vst [vmem:[#allocation38_spill] sm:$0xff] %v13212_v59  ;;  %v3477_v12 = vrot.slane %v3475_v17, 5  ;;  %v3482_v33 = vrot.slane %v3480_v15, 4  ;;  %v1592_v37 = vshll.u32 %v1572_v44, 16  ;;  %v2396_v54 = vor.u32 %v2395_v61, %v2392_v23  ;;  %v1931_v44 = vld [vmem:[#allocation2 + $0x78] sm:$0xf] }
 0x5b7   : > { %v3831_v45 = vor.u32 %v3830_v18, %v3827_v1  ;;  %v3485_v27 = vrot.slane %v3483_v21, 5  ;;  %v626_v11 = vsel %vm12266_vm10, 0, %v625_v55  ;;  %v13254_v49 = vrot.slane %v1597_v41, 3 }
 0x5b8   : > { %v13216_v57 = vpop.permute.xlu0 %2619  ;;  %v3478_v18 = vor.u32 %v3477_v12, %v3474_v58  ;;  %627 = vst [vmem:[#allocation2 + $0xe0] sm:$0x8] %v626_v11  ;;  %v13258_v62 = vrot.slane %v1589_v10, 3  ;;  %v2397_v23 = vsel %vm635_vm6, %v2388_v4, %v2396_v54  ;;  %v13261_v61 = vrot.slane %v1592_v37, 4  ;;  %v11059_v12 = vld [vmem:[#allocation2 + $0x18] sm:$0xf] }
 0x5b9   : > { %15868 = vst [vmem:[#allocation39_spill] sm:$0xff] %v13216_v57  ;;  %v13218_v35 = vpop.permute.xlu1 %4317  ;;  %v3832_v32 = vsel %vm1781_vm4, %v3823_v16, %v3831_v45  ;;  %v13256_v16 = vrot.slane %v1600_v7, 4  ;;  %v3486_v22 = vor.u32 %v3485_v27, %v3482_v33  ;;  %v11058_v45 = vld [vmem:[#allocation2 + $0xe8] sm:$0xf]  ;;  %v2037_v58 = vshrl.u32 %v1930_v48, 16 }
 0x5ba   : > { %15869 = vst [vmem:[#allocation40_spill] sm:$0xff] %v13218_v35  ;;  %4285 = vrot.lane.b32.xlu1 %v3832_v32, %s11501_s19  ;;  %v3978_v17 = vshrl.u32 %v11058_v45, 16  ;;  %v3981_v15 = vshll.u32 %v11058_v45, 16  ;;  %v2040_v7 = vshll.u32 %v1930_v48, 16  ;;  %v1606_v55 = vshrl.u32 %v1574_v40, 16 }
 0x5bb   : > { %v3487_v41 = vsel %vm1781_vm4, %v3478_v18, %v3486_v22  ;;  %v1609_v32 = vshll.u32 %v1574_v40, 16  ;;  %v1614_v10 = vshrl.u32 %v11059_v12, 16  ;;  %v2045_v4 = vshrl.u32 %v1931_v44, 16  ;;  %v3548_v11 = vld [vmem:[#allocation2 + $0xd0] sm:$0xf8] }
 0x5bc   : > { %v13224_v39 = vpop.permute.xlu0 %4237  ;;  %4253 = vrot.lane.b32.xlu0 %v3487_v41, %s11502_s29  ;;  %v2039_v54 = vrot.slane %v2037_v58, 3  ;;  %v2042_v37 = vrot.slane %v2040_v7, 4  ;;  %v2048_v27 = vshll.u32 %v1931_v44, 16  ;;  %v3980_v22 = vrot.slane %v3978_v17, 3  ;;  %v11060_v35 = vld [vmem:[#allocation2 + $0x28] sm:$0xf] }
 0x5bd   : > { %15870 = vst [vmem:[#allocation41_spill] sm:$0xff] %v13224_v39  ;;  %v13226_v31 = vpop.permute.xlu1 %2701  ;;  %v3983_v48 = vrot.slane %v3981_v15, 4  ;;  %v1595_v40 = vor.u32 %v13261_v61, %v13258_v62  ;;  %v1617_v45 = vshll.u32 %v11059_v12, 16  ;;  %v13276_v58 = vrot.slane %v1606_v55, 3  ;;  %v2077_v12 = vld [vmem:[#allocation2 + $0x80] sm:$0xf0] }
 0x5be   : > { %15871 = vst [vmem:[#allocation42_spill] sm:$0xff] %v13226_v31  ;;  %2683 = vrot.lane.b32.xlu1 %v2397_v23, %s11502_s29  ;;  %v2047_v23 = vrot.slane %v2045_v4, 3  ;;  %v2050_v41 = vrot.slane %v2048_v27, 4  ;;  %v13278_v44 = vrot.slane %v1609_v32, 4  ;;  %v13280_v7 = vrot.slane %v1614_v10, 3 }
 0x5bf   : > { %v3893_v18 = vld [vmem:[#allocation2 + $0xe0] sm:$0xf8]  ;;  %v3625_v17 = vshrl.u32 %v3548_v11, 16  ;;  %v3628_v61 = vshll.u32 %v3548_v11, 16  ;;  %v3984_v27 = vor.u32 %v3983_v48, %v3980_v22  ;;  %v2125_v31 = vld [vmem:[#allocation2 + $0x88] sm:$0x1f] }
 0x5c0   : > { %v13232_v14 = vpop.permute.xlu0 %2621  ;;  %v3970_v4 = vshrl.u32 %v3893_v18, 16  ;;  %v2051_v62 = vor.u32 %v2050_v41, %v2047_v23  ;;  %v1631_v57 = vshrl.u32 %v11060_v35, 16  ;;  %v2249_v48 = vshll.u32 %v2077_v12, 16 }
 0x5c1   : > { %15872 = vst [vmem:[#allocation43_spill] sm:$0xff] %v13232_v14  ;;  %v13234_v29 = vpop.permute.xlu1 %4319  ;;  %v3627_v14 = vrot.slane %v3625_v17, 3  ;;  %v3630_v10 = vrot.slane %v3628_v61, 4  ;;  %v2254_v41 = vshrl.u32 %v2125_v31, 16  ;;  %v1619_v17 = vrot.slane %v1617_v45, 4 }
 0x5c2   : > { %15873 = vst [vmem:[#allocation45_spill] sm:$0xff] %v13234_v29  ;;  %v3973_v29 = vshll.u32 %v3893_v18, 16  ;;  %v3972_v55 = vrot.slane %v3970_v4, 3  ;;  %v2246_v18 = vshrl.u32 %v2077_v12, 16  ;;  %v2251_v56 = vrot.slane %v2249_v48, 5 }
 0x5c3   : > { %v2256_v38 = vrot.slane %v2254_v41, 4  ;;  %v2257_v52 = vshll.u32 %v2125_v31, 16  ;;  %v1633_v12 = vrot.slane %v1631_v57, 3  ;;  %v1780_v31 = vld [vmem:[#allocation2 + $0x78] sm:$0x1f]  ;;  %v1620_v57 = vor.u32 %v1619_v17, %v13280_v7 }
 0x5c4   : > { %v13236_v50 = vpop.permute.xlu0 %4239  ;;  %v3975_v39 = vrot.slane %v3973_v29, 4  ;;  %v1910_v41 = vshrl.u32 %v1780_v31, 16 }
 0x5c5   : > { %15874 = vst [vmem:[#allocation46_spill] sm:$0xff] %v13236_v50  ;;  %v13238_v19 = vpop.permute.xlu1 %4241 }
 0x5c6   : > { %15875 = vst [vmem:[#allocation47_spill] sm:$0xff] %v13238_v19  ;;  %v3549_v19 = vld [vmem:[#allocation2 + $0xd8] sm:$0xf]  ;;  %v3976_v22 = vor.u32 %v3975_v39, %v3972_v55 }
 0x5c7   : > { %v3633_v59 = vshrl.u32 %v3549_v19, 16  ;;  %v3636_v2 = vshll.u32 %v3549_v19, 16 }
 0x5c8   : > { %v13242_v43 = vpop.permute.xlu0 %4321  ;;  %v3985_v0 = vsel %vm635_vm6, %v3976_v22, %v3984_v27 }
 0x5c9   : > { %15876 = vst [vmem:[#allocation48_spill] sm:$0xff] %v13242_v43  ;;  %v13244_v3 = vpop.permute.xlu1 %4243  ;;  %v2043_v43 = vor.u32 %v2042_v37, %v2039_v54  ;;  %v3635_v29 = vrot.slane %v3633_v59, 3  ;;  %v3638_v4 = vrot.slane %v3636_v2, 4  ;;  %4301 = vrot.lane.b32.xlu1 %v3985_v0, %s11502_s29  ;;  %v15878_v59 = vor.u32 %v13256_v16, %v13254_v49  ;;  %v11061_v16 = vld [vmem:[#allocation2 + $0x70] sm:$0xf0] }
 0x5ca   : > { %15877 = vst [vmem:[#allocation49_spill] sm:$0xff] %v13244_v3  ;;  %v1576_v3 = vld [vmem:[#allocation2 + $0x20] sm:$0xf8]  ;;  %v1905_v22 = vshll.u32 %v11061_v16, 16 }
 0x5cb   : > { %v1623_v54 = vshrl.u32 %v1576_v3, 16  ;;  %v1626_v37 = vshll.u32 %v1576_v3, 16  ;;  %v2052_v32 = vsel %vm635_vm6, %v2043_v43, %v2051_v62  ;;  %v1634_v3 = vshll.u32 %v11060_v35, 16  ;;  %v676_v62 = vld [vmem:[#allocation2 + $0xe8] sm:$0x10] }
 0x5cc   : > { %v13248_v1 = vpop.permute.xlu0 %2655  ;;  %2651 = vrot.lane.b32.xlu0 %v2052_v32, %s11503_s16  ;;  %v2248_v43 = vrot.slane %v2246_v18, 4  ;;  %v3631_v32 = vor.u32 %v3630_v10, %v3627_v14  ;;  %v3639_v20 = vor.u32 %v3638_v4, %v3635_v29  ;;  %v3697_v35 = vld [vmem:[#allocation2 + $0xe0] sm:$0xf0]  ;;  %v677_v2 = vsel %vm12243_vm7, 0, %v676_v62  ;;  %v2277_v4 = vld [vmem:[#allocation2 + $0x90] sm:$0xf8] }
 0x5cd   : > { %v13252_v30 = vpop.permute.xlu1 %2671  ;;  %v1625_v61 = vrot.slane %v1623_v54, 3  ;;  %v1628_v19 = vrot.slane %v1626_v37, 4  ;;  %v1636_v45 = vrot.slane %v1634_v3, 4  ;;  %v1604_v14 = vsel %vm635_vm6, %v1595_v40, %v15878_v59  ;;  %678 = vst [vmem:[#allocation2 + $0xe8] sm:$0x10] %v677_v2 }
 0x5ce   : > { %v1612_v54 = vor.u32 %v13278_v44, %v13276_v58  ;;  %v2252_v0 = vor.u32 %v2251_v56, %v2248_v43  ;;  %v2259_v37 = vrot.slane %v2257_v52, 5  ;;  %v3640_v55 = vsel %vm635_vm6, %v3631_v32, %v3639_v20  ;;  %v11062_v56 = vld [vmem:[#allocation2 + $0x88] sm:$0xf]  ;;  %v13313_v62 = vld [vmem:[#allocation2 + $0x30] sm:$0xf8] }
 0x5cf   : > { %v3834_v10 = vshrl.u32 %v3697_v35, 16  ;;  %v3837_v18 = vshll.u32 %v3697_v35, 16  ;;  %v1629_v3 = vor.u32 %v1628_v19, %v1625_v61  ;;  %4269 = vrot.lane.b32.xlu1 %v3640_v55, %s11503_s16  ;;  %v1902_v40 = vshrl.u32 %v11061_v16, 16  ;;  %v3195_v2 = vld [vmem:[#allocation2 + $0x80] sm:$0xf8] }
 0x5d0   : > { %v13265_v21 = vpop.permute.xlu0 %2657  ;;  %v2260_v49 = vor.u32 %v2259_v37, %v2256_v38  ;;  %v1637_v52 = vor.u32 %v1636_v45, %v1633_v12  ;;  %v3220_v44 = vshrl.u32 %v11062_v56, 16  ;;  %v3223_v48 = vshll.u32 %v11062_v56, 16 }
 0x5d1   : > { %v13268_v33 = vpop.permute.xlu1 %2639  ;;  %v1904_v17 = vrot.slane %v1902_v40, 4  ;;  %v1907_v20 = vrot.slane %v1905_v22, 5  ;;  %v1913_v29 = vshll.u32 %v1780_v31, 16  ;;  %v1621_v38 = vsel %vm635_vm6, %v1612_v54, %v1620_v57 }
 0x5d2   : > { %v2261_v7 = vsel %vm1781_vm4, %v2252_v0, %v2260_v49  ;;  %v3836_v61 = vrot.slane %v3834_v10, 4  ;;  %v3839_v32 = vrot.slane %v3837_v18, 5  ;;  %v1912_v19 = vrot.slane %v1910_v41, 4 }
 0x5d3   : > { %2669 = vrot.lane.b32.xlu0 %v2261_v7, %s11501_s19  ;;  %v13320_v12 = vsel %vm727_vm1, %v1604_v14, %v13104_v53  ;;  %v13324_v45 = vsel %vm727_vm1, %v1621_v38, %v13116_v9  ;;  %v1908_v59 = vor.u32 %v1907_v20, %v1904_v17  ;;  %v1915_v54 = vrot.slane %v1913_v29, 5  ;;  %v11063_v38 = vld [vmem:[#allocation2 + $0x98] sm:$0xf] }
 0x5d4   : > { %v13274_v50 = vpop.permute.xlu0 %2673  ;;  %v13331_v31 = vsel %vm635_vm6, %v1629_v3, %v1637_v52  ;;  %v13333_v57 = vrot.slane %v3220_v44, 3  ;;  %v13335_v55 = vrot.slane %v3223_v48, 4  ;;  %v3745_v53 = vld [vmem:[#allocation2 + $0xe8] sm:$0x1f]  ;;  %v2399_v14 = vshrl.u32 %v2277_v4, 16 }
 0x5d5   : > { %v13282_v15 = vpop.permute.xlu1 %2625  ;;  %v1640_v10 = vshrl.u32 %v13313_v62, 16  ;;  %v3842_v9 = vshrl.u32 %v3745_v53, 16  ;;  %v3845_v18 = vshll.u32 %v3745_v53, 16  ;;  %v1916_v49 = vor.u32 %v1915_v54, %v1912_v19  ;;  %v3400_v44 = vld [vmem:[#allocation2 + $0xd8] sm:$0x1f] }
 0x5d6   : > { %v3212_v22 = vshrl.u32 %v3195_v2, 16  ;;  %v1643_v56 = vshll.u32 %v13313_v62, 16  ;;  %v3840_v3 = vor.u32 %v3839_v32, %v3836_v61  ;;  %v2402_v52 = vshll.u32 %v2277_v4, 16  ;;  %v11065_v32 = vld [vmem:[#allocation2 + $0x38] sm:$0xf] }
 0x5d7   : > { %v3844_v41 = vrot.slane %v3842_v9, 4  ;;  %v3847_v48 = vrot.slane %v3845_v18, 5  ;;  %v1917_v7 = vsel %vm1781_vm4, %v1908_v59, %v1916_v49  ;;  %v2401_v17 = vrot.slane %v2399_v14, 3 }
 0x5d8   : > { %v13288_v11 = vpop.permute.xlu0 %2659  ;;  %v3215_v20 = vshll.u32 %v3195_v2, 16  ;;  %2637 = vrot.lane.b32.xlu0 %v1917_v7, %s11502_s29  ;;  %v2404_v29 = vrot.slane %v2402_v52, 4  ;;  %v2407_v19 = vshrl.u32 %v11063_v38, 16  ;;  %v2410_v54 = vshll.u32 %v11063_v38, 16  ;;  %v628_v7 = vld [vmem:[#allocation2 + $0xf0] sm:$0x8] }
 0x5d9   : > { %v13286_v23 = vpop.permute.xlu1 %2641  ;;  %v3848_v53 = vor.u32 %v3847_v48, %v3844_v41  ;;  %v3497_v62 = vshrl.u32 %v3400_v44, 16  ;;  %v1648_v59 = vshrl.u32 %v11065_v32, 16  ;;  %v13352_v48 = vrot.slane %v1640_v10, 3 }
 0x5da   : > { %v2409_v14 = vrot.slane %v2407_v19, 3  ;;  %v2412_v2 = vrot.slane %v2410_v54, 4  ;;  %v2405_v18 = vor.u32 %v2404_v29, %v2401_v17  ;;  %v3500_v4 = vshll.u32 %v3400_v44, 16  ;;  %v13361_v29 = vld [vmem:[#allocation2 + $0x88] sm:$0xf] }
 0x5db   : > { %v3849_v9 = vsel %vm1781_vm4, %v3840_v3, %v3848_v53  ;;  %v3214_v47 = vrot.slane %v3212_v22, 3  ;;  %v3217_v63 = vrot.slane %v3215_v20, 4  ;;  %v13355_v19 = vrot.slane %v1643_v56, 4  ;;  %v1932_v3 = vld [vmem:[#allocation2 + $0x80] sm:$0xf8]  ;;  %15883 = vst [vmem:[#allocation54_spill] sm:$0xff] %v13361_v29 }
 0x5dc   : > { %v13302_v27 = vpop.permute.xlu0 %2627  ;;  %4287 = vrot.lane.b32.xlu1 %v3849_v9, %s11501_s19  ;;  %v2413_v38 = vor.u32 %v2412_v2, %v2409_v14  ;;  %v1651_v54 = vshll.u32 %v11065_v32, 16  ;;  %v13357_v17 = vrot.slane %v1648_v59, 3  ;;  %v629_v10 = vsel %vm12266_vm10, 0, %v628_v7  ;;  %v11066_v14 = vld [vmem:[#allocation2 + $0x98] sm:$0xf] }
 0x5dd   : > { %v13292_v39 = vpop.permute.xlu1 %4277  ;;  %630 = vst [vmem:[#allocation2 + $0xf0] sm:$0x8] %v629_v10  ;;  %v3240_v44 = vshll.u32 %v11066_v14, 16  ;;  %v2054_v32 = vshrl.u32 %v1932_v3, 16  ;;  %v3218_v59 = vor.u32 %v3217_v63, %v3214_v47  ;;  %v1580_v2 = vld [vmem:[#allocation2 + $0x40] sm:$0xf8] }
 0x5de   : > { %v2414_v22 = vsel %vm635_vm6, %v2405_v18, %v2413_v38  ;;  %v13370_v28 = vrot.slane %v1651_v54, 4  ;;  %v2065_v47 = vshll.u32 %v13361_v29, 16 }
 0x5df   : > { %v2056_v38 = vrot.slane %v2054_v32, 3 }
 0x5e0   : > { %v13326_v0 = vpop.permute.xlu0 %4245  ;;  %2685 = vrot.lane.b32.xlu1 %v2414_v22, %s11502_s29 }
 0x5e1   : > { %v13307_v58 = vpop.permute.xlu1 %2675  ;;  %v13310_v43 = vpop.f32.mrb[4].mxu1 }
 0x5e2   : > { %15879 = vst [vmem:[#allocation50_spill] sm:$0xff] %v13310_v43  ;;  %v13316_v35 = vpop.f32.mrb[5].mxu1 }
 0x5e3   : > { %15880 = vst [vmem:[#allocation51_spill] sm:$0xff] %v13316_v35  ;;  %v13328_v37 = vpop.f32.mrb[6].mxu1  ;;  %v3499_v35 = vrot.slane %v3497_v62, 4  ;;  %v3237_v62 = vshrl.u32 %v11066_v14, 16 }
 0x5e4   : > { %15881 = vst [vmem:[#allocation52_spill] sm:$0xff] %v13328_v37  ;;  %v13340_v40 = vpop.f32.mrb[7].mxu1  ;;  %v11064_v37 = vld [vmem:[#allocation2 + $0xd0] sm:$0xf0]  ;;  %v13345_v61 = vpop.permute.xlu0 %2643 }
 0x5e5   : > { %v13338_v16 = vpop.permute.xlu1 %4293  ;;  %15882 = vst [vmem:[#allocation53_spill] sm:$0xff] %v13340_v40  ;;  %v3489_v43 = vshrl.u32 %v11064_v37, 16  ;;  %v3492_v40 = vshll.u32 %v11064_v37, 16  ;;  %v3197_v37 = vld [vmem:[#allocation2 + $0x90] sm:$0xf8]  ;;  %v13384_v54 = vrot.slane %v3237_v62, 3 }
 0x5e6   : > { %v3229_v53 = vshrl.u32 %v3197_v37, 16  ;;  %v3232_v9 = vshll.u32 %v3197_v37, 16  ;;  %v2062_v37 = vshrl.u32 %v13361_v29, 16  ;;  %v1660_v62 = vshll.u32 %v1580_v2, 16 }
 0x5e7   : > { %v3491_v49 = vrot.slane %v3489_v43, 4  ;;  %v3494_v52 = vrot.slane %v3492_v40, 5  ;;  %v3502_v40 = vrot.slane %v3500_v4, 5  ;;  %v2057_v4 = vshll.u32 %v1932_v3, 16 }
 0x5e8   : > { %v13364_v56 = vpop.permute.xlu0 %2661  ;;  %v13373_v14 = vrot.slane %v3229_v53, 3  ;;  %v2064_v63 = vrot.slane %v2062_v37, 3  ;;  %v13382_v3 = vsel %vm727_vm1, %v13331_v31, %v13148_v5  ;;  %v1646_v5 = vor.u32 %v13355_v19, %v13352_v48  ;;  %v11068_v48 = vld [vmem:[#allocation2 + $0x48] sm:$0xf] }
 0x5e9   : > { %v13350_v41 = vpop.permute.xlu1 %4261  ;;  %v3495_v43 = vor.u32 %v3494_v52, %v3491_v49  ;;  %v3503_v20 = vor.u32 %v3502_v40, %v3499_v35  ;;  %v11067_v49 = vld [vmem:[#allocation2 + $0xf8] sm:$0xf]  ;;  %v2059_v10 = vrot.slane %v2057_v4, 4  ;;  %v13375_v35 = vrot.slane %v3232_v9, 4 }
 0x5ea   : > { %v3995_v52 = vshrl.u32 %v11067_v49, 16  ;;  %v3998_v7 = vshll.u32 %v11067_v49, 16  ;;  %v13386_v40 = vrot.slane %v3240_v44, 4  ;;  %v2067_v9 = vrot.slane %v2065_v47, 4  ;;  %v3895_v44 = vld [vmem:[#allocation2 + $0xf0] sm:$0xf8] }
 0x5eb   : > { %v3504_v18 = vsel %vm1781_vm4, %v3495_v43, %v3503_v20  ;;  %v1657_v43 = vshrl.u32 %v1580_v2, 16  ;;  %v2060_v20 = vor.u32 %v2059_v10, %v2056_v38  ;;  %v15885_v4 = vor.u32 %v13335_v55, %v13333_v57  ;;  %v3550_v10 = vld [vmem:[#allocation2 + $0xe0] sm:$0xf8] }
 0x5ec   : > { %4255 = vrot.lane.b32.xlu0 %v3504_v18, %s11502_s29  ;;  %v3997_v22 = vrot.slane %v3995_v52, 3  ;;  %v4000_v53 = vrot.slane %v3998_v7, 4  ;;  %v13388_v32 = vpop.permute.xlu0 %2629  ;;  %v1654_v31 = vor.u32 %v13370_v28, %v13357_v17  ;;  %v3235_v52 = vor.u32 %v13375_v35, %v13373_v14  ;;  %v3199_v7 = vld [vmem:[#allocation2 + $0xa0] sm:$0xf8]  ;;  %v13406_v17 = vld [vmem:[#allocation2 + $0xe8] sm:$0xf] }
 0x5ed   : > { %v13368_v46 = vpop.permute.xlu1 %4279  ;;  %15884 = vst [vmem:[#allocation55_spill] sm:$0xff] %v13388_v32  ;;  %v3227_v49 = vsel %vm635_vm6, %v3218_v59, %v15885_v4  ;;  %v3987_v37 = vshrl.u32 %v3895_v44, 16  ;;  %v3990_v18 = vshll.u32 %v3895_v44, 16  ;;  %v2068_v38 = vor.u32 %v2067_v9, %v2064_v63  ;;  %15887 = vst [vmem:[#allocation57_spill] sm:$0xff] %v13406_v17  ;;  %v679_v9 = vld [vmem:[#allocation2 + $0xf8] sm:$0x10] }
 0x5ee   : > { %v3243_v57 = vor.u32 %v13386_v40, %v13384_v54  ;;  %v13404_v55 = vrot.slane %v1657_v43, 3  ;;  %v1665_v19 = vshrl.u32 %v11068_v48, 16  ;;  %v1668_v28 = vshll.u32 %v11068_v48, 16 }
 0x5ef   : > { %v3989_v2 = vrot.slane %v3987_v37, 3  ;;  %v3992_v14 = vrot.slane %v3990_v18, 4  ;;  %v4001_v35 = vor.u32 %v4000_v53, %v3997_v22  ;;  %v2069_v63 = vsel %vm635_vm6, %v2060_v20, %v2068_v38  ;;  %v13420_v53 = vld [vmem:[#allocation2 + $0xf0] sm:$0xf0] }
 0x5f0   : > { %15886 = vst [vmem:[#allocation56_spill] sm:$0xff] %v13404_v55  ;;  %v13413_v44 = vrot.slane %v1660_v62, 4  ;;  %v3246_v54 = vshrl.u32 %v3199_v7, 16  ;;  %v3249_v40 = vshll.u32 %v3199_v7, 16  ;;  %2653 = vrot.lane.b32.xlu0 %v2069_v63, %s11503_s16  ;;  %v3642_v43 = vshrl.u32 %v3550_v10, 16  ;;  %15892 = vst [vmem:[#allocation62_spill] sm:$0xff] %v13420_v53  ;;  %v13422_v20 = vpop.permute.xlu0 %4247 }
 0x5f1   : > { %v13400_v47 = vpop.permute.xlu1 %2677  ;;  %v3993_v29 = vor.u32 %v3992_v14, %v3989_v2  ;;  %v3645_v32 = vshll.u32 %v3550_v10, 16  ;;  %v3650_v37 = vshrl.u32 %v13406_v17, 16  ;;  %v3653_v22 = vshll.u32 %v13406_v17, 16  ;;  %v11069_v2 = vld [vmem:[#allocation2 + $0xa8] sm:$0xf] }
 0x5f2   : > { %15890 = vst [vmem:[#allocation60_spill] sm:$0xff] %v13413_v44  ;;  %v13426_v62 = vrot.slane %v1665_v19, 3  ;;  %v13428_v7 = vrot.slane %v1668_v28, 4  ;;  %v3644_v38 = vrot.slane %v3642_v43, 3  ;;  %v680_v63 = vsel %vm12243_vm7, 0, %v679_v9 }
 0x5f3   : > { %v3254_v10 = vshrl.u32 %v11069_v2, 16  ;;  %v4002_v14 = vsel %vm635_vm6, %v3993_v29, %v4001_v35  ;;  %681 = vst [vmem:[#allocation2 + $0xf8] sm:$0x10] %v680_v63  ;;  %v3655_v19 = vrot.slane %v3653_v22, 4  ;;  %v3851_v28 = vshrl.u32 %v13420_v53, 16 }
 0x5f4   : > { %15894 = vst [vmem:[#allocation64_spill] sm:$0xff] %v13426_v62  ;;  %15895 = vst [vmem:[#allocation65_spill] sm:$0xff] %v13428_v7  ;;  %4303 = vrot.lane.b32.xlu1 %v4002_v14, %s11502_s29  ;;  %v3854_v9 = vshll.u32 %v13420_v53, 16  ;;  %v1655_v43 = vsel %vm635_vm6, %v1646_v5, %v1654_v31  ;;  %v13443_v17 = vrot.slane %v3246_v54, 3  ;;  %v13445_v29 = vrot.slane %v3249_v40, 4 }
 0x5f5   : > { %v13449_v35 = vsel %vm727_vm1, %v1655_v43, %v13177_v26  ;;  %v3401_v22 = vld [vmem:[#allocation2 + $0xe8] sm:$0x1f]  ;;  %v13460_v54 = vrot.slane %v3254_v10, 3  ;;  %v631_v40 = vld [vmem:[#allocation2 + $0x100] sm:$0x8]  ;;  %v13462_v26 = vpop.permute.xlu0 %2645 }
 0x5f6   : > { %15896 = vst [vmem:[#allocation66_spill] sm:$0xff] %v13443_v17  ;;  %15897 = vst [vmem:[#allocation67_spill] sm:$0xff] %v13445_v29  ;;  %v3514_v14 = vshrl.u32 %v3401_v22, 16  ;;  %v3552_v29 = vld [vmem:[#allocation2 + $0xf0] sm:$0xf8] }
 0x5f7   : > { %v13478_v62 = vld [vmem:[#allocation2 + $0xf8] sm:$0xf] }
 0x5f8   : > { %v13408_v59 = vpop.f32.mrb[8].mxu1  ;;  %15898 = vst [vmem:[#allocation68_spill] sm:$0xff] %v13478_v62 }
 0x5f9   : > { %15888 = vst [vmem:[#allocation58_spill] sm:$0xff] %v13408_v59  ;;  %v13411_v4 = vpop.f32.mrb[9].mxu1  ;;  %v3652_v59 = vrot.slane %v3650_v37, 3  ;;  %v13480_v7 = vpop.permute.xlu0 %2663 }
 0x5fa   : > { %15889 = vst [vmem:[#allocation59_spill] sm:$0xff] %v13411_v4  ;;  %v13416_v48 = vpop.f32.mrb[10].mxu1  ;;  %v13433_v4 = vpop.permute.xlu1 %4295 }
 0x5fb   : > { %15891 = vst [vmem:[#allocation61_spill] sm:$0xff] %v13416_v48  ;;  %v13424_v18 = vpop.f32.mrb[11].mxu1  ;;  %v3647_v48 = vrot.slane %v3645_v32, 4  ;;  %v3656_v37 = vor.u32 %v3655_v19, %v3652_v59  ;;  %v3856_v59 = vrot.slane %v3854_v9, 5  ;;  %v3517_v19 = vshll.u32 %v3401_v22, 16 }
 0x5fc   : > { %15893 = vst [vmem:[#allocation63_spill] sm:$0xff] %v13424_v18  ;;  %v13437_v18 = vsel %vm727_vm1, %v3227_v49, %v13161_v13  ;;  %v3244_v13 = vsel %vm635_vm6, %v3235_v52, %v3243_v57  ;;  %v3257_v49 = vshll.u32 %v11069_v2, 16  ;;  %v3853_v57 = vrot.slane %v3851_v28, 4  ;;  %v11071_v9 = vld [vmem:[#allocation2 + $0x108] sm:$0xf] }
 0x5fd   : > { %v3648_v32 = vor.u32 %v3647_v48, %v3644_v38  ;;  %v13454_v63 = vsel %vm727_vm1, %v3244_v13, %v13188_v6  ;;  %v11070_v48 = vld [vmem:[#allocation2 + $0xe0] sm:$0xf0]  ;;  %v3746_v13 = vld [vmem:[#allocation2 + $0xf8] sm:$0x1f]  ;;  %v632_v28 = vsel %vm12266_vm10, 0, %v631_v40  ;;  %v3519_v22 = vrot.slane %v3517_v19, 5 }
 0x5fe   : > { %v3506_v38 = vshrl.u32 %v11070_v48, 16  ;;  %v3509_v2 = vshll.u32 %v11070_v48, 16  ;;  %v13468_v43 = vpop.permute.xlu1 %4263  ;;  %v13470_v10 = vrot.slane %v3257_v49, 4  ;;  %v3859_v31 = vshrl.u32 %v3746_v13, 16  ;;  %633 = vst [vmem:[#allocation2 + $0x100] sm:$0x8] %v632_v28 }
 0x5ff   : > { %v3657_v52 = vsel %vm635_vm6, %v3648_v32, %v3656_v37  ;;  %v4012_v32 = vshrl.u32 %v11071_v9, 16  ;;  %v13474_v37 = vld [vmem:[#allocation2 + $0x50] sm:$0xf8]  ;;  %v3862_v6 = vshll.u32 %v3746_v13, 16  ;;  %v3857_v48 = vor.u32 %v3856_v59, %v3853_v57  ;;  %v11073_v57 = vld [vmem:[#allocation2 + $0x18] sm:$0xf] }
 0x600   : > { %4271 = vrot.lane.b32.xlu1 %v3657_v52, %s11503_s16  ;;  %v3508_v5 = vrot.slane %v3506_v38, 4  ;;  %v3511_v53 = vrot.slane %v3509_v2, 5  ;;  %v3516_v52 = vrot.slane %v3514_v14, 4  ;;  %v4015_v49 = vshll.u32 %v11071_v9, 16 }
 0x601   : > { %v13476_v17 = vrot.slane %v4012_v32, 3  ;;  %v3861_v55 = vrot.slane %v3859_v31, 4  ;;  %v3864_v38 = vrot.slane %v3862_v6, 5  ;;  %v2094_v40 = vrot.slane %v11072_v51, 4  ;;  %v3899_v6 = vld [vmem:[#allocation2 + $0x110] sm:$0xf8] }
 0x602   : > { %v3512_v44 = vor.u32 %v3511_v53, %v3508_v5  ;;  %v3520_v14 = vor.u32 %v3519_v22, %v3516_v52  ;;  %v4017_v13 = vrot.slane %v4015_v49, 4  ;;  %v2095_v59 = vrot.slane %v11073_v57, 4  ;;  %v13485_v53 = vpop.permute.xlu1 %4281  ;;  %v13491_v52 = vld [vmem:[#allocation2 + $0x118] sm:$0xf] }
 0x603   : > { %v3865_v28 = vor.u32 %v3864_v38, %v3861_v55  ;;  %v3659_v9 = vshrl.u32 %v3552_v29, 16  ;;  %v3662_v31 = vshll.u32 %v3552_v29, 16  ;;  %v3667_v2 = vshrl.u32 %v13478_v62, 16 }
 0x604   : > { %v3521_v5 = vsel %vm1781_vm4, %v3512_v44, %v3520_v14  ;;  %v4018_v32 = vor.u32 %v4017_v13, %v13476_v17  ;;  %v2096_v51 = vsel %vm1748_vm3, %v2094_v40, %v2095_v59  ;;  %v3670_v17 = vshll.u32 %v13478_v62, 16 }
 0x605   : > { %v3866_v22 = vsel %vm1781_vm4, %v3857_v48, %v3865_v28  ;;  %4257 = vrot.lane.b32.xlu1 %v3521_v5, %s11502_s29  ;;  %v2770_v55 = vsel %vm727_vm1, %v2096_v51, %v13248_v1  ;;  %v3661_v29 = vrot.slane %v3659_v9, 3  ;;  %v3664_v49 = vrot.slane %v3662_v31, 4  ;;  %v3897_v44 = vld [vmem:[#allocation2 + $0x100] sm:$0xf8]  ;;  %v13500_v28 = vpop.permute.xlu0 %2631 }
 0x606   : > { %4289 = vrot.lane.b32.xlu0 %v3866_v22, %s11501_s19  ;;  %v3669_v38 = vrot.slane %v3667_v2, 3  ;;  %v4021_v40 = vshrl.u32 %v3899_v6, 16  ;;  %v4024_v14 = vshll.u32 %v3899_v6, 16  ;;  %v4004_v13 = vshrl.u32 %v3897_v44, 16  ;;  %15899 = vst [vmem:[#allocation69_spill] sm:$0xff] %v13500_v28  ;;  %v13503_v2 = vpop.permute.xlu1 %2679 }
 0x607   : > { %v4007_v57 = vshll.u32 %v3897_v44, 16  ;;  %v3665_v59 = vor.u32 %v3664_v49, %v3661_v29  ;;  %v4029_v48 = vshrl.u32 %v13491_v52, 16  ;;  %v3672_v5 = vrot.slane %v3670_v17, 4  ;;  %v3402_v17 = vld [vmem:[#allocation2 + $0xf8] sm:$0x1f] }
 0x608   : > { %v4023_v19 = vrot.slane %v4021_v40, 3  ;;  %v4026_v1 = vrot.slane %v4024_v14, 4  ;;  %v4032_v9 = vshll.u32 %v13491_v52, 16  ;;  %v4006_v31 = vrot.slane %v4004_v13, 3 }
 0x609   : > { %v4009_v51 = vrot.slane %v4007_v57, 4  ;;  %v4031_v22 = vrot.slane %v4029_v48, 3  ;;  %v3673_v6 = vor.u32 %v3672_v5, %v3669_v38  ;;  %v2728_v49 = vsel %vm576_vm2, %v13320_v12, %v13099_v25  ;;  %v11074_v48 = vld [vmem:[#allocation2 + $0x20] sm:$0xf0]  ;;  %v11075_v12 = vld [vmem:[#allocation2 + $0x28] sm:$0xf] }
 0x60a   : > { %v4027_v44 = vor.u32 %v4026_v1, %v4023_v19  ;;  %v4034_v29 = vrot.slane %v4032_v9, 4  ;;  %v2745_v13 = vsel %vm2743_vm13, %v2728_v49, %v13268_v33  ;;  %v2793_v57 = vsel %vm576_vm2, %v2770_v55, %v13252_v30  ;;  %v11076_v30 = vld [vmem:[#allocation2 + $0xf0] sm:$0xf0]  ;;  %v13525_v49 = vld [vmem:[#allocation2 + $0x100] sm:$0xf0] }
 0x60b   : > { %v4010_v14 = vor.u32 %v4009_v51, %v4006_v31  ;;  %v2097_v28 = vrot.slane %v11074_v48, 4  ;;  %v3674_v19 = vsel %vm635_vm6, %v3665_v59, %v3673_v6  ;;  %v2809_v25 = vsel %vm2743_vm13, %v2793_v57, %v13123_v42  ;;  %v13527_v59 = vpop.permute.xlu0 %4249 }
 0x60c   : > { %v4035_v5 = vor.u32 %v4034_v29, %v4031_v22  ;;  %v2098_v1 = vrot.slane %v11075_v12, 4  ;;  %4273 = vrot.lane.b32.xlu1 %v3674_v19, %s11503_s16  ;;  %3032 = vmatprep.mubr.bf16.mxu0 %v2809_v25  ;;  %v3523_v55 = vshrl.u32 %v11076_v30, 16  ;;  %v3526_v31 = vshll.u32 %v11076_v30, 16  ;;  %v3554_v29 = vld [vmem:[#allocation2 + $0x100] sm:$0xf8] }
 0x60d   : > { %v4019_v33 = vsel %vm635_vm6, %v4010_v14, %v4018_v32  ;;  %v3531_v51 = vshrl.u32 %v3402_v17, 16  ;;  %v3534_v6 = vshll.u32 %v3402_v17, 16  ;;  %3033 = vmatmul.mubr.bf16.vlgmr.msra.gmra.mrb[4].mxu0 %v2745_v13  ;;  %v13535_v25 = vld [vmem:[#allocation2 + $0x108] sm:$0xf]  ;;  %v13540_v12 = vld [vmem:[%s15725_s5 + $0x80] sm:$0xff]   ;;  %v3871_v17 = vshll.u32 %v13525_v49, 16 }
 0x60e   : > { %4305 = vrot.lane.b32.xlu0 %v4019_v33, %s11502_s29  ;;  %v4036_v42 = vsel %vm635_vm6, %v4027_v44, %v4035_v5  ;;  %v2099_v14 = vsel %vm1748_vm3, %v2097_v28, %v2098_v1  ;;  %v3525_v57 = vrot.slane %v3523_v55, 4  ;;  %v3528_v48 = vrot.slane %v3526_v31, 5  ;;  %10386 = vmatpush3.bf16.msra.mxu0 %v13540_v12  ;;  %v13543_v44 = vpop.permute.xlu1 %4297  ;;  %v13552_v13 = vld [vmem:[%s15725_s5 + $0x88] sm:$0xff]   ;;  %v13557_v55 = vld [vmem:[#allocation2 + $0x110] sm:$0xf0] }
 0x60f   : > { %v3533_v19 = vrot.slane %v3531_v51, 4  ;;  %v2773_v24 = vsel %vm727_vm1, %v2099_v14, %v13265_v21  ;;  %v3868_v28 = vshrl.u32 %v13525_v49, 16  ;;  %10387 = vmatprep.subr.bf16.mxu0 %v13552_v13  ;;  %v3676_v33 = vshrl.u32 %v3554_v29, 16  ;;  %v13573_v22 = vpop.permute.xlu0 %2647 }
 0x610   : > { %v13505_v62 = vpop.f32.mrb[12].mxu1  ;;  %v3529_v5 = vor.u32 %v3528_v48, %v3525_v57  ;;  %v2795_v1 = vsel %vm576_vm2, %v2773_v24, %v13274_v50  ;;  %v3679_v30 = vshll.u32 %v3554_v29, 16  ;;  %v13569_v57 = vld [vmem:[#allocation2 + $0x58] sm:$0xf]  ;;  %v3687_v24 = vshll.u32 %v13535_v25, 16 }
 0x611   : > { %15900 = vst [vmem:[#allocation70_spill] sm:$0xff] %v13505_v62  ;;  %v13510_v40 = vpop.f32.mrb[13].mxu1  ;;  %v682_v62 = vld [vmem:[#allocation2 + $0x108] sm:$0x10]  ;;  %v13562_v51 = vrot.slane %v3868_v28, 4  ;;  %v3678_v29 = vrot.slane %v3676_v33, 3 }
 0x612   : > { %v13516_v38 = vpop.f32.mrb[14].mxu1  ;;  %v683_v32 = vsel %vm12243_vm7, 0, %v682_v62  ;;  %v3536_v62 = vrot.slane %v3534_v6, 5  ;;  %4307 = vrot.lane.b32.xlu0 %v4036_v42, %s11502_s29  ;;  %v13564_v6 = vrot.slane %v3871_v17, 5  ;;  %v3681_v48 = vrot.slane %v3679_v30, 4  ;;  %10388 = vmatpush3.bf16.msra.mxu0 %v13552_v13 }
 0x613   : > { %15901 = vst [vmem:[#allocation71_spill] sm:$0xff] %v13516_v38  ;;  %v13521_v9 = vpop.f32.mrb[15].mxu1  ;;  %684 = vst [vmem:[#allocation2 + $0x108] sm:$0x10] %v683_v32  ;;  %v3684_v32 = vshrl.u32 %v13535_v25, 16  ;;  %10591 = vmatprep.subr.bf16.mxu0 %v15834_v60  ;;  %v3689_v30 = vrot.slane %v3687_v24, 4 }
 0x614   : > { %v3537_v31 = vor.u32 %v3536_v62, %v3533_v19  ;;  %v2730_v62 = vsel %vm576_vm2, %v13324_v45, %v13282_v15  ;;  %v3682_v33 = vor.u32 %v3681_v48, %v3678_v29  ;;  %v3874_v15 = vor.u32 %v13564_v6, %v13562_v51  ;;  %v11081_v45 = vld [vmem:[#allocation2 + $0x38] sm:$0xf]  ;;  %v11084_v6 = vld [vmem:[#allocation2 + $0x40] sm:$0xf0] }
 0x615   : > { %v3686_v28 = vrot.slane %v3684_v32, 3  ;;  %v2101_v32 = vrot.slane %v11081_v45, 4  ;;  %v2748_v17 = vsel %vm2743_vm13, %v2730_v62, %v13286_v23  ;;  %v2732_v51 = vsel %vm576_vm2, %v13382_v3, %v13302_v27 }
 0x616   : > { %v3538_v19 = vsel %vm1781_vm4, %v3529_v5, %v3537_v31  ;;  %v13589_v31 = vpop.permute.xlu1 %4265  ;;  %v4350_v27 = vsel %vm576_vm2, %v13437_v18, %v13326_v0  ;;  %v2751_v3 = vsel %vm2743_vm13, %v2732_v51, %v13345_v61  ;;  %v11086_v61 = vld [vmem:[#allocation2 + $0xa0] sm:$0xf0] }
 0x617   : > { %4259 = vrot.lane.b32.xlu1 %v3538_v19, %s11502_s29  ;;  %v11082_v19 = vld [vmem:[#allocation2 + $0x90] sm:$0xf0]  ;;  %v4366_v0 = vsel %vm2743_vm13, %v4350_v27, %v13350_v41  ;;  %v3719_v18 = vrot.slane %v11086_v61, 4  ;;  %v11091_v27 = vld [vmem:[#allocation2 + $0xb8] sm:$0xf] }
 0x618   : > { %v13559_v21 = vpop.f32.mrb[16].mxu1  ;;  %v3716_v29 = vrot.slane %v11082_v19, 4  ;;  %v11087_v19 = vld [vmem:[#allocation2 + $0xa8] sm:$0xf]  ;;  %v11092_v61 = vld [vmem:[#allocation2 + $0x60] sm:$0xf0] }
 0x619   : > { %15902 = vst [vmem:[#allocation72_spill] sm:$0xff] %v13559_v21  ;;  %v13567_v14 = vpop.f32.mrb[17].mxu1  ;;  %v11080_v21 = vld [vmem:[#allocation2 + $0x30] sm:$0xf0] }
 0x61a   : > { %15903 = vst [vmem:[#allocation73_spill] sm:$0xff] %v13567_v14  ;;  %v13575_v42 = vpop.f32.mrb[18].mxu1  ;;  %v2100_v5 = vrot.slane %v11080_v21, 4  ;;  %v3747_v14 = vld [vmem:[#allocation2 + $0x108] sm:$0x1f]  ;;  %v4083_v21 = vrot.slane %v13491_v52, 4 }
 0x61b   : > { %15904 = vst [vmem:[#allocation74_spill] sm:$0xff] %v13575_v42  ;;  %v13583_v50 = vpop.f32.mrb[19].mxu1  ;;  %v2812_v42 = vsel %vm2743_vm13, %v2795_v1, %v13134_v34  ;;  %v3876_v48 = vshrl.u32 %v3747_v14, 16  ;;  %v3879_v24 = vshll.u32 %v3747_v14, 16  ;;  %v11083_v34 = vld [vmem:[#allocation2 + $0x98] sm:$0xf] }
 0x61c   : > { %15905 = vst [vmem:[#allocation75_spill] sm:$0xff] %v13583_v50  ;;  %3040 = vmatprep.mubr.bf16.mxu0 %v2812_v42  ;;  %v3690_v50 = vor.u32 %v3689_v30, %v3686_v28  ;;  %v3717_v1 = vrot.slane %v11083_v34, 4  ;;  %v2102_v38 = vsel %vm1748_vm3, %v2100_v5, %v2101_v32  ;;  %v2103_v42 = vrot.slane %v11084_v6, 4  ;;  %v13603_v28 = vpop.permute.xlu0 %2665  ;;  %v11085_v30 = vld [vmem:[#allocation2 + $0x48] sm:$0xf]  ;;  %v13620_v32 = vpop.permute.xlu1 %4283 }
 0x61d   : > { %3041 = vmatmul.mubr.bf16.gmra.mrb[8].mxu0 %v2748_v17  ;;  %v3878_v45 = vrot.slane %v3876_v48, 4  ;;  %v3881_v23 = vrot.slane %v3879_v24, 5  ;;  %v2776_v14 = vsel %vm727_vm1, %v2102_v38, %v13288_v11  ;;  %v2104_v5 = vrot.slane %v11085_v30, 4 }
 0x61e   : > { %v3691_v62 = vsel %vm635_vm6, %v3682_v33, %v3690_v50  ;;  %v3718_v52 = vsel %vm1748_vm3, %v3716_v29, %v3717_v1  ;;  %v2797_v17 = vsel %vm576_vm2, %v2776_v14, %v13307_v58  ;;  %v13614_v50 = vld [vmem:[#allocation2 + $0xb0] sm:$0xf8]  ;;  %v3720_v29 = vrot.slane %v11087_v19, 4  ;;  %v11093_v19 = vld [vmem:[#allocation2 + $0x68] sm:$0xf] }
 0x61f   : > { %4275 = vrot.lane.b32.xlu1 %v3691_v62, %s11503_s16  ;;  %v3882_v33 = vor.u32 %v3881_v23, %v3878_v45  ;;  %v4391_v11 = vsel %vm727_vm1, %v3718_v52, %v13292_v39  ;;  %v2815_v38 = vsel %vm2743_vm13, %v2797_v17, %v13129_v8  ;;  %v1685_v39 = vshll.u32 %v13569_v57, 16  ;;  %v11088_v1 = vld [vmem:[#allocation2 + $0x50] sm:$0xf0]  ;;  %v11089_v45 = vld [vmem:[#allocation2 + $0x58] sm:$0xf] }
 0x620   : > { %3048 = vmatprep.mubr.bf16.mxu0 %v2815_v38  ;;  %v4414_v58 = vsel %vm576_vm2, %v4391_v11, %v13338_v16  ;;  %v2105_v24 = vsel %vm1748_vm3, %v2103_v42, %v2104_v5  ;;  %v3263_v34 = vshrl.u32 %v13614_v50, 16  ;;  %v3721_v41 = vsel %vm1748_vm3, %v3719_v18, %v3720_v29  ;;  %v13643_v62 = vpop.permute.xlu0 %2633  ;;  %v11090_v17 = vld [vmem:[#allocation2 + $0xb0] sm:$0xf0]  ;;  %v2682_v30 = vpop.permute.xlu1 %2681  ;;  %v11094_v29 = vld [vmem:[#allocation2 + $0xc0] sm:$0xf0] }
 0x621   : > { %v3883_v48 = vsel %vm1781_vm4, %v3874_v15, %v3882_v33  ;;  %v4430_v8 = vsel %vm2743_vm13, %v4414_v58, %v13144_v36  ;;  %v2779_v16 = vsel %vm727_vm1, %v2105_v24, %v13364_v56  ;;  %v2106_v51 = vrot.slane %v11088_v1, 4  ;;  %v15907_v56 = vld [vmem:[#allocation28_spill] sm:$0xff]  ;;  %v15909_v11 = vld [vmem:[#allocation29_spill] sm:$0xff]  ;;  %v15911_v1 = vld [vmem:[#allocation31_spill] sm:$0xff] }
 0x622   : > { %4291 = vrot.lane.b32.xlu0 %v3883_v48, %s11501_s19  ;;  %4509 = vmatprep.mubr.bf16.mxu1 %v4430_v8  ;;  %v15906_v6 = vrot.slane %v13557_v55, 4  ;;  %v4394_v36 = vsel %vm727_vm1, %v3721_v41, %v13368_v46  ;;  %v2799_v42 = vsel %vm576_vm2, %v2779_v16, %v13400_v47  ;;  %v2107_v23 = vrot.slane %v11089_v45, 4  ;;  %v15908_v46 = vld [vmem:[#allocation55_spill] sm:$0xff]  ;;  %v11095_v8 = vld [vmem:[#allocation2 + $0xc8] sm:$0xf]  ;;  %v15910_v41 = vld [vmem:[#allocation30_spill] sm:$0xff] }
 0x623   : > { %4510 = vmatmul.mubr.bf16.vlgmr.msra.gmra.mrb[20].mxu1 %v4366_v0  ;;  %v2818_v14 = vsel %vm2743_vm13, %v2799_v42, %v15907_v56  ;;  %v4416_v52 = vsel %vm576_vm2, %v4394_v36, %v13433_v4  ;;  %v2734_v47 = vsel %vm576_vm2, %v13449_v35, %v15908_v46  ;;  %v4352_v33 = vsel %vm576_vm2, %v13454_v63, %v13422_v20  ;;  %v15915_v42 = vld [vmem:[#allocation60_spill] sm:$0xff]  ;;  %s11409_s19 = scalar_lea.vmem %s15670_s24, 4096 }
 0x624   : > { %v4084_v15 = vsel %vm1748_vm3, %v15906_v6, %v4083_v21  ;;  %v3722_v21 = vrot.slane %v11090_v17, 4  ;;  %10611 = vmatpush3.bf16.msra.mxu1 %v13540_v12  ;;  %v4433_v38 = vsel %vm2743_vm13, %v4416_v52, %v15909_v11  ;;  %v2108_v4 = vsel %vm1748_vm3, %v2106_v51, %v2107_v23  ;;  %v4252_v6 = vpop.permute.xlu0 %4251  ;;  %v15916_v45 = vld [vmem:[#allocation56_spill] sm:$0xff]  ;;  %v15920_v52 = vld [vmem:[#allocation66_spill] sm:$0xff]  ;;  %p11410_p13 = scmp.ne.s32.totalorder %s15670_s24, %s11409_s19 }
 0x625   : > { %3049 = vmatmul.mubr.bf16.gmra.mrb[12].mxu0 %v2751_v3  ;;  %v3723_v3 = vrot.slane %v11091_v27, 4  ;;  %v3266_v5 = vshll.u32 %v13614_v50, 16  ;;  %v2754_v12 = vsel %vm2743_vm13, %v2734_v47, %v13462_v26  ;;  %4517 = vmatprep.mubr.bf16.mxu1 %v4433_v38  ;;  %v2782_v35 = vsel %vm727_vm1, %v2108_v4, %v13480_v7  ;;  %v15926_v50 = vld [vmem:[#allocation33_spill] sm:$0xff] }
 0x626   : > { %3056 = vmatprep.mubr.bf16.mxu0 %v2818_v14  ;;  %4323 = vrot.lane.b32.xlu0 %v4084_v15, %s11503_s16  ;;  %v4369_v63 = vsel %vm2743_vm13, %v4352_v33, %v13468_v43  ;;  %v2801_v0 = vsel %vm576_vm2, %v2782_v35, %v13503_v2  ;;  %v2109_v18 = vrot.slane %v11092_v61, 4  ;;  %v2110_v7 = vrot.slane %v11093_v19, 4  ;;  %v11096_v43 = vld [vmem:[#allocation2 + $0xb8] sm:$0xf]  ;;  %v15913_v15 = vld [vmem:[#allocation64_spill] sm:$0xff]  ;;  %v15919_v14 = vld [vmem:[#allocation67_spill] sm:$0xff]  ;;  %p11411_p6 = pnand %p11410_p13, %p15984_p1 }
 0x627   : > { %v3724_v20 = vsel %vm1748_vm3, %v3722_v21, %v3723_v3  ;;  %10610 = vmatprep.subr.bf16.mxu1 %v13552_v13  ;;  %v3725_v48 = vrot.slane %v11094_v29, 4  ;;  %v3726_v24 = vrot.slane %v11095_v8, 4  ;;  %v3274_v16 = vshll.u32 %v11096_v43, 16  ;;  %v15927_v61 = vld [vmem:[#allocation69_spill] sm:$0xff]  ;;  %s11504_s16 = smov [#allocation14]  }
 0x628   : > { %v4397_v58 = vsel %vm727_vm1, %v3724_v20, %v13485_v53  ;;  %10612 = vmatpush3.bf16.msra.mxu1 %v13552_v13  ;;  %v3271_v53 = vshrl.u32 %v11096_v43, 16  ;;  %v2821_v2 = vsel %vm2743_vm13, %v2801_v0, %v15910_v41  ;;  %v15917_v23 = vor.u32 %v15915_v42, %v15916_v45  ;;  %v15929_v43 = vld [vmem:[#allocation36_spill] sm:$0xff]  ;;  %p11412_p9 = pneg %p11411_p6 }
 0x629   : > { %v4418_v26 = vsel %vm576_vm2, %v4397_v58, %v13543_v44  ;;  %10573 = vmatprep.subr.bf16.mxu1 %v15834_v60  ;;  %v15912_v44 = vld [vmem:[#allocation65_spill] sm:$0xff]  ;;  %v15918_v56 = vor.u32 %v13470_v10, %v13460_v54  ;;  %v15921_v17 = vor.u32 %v15919_v14, %v15920_v52  ;;  %v15922_v27 = vshrl.u32 %v13474_v37, 16  ;;  %v4300_v54 = vpop.permute.xlu1 %4299 }
 0x62a   : > { %v4436_v51 = vsel %vm2743_vm13, %v4418_v26, %v15911_v1  ;;  %v15914_v36 = vor.u32 %v15912_v44, %v15913_v15  ;;  %v15923_v46 = vshll.u32 %v13474_v37, 16  ;;  %v15924_v33 = vshrl.u32 %v13569_v57, 16 }
 0x62b   : > { %v3261_v21 = vsel %vm635_vm6, %v15921_v17, %v15918_v56  ;;  %v1676_v3 = vrot.slane %v15922_v27, 3  ;;  %v1687_v38 = vrot.slane %v1685_v39, 4  ;;  %4518 = vmatmul.mubr.bf16.gmra.mrb[24].mxu1 %v4369_v63  ;;  %v3265_v10 = vrot.slane %v3263_v34, 3  ;;  %v15925_v39 = vld [vmem:[#allocation32_spill] sm:$0xff]  ;;  %v11098_v17 = vld [vmem:[#allocation2 + $0x70] sm:$0xf0] }
 0x62c   : > { %v1672_v13 = vsel %vm635_vm6, %v15917_v23, %v15914_v36  ;;  %v1679_v47 = vrot.slane %v15923_v46, 4  ;;  %v1684_v11 = vrot.slane %v15924_v33, 3  ;;  %v3268_v4 = vrot.slane %v3266_v5, 4  ;;  %4525 = vmatprep.mubr.bf16.mxu1 %v4436_v51  ;;  %v15931_v51 = vld [vmem:[#allocation37_spill] sm:$0xff]  ;;  %v11097_v23 = vld [vmem:[#allocation2 + $0x68] sm:$0xf] }
 0x62d   : > { %3057 = vmatmul.mubr.bf16.gmra.mrb[16].mxu0 %v2754_v12  ;;  %v2111_v35 = vsel %vm1748_vm3, %v2109_v18, %v2110_v7  ;;  %v3727_v37 = vsel %vm1748_vm3, %v3725_v48, %v3726_v24  ;;  %v3273_v20 = vrot.slane %v3271_v53, 3  ;;  %v3276_v58 = vrot.slane %v3274_v16, 4  ;;  %v4268_v16 = vpop.permute.xlu1 %4267  ;;  %v11099_v27 = vld [vmem:[#allocation2 + $0x78] sm:$0xf] }
 0x62e   : > { %3064 = vmatprep.mubr.bf16.mxu0 %v2821_v2  ;;  %v2785_v0 = vsel %vm727_vm1, %v2111_v35, %v13603_v28  ;;  %v4400_v57 = vsel %vm727_vm1, %v3727_v37, %v13620_v32  ;;  %v2717_v12 = vsel %vm727_vm1, %v1672_v13, %v15925_v39  ;;  %v4333_v34 = vsel %vm727_vm1, %v3261_v21, %v15926_v50  ;;  %v2650_v28 = vpop.permute.xlu0 %2649 }
 0x62f   : > { %v2803_v5 = vsel %vm576_vm2, %v2785_v0, %v2682_v30  ;;  %v4420_v63 = vsel %vm576_vm2, %v4400_v57, %v4300_v54  ;;  %v2736_v18 = vsel %vm576_vm2, %v2717_v12, %v15927_v61  ;;  %v4354_v26 = vsel %vm576_vm2, %v4333_v34, %v13527_v59  ;;  %v15928_v30 = vld [vmem:[#allocation34_spill] sm:$0xff]  ;;  %v1584_v59 = vld [vmem:[#allocation2 + $0x60] sm:$0xf8]  ;;  %v11100_v12 = vld [vmem:[#allocation2 + $0xc8] sm:$0xf] }
 0x630   : > { %v1680_v19 = vor.u32 %v1679_v47, %v1676_v3  ;;  %v1688_v7 = vor.u32 %v1687_v38, %v1684_v11  ;;  %v2757_v32 = vsel %vm2743_vm13, %v2736_v18, %v13573_v22  ;;  %v4372_v29 = vsel %vm2743_vm13, %v4354_v26, %v13589_v31  ;;  %v15930_v31 = vld [vmem:[#allocation35_spill] sm:$0xff] }
 0x631   : > { %v3269_v48 = vor.u32 %v3268_v4, %v3265_v10  ;;  %v3277_v8 = vor.u32 %v3276_v58, %v3273_v20  ;;  %v2824_v24 = vsel %vm2743_vm13, %v2803_v5, %v15928_v30  ;;  %v4439_v53 = vsel %vm2743_vm13, %v4420_v63, %v15929_v43  ;;  %v4286_v46 = vpop.permute.xlu1 %4285  ;;  %v3203_v54 = vld [vmem:[#allocation2 + $0xc0] sm:$0xf8]  ;;  %v15932_v58 = vld [vmem:[#allocation38_spill] sm:$0xff] }
 0x632   : > { %v1689_v41 = vsel %vm635_vm6, %v1680_v19, %v1688_v7  ;;  %v2668_v2 = vpop.permute.xlu0 %2667  ;;  %v1691_v15 = vshrl.u32 %v1584_v59, 16  ;;  %v1694_v36 = vshll.u32 %v1584_v59, 16  ;;  %v1699_v13 = vshrl.u32 %v11097_v23, 16  ;;  %v15933_v19 = vld [vmem:[#allocation39_spill] sm:$0xff] }
 0x633   : > { %4526 = vmatmul.mubr.bf16.gmra.mrb[28].mxu1 %v4372_v29  ;;  %v3278_v22 = vsel %vm635_vm6, %v3269_v48, %v3277_v8  ;;  %v2720_v1 = vsel %vm727_vm1, %v1689_v41, %v15930_v31  ;;  %v1702_v56 = vshll.u32 %v11097_v23, 16  ;;  %v2112_v21 = vrot.slane %v11098_v17, 4  ;;  %v11102_v48 = vld [vmem:[#allocation2 + $0xd8] sm:$0xf]  ;;  %v1586_v23 = vld [vmem:[#allocation2 + $0x70] sm:$0xf8] }
 0x634   : > { %4533 = vmatprep.mubr.bf16.mxu1 %v4439_v53  ;;  %v4336_v44 = vsel %vm727_vm1, %v3278_v22, %v15931_v51  ;;  %v2738_v42 = vsel %vm576_vm2, %v2720_v1, %v13643_v62  ;;  %v2113_v3 = vrot.slane %v11099_v27, 4  ;;  %v1693_v33 = vrot.slane %v1691_v15, 3  ;;  %v15934_v1 = vld [vmem:[#allocation40_spill] sm:$0xff] }
 0x635   : > { %3065 = vmatmul.mubr.bf16.gmra.mrb[20].mxu0 %v2757_v32  ;;  %v4356_v45 = vsel %vm576_vm2, %v4336_v44, %v4252_v6  ;;  %v2760_v14 = vsel %vm2743_vm13, %v2738_v42, %v2650_v28  ;;  %v1696_v11 = vrot.slane %v1694_v36, 4  ;;  %v1701_v62 = vrot.slane %v1699_v13, 3  ;;  %v2684_v4 = vpop.permute.xlu1 %2683  ;;  %v11101_v32 = vld [vmem:[#allocation2 + $0xd0] sm:$0xf0]  ;;  %v11104_v27 = vld [vmem:[#allocation2 + $0x80] sm:$0xf0] }
 0x636   : > { %3072 = vmatprep.mubr.bf16.mxu0 %v2824_v24  ;;  %v4375_v52 = vsel %vm2743_vm13, %v4356_v45, %v4268_v16  ;;  %v2636_v47 = vpop.permute.xlu0 %2635  ;;  %v1704_v38 = vrot.slane %v1702_v56, 4  ;;  %v2114_v6 = vsel %vm1748_vm3, %v2112_v21, %v2113_v3  ;;  %v3280_v57 = vshrl.u32 %v3203_v54, 16  ;;  %v15935_v44 = vld [vmem:[#allocation41_spill] sm:$0xff] }
 0x637   : > { %v2788_v10 = vsel %vm727_vm1, %v2114_v6, %v2668_v2  ;;  %v1697_v37 = vor.u32 %v1696_v11, %v1693_v33  ;;  %v3283_v39 = vshll.u32 %v3203_v54, 16  ;;  %v3288_v50 = vshrl.u32 %v11100_v12, 16  ;;  %v4085_v54 = vld [vmem:[#allocation2 + $0xa8] sm:$0x1f] }
 0x638   : > { %v2805_v35 = vsel %vm576_vm2, %v2788_v10, %v2684_v4  ;;  %v1705_v20 = vor.u32 %v1704_v38, %v1701_v62  ;;  %v3291_v34 = vshll.u32 %v11100_v12, 16  ;;  %v3282_v61 = vrot.slane %v3280_v57, 3 }
 0x639   : > { %v2827_v0 = vsel %vm2743_vm13, %v2805_v35, %v15932_v58  ;;  %v3285_v18 = vrot.slane %v3283_v39, 4  ;;  %v3290_v26 = vrot.slane %v3288_v50, 3  ;;  %v3728_v29 = vrot.slane %v11101_v32, 4  ;;  %v11105_v35 = vld [vmem:[#allocation2 + $0xa0] sm:$0xf0] }
 0x63a   : > { %v4254_v5 = vpop.permute.xlu0 %4253  ;;  %v1706_v63 = vsel %vm635_vm6, %v1697_v37, %v1705_v20  ;;  %v3293_v28 = vrot.slane %v3291_v34, 4  ;;  %v3729_v8 = vrot.slane %v11102_v48, 4  ;;  %v1708_v56 = vshrl.u32 %v1586_v23, 16  ;;  %v3205_v58 = vld [vmem:[#allocation2 + $0xd0] sm:$0xf8] }
 0x63b   : > { %4534 = vmatmul.mubr.bf16.gmra.mrb[32].mxu1 %v4375_v52  ;;  %v2723_v7 = vsel %vm727_vm1, %v1706_v63, %v15933_v19  ;;  %v3286_v53 = vor.u32 %v3285_v18, %v3282_v61  ;;  %v4302_v22 = vpop.permute.xlu1 %4301  ;;  %v11103_v52 = vld [vmem:[#allocation2 + $0x78] sm:$0xf]  ;;  %v2115_v3 = vrot.slane %v11104_v27, 4  ;;  %v4094_v37 = vshrl.u32 %v11105_v35, 16  ;;  %v11106_v63 = vld [vmem:[#allocation2 + $0xb0] sm:$0xf0] }
 0x63c   : > { %v2740_v30 = vsel %vm576_vm2, %v2723_v7, %v2636_v47  ;;  %v3294_v59 = vor.u32 %v3293_v28, %v3290_v26  ;;  %v3730_v16 = vsel %vm1748_vm3, %v3728_v29, %v3729_v8  ;;  %v1716_v17 = vshrl.u32 %v11103_v52, 16  ;;  %v15937_v18 = vld [vmem:[#allocation42_spill] sm:$0xff] }
 0x63d   : > { %3073 = vmatmul.mubr.bf16.gmra.mrb[24].mxu0 %v2760_v14  ;;  %v4403_v41 = vsel %vm727_vm1, %v3730_v16, %v4286_v46  ;;  %v1711_v14 = vshll.u32 %v1586_v23, 16  ;;  %v1719_v21 = vshll.u32 %v11103_v52, 16  ;;  %v15936_v46 = vld [vmem:[#allocation54_spill] sm:$0xff]  ;;  %v1710_v11 = vrot.slane %v1708_v56, 3 }
 0x63e   : > { %3080 = vmatprep.mubr.bf16.mxu0 %v2827_v0  ;;  %v2652_v24 = vpop.permute.xlu0 %2651  ;;  %v4422_v2 = vsel %vm576_vm2, %v4403_v41, %v4302_v22  ;;  %v3295_v31 = vsel %vm635_vm6, %v3286_v53, %v3294_v59  ;;  %v2116_v47 = vrot.slane %v15936_v46, 4  ;;  %v1718_v38 = vrot.slane %v1716_v17, 3  ;;  %v4086_v29 = vld [vmem:[#allocation2 + $0xb8] sm:$0x1f]  ;;  %v4087_v41 = vld [vmem:[#allocation2 + $0xc8] sm:$0x1f] }
 0x63f   : > { %v2763_v43 = vsel %vm2743_vm13, %v2740_v30, %v2652_v24  ;;  %v4442_v51 = vsel %vm2743_vm13, %v4422_v2, %v15934_v1  ;;  %v4339_v15 = vsel %vm727_vm1, %v3295_v31, %v15935_v44  ;;  %v1713_v62 = vrot.slane %v1711_v14, 4  ;;  %v11107_v53 = vld [vmem:[#allocation2 + $0xd8] sm:$0xf]  ;;  %v15938_v2 = vld [vmem:[#allocation43_spill] sm:$0xff] }
 0x640   : > { %4541 = vmatprep.mubr.bf16.mxu1 %v4442_v51  ;;  %v4358_v36 = vsel %vm576_vm2, %v4339_v15, %v4254_v5  ;;  %v1721_v6 = vrot.slane %v1719_v21, 4  ;;  %v2117_v4 = vsel %vm1748_vm3, %v2115_v3, %v2116_v47  ;;  %v4097_v20 = vshll.u32 %v11105_v35, 16  ;;  %v11109_v21 = vld [vmem:[#allocation2 + $0xe0] sm:$0xf0]  ;;  %v15939_v3 = vld [vmem:[#allocation57_spill] sm:$0xff] }
 0x641   : > { %v4270_v42 = vpop.permute.xlu1 %4269  ;;  %v4102_v39 = vshrl.u32 %v4085_v54, 16  ;;  %v4105_v12 = vshll.u32 %v4085_v54, 16  ;;  %v1714_v50 = vor.u32 %v1713_v62, %v1710_v11  ;;  %v4111_v61 = vshrl.u32 %v11106_v63, 16 }
 0x642   : > { %v4378_v45 = vsel %vm2743_vm13, %v4358_v36, %v4270_v42  ;;  %v1722_v34 = vor.u32 %v1721_v6, %v1718_v38  ;;  %v3297_v28 = vshrl.u32 %v3205_v58, 16  ;;  %v3300_v19 = vshll.u32 %v3205_v58, 16  ;;  %v11108_v42 = vld [vmem:[#allocation2 + $0xc0] sm:$0xf0] }
 0x643   : > { %4542 = vmatmul.mubr.bf16.gmra.mrb[36].mxu1 %v4378_v45  ;;  %v4096_v7 = vrot.slane %v4094_v37, 4  ;;  %v4099_v32 = vrot.slane %v4097_v20, 5  ;;  %v4104_v8 = vrot.slane %v4102_v39, 4  ;;  %v4107_v30 = vrot.slane %v4105_v12, 5 }
 0x644   : > { %v4114_v24 = vshll.u32 %v11106_v63, 16  ;;  %v3305_v59 = vshrl.u32 %v11107_v53, 16  ;;  %v3308_v16 = vshll.u32 %v11107_v53, 16  ;;  %v4113_v22 = vrot.slane %v4111_v61, 4  ;;  %v11110_v63 = vld [vmem:[#allocation2 + $0xd0] sm:$0xf0] }
 0x645   : > { %3081 = vmatmul.mubr.bf16.gmra.mrb[28].mxu0 %v2763_v43  ;;  %v2670_v13 = vpop.permute.xlu0 %2669  ;;  %v1723_v43 = vsel %vm635_vm6, %v1714_v50, %v1722_v34  ;;  %v4119_v1 = vshrl.u32 %v4086_v29, 16  ;;  %v4122_v51 = vshll.u32 %v4086_v29, 16  ;;  %v3299_v44 = vrot.slane %v3297_v28, 3 }
 0x646   : > { %v2791_v0 = vsel %vm727_vm1, %v2117_v4, %v2670_v13  ;;  %v2726_v31 = vsel %vm727_vm1, %v1723_v43, %v15938_v2  ;;  %v3302_v15 = vrot.slane %v3300_v19, 4  ;;  %v4100_v36 = vor.u32 %v4099_v32, %v4096_v7  ;;  %v15940_v7 = vld [vmem:[#allocation45_spill] sm:$0xff] }
 0x647   : > { %v4128_v45 = vshrl.u32 %v11108_v42, 16  ;;  %v4108_v23 = vor.u32 %v4107_v30, %v4104_v8  ;;  %v4131_v13 = vshll.u32 %v11108_v42, 16  ;;  %v4136_v56 = vshrl.u32 %v4087_v41, 16 }
 0x648   : > { %v4139_v14 = vshll.u32 %v4087_v41, 16  ;;  %v3307_v52 = vrot.slane %v3305_v59, 3  ;;  %v3310_v17 = vrot.slane %v3308_v16, 4  ;;  %v3731_v27 = vrot.slane %v11109_v21, 4  ;;  %v3207_v59 = vld [vmem:[#allocation2 + $0xe0] sm:$0xf8] }
 0x649   : > { %v3732_v46 = vrot.slane %v15939_v3, 4  ;;  %v4116_v47 = vrot.slane %v4114_v24, 5  ;;  %v4121_v38 = vrot.slane %v4119_v1, 4  ;;  %v4124_v6 = vrot.slane %v4122_v51, 5  ;;  %v15941_v24 = vld [vmem:[#allocation46_spill] sm:$0xff] }
 0x64a   : > { %v2638_v10 = vpop.permute.xlu0 %2637  ;;  %v4130_v4 = vrot.slane %v4128_v45, 4  ;;  %v4109_v35 = vsel %vm1781_vm4, %v4100_v36, %v4108_v23  ;;  %v4133_v37 = vrot.slane %v4131_v13, 5  ;;  %v4138_v20 = vrot.slane %v4136_v56, 4  ;;  %v11111_v36 = vld [vmem:[#allocation2 + $0xe8] sm:$0xf] }
 0x64b   : > { %v2742_v11 = vsel %vm576_vm2, %v2726_v31, %v2638_v10  ;;  %v4141_v58 = vrot.slane %v4139_v14, 5  ;;  %v3311_v39 = vor.u32 %v3310_v17, %v3307_v52  ;;  %v3733_v12 = vsel %vm1748_vm3, %v3731_v27, %v3732_v46 }
 0x64c   : > { %v4117_v34 = vor.u32 %v4116_v47, %v4113_v22  ;;  %v4145_v61 = vshrl.u32 %v11110_v63, 16  ;;  %v4134_v29 = vor.u32 %v4133_v37, %v4130_v4  ;;  %v3322_v42 = vshrl.u32 %v11111_v36, 16  ;;  %v15945_v4 = vld [vmem:[#allocation47_spill] sm:$0xff] }
 0x64d   : > { %v4142_v8 = vor.u32 %v4141_v58, %v4138_v20  ;;  %v3325_v45 = vshll.u32 %v11111_v36, 16  ;;  %v15942_v27 = vmov 0.0   ;;  %v11114_v36 = vld [vmem:[#allocation2 + $0xf0] sm:$0xf0] }
 0x64e   : > { %v13761_v33 = vpop.permute.xlu1 %4287  ;;  %v4147_v53 = vrot.slane %v4145_v61, 4  ;;  %v3324_v14 = vrot.slane %v3322_v42, 3  ;;  %v11112_v61 = vld [vmem:[#allocation2 + $0xf8] sm:$0xf]  ;;  %v4179_v42 = vshrl.u32 %v11114_v36, 16 }
 0x64f   : > { %v4406_v10 = vsel %vm727_vm1, %v3733_v12, %v13761_v33  ;;  %v4143_v51 = vsel %vm1781_vm4, %v4134_v29, %v4142_v8  ;;  %v3327_v52 = vrot.slane %v3325_v45, 4 }
 0x651   : > { %v3328_v46 = vor.u32 %v3327_v52, %v3324_v14  ;;  %v15947_v14 = vld [vmem:[#allocation49_spill] sm:$0xff] }
 0x652   : > { %v2686_v57 = vpop.permute.xlu1 %2685 }
 0x653   : > { %v2807_v5 = vsel %vm576_vm2, %v2791_v0, %v2686_v57  ;;  %v4088_v0 = vld [vmem:[#allocation2 + $0xd8] sm:$0x1f]  ;;  %v3303_v57 = vor.u32 %v3302_v15, %v3299_v44  ;;  %v3314_v44 = vshrl.u32 %v3207_v59, 16  ;;  %v3317_v15 = vshll.u32 %v3207_v59, 16 }
 0x654   : > { %v2830_v26 = vsel %vm2743_vm13, %v2807_v5, %v15937_v18  ;;  %v4125_v5 = vor.u32 %v4124_v6, %v4121_v38  ;;  %v4153_v28 = vshrl.u32 %v4088_v0, 16  ;;  %v4156_v19 = vshll.u32 %v4088_v0, 16  ;;  %v15944_v38 = vld [vmem:[#allocation68_spill] sm:$0xff] }
 0x655   : > { %3088 = vmatprep.mubr.bf16.mxu0 %v2830_v26  ;;  %v4148_v26 = vshll.u32 %v11110_v63, 16  ;;  %v3312_v30 = vsel %vm635_vm6, %v3303_v57, %v3311_v39  ;;  %v3316_v13 = vrot.slane %v3314_v44, 3  ;;  %v3319_v56 = vrot.slane %v3317_v15, 4  ;;  %v3209_v39 = vld [vmem:[#allocation2 + $0xf0] sm:$0xf8] }
 0x656   : > { %v4342_v33 = vsel %vm727_vm1, %v3312_v30, %v15941_v24  ;;  %v4126_v43 = vsel %vm1781_vm4, %v4117_v34, %v4125_v5  ;;  %v4155_v2 = vrot.slane %v4153_v28, 4  ;;  %v4158_v31 = vrot.slane %v4156_v19, 5  ;;  %v4089_v28 = vld [vmem:[#allocation2 + $0xe8] sm:$0x1f]  ;;  %v11113_v30 = vld [vmem:[#allocation2 + $0xe0] sm:$0xf0] }
 0x657   : > { %v4150_v22 = vrot.slane %v4148_v26, 5  ;;  %v3320_v3 = vor.u32 %v3319_v56, %v3316_v13  ;;  %v3735_v6 = vrot.slane %v15944_v38, 4  ;;  %v3331_v5 = vshrl.u32 %v3209_v39, 16  ;;  %v4090_v15 = vld [vmem:[#allocation2 + $0xf8] sm:$0x1f] }
 0x658   : > { %v3334_v63 = vshll.u32 %v3209_v39, 16  ;;  %v3342_v26 = vshll.u32 %v11112_v61, 16  ;;  %v4162_v24 = vshrl.u32 %v11113_v30, 16  ;;  %v4091_v13 = vld [vmem:[#allocation2 + $0x108] sm:$0x1f]  ;;  %v4182_v56 = vshll.u32 %v11114_v36, 16 }
 0x659   : > { %v4151_v23 = vor.u32 %v4150_v22, %v4147_v53  ;;  %v3333_v19 = vrot.slane %v3331_v5, 3  ;;  %v4173_v53 = vshll.u32 %v4089_v28, 16  ;;  %v3737_v22 = vrot.slane %v13525_v49, 4  ;;  %v15948_v36 = vld [vmem:[#allocation51_spill] sm:$0xff] }
 0x65a   : > { %v3344_v29 = vrot.slane %v3342_v26, 4 }
 0x65b   : > { %v4175_v44 = vrot.slane %v4173_v53, 5 }
 0x65e   : > { %v13768_v48 = vpop.permute.xlu0 %4255 }
 0x65f   : > { %v4360_v16 = vsel %vm576_vm2, %v4342_v33, %v13768_v48  ;;  %v4159_v48 = vor.u32 %v4158_v31, %v4155_v2  ;;  %v4165_v33 = vshll.u32 %v11113_v30, 16  ;;  %v3738_v2 = vrot.slane %v13535_v25, 4 }
 0x660   : > { %v4164_v31 = vrot.slane %v4162_v24, 4 }
 0x661   : > { %v4160_v17 = vsel %vm1781_vm4, %v4151_v23, %v4159_v48  ;;  %v3739_v23 = vsel %vm1748_vm3, %v3737_v22, %v3738_v2  ;;  %v13833_v22 = vld [vmem:[#allocation8] ss:$0 sm:$0xff] }
 0x662   : > { %v2654_v62 = vpop.permute.xlu0 %2653 }
 0x663   : > { %v2766_v54 = vsel %vm2743_vm13, %v2742_v11, %v2654_v62  ;;  %v15943_v11 = vld [vmem:[#allocation62_spill] sm:$0xff] }
 0x664   : > { %3089 = vmatmul.mubr.bf16.gmra.mrb[32].mxu0 %v2766_v54  ;;  %v3734_v62 = vrot.slane %v15943_v11, 4  ;;  %v3329_v54 = vsel %vm635_vm6, %v3320_v3, %v3328_v46  ;;  %v4190_v46 = vshll.u32 %v4090_v15, 16 }
 0x665   : > { %10389 = vmatprep.mubr.msk.bf16.mxu0 %vm727_vm1, %v4109_v35  ;;  %v4345_v35 = vsel %vm727_vm1, %v3329_v54, %v15945_v4  ;;  %v4207_v54 = vshll.u32 %v4091_v13, 16 }
 0x666   : > { %v4304_v50 = vpop.permute.xlu1 %4303  ;;  %v3736_v37 = vsel %vm1748_vm3, %v3734_v62, %v3735_v6  ;;  %v4204_v6 = vshrl.u32 %v4091_v13, 16 }
 0x667   : > { %v4424_v18 = vsel %vm576_vm2, %v4406_v10, %v4304_v50  ;;  %v15946_v50 = vld [vmem:[#allocation48_spill] sm:$0xff] }
 0x668   : > { %v4445_v32 = vsel %vm2743_vm13, %v4424_v18, %v15940_v7  ;;  %v3339_v18 = vshrl.u32 %v11112_v61, 16  ;;  %v3336_v7 = vrot.slane %v3334_v63, 4  ;;  %v4206_v5 = vrot.slane %v4204_v6, 4 }
 0x669   : > { %4549 = vmatprep.mubr.bf16.mxu1 %v4445_v32  ;;  %v4209_v63 = vrot.slane %v4207_v54, 5  ;;  %v4213_v61 = vshrl.u32 %v13557_v55, 16 }
 0x66a   : > { %v3341_v32 = vrot.slane %v3339_v18, 3  ;;  %v4216_v18 = vshll.u32 %v13557_v55, 16 }
 0x66c   : > { %10390 = vmatmul.mubr.msk.bf16.vlgmr.msra.gmra.mrb[36].mxu0 %vm727_vm1, %v4126_v43  ;;  %v4170_v43 = vshrl.u32 %v4089_v28, 16  ;;  %v4218_v30 = vrot.slane %v4216_v18, 5 }
 0x66d   : > { %10393 = vmatprep.mubr.msk.bf16.mxu0 %vm727_vm1, %v4143_v51 }
 0x66e   : > { %v4172_v51 = vrot.slane %v4170_v43, 4 }
 0x670   : > { %v4176_v3 = vor.u32 %v4175_v44, %v4172_v51 }
 0x672   : > { %v4272_v41 = vpop.permute.xlu1 %4271 }
 0x673   : > { %v4381_v1 = vsel %vm2743_vm13, %v4360_v16, %v4272_v41  ;;  %v3337_v16 = vor.u32 %v3336_v7, %v3333_v19  ;;  %v3345_v41 = vor.u32 %v3344_v29, %v3341_v32  ;;  %v4210_v29 = vor.u32 %v4209_v63, %v4206_v5  ;;  %v15953_v5 = vld [vmem:[#allocation63_spill] sm:$0xff] }
 0x674   : > { %4550 = vmatmul.mubr.bf16.gmra.mrb[40].mxu1 %v4381_v1  ;;  %10394 = vmatmul.mubr.msk.bf16.gmra.mrb[40].mxu0 %vm727_vm1, %v4160_v17  ;;  %v4167_v1 = vrot.slane %v4165_v33, 5  ;;  %v4187_v17 = vshrl.u32 %v4090_v15, 16 }
 0x675   : > { %10451 = vmatprep.mubr.msk.f32.mxu0 %vm11498_vm0, %v15942_v27  ;;  %v3346_v45 = vsel %vm635_vm6, %v3337_v16, %v3345_v41 }
 0x676   : > { %v4348_v52 = vsel %vm727_vm1, %v3346_v45, %v15947_v14 }
 0x677   : > { %v4258_v21 = vpop.permute.xlu1 %4257 }
 0x678   : > { %v4290_v47 = vpop.permute.xlu0 %4289  ;;  %v4362_v0 = vsel %vm576_vm2, %v4345_v35, %v4258_v21  ;;  %v4168_v21 = vor.u32 %v4167_v1, %v4164_v31 }
 0x679   : > { %v4409_v58 = vsel %vm727_vm1, %v3736_v37, %v4290_v47  ;;  %v11115_v47 = vld [vmem:[#allocation2 + $0x100] sm:$0xf0] }
 0x67a   : > { %v4196_v11 = vshrl.u32 %v11115_v47, 16  ;;  %v4199_v38 = vshll.u32 %v11115_v47, 16  ;;  %v4177_v39 = vsel %vm1781_vm4, %v4168_v21, %v4176_v3  ;;  %v15950_v21 = vld [vmem:[#allocation50_spill] sm:$0xff]  ;;  %v15951_v47 = vld [vmem:[#allocation52_spill] sm:$0xff] }
 0x67e   : > { %v4274_v20 = vpop.permute.xlu1 %4273 }
 0x67f   : > { %v4384_v10 = vsel %vm2743_vm13, %v4362_v0, %v4274_v20  ;;  %v4181_v20 = vrot.slane %v4179_v42, 4  ;;  %v4092_v0 = vld [vmem:[#allocation2 + $0x118] sm:$0x1f] }
 0x680   : > { %v4306_v57 = vpop.permute.xlu0 %4305  ;;  %v4221_v26 = vshrl.u32 %v4092_v0, 16  ;;  %v4224_v28 = vshll.u32 %v4092_v0, 16 }
 0x681   : > { %v4426_v12 = vsel %vm576_vm2, %v4409_v58, %v4306_v57  ;;  %v4184_v57 = vrot.slane %v4182_v56, 5 }
 0x682   : > { %v4448_v34 = vsel %vm2743_vm13, %v4426_v12, %v15946_v50  ;;  %v4189_v12 = vrot.slane %v4187_v17, 4  ;;  %v4198_v50 = vrot.slane %v4196_v11, 4  ;;  %v4223_v24 = vrot.slane %v4221_v26, 4 }
 0x683   : > { %4557 = vmatprep.mubr.bf16.mxu1 %v4448_v34  ;;  %v4201_v34 = vrot.slane %v4199_v38, 5  ;;  %v4185_v19 = vor.u32 %v4184_v57, %v4181_v20  ;;  %v4226_v33 = vrot.slane %v4224_v28, 5 }
 0x684   : > { %4558 = vmatmul.mubr.bf16.gmra.mrb[44].mxu1 %v4384_v10  ;;  %v4308_v8 = vpop.permute.xlu0 %4307  ;;  %v4192_v10 = vrot.slane %v4190_v46, 5 }
 0x685   : > { %v4202_v32 = vor.u32 %v4201_v34, %v4198_v50  ;;  %v4227_v55 = vor.u32 %v4226_v33, %v4223_v24 }
 0x686   : > { %v4193_v7 = vor.u32 %v4192_v10, %v4189_v12  ;;  %v15952_v10 = vld [vmem:[#allocation59_spill] sm:$0xff] }
 0x687   : > { %v4211_v53 = vsel %vm1781_vm4, %v4202_v32, %v4210_v29 }
 0x688   : > { %v4194_v43 = vsel %vm1781_vm4, %v4185_v19, %v4193_v7 }
 0x689   : > { %v4260_v59 = vpop.permute.xlu1 %4259 }
 0x68a   : > { %v4364_v62 = vsel %vm576_vm2, %v4348_v52, %v4260_v59 }
 0x691   : > { %v4276_v25 = vpop.permute.xlu1 %4275 }
 0x692   : > { %v4387_v37 = vsel %vm2743_vm13, %v4364_v62, %v4276_v25 }
 0x694   : > { %v4292_v48 = vpop.permute.xlu0 %4291 }
 0x695   : > { %v4412_v49 = vsel %vm727_vm1, %v3739_v23, %v4292_v48  ;;  %v15949_v23 = vld [vmem:[#allocation53_spill] sm:$0xff] }
 0x696   : > { %v4428_v35 = vsel %vm576_vm2, %v4412_v49, %v4308_v8  ;;  %v4215_v8 = vrot.slane %v4213_v61, 4 }
 0x698   : > { %v4324_v4 = vpop.permute.xlu0 %4323  ;;  %v4219_v59 = vor.u32 %v4218_v30, %v4215_v8 }
 0x699   : > { %v4451_v58 = vsel %vm2743_vm13, %v4428_v35, %v4324_v4 }
 0x69a   : > { %4565 = vmatprep.mubr.bf16.mxu1 %v4451_v58  ;;  %v4228_v16 = vsel %vm1781_vm4, %v4219_v59, %v4227_v55 }
 0x69b   : > { %4566 = vmatmul.mubr.bf16.gmra.mrb[48].mxu1 %v4387_v37 }
 0x69c   : > { %10397 = vmatprep.mubr.msk.bf16.mxu1 %vm727_vm1, %v4177_v39 }
 0x6a3   : > { %10398 = vmatmul.mubr.msk.bf16.vlgmr.msra.gmra.mrb[52].mxu1 %vm727_vm1, %v4194_v43 }
 0x6a4   : > { %10401 = vmatprep.mubr.msk.bf16.mxu1 %vm727_vm1, %v4211_v53  ;;  %v15954_v53 = vld [vmem:[#allocation58_spill] sm:$0xff] }
 0x6ab   : > { %10402 = vmatmul.mubr.msk.bf16.gmra.mrb[56].mxu1 %vm727_vm1, %v4228_v16  ;;  %v15955_v16 = vld [vmem:[#allocation61_spill] sm:$0xff] }
 0x6ac   : > { %10421 = vmatprep.mubr.msk.f32.mxu1 %vm11498_vm0, %v15942_v27 }
 0x6e0   : > { %v9863_v41 = vpop.f32.mrb[4].mxu0 }
 0x6e1   : > { %v9864_v2 = vpop.f32.mrb[5].mxu0 }
 0x6e2   : > { %v9865_v31 = vadd.f32 %v9864_v2, %v9863_v41  ;;  %v9866_v1 = vpop.f32.mrb[6].mxu0 }
 0x6e3   : > { %v9867_v51 = vpop.f32.mrb[7].mxu0 }
 0x6e4   : > { %v3035_v44 = vadd.f32 %v9865_v31, %v13833_v22  ;;  %v9868_v15 = vadd.f32 %v9867_v51, %v9866_v1 }
 0x6e6   : > { %v13837_v42 = vadd.f32 %v15948_v36, %v3035_v44  ;;  %v3038_v45 = vadd.f32 %v9868_v15, %v13833_v22 }
 0x6e8   : > { %v13841_v48 = vadd.f32 %v15949_v23, %v3038_v45 }
 0x6f0   : > { %v9869_v13 = vpop.f32.mrb[8].mxu0 }
 0x6f1   : > { %v9870_v56 = vpop.f32.mrb[9].mxu0 }
 0x6f2   : > { %v9871_v14 = vadd.f32 %v9870_v56, %v9869_v13  ;;  %v9872_v52 = vpop.f32.mrb[10].mxu0 }
 0x6f3   : > { %v9873_v49 = vpop.f32.mrb[11].mxu0 }
 0x6f4   : > { %v3043_v25 = vadd.f32 %v9871_v14, %v13833_v22  ;;  %v9874_v17 = vadd.f32 %v9873_v49, %v9872_v52 }
 0x6f6   : > { %v13845_v3 = vadd.f32 %v15950_v21, %v3043_v25  ;;  %v3046_v46 = vadd.f32 %v9874_v17, %v13833_v22  ;;  %v9937_v38 = vpop.f32.mrb[20].mxu1 }
 0x6f7   : > { %v9938_v54 = vpop.f32.mrb[21].mxu1 }
 0x6f8   : > { %v13849_v11 = vadd.f32 %v15951_v47, %v3046_v46  ;;  %v9875_v62 = vpop.f32.mrb[12].mxu0  ;;  %v13851_v37 = vadd.f32 %v9938_v54, %v9937_v38  ;;  %v9940_v20 = vpop.f32.mrb[22].mxu1 }
 0x6f9   : > { %v9876_v6 = vpop.f32.mrb[13].mxu0  ;;  %v9941_v0 = vpop.f32.mrb[23].mxu1 }
 0x6fa   : > { %v9877_v4 = vadd.f32 %v9876_v6, %v9875_v62  ;;  %v9878_v35 = vpop.f32.mrb[14].mxu0  ;;  %v13854_v12 = vadd.f32 %v9941_v0, %v9940_v20 }
 0x6fb   : > { %v9879_v58 = vpop.f32.mrb[15].mxu0 }
 0x6fc   : > { %v3051_v57 = vadd.f32 %v9877_v4, %v13833_v22  ;;  %v9880_v39 = vadd.f32 %v9879_v58, %v9878_v35 }
 0x6fe   : > { %v13857_v50 = vadd.f32 %v15952_v10, %v3051_v57  ;;  %v3054_v34 = vadd.f32 %v9880_v39, %v13833_v22  ;;  %v9943_v18 = vpop.f32.mrb[24].mxu1  ;;  %v15956_v57 = vld [vmem:[#allocation70_spill] sm:$0xff]  ;;  %v4673_v10 = vld [vmem:[%s15729_s9] sm:$0xff] }
 0x6ff   : > { %v9944_v28 = vpop.f32.mrb[25].mxu1 }
 0x700   : > { %v13861_v63 = vadd.f32 %v15953_v5, %v3054_v34  ;;  %v9881_v61 = vpop.f32.mrb[16].mxu0  ;;  %v13863_v32 = vadd.f32 %v9944_v28, %v9943_v18  ;;  %v9946_v29 = vpop.f32.mrb[26].mxu1  ;;  %v4674_v34 = vld [vmem:[%s15729_s9 + $0x8] sm:$0xff]  ;;  %v4675_v5 = vld [vmem:[%s15729_s9 + $0x10] sm:$0xff]  ;;  %v4676_v28 = vld [vmem:[%s15729_s9 + $0x18] sm:$0xff] }
 0x701   : > { %v9882_v26 = vpop.f32.mrb[17].mxu0  ;;  %v9947_v30 = vpop.f32.mrb[27].mxu1 }
 0x702   : > { %v9883_v19 = vadd.f32 %v9882_v26, %v9881_v61  ;;  %v9884_v7 = vpop.f32.mrb[18].mxu0  ;;  %v13866_v43 = vadd.f32 %v9947_v30, %v9946_v29  ;;  %v15957_v61 = vld [vmem:[#allocation71_spill] sm:$0xff]  ;;  %v10574_v26 = vpack.c.bf16 %v4674_v34, %v4673_v10  ;;  %v4678_v29 = vld [vmem:[%s15729_s9 + $0x28] sm:$0xff] }
 0x703   : > { %v9885_v8 = vpop.f32.mrb[19].mxu0 }
 0x704   : > { %v3059_v24 = vadd.f32 %v9883_v19, %v13833_v22  ;;  %v9886_v33 = vadd.f32 %v9885_v8, %v9884_v7  ;;  %10575 = vmatpush3.bf16.msra.mxu1 %v10574_v26  ;;  %v10577_v19 = vpack.c.bf16 %v4676_v28, %v4675_v5  ;;  %10593 = vmatpush3.bf16.msra.mxu0 %v10574_v26  ;;  %v4677_v7 = vld [vmem:[%s15729_s9 + $0x20] sm:$0xff] }
 0x705   : > { %10576 = vmatprep.subr.bf16.mxu1 %v15834_v60  ;;  %10594 = vmatprep.subr.bf16.mxu0 %v15834_v60  ;;  %v10580_v30 = vpack.c.bf16 %v4678_v29, %v4677_v7 }
 0x706   : > { %v13869_v59 = vadd.f32 %v15954_v53, %v3059_v24  ;;  %v3062_v55 = vadd.f32 %v9886_v33, %v13833_v22  ;;  %v9949_v31 = vpop.f32.mrb[28].mxu1  ;;  %v4679_v33 = vld [vmem:[%s15729_s9 + $0x30] sm:$0xff]  ;;  %v4680_v53 = vld [vmem:[%s15729_s9 + $0x38] sm:$0xff] }
 0x707   : > { %v9950_v51 = vpop.f32.mrb[29].mxu1 }
 0x708   : > { %v13873_v41 = vadd.f32 %v15955_v16, %v3062_v55  ;;  %v9887_v2 = vpop.f32.mrb[20].mxu0  ;;  %v13875_v36 = vadd.f32 %v9950_v51, %v9949_v31  ;;  %v9952_v45 = vpop.f32.mrb[30].mxu1  ;;  %10578 = vmatpush3.bf16.msra.mxu1 %v10577_v19  ;;  %10596 = vmatpush3.bf16.msra.mxu0 %v10577_v19  ;;  %v10583_v51 = vpack.c.bf16 %v4680_v53, %v4679_v33  ;;  %v4696_v10 = vsel %vm576_vm2, %v13869_v59, 0.0 }
 0x709   : > { %v9888_v1 = vpop.f32.mrb[21].mxu0  ;;  %v9953_v13 = vpop.f32.mrb[31].mxu1  ;;  %10579 = vmatprep.subr.bf16.mxu1 %v15834_v60  ;;  %10597 = vmatprep.subr.bf16.mxu0 %v15834_v60 }
 0x70a   : > { %v9889_v44 = vadd.f32 %v9888_v1, %v9887_v2  ;;  %v9890_v15 = vpop.f32.mrb[22].mxu0  ;;  %v13878_v52 = vadd.f32 %v9953_v13, %v9952_v45 }
 0x70b   : > { %v9891_v23 = vpop.f32.mrb[23].mxu0 }
 0x70c   : > { %v3067_v56 = vadd.f32 %v9889_v44, %v13833_v22  ;;  %v9892_v14 = vadd.f32 %v9891_v23, %v9890_v15  ;;  %10581 = vmatpush3.bf16.msra.mxu1 %v10580_v30  ;;  %10599 = vmatpush3.bf16.msra.mxu0 %v10580_v30  ;;  %v15958_v44 = vld [vmem:[#allocation73_spill] sm:$0xff]  ;;  %v15959_v23 = vld [vmem:[#allocation75_spill] sm:$0xff] }
 0x70d   : > { %10582 = vmatprep.subr.bf16.mxu1 %v15834_v60  ;;  %10600 = vmatprep.subr.bf16.mxu0 %v15834_v60 }
 0x70e   : > { %v13881_v49 = vadd.f32 %v13510_v40, %v3067_v56  ;;  %v3070_v25 = vadd.f32 %v9892_v14, %v13833_v22  ;;  %v9955_v46 = vpop.f32.mrb[32].mxu1 }
 0x70f   : > { %v9956_v62 = vpop.f32.mrb[33].mxu1 }
 0x710   : > { %v13885_v17 = vadd.f32 %v13521_v9, %v3070_v25  ;;  %v9893_v21 = vpop.f32.mrb[24].mxu0  ;;  %v13887_v54 = vadd.f32 %v9956_v62, %v9955_v46  ;;  %v9958_v4 = vpop.f32.mrb[34].mxu1  ;;  %10584 = vmatpush3.bf16.msra.mxu1 %v10583_v51  ;;  %10602 = vmatpush3.bf16.msra.mxu0 %v10583_v51  ;;  %v4686_v62 = vsel %vm576_vm2, %v13841_v48, 0.0  ;;  %v4700_v28 = vsel %vm576_vm2, %v13881_v49, 0.0 }
 0x711   : > { %v9894_v47 = vpop.f32.mrb[25].mxu0  ;;  %v9959_v20 = vpop.f32.mrb[35].mxu1  ;;  %10585 = vmatprep.subr.bf16.mxu1 %v15834_v60  ;;  %v4520_v51 = vadd.f32 %v13863_v32, %v13833_v22 }
 0x712   : > { %v9895_v38 = vadd.f32 %v9894_v47, %v9893_v21  ;;  %v9896_v6 = vpop.f32.mrb[26].mxu0  ;;  %v13890_v0 = vadd.f32 %v9959_v20, %v9958_v4  ;;  %v4690_v20 = vsel %vm576_vm2, %v13849_v11, 0.0 }
 0x713   : > { %v9897_v35 = vpop.f32.mrb[27].mxu0 }
 0x714   : > { %v3075_v58 = vadd.f32 %v9895_v38, %v13833_v22  ;;  %v9898_v40 = vadd.f32 %v9897_v35, %v9896_v6  ;;  %v4685_v38 = vsel %vm576_vm2, %v13837_v42, 0.0  ;;  %v4688_v6 = vsel %vm576_vm2, %v13845_v3, 0.0 }
 0x715   : > { %v4687_v4 = vadd.f32 %v4686_v62, %v4685_v38  ;;  %v4523_v38 = vadd.f32 %v13866_v43, %v13833_v22 }
 0x716   : > { %v13893_v39 = vadd.f32 %v15956_v57, %v3075_v58  ;;  %v3078_v9 = vadd.f32 %v9898_v40, %v13833_v22  ;;  %v9961_v56 = vpop.f32.mrb[36].mxu1  ;;  %v4692_v58 = vsel %vm576_vm2, %v13857_v50, 0.0 }
 0x717   : > { %v9962_v14 = vpop.f32.mrb[37].mxu1  ;;  %v4689_v35 = vadd.f32 %v4688_v6, %v4687_v4 }
 0x718   : > { %v13906_v18 = vadd.f32 %v15957_v61, %v3078_v9  ;;  %v9899_v8 = vpop.f32.mrb[28].mxu0  ;;  %v13938_v25 = vadd.f32 %v9962_v14, %v9961_v56  ;;  %v9964_v21 = vpop.f32.mrb[38].mxu1  ;;  %v4694_v9 = vsel %vm576_vm2, %v13861_v63, 0.0  ;;  %v4698_v61 = vsel %vm576_vm2, %v13873_v41, 0.0 }
 0x719   : > { %v9900_v24 = vpop.f32.mrb[29].mxu0  ;;  %v9965_v46 = vpop.f32.mrb[39].mxu1  ;;  %v4691_v40 = vadd.f32 %v4690_v20, %v4689_v35  ;;  %v4512_v14 = vadd.f32 %v13851_v37, %v13833_v22  ;;  %v4515_v20 = vadd.f32 %v13854_v12, %v13833_v22 }
 0x71a   : > { %v9901_v55 = vadd.f32 %v9900_v24, %v9899_v8  ;;  %v9902_v16 = vpop.f32.mrb[30].mxu0  ;;  %v13940_v47 = vadd.f32 %v9965_v46, %v9964_v21 }
 0x71b   : > { %v9903_v2 = vpop.f32.mrb[31].mxu0  ;;  %v4693_v57 = vadd.f32 %v4692_v58, %v4691_v40  ;;  %v4706_v58 = vsel %vm576_vm2, %v13906_v18, 0.0 }
 0x71c   : > { %v3083_v31 = vadd.f32 %v9901_v55, %v13833_v22  ;;  %v9904_v1 = vadd.f32 %v9903_v2, %v9902_v16  ;;  %v4702_v55 = vsel %vm576_vm2, %v13885_v17, 0.0  ;;  %v15960_v16 = vld [vmem:[#allocation72_spill] sm:$0xff] }
 0x71d   : > { %v4695_v34 = vadd.f32 %v4694_v9, %v4693_v57 }
 0x71e   : > { %v13931_v15 = vadd.f32 %v15958_v44, %v3083_v31  ;;  %v3086_v45 = vadd.f32 %v9904_v1, %v13833_v22  ;;  %v4704_v1 = vsel %vm576_vm2, %v13893_v39, 0.0 }
 0x71f   : > { %v4697_v5 = vadd.f32 %v4696_v10, %v4695_v34 }
 0x720   : > { %v13935_v13 = vadd.f32 %v15959_v23, %v3086_v45  ;;  %v15961_v45 = vld [vmem:[#allocation74_spill] sm:$0xff]  ;;  %v4708_v43 = vsel %vm576_vm2, %v13931_v15, 0.0 }
 0x721   : > { %v4699_v7 = vadd.f32 %v4698_v61, %v4697_v5 }
 0x723   : > { %v4701_v24 = vadd.f32 %v4700_v28, %v4699_v7  ;;  %v4710_v7 = vsel %vm576_vm2, %v13935_v13, 0.0 }
 0x725   : > { %v4703_v44 = vadd.f32 %v4702_v55, %v4701_v24 }
 0x727   : > { %v4705_v6 = vadd.f32 %v4704_v1, %v4703_v44 }
 0x729   : > { %v4707_v61 = vadd.f32 %v4706_v58, %v4705_v6 }
 0x72b   : > { %v4709_v12 = vadd.f32 %v4708_v43, %v4707_v61 }
 0x737   : > { %v9905_v26 = vpop.f32.mrb[32].mxu0 }
 0x738   : > { %v9906_v19 = vpop.f32.mrb[33].mxu0 }
 0x739   : > { %v9907_v29 = vadd.f32 %v9906_v19, %v9905_v26  ;;  %v9908_v8 = vpop.f32.mrb[34].mxu0  ;;  %v4536_v26 = vadd.f32 %v13887_v54, %v13833_v22  ;;  %v4528_v19 = vadd.f32 %v13875_v36, %v13833_v22  ;;  %v4531_v54 = vadd.f32 %v13878_v52, %v13833_v22 }
 0x73a   : > { %v9909_v30 = vpop.f32.mrb[35].mxu0 }
 0x73b   : > { %v3091_v33 = vadd.f32 %v9907_v29, %v13833_v22  ;;  %v9910_v53 = vadd.f32 %v9909_v30, %v9908_v8  ;;  %v4539_v30 = vadd.f32 %v13890_v0, %v13833_v22 }
 0x73d   : > { %v13964_v2 = vadd.f32 %v15960_v16, %v3091_v33  ;;  %v3094_v31 = vadd.f32 %v9910_v53, %v13833_v22  ;;  %v4711_v16 = vadd.f32 %v4710_v7, %v4709_v12 }
 0x73f   : > { %v13972_v23 = vadd.f32 %v15961_v45, %v3094_v31  ;;  %v10391_v56 = vpop.f32.mrb[36].mxu0  ;;  %v4712_v53 = vsel %vm576_vm2, %v13964_v2, 0.0 }
 0x740   : > { %v13976_v46 = vadd.f32 %v10391_v56, %v4520_v51  ;;  %v4608_v62 = vpop.f32.mrb[37].mxu0  ;;  %v4713_v1 = vadd.f32 %v4712_v53, %v4711_v16 }
 0x741   : > { %v13980_v35 = vadd.f32 %v4608_v62, %v4512_v14  ;;  %v10392_v32 = vpop.f32.mrb[38].mxu0  ;;  %v4714_v51 = vsel %vm576_vm2, %v13972_v23, 0.0 }
 0x742   : > { %v13986_v57 = vadd.f32 %v10392_v32, %v4523_v38  ;;  %v4611_v9 = vpop.f32.mrb[39].mxu0  ;;  %v4715_v0 = vadd.f32 %v4714_v51, %v4713_v1  ;;  %v4720_v32 = vsel %vm576_vm2, %v13976_v46, 0.0 }
 0x743   : > { %v13988_v34 = vadd.f32 %v4611_v9, %v4515_v20  ;;  %v4716_v44 = vsel %vm576_vm2, %v13980_v35, 0.0 }
 0x744   : > { %v4717_v52 = vadd.f32 %v4716_v44, %v4715_v0  ;;  %v4722_v58 = vsel %vm576_vm2, %v13986_v57, 0.0 }
 0x745   : > { %v4718_v62 = vsel %vm576_vm2, %v13988_v34, 0.0 }
 0x747   : > { %v9967_v21 = vpop.f32.mrb[40].mxu1  ;;  %v10395_v28 = vpop.f32.mrb[40].mxu0 }
 0x748   : > { %v9968_v4 = vpop.f32.mrb[41].mxu1  ;;  %v13998_v29 = vadd.f32 %v10395_v28, %v4536_v26  ;;  %v4624_v8 = vpop.f32.mrb[41].mxu0 }
 0x749   : > { %v9969_v40 = vadd.f32 %v9968_v4, %v9967_v21  ;;  %v9970_v37 = vpop.f32.mrb[42].mxu1  ;;  %v14002_v24 = vadd.f32 %v4624_v8, %v4528_v19  ;;  %v10396_v33 = vpop.f32.mrb[42].mxu0  ;;  %v4719_v4 = vadd.f32 %v4718_v62, %v4717_v52 }
 0x74a   : > { %v9971_v10 = vpop.f32.mrb[43].mxu1  ;;  %v14008_v55 = vadd.f32 %v10396_v33, %v4539_v30  ;;  %v4627_v36 = vpop.f32.mrb[43].mxu0  ;;  %v4728_v30 = vsel %vm576_vm2, %v13998_v29, 0.0 }
 0x74b   : > { %v9972_v5 = vadd.f32 %v9971_v10, %v9970_v37  ;;  %v14010_v31 = vadd.f32 %v4627_v36, %v4531_v54  ;;  %v4721_v20 = vadd.f32 %v4720_v32, %v4719_v4  ;;  %v4724_v9 = vsel %vm576_vm2, %v14002_v24, 0.0 }
 0x74c   : > { %v4552_v54 = vadd.f32 %v9969_v40, %v13833_v22  ;;  %v4544_v36 = vadd.f32 %v13938_v25, %v13833_v22  ;;  %v4730_v0 = vsel %vm576_vm2, %v14008_v55, 0.0 }
 0x74d   : > { %v4723_v37 = vadd.f32 %v4722_v58, %v4721_v20  ;;  %v4726_v43 = vsel %vm576_vm2, %v14010_v31, 0.0  ;;  %v4555_v51 = vadd.f32 %v9972_v5, %v13833_v22 }
 0x74f   : > { %v4725_v10 = vadd.f32 %v4724_v9, %v4723_v37 }
 0x751   : > { %v4727_v19 = vadd.f32 %v4726_v43, %v4725_v10 }
 0x753   : > { %v4729_v33 = vadd.f32 %v4728_v30, %v4727_v19 }
 0x755   : > { %v4731_v52 = vadd.f32 %v4730_v0, %v4729_v33 }
 0x757   : > { %v9973_v45 = vpop.f32.mrb[44].mxu1 }
 0x758   : > { %v9974_v56 = vpop.f32.mrb[45].mxu1 }
 0x759   : > { %v9975_v14 = vadd.f32 %v9974_v56, %v9973_v45  ;;  %v9976_v21 = vpop.f32.mrb[46].mxu1  ;;  %v4547_v56 = vadd.f32 %v13940_v47, %v13833_v22 }
 0x75a   : > { %v9977_v38 = vpop.f32.mrb[47].mxu1 }
 0x75b   : > { %v9978_v6 = vadd.f32 %v9977_v38, %v9976_v21  ;;  %v4560_v58 = vadd.f32 %v9975_v14, %v13833_v22 }
 0x76e   : > { %v9979_v61 = vpop.f32.mrb[48].mxu1 }
 0x76f   : > { %v9980_v26 = vpop.f32.mrb[49].mxu1 }
 0x770   : > { %v9981_v12 = vadd.f32 %v9980_v26, %v9979_v61  ;;  %v9982_v28 = vpop.f32.mrb[50].mxu1 }
 0x771   : > { %v9983_v7 = vpop.f32.mrb[51].mxu1 }
 0x772   : > { %v9984_v8 = vadd.f32 %v9983_v7, %v9982_v28  ;;  %v4568_v32 = vadd.f32 %v9981_v12, %v13833_v22  ;;  %v4563_v12 = vadd.f32 %v9978_v6, %v13833_v22 }
 0x774   : > { %v4571_v43 = vadd.f32 %v9984_v8, %v13833_v22 }
 0x776   : > { %v10399_v53 = vpop.f32.mrb[52].mxu1 }
 0x777   : > { %v14031_v16 = vadd.f32 %v10399_v53, %v4552_v54  ;;  %v4640_v1 = vpop.f32.mrb[53].mxu1 }
 0x778   : > { %v14036_v44 = vadd.f32 %v4640_v1, %v4544_v36  ;;  %v10400_v45 = vpop.f32.mrb[54].mxu1 }
 0x779   : > { %v14040_v40 = vadd.f32 %v10400_v45, %v4555_v51  ;;  %v4643_v21 = vpop.f32.mrb[55].mxu1  ;;  %v4736_v20 = vsel %vm576_vm2, %v14031_v16, 0.0 }
 0x77a   : > { %v4732_v25 = vsel %vm576_vm2, %v14036_v44, 0.0  ;;  %v14044_v62 = vadd.f32 %v4643_v21, %v4547_v56  ;;  %v4682_v21 = vld [vmem:[#allocation12 + $0x8] sm:$0xff] }
 0x77b   : > { %v4733_v38 = vadd.f32 %v4732_v25, %v4731_v52  ;;  %v4738_v61 = vsel %vm576_vm2, %v14040_v40, 0.0  ;;  %v4681_v52 = vld [vmem:[#allocation12] sm:$0xff] }
 0x77c   : > { %v4734_v5 = vsel %vm576_vm2, %v14044_v62, 0.0 }
 0x77d   : > { %v4735_v4 = vadd.f32 %v4734_v5, %v4733_v38  ;;  %v10586_v38 = vpack.c.bf16 %v4682_v21, %v4681_v52 }
 0x77e   : > { %v10403_v47 = vpop.f32.mrb[56].mxu1 }
 0x77f   : > { %v4737_v37 = vadd.f32 %v4736_v20, %v4735_v4  ;;  %v14052_v9 = vadd.f32 %v10403_v47, %v4568_v32  ;;  %v4656_v10 = vpop.f32.mrb[57].mxu1  ;;  %v4683_v4 = vld [vmem:[#allocation12 + $0x10] sm:$0xff]  ;;  %v4684_v32 = vld [vmem:[#allocation12 + $0x18] sm:$0xff] }
 0x780   : > { %v14057_v26 = vadd.f32 %v4656_v10, %v4560_v58  ;;  %v10404_v28 = vpop.f32.mrb[58].mxu1  ;;  %v10589_v20 = vpack.c.bf16 %v4684_v32, %v4683_v4 }
 0x781   : > { %v4739_v19 = vadd.f32 %v4738_v61, %v4737_v37  ;;  %v14060_v7 = vadd.f32 %v10404_v28, %v4571_v43  ;;  %v4659_v30 = vpop.f32.mrb[59].mxu1  ;;  %v4744_v36 = vsel %vm576_vm2, %v14052_v9, 0.0  ;;  %v15962_v61 = vld [vmem:[#allocation44_spill] sm:$0xff] }
 0x782   : > { %v4740_v14 = vsel %vm576_vm2, %v14057_v26, 0.0  ;;  %v14064_v33 = vadd.f32 %v4659_v30, %v4563_v12 }
 0x783   : > { %v4741_v54 = vadd.f32 %v4740_v14, %v4739_v19  ;;  %v4746_v22 = vsel %vm576_vm2, %v14060_v7, 0.0 }
 0x784   : > { %v4742_v8 = vsel %vm576_vm2, %v14064_v33, 0.0 }
 0x785   : > { %v4743_v53 = vadd.f32 %v4742_v8, %v4741_v54 }
 0x787   : > { %v4745_v1 = vadd.f32 %v4744_v36, %v4743_v53 }
 0x789   : > { %v4747_v6 = vadd.f32 %v4746_v22, %v4745_v1 }
 0x78b   : > { %v4748_v51 = vrot.slane %v4747_v6, 4 }
 0x78d   : > { %v4749_v0 = vadd.f32 %v4748_v51, %v4747_v6 }
 0x78f   : > { %v4750_v45 = vrot.slane %v4749_v0, 2 }
 0x791   : > { %v4751_v56 = vadd.f32 %v4750_v45, %v4749_v0 }
 0x793   : > { %v4752_v25 = vrot.slane %v4751_v56, 1 }
 0x795   : > { %v4753_v5 = vadd.f32 %v4752_v25, %v4751_v56 }
 0x797   : > { %10422 = vmatmul.mubr.msk.f32.vlgmr.msra.gmra.mrb[60].mxu1 %vm576_vm2, %v4753_v5 }
 0x798   : > { %10587 = vmatpush3.bf16.msra.mxu1 %v10586_v38  ;;  %10432 = vmatprep.mubr.msk.f32.mxu1 %vm11498_vm0, %v15942_v27 }
 0x799   : > { %10588 = vmatprep.subr.bf16.mxu1 %v15834_v60 }
 0x79c   : > { %10590 = vmatpush3.bf16.msra.mxu1 %v10589_v20 }
 0x79d   : > { %10603 = vmatprep.subr.bf16.mxu1 %v15834_v60 }
 0x86a   : > { %v4823_v47 = vpop.f32.mrb[60].mxu1 }
 0x86b   : > { %v4828_v58 = vmul.f32 0.001953125, %v4823_v47  ;;  %v10423_v37 = vpop.f32.mrb[61].mxu1 }
 0x86d   : > { %10433 = vmatmul.mubr.msk.f32.vlgmr.msra.gmra.mrb[62].mxu1 %vm727_vm1, %v4828_v58 }
 0x86e   : > { %10605 = vmatpush3.bf16.msra.mxu1 %v10586_v38  ;;  %10462 = vmatprep.mubr.msk.f32.mxu1 %vm11498_vm0, %v15942_v27 }
 0x86f   : > { %10606 = vmatprep.subr.bf16.mxu1 %v15834_v60 }
 0x872   : > { %10608 = vmatpush3.bf16.msra.mxu1 %v10589_v20 }
 0x940   : > { %v4898_v10 = vpop.f32.mrb[62].mxu1 }
 0x941   : > { %v10434_v43 = vpop.f32.mrb[63].mxu1  ;;  %v14082_v28 = vrot.slane %v4898_v10, %v15962_v61 }
 0x943   : > { %v14086_v12 = vsub.f32 %v13837_v42, %v14082_v28  ;;  %v14090_v19 = vsub.f32 %v13841_v48, %v14082_v28  ;;  %v14094_v30 = vsub.f32 %v13845_v3, %v14082_v28  ;;  %v14098_v60 = vsub.f32 %v13849_v11, %v14082_v28 }
 0x944   : > { %v14106_v42 = vsub.f32 %v13857_v50, %v14082_v28  ;;  %v14112_v3 = vsub.f32 %v13861_v63, %v14082_v28  ;;  %v14120_v36 = vsub.f32 %v13869_v59, %v14082_v28  ;;  %v14127_v63 = vsub.f32 %v13873_v41, %v14082_v28 }
 0x945   : > { %v4938_v27 = vmul.f32 %v14086_v12, %v14086_v12  ;;  %v4939_v14 = vmul.f32 %v14090_v19, %v14090_v19  ;;  %v4940_v48 = vmul.f32 %v14094_v30, %v14094_v30  ;;  %v4941_v11 = vmul.f32 %v14098_v60, %v14098_v60 }
 0x946   : > { %v4942_v50 = vmul.f32 %v14106_v42, %v14106_v42  ;;  %v4943_v6 = vmul.f32 %v14112_v3, %v14112_v3  ;;  %v14134_v59 = vsub.f32 %v13881_v49, %v14082_v28  ;;  %v4944_v45 = vmul.f32 %v14120_v36, %v14120_v36 }
 0x947   : > { %v4970_v54 = vsel %vm576_vm2, %v4938_v27, 0.0  ;;  %v4971_v8 = vsel %vm576_vm2, %v4939_v14, 0.0  ;;  %v4973_v1 = vsel %vm576_vm2, %v4940_v48, 0.0  ;;  %v4975_v51 = vsel %vm576_vm2, %v4941_v11, 0.0 }
 0x948   : > { %v4972_v53 = vadd.f32 %v4971_v8, %v4970_v54  ;;  %v4977_v56 = vsel %vm576_vm2, %v4942_v50, 0.0  ;;  %v14141_v41 = vsub.f32 %v13885_v17, %v14082_v28  ;;  %v4945_v21 = vmul.f32 %v14127_v63, %v14127_v63 }
 0x949   : > { %v4979_v25 = vsel %vm576_vm2, %v4943_v6, 0.0  ;;  %v14148_v49 = vsub.f32 %v13893_v39, %v14082_v28  ;;  %v4946_v5 = vmul.f32 %v14134_v59, %v14134_v59  ;;  %v4981_v4 = vsel %vm576_vm2, %v4944_v45, 0.0 }
 0x94a   : > { %v4974_v22 = vadd.f32 %v4973_v1, %v4972_v53  ;;  %v14155_v17 = vsub.f32 %v13906_v18, %v14082_v28  ;;  %v4947_v20 = vmul.f32 %v14141_v41, %v14141_v41  ;;  %v4983_v47 = vsel %vm576_vm2, %v4945_v21, 0.0 }
 0x94b   : > { %v14162_v39 = vsub.f32 %v13931_v15, %v14082_v28  ;;  %v4948_v37 = vmul.f32 %v14148_v49, %v14148_v49  ;;  %v4985_v10 = vsel %vm576_vm2, %v4946_v5, 0.0  ;;  %v14169_v18 = vsub.f32 %v13935_v13, %v14082_v28 }
 0x94c   : > { %v4976_v0 = vadd.f32 %v4975_v51, %v4974_v22  ;;  %v4949_v27 = vmul.f32 %v14155_v17, %v14155_v17  ;;  %v4987_v14 = vsel %vm576_vm2, %v4947_v20, 0.0  ;;  %v14176_v15 = vsub.f32 %v13964_v2, %v14082_v28 }
 0x94d   : > { %v4950_v11 = vmul.f32 %v14162_v39, %v14162_v39  ;;  %v4989_v54 = vsel %vm576_vm2, %v4948_v37, 0.0  ;;  %v14183_v13 = vsub.f32 %v13972_v23, %v14082_v28  ;;  %v4951_v53 = vmul.f32 %v14169_v18, %v14169_v18 }
 0x94e   : > { %v4978_v52 = vadd.f32 %v4977_v56, %v4976_v0  ;;  %v4991_v50 = vsel %vm576_vm2, %v4949_v27, 0.0  ;;  %v14190_v2 = vsub.f32 %v13980_v35, %v14082_v28  ;;  %v4952_v22 = vmul.f32 %v14176_v15, %v14176_v15 }
 0x94f   : > { %v4993_v6 = vsel %vm576_vm2, %v4950_v11, 0.0  ;;  %v14197_v23 = vsub.f32 %v13988_v34, %v14082_v28  ;;  %v4953_v0 = vmul.f32 %v14183_v13, %v14183_v13  ;;  %v4995_v45 = vsel %vm576_vm2, %v4951_v53, 0.0 }
 0x950   : > { %v4980_v38 = vadd.f32 %v4979_v25, %v4978_v52  ;;  %v14204_v35 = vsub.f32 %v13976_v46, %v14082_v28  ;;  %v4954_v52 = vmul.f32 %v14190_v2, %v14190_v2  ;;  %v4997_v21 = vsel %vm576_vm2, %v4952_v22, 0.0 }
 0x951   : > { %v14211_v34 = vsub.f32 %v13986_v57, %v14082_v28  ;;  %v4999_v5 = vsel %vm576_vm2, %v4953_v0, 0.0  ;;  %v14218_v46 = vsub.f32 %v14002_v24, %v14082_v28  ;;  %v14225_v57 = vsub.f32 %v14010_v31, %v14082_v28 }
 0x952   : > { %v4982_v32 = vadd.f32 %v4981_v4, %v4980_v38  ;;  %v4955_v38 = vmul.f32 %v14197_v23, %v14197_v23  ;;  %v5001_v20 = vsel %vm576_vm2, %v4954_v52, 0.0  ;;  %v14232_v24 = vsub.f32 %v13998_v29, %v14082_v28 }
 0x953   : > { %v14239_v31 = vsub.f32 %v14008_v55, %v14082_v28  ;;  %v14246_v29 = vsub.f32 %v14036_v44, %v14082_v28  ;;  %v14253_v55 = vsub.f32 %v14044_v62, %v14082_v28  ;;  %v14260_v44 = vsub.f32 %v14031_v16, %v14082_v28 }
 0x954   : > { %v4984_v58 = vadd.f32 %v4983_v47, %v4982_v32  ;;  %v4956_v32 = vmul.f32 %v14204_v35, %v14204_v35  ;;  %v5003_v37 = vsel %vm576_vm2, %v4955_v38, 0.0  ;;  %v14267_v62 = vsub.f32 %v14040_v40, %v14082_v28 }
 0x955   : > { %v14274_v16 = vsub.f32 %v14057_v26, %v14082_v28  ;;  %v14281_v40 = vsub.f32 %v14064_v33, %v14082_v28  ;;  %v14288_v26 = vsub.f32 %v14052_v9, %v14082_v28  ;;  %v14295_v33 = vsub.f32 %v14060_v7, %v14082_v28 }
 0x956   : > { %v4986_v43 = vadd.f32 %v4985_v10, %v4984_v58  ;;  %v4957_v58 = vmul.f32 %v14211_v34, %v14211_v34  ;;  %v5005_v27 = vsel %vm576_vm2, %v4956_v32, 0.0 }
 0x957   : > { %v4968_v9 = vmul.f32 %v14288_v26, %v14288_v26 }
 0x958   : > { %v4988_v48 = vadd.f32 %v4987_v14, %v4986_v43  ;;  %v4958_v43 = vmul.f32 %v14218_v46, %v14218_v46  ;;  %v5007_v11 = vsel %vm576_vm2, %v4957_v58, 0.0 }
 0x959   : > { %v5029_v7 = vsel %vm576_vm2, %v4968_v9, 0.0 }
 0x95a   : > { %v4990_v8 = vadd.f32 %v4989_v54, %v4988_v48  ;;  %v4959_v48 = vmul.f32 %v14225_v57, %v14225_v57  ;;  %v5009_v53 = vsel %vm576_vm2, %v4958_v43, 0.0 }
 0x95c   : > { %v4992_v1 = vadd.f32 %v4991_v50, %v4990_v8  ;;  %v4960_v8 = vmul.f32 %v14232_v24, %v14232_v24  ;;  %v5011_v22 = vsel %vm576_vm2, %v4959_v48, 0.0 }
 0x95e   : > { %v4994_v51 = vadd.f32 %v4993_v6, %v4992_v1  ;;  %v4961_v1 = vmul.f32 %v14239_v31, %v14239_v31  ;;  %v5013_v0 = vsel %vm576_vm2, %v4960_v8, 0.0 }
 0x960   : > { %v4996_v56 = vadd.f32 %v4995_v45, %v4994_v51  ;;  %v4962_v51 = vmul.f32 %v14246_v29, %v14246_v29  ;;  %v5015_v52 = vsel %vm576_vm2, %v4961_v1, 0.0 }
 0x962   : > { %v4998_v25 = vadd.f32 %v4997_v21, %v4996_v56  ;;  %v4963_v56 = vmul.f32 %v14253_v55, %v14253_v55  ;;  %v5017_v38 = vsel %vm576_vm2, %v4962_v51, 0.0 }
 0x964   : > { %v5000_v4 = vadd.f32 %v4999_v5, %v4998_v25  ;;  %v4964_v25 = vmul.f32 %v14260_v44, %v14260_v44  ;;  %v5019_v32 = vsel %vm576_vm2, %v4963_v56, 0.0 }
 0x966   : > { %v5002_v47 = vadd.f32 %v5001_v20, %v5000_v4  ;;  %v4965_v4 = vmul.f32 %v14267_v62, %v14267_v62  ;;  %v5021_v58 = vsel %vm576_vm2, %v4964_v25, 0.0 }
 0x968   : > { %v5004_v10 = vadd.f32 %v5003_v37, %v5002_v47  ;;  %v4966_v47 = vmul.f32 %v14274_v16, %v14274_v16  ;;  %v5023_v43 = vsel %vm576_vm2, %v4965_v4, 0.0  ;;  %v14310_v4 = vld [vmem:[#allocation2 + $0x8] sm:$0xf] }
 0x969   : > { %15963 = vst [vmem:[#allocation28_spill] sm:$0xff] %v14310_v4 }
 0x96a   : > { %v5006_v14 = vadd.f32 %v5005_v27, %v5004_v10  ;;  %v4967_v10 = vmul.f32 %v14281_v40, %v14281_v40 }
 0x96c   : > { %v5008_v54 = vadd.f32 %v5007_v11, %v5006_v14  ;;  %v5025_v14 = vsel %vm576_vm2, %v4966_v47, 0.0  ;;  %v4969_v11 = vmul.f32 %v14295_v33, %v14295_v33  ;;  %v5954_v47 = vrot.slane %v14310_v4, 4 }
 0x96e   : > { %v5010_v50 = vadd.f32 %v5009_v53, %v5008_v54  ;;  %v5027_v54 = vsel %vm576_vm2, %v4967_v10, 0.0  ;;  %v5031_v53 = vsel %vm576_vm2, %v4969_v11, 0.0 }
 0x970   : > { %v5012_v6 = vadd.f32 %v5011_v22, %v5010_v50 }
 0x972   : > { %v5014_v45 = vadd.f32 %v5013_v0, %v5012_v6 }
 0x974   : > { %v5016_v21 = vadd.f32 %v5015_v52, %v5014_v45 }
 0x976   : > { %v5018_v5 = vadd.f32 %v5017_v38, %v5016_v21 }
 0x978   : > { %v5020_v20 = vadd.f32 %v5019_v32, %v5018_v5  ;;  %v14312_v32 = vld [vmem:[#allocation2] sm:$0xf0] }
 0x979   : > { %15964 = vst [vmem:[#allocation55_spill] sm:$0xff] %v14312_v32 }
 0x97a   : > { %v5022_v37 = vadd.f32 %v5021_v58, %v5020_v20  ;;  %v5953_v20 = vrot.slane %v14312_v32, 4 }
 0x97c   : > { %v5024_v27 = vadd.f32 %v5023_v43, %v5022_v37  ;;  %v5955_v58 = vsel %vm1748_vm3, %v5953_v20, %v5954_v47  ;;  %v4671_v43 = vld [vmem:[#allocation9] sm:$0x1] }
 0x97d   : > { %6809 = vrot.lane.b32.xlu1 %v5955_v58, %s11502_s29 }
 0x97e   : > { %v5026_v48 = vadd.f32 %v5025_v14, %v5024_v27 }
 0x980   : > { %v5028_v8 = vadd.f32 %v5027_v54, %v5026_v48 }
 0x982   : > { %v5030_v28 = vadd.f32 %v5029_v7, %v5028_v8 }
 0x984   : > { %v5032_v50 = vadd.f32 %v5031_v53, %v5030_v28 }
 0x986   : > { %v5033_v1 = vrot.slane %v5032_v50, 4 }
 0x988   : > { %v5034_v22 = vadd.f32 %v5033_v1, %v5032_v50 }
 0x98a   : > { %v5035_v6 = vrot.slane %v5034_v22, 2 }
 0x98c   : > { %v5036_v51 = vadd.f32 %v5035_v6, %v5034_v22 }
 0x98e   : > { %v5037_v0 = vrot.slane %v5036_v51, 1 }
 0x990   : > { %v5038_v45 = vadd.f32 %v5037_v0, %v5036_v51  ;;  %v14336_v0 = vld [vmem:[#allocation11] ss:$0 sm:$0xff] }
 0x992   : > { %10452 = vmatmul.mubr.msk.f32.vlgmr.msra.gmra.mrb[44].mxu0 %vm576_vm2, %v5038_v45 }
 0xa65   : > { %v5108_v56 = vpop.f32.mrb[44].mxu0 }
 0xa66   : > { %v5112_v52 = vmul.f32 0.001953125, %v5108_v56  ;;  %v10453_v21 = vpop.f32.mrb[45].mxu0 }
 0xa68   : > { %v5113_v25 = vmax.f32 %v5112_v52, 0.0 }
 0xa6a   : > { %v5114_v38 = vadd.f32 1e-05, %v5113_v25 }
 0xa6c   : > { %10978 = vrsqrt.f32 %v5114_v38 }
 0xa76   : > { %v10979_v5 = vpop.eup %10978 }
 0xa77   : > { %10463 = vmatmul.mubr.msk.f32.vlgmr.msra.gmra.mrb[64].mxu1 %vm727_vm1, %v10979_v5 }
 0xb4a   : > { %v5185_v37 = vpop.f32.mrb[64].mxu1 }
 0xb4b   : > { %v10464_v10 = vpop.f32.mrb[65].mxu1  ;;  %v5189_v27 = vmul.f32 %v5185_v37, %v4671_v43 }
 0xb4d   : > { %v5193_v9 = vrot.slane %v5189_v27, %v15962_v61 }
 0xb4f   : > { %v5194_v48 = vmul.f32 %v5193_v9, %v14086_v12  ;;  %v5195_v7 = vmul.f32 %v5193_v9, %v14090_v19  ;;  %v5196_v28 = vmul.f32 %v5193_v9, %v14094_v30  ;;  %v5197_v53 = vmul.f32 %v5193_v9, %v14098_v60 }
 0xb50   : > { %v5198_v50 = vmul.f32 %v5193_v9, %v14106_v42  ;;  %v5199_v61 = vmul.f32 %v5193_v9, %v14112_v3  ;;  %v5200_v1 = vmul.f32 %v5193_v9, %v14120_v36  ;;  %v5201_v12 = vmul.f32 %v5193_v9, %v14127_v63 }
 0xb51   : > { %v5202_v22 = vmul.f32 %v5193_v9, %v14134_v59  ;;  %v5203_v6 = vmul.f32 %v5193_v9, %v14141_v41  ;;  %v5204_v51 = vmul.f32 %v5193_v9, %v14148_v49  ;;  %v5205_v19 = vmul.f32 %v5193_v9, %v14155_v17 }
 0xb52   : > { %v5206_v30 = vmul.f32 %v5193_v9, %v14162_v39  ;;  %v5207_v60 = vmul.f32 %v5193_v9, %v14169_v18  ;;  %v5208_v42 = vmul.f32 %v5193_v9, %v14176_v15  ;;  %v5209_v3 = vmul.f32 %v5193_v9, %v14183_v13 }
 0xb53   : > { %v5210_v36 = vmul.f32 %v5193_v9, %v14190_v2  ;;  %v5211_v63 = vmul.f32 %v5193_v9, %v14197_v23  ;;  %v5212_v59 = vmul.f32 %v5193_v9, %v14204_v35  ;;  %v5213_v41 = vmul.f32 %v5193_v9, %v14211_v34 }
 0xb54   : > { %v5214_v49 = vmul.f32 %v5193_v9, %v14218_v46  ;;  %v5215_v17 = vmul.f32 %v5193_v9, %v14225_v57  ;;  %v5216_v39 = vmul.f32 %v5193_v9, %v14232_v24  ;;  %v5217_v18 = vmul.f32 %v5193_v9, %v14239_v31 }
 0xb55   : > { %v5218_v15 = vmul.f32 %v5193_v9, %v14246_v29  ;;  %v5219_v13 = vmul.f32 %v5193_v9, %v14253_v55  ;;  %v5220_v2 = vmul.f32 %v5193_v9, %v14260_v44  ;;  %v5221_v23 = vmul.f32 %v5193_v9, %v14267_v62 }
 0xb56   : > { %v14354_v35 = vadd.f32 %v14336_v0, %v5194_v48  ;;  %v5222_v34 = vmul.f32 %v5193_v9, %v14274_v16  ;;  %v5223_v46 = vmul.f32 %v5193_v9, %v14281_v40  ;;  %v5224_v57 = vmul.f32 %v5193_v9, %v14288_v26 }
 0xb57   : > { %v14360_v24 = vadd.f32 %v14336_v0, %v5195_v7  ;;  %v5225_v31 = vmul.f32 %v5193_v9, %v14295_v33  ;;  %v14364_v29 = vadd.f32 %v14336_v0, %v5196_v28  ;;  %v14367_v55 = vadd.f32 %v14336_v0, %v5197_v53 }
 0xb58   : > { %v14370_v44 = vadd.f32 %v14336_v0, %v5198_v50  ;;  %v14373_v62 = vadd.f32 %v14336_v0, %v5199_v61  ;;  %v14376_v16 = vadd.f32 %v14336_v0, %v5200_v1  ;;  %v14379_v40 = vadd.f32 %v14336_v0, %v5201_v12 }
 0xb59   : > { %v14382_v26 = vadd.f32 %v14336_v0, %v5202_v22  ;;  %v14385_v33 = vadd.f32 %v14336_v0, %v5203_v6  ;;  %v14388_v45 = vadd.f32 %v14336_v0, %v5204_v51  ;;  %v14391_v56 = vadd.f32 %v14336_v0, %v5205_v19 }
 0xb5a   : > { %v5264_v52 = vmul.f32 0.5, %v14354_v35  ;;  %v14395_v21 = vadd.f32 %v14336_v0, %v5206_v30  ;;  %v14398_v25 = vadd.f32 %v14336_v0, %v5207_v60  ;;  %v14401_v38 = vadd.f32 %v14336_v0, %v5208_v42 }
 0xb5b   : > { %v5265_v5 = vmul.f32 0.5, %v14360_v24  ;;  %v14405_v20 = vadd.f32 %v14336_v0, %v5209_v3  ;;  %v14408_v47 = vadd.f32 %v14336_v0, %v5210_v36  ;;  %v14411_v58 = vadd.f32 %v14336_v0, %v5211_v63 }
 0xb5c   : > { %v5266_v37 = vmul.f32 0.5, %v14364_v29  ;;  %v14415_v10 = vadd.f32 %v14336_v0, %v5212_v59  ;;  %v14418_v43 = vadd.f32 %v14336_v0, %v5213_v41  ;;  %v14421_v27 = vadd.f32 %v14336_v0, %v5214_v49 }
 0xb5d   : > { %v5267_v9 = vmul.f32 0.5, %v14367_v55  ;;  %v14425_v48 = vadd.f32 %v14336_v0, %v5215_v17  ;;  %v14428_v7 = vadd.f32 %v14336_v0, %v5216_v39  ;;  %v5268_v28 = vmul.f32 0.5, %v14370_v44 }
 0xb5e   : > { %10980 = vtanh.f32 %v5264_v52  ;;  %v14432_v53 = vadd.f32 %v14336_v0, %v5217_v18  ;;  %v14435_v50 = vadd.f32 %v14336_v0, %v5218_v15  ;;  %v5269_v61 = vmul.f32 0.5, %v14373_v62 }
 0xb5f   : > { %10982 = vtanh.f32 %v5265_v5  ;;  %v14439_v1 = vadd.f32 %v14336_v0, %v5219_v13  ;;  %v14442_v12 = vadd.f32 %v14336_v0, %v5220_v2  ;;  %v5270_v22 = vmul.f32 0.5, %v14376_v16 }
 0xb60   : > { %10984 = vtanh.f32 %v5266_v37  ;;  %v14446_v6 = vadd.f32 %v14336_v0, %v5221_v23  ;;  %v14449_v51 = vadd.f32 %v14336_v0, %v5222_v34  ;;  %v5271_v19 = vmul.f32 0.5, %v14379_v40 }
 0xb61   : > { %10986 = vtanh.f32 %v5267_v9  ;;  %v14453_v30 = vadd.f32 %v14336_v0, %v5223_v46  ;;  %v14456_v60 = vadd.f32 %v14336_v0, %v5224_v57  ;;  %v5272_v42 = vmul.f32 0.5, %v14382_v26 }
 0xb62   : > { %15965 = vst [vmem:[#allocation29_spill] sm:$0xff] %v14449_v51  ;;  %10988 = vtanh.f32 %v5268_v28  ;;  %v14460_v3 = vadd.f32 %v14336_v0, %v5225_v31  ;;  %v5273_v36 = vmul.f32 0.5, %v14385_v33  ;;  %v5274_v63 = vmul.f32 0.5, %v14388_v45 }
 0xb63   : > { %15966 = vst [vmem:[#allocation30_spill] sm:$0xff] %v14453_v30  ;;  %15967 = vst [vmem:[#allocation31_spill] sm:$0xff] %v14456_v60  ;;  %10990 = vtanh.f32 %v5269_v61  ;;  %v5275_v59 = vmul.f32 0.5, %v14391_v56  ;;  %v5276_v41 = vmul.f32 0.5, %v14395_v21  ;;  %v5277_v49 = vmul.f32 0.5, %v14398_v25 }
 0xb64   : > { %15968 = vst [vmem:[#allocation65_spill] sm:$0xff] %v14460_v3  ;;  %10992 = vtanh.f32 %v5270_v22  ;;  %v5278_v17 = vmul.f32 0.5, %v14401_v38  ;;  %v5279_v39 = vmul.f32 0.5, %v14405_v20  ;;  %v5280_v18 = vmul.f32 0.5, %v14408_v47 }
 0xb65   : > { %10994 = vtanh.f32 %v5271_v19  ;;  %v5281_v0 = vmul.f32 0.5, %v14411_v58  ;;  %v5282_v15 = vmul.f32 0.5, %v14415_v10  ;;  %v5283_v13 = vmul.f32 0.5, %v14418_v43 }
 0xb66   : > { %10996 = vtanh.f32 %v5272_v42  ;;  %v14474_v2 = vmul.f32 0.5, %v14421_v27  ;;  %v14477_v23 = vmul.f32 0.5, %v14425_v48  ;;  %v14480_v34 = vmul.f32 0.5, %v14428_v7 }
 0xb67   : > { %10998 = vtanh.f32 %v5273_v36  ;;  %v14483_v57 = vmul.f32 0.5, %v14432_v53  ;;  %v14486_v31 = vmul.f32 0.5, %v14435_v50  ;;  %v14489_v52 = vmul.f32 0.5, %v14439_v1 }
 0xb68   : > { %v10981_v46 = vpop.eup %10980  ;;  %11000 = vtanh.f32 %v5274_v63  ;;  %v14492_v37 = vmul.f32 0.5, %v14442_v12  ;;  %v14495_v9 = vmul.f32 0.5, %v14446_v6  ;;  %v14498_v22 = vmul.f32 0.5, %v14449_v51 }
 0xb69   : > { %v10983_v5 = vpop.eup %10982  ;;  %v5328_v28 = vmul.f32 0.5, %v10981_v46  ;;  %11002 = vtanh.f32 %v5275_v59  ;;  %v14501_v19 = vmul.f32 0.5, %v14453_v30  ;;  %v14504_v63 = vmul.f32 0.5, %v14456_v60  ;;  %v10838_v59 = vld [vmem:[%s15733_s13] sm:$0xff]  }
 0xb6a   : > { %v10985_v61 = vpop.eup %10984  ;;  %v5329_v42 = vmul.f32 0.5, %v10983_v5  ;;  %11004 = vtanh.f32 %v5276_v41  ;;  %v10839_v46 = vld [vmem:[%s15731_s11 + $0x40] sm:$0xff]   ;;  %v14513_v14 = vmul.f32 0.5, %v14460_v3  ;;  %10465 = vmatprep.subr.bf16.mxu1 %v10838_v59 }
 0xb6b   : > { %v10987_v36 = vpop.eup %10986  ;;  %v5360_v8 = vadd.f32 0.5, %v5328_v28  ;;  %11006 = vtanh.f32 %v5277_v49  ;;  %v5330_v54 = vmul.f32 0.5, %v10985_v61  ;;  %10041 = vmatprep.subr.bf16.mxu0 %v10839_v46  ;;  %10466 = vmatpush3.bf16.msra.mxu1 %v10838_v59 }
 0xb6c   : > { %v10989_v11 = vpop.eup %10988  ;;  %v5361_v41 = vadd.f32 0.5, %v5329_v42  ;;  %11008 = vtanh.f32 %v5278_v17  ;;  %v5331_v5 = vmul.f32 0.5, %v10987_v36 }
 0xb6d   : > { %v10991_v32 = vpop.eup %10990  ;;  %v5392_v28 = vmul.f32 %v5360_v8, %v14354_v35  ;;  %11010 = vtanh.f32 %v5279_v39  ;;  %v5332_v49 = vmul.f32 0.5, %v10989_v11  ;;  %v5362_v61 = vadd.f32 0.5, %v5330_v54  ;;  %v10840_v11 = vld [vmem:[%s15733_s13 + $0x8] sm:$0xff]   ;;  %v10841_v54 = vld [vmem:[%s15731_s11] sm:$0xff]  }
 0xb6e   : > { %v10993_v4 = vpop.eup %10992  ;;  %v5393_v60 = vmul.f32 %v5361_v41, %v14360_v24  ;;  %11012 = vtanh.f32 %v5280_v18  ;;  %v5333_v30 = vmul.f32 0.5, %v10991_v32  ;;  %v5363_v51 = vadd.f32 0.5, %v5331_v5  ;;  %v10842_v32 = vld [vmem:[%s15731_s11 + $0x48] sm:$0xff]   ;;  %10467 = vmatprep.subr.bf16.mxu1 %v10840_v11  ;;  %10042 = vmatpush3.bf16.msra.mxu0 %v10841_v54 }
 0xb6f   : > { %v10995_v3 = vpop.eup %10994  ;;  %11014 = vtanh.f32 %v5281_v0  ;;  %v5334_v42 = vmul.f32 0.5, %v10993_v4  ;;  %v5394_v17 = vmul.f32 %v5362_v61, %v14364_v29  ;;  %v5364_v36 = vadd.f32 0.5, %v5332_v49  ;;  %10468 = vmatpush3.bf16.msra.mxu1 %v10840_v11  ;;  %10043 = vmatprep.subr.bf16.mxu0 %v10842_v32 }
 0xb70   : > { %v10997_v8 = vpop.eup %10996  ;;  %v5424_v35 = vpack.c.bf16 %v5393_v60, %v5392_v28  ;;  %11016 = vtanh.f32 %v5282_v15  ;;  %v5335_v24 = vmul.f32 0.5, %v10995_v3  ;;  %v5395_v4 = vmul.f32 %v5363_v51, %v14367_v55  ;;  %v10844_v15 = vld [vmem:[%s15731_s11 + $0x50] sm:$0xff]  }
 0xb71   : > { %v10999_v29 = vpop.eup %10998  ;;  %11018 = vtanh.f32 %v5283_v13  ;;  %v5336_v39 = vmul.f32 0.5, %v10997_v8  ;;  %v5365_v18 = vadd.f32 0.5, %v5333_v30  ;;  %v5366_v0 = vadd.f32 0.5, %v5334_v42  ;;  %v10843_v30 = vld [vmem:[%s15731_s11 + $0x8] sm:$0xff]  }
 0xb72   : > { %v11001_v59 = vpop.eup %11000  ;;  %v5456_v46 = vrot.slane %v5424_v35, 4  ;;  %11020 = vtanh.f32 %v14474_v2  ;;  %v5337_v41 = vmul.f32 0.5, %v10999_v29  ;;  %v5425_v5 = vpack.c.bf16 %v5395_v4, %v5394_v17  ;;  %10044 = vmatpush3.bf16.msra.mxu0 %v10843_v30  ;;  %v10846_v35 = vld [vmem:[%s15731_s11 + $0x58] sm:$0xff]  }
 0xb73   : > { %v11003_v60 = vpop.eup %11002  ;;  %11022 = vtanh.f32 %v14477_v23  ;;  %v5338_v3 = vmul.f32 0.5, %v11001_v59  ;;  %v5367_v55 = vadd.f32 0.5, %v5335_v24  ;;  %v5368_v51 = vadd.f32 0.5, %v5336_v39  ;;  %10045 = vmatprep.subr.bf16.mxu0 %v10844_v15 }
 0xb74   : > { %v11005_v13 = vpop.eup %11004  ;;  %5489 = vst.msk [vmem:[#allocation2 + $0x10] sm:$0xf0] %vm5488_vm14, %v5456_v46  ;;  %11024 = vtanh.f32 %v14480_v34  ;;  %v5339_v2 = vmul.f32 0.5, %v11003_v60  ;;  %v5457_v23 = vrot.slane %v5425_v5, 4  ;;  %v5369_v28 = vadd.f32 0.5, %v5337_v41 }
 0xb75   : > { %5491 = vst.msk [vmem:[#allocation2 + $0x18] sm:$0xf] %vm5490_vm15, %v5456_v46  ;;  %v11007_v49 = vpop.eup %11006  ;;  %11026 = vtanh.f32 %v14483_v57  ;;  %v5340_v61 = vmul.f32 0.5, %v11005_v13  ;;  %v5370_v42 = vadd.f32 0.5, %v5338_v3  ;;  %v14541_v17 = vmul.f32 %v5364_v36, %v14370_v44 }
 0xb76   : > { %v11009_v11 = vpop.eup %11008  ;;  %11028 = vtanh.f32 %v14486_v31  ;;  %v5341_v54 = vmul.f32 0.5, %v11007_v49  ;;  %5492 = vst.msk [vmem:[#allocation2 + $0x20] sm:$0xf0] %vm5488_vm14, %v5457_v23  ;;  %v5371_v34 = vadd.f32 0.5, %v5339_v2  ;;  %v14547_v32 = vmul.f32 %v5365_v18, %v14373_v62  ;;  %v10845_v31 = vld [vmem:[%s15731_s11 + $0x10] sm:$0xff]  }
 0xb77   : > { %5493 = vst.msk [vmem:[#allocation2 + $0x28] sm:$0xf] %vm5490_vm15, %v5457_v23  ;;  %v11011_v57 = vpop.eup %11010  ;;  %11030 = vtanh.f32 %v14489_v52  ;;  %v5342_v8 = vmul.f32 0.5, %v11009_v11  ;;  %v5372_v44 = vadd.f32 0.5, %v5340_v61  ;;  %v14551_v36 = vmul.f32 %v5366_v0, %v14376_v16  ;;  %10046 = vmatpush3.bf16.msra.mxu0 %v10845_v31 }
 0xb78   : > { %v11013_v24 = vpop.eup %11012  ;;  %11032 = vtanh.f32 %v14492_v37  ;;  %v5343_v62 = vmul.f32 0.5, %v11011_v57  ;;  %v14560_v4 = vadd.f32 0.5, %v5341_v54  ;;  %v14563_v52 = vmul.f32 %v5367_v55, %v14379_v40  ;;  %10047 = vmatprep.subr.bf16.mxu0 %v10846_v35 }
 0xb79   : > { %v11015_v29 = vpop.eup %11014  ;;  %11034 = vtanh.f32 %v14495_v9  ;;  %v5344_v16 = vmul.f32 0.5, %v11013_v24  ;;  %v14566_v39 = vadd.f32 0.5, %v5342_v8  ;;  %v14569_v18 = vmul.f32 %v5368_v51, %v14382_v26 }
 0xb7a   : > { %v11017_v0 = vpop.eup %11016  ;;  %11036 = vtanh.f32 %v14498_v22  ;;  %v5345_v37 = vmul.f32 0.5, %v11015_v29  ;;  %v14572_v59 = vadd.f32 0.5, %v5343_v62  ;;  %v14575_v46 = vmul.f32 %v5369_v28, %v14385_v33 }
 0xb7b   : > { %v11019_v40 = vpop.eup %11018  ;;  %v5930_v9 = vld [vmem:[#allocation2 + $0x10] sm:$0xf0]  ;;  %11038 = vtanh.f32 %v14501_v19  ;;  %v14579_v26 = vmul.f32 %v5370_v42, %v14388_v45  ;;  %v14582_v60 = vmul.f32 %v5371_v34, %v14391_v56  ;;  %v14585_v22 = vmul.f32 %v5372_v44, %v14395_v21  ;;  %v10847_v19 = vld [vmem:[%s15731_s11 + $0x18] sm:$0xff]   ;;  %v10848_v21 = vld [vmem:[%s15731_s11 + $0x60] sm:$0xff]  }
 0xb7c   : > { %v5780_v41 = vld [vmem:[#allocation2 + $0x18] sm:$0xf]  ;;  %v6121_v5 = vld [vmem:[#allocation2 + $0x10] sm:$0xf8]  ;;  %v11021_v3 = vpop.eup %11020  ;;  %v5956_v55 = vrot.slane %v5930_v9, 4  ;;  %11040 = vtanh.f32 %v14504_v63  ;;  %v5346_v49 = vmul.f32 0.5, %v11017_v0  ;;  %10048 = vmatpush3.bf16.msra.mxu0 %v10847_v19 }
 0xb7d   : > { %v5957_v33 = vrot.slane %v5780_v41, 4  ;;  %v6122_v51 = vld [vmem:[#allocation2 + $0x18] sm:$0xf]  ;;  %v6138_v30 = vshrl.u32 %v6121_v5, 16  ;;  %v11023_v15 = vpop.eup %11022  ;;  %11042 = vtanh.f32 %v14513_v14  ;;  %v6141_v45 = vshll.u32 %v6121_v5, 16  ;;  %10049 = vmatprep.subr.bf16.mxu0 %v10848_v21 }
 0xb7e   : > { %v6146_v56 = vshrl.u32 %v6122_v51, 16  ;;  %v6149_v13 = vshll.u32 %v6122_v51, 16  ;;  %v5782_v2 = vld [vmem:[#allocation2 + $0x28] sm:$0xf]  ;;  %v11025_v23 = vpop.eup %11024  ;;  %v5347_v61 = vmul.f32 0.5, %v11019_v40  ;;  %v5348_v57 = vmul.f32 0.5, %v11021_v3 }
 0xb7f   : > { %v5958_v63 = vsel %vm1748_vm3, %v5956_v55, %v5957_v33  ;;  %v6140_v28 = vrot.slane %v6138_v30, 3  ;;  %v5931_v42 = vld [vmem:[#allocation2 + $0x20] sm:$0xf0]  ;;  %v11027_v11 = vpop.eup %11026  ;;  %v6143_v14 = vrot.slane %v6141_v45, 4  ;;  %v5349_v44 = vmul.f32 0.5, %v11023_v15 }
 0xb80   : > { %6811 = vrot.lane.b32.xlu1 %v5958_v63, %s11502_s29  ;;  %v6148_v54 = vrot.slane %v6146_v56, 3  ;;  %v6151_v34 = vrot.slane %v6149_v13, 4  ;;  %v11029_v8 = vpop.eup %11028  ;;  %v5350_v31 = vmul.f32 0.5, %v11025_v23  ;;  %v5351_v35 = vmul.f32 0.5, %v11027_v11  ;;  %v6123_v56 = vld [vmem:[#allocation2 + $0x20] sm:$0xf8] }
 0xb81   : > { %v5959_v24 = vrot.slane %v5931_v42, 4  ;;  %v11031_v62 = vpop.eup %11030  ;;  %v6144_v29 = vor.u32 %v6143_v14, %v6140_v28  ;;  %v5352_v0 = vmul.f32 0.5, %v11029_v8  ;;  %v5960_v40 = vrot.slane %v5782_v2, 4  ;;  %v10850_v14 = vld [vmem:[%s15731_s11 + $0x68] sm:$0xff]  }
 0xb82   : > { %v6152_v41 = vor.u32 %v6151_v34, %v6148_v54  ;;  %v11033_v9 = vpop.eup %11032  ;;  %v5353_v5 = vmul.f32 0.5, %v11031_v62  ;;  %v5376_v55 = vadd.f32 0.5, %v5344_v16  ;;  %v5377_v33 = vadd.f32 0.5, %v5345_v37  ;;  %v6124_v16 = vld [vmem:[#allocation2 + $0x28] sm:$0xf] }
 0xb83   : > { %v5378_v51 = vadd.f32 0.5, %v5346_v49  ;;  %v11035_v30 = vpop.eup %11034  ;;  %v5354_v3 = vmul.f32 0.5, %v11033_v9  ;;  %v5961_v45 = vsel %vm1748_vm3, %v5959_v24, %v5960_v40  ;;  %v5379_v15 = vadd.f32 0.5, %v5347_v61  ;;  %v10849_v61 = vld [vmem:[%s15731_s11 + $0x20] sm:$0xff]  }
 0xb84   : > { %v6153_v19 = vsel %vm635_vm6, %v6144_v29, %v6152_v41  ;;  %v11037_v13 = vpop.eup %11036  ;;  %v5355_v21 = vmul.f32 0.5, %v11035_v30  ;;  %6813 = vrot.lane.b32.xlu1 %v5961_v45, %s11502_s29  ;;  %v5380_v2 = vadd.f32 0.5, %v5348_v57  ;;  %v5381_v23 = vadd.f32 0.5, %v5349_v44  ;;  %10050 = vmatpush3.bf16.msra.mxu0 %v10849_v61  ;;  %v10851_v41 = vld [vmem:[%s15731_s11 + $0x28] sm:$0xff]   ;;  %v10852_v30 = vld [vmem:[%s15731_s11 + $0x70] sm:$0xff]  }
 0xb85   : > { %6825 = vrot.lane.b32.xlu0 %v6153_v19, %s11502_s29  ;;  %v5382_v63 = vadd.f32 0.5, %v5350_v31  ;;  %v11039_v37 = vpop.eup %11038  ;;  %v5356_v28 = vmul.f32 0.5, %v11037_v13  ;;  %v5383_v49 = vadd.f32 0.5, %v5351_v35  ;;  %v5384_v42 = vadd.f32 0.5, %v5352_v0  ;;  %10051 = vmatprep.subr.bf16.mxu0 %v10850_v14 }
 0xb86   : > { %v5385_v11 = vadd.f32 0.5, %v5353_v5  ;;  %v11041_v54 = vpop.eup %11040  ;;  %v5357_v34 = vmul.f32 0.5, %v11039_v37  ;;  %v5386_v8 = vadd.f32 0.5, %v5354_v3  ;;  %v5387_v57 = vadd.f32 0.5, %v5355_v21 }
 0xb87   : > { %v6155_v44 = vshrl.u32 %v6123_v56, 16  ;;  %v11043_v31 = vpop.eup %11042  ;;  %v5358_v24 = vmul.f32 0.5, %v11041_v54  ;;  %v5388_v62 = vadd.f32 0.5, %v5356_v28  ;;  %v6158_v29 = vshll.u32 %v6123_v56, 16 }
 0xb88   : > { %v6163_v35 = vshrl.u32 %v6124_v16, 16  ;;  %v5359_v0 = vmul.f32 0.5, %v11043_v31  ;;  %v5389_v40 = vadd.f32 0.5, %v5357_v34  ;;  %v6166_v5 = vshll.u32 %v6124_v16, 16  ;;  %10052 = vmatpush3.bf16.msra.mxu0 %v10851_v41 }
 0xb89   : > { %v6157_v9 = vrot.slane %v6155_v44, 3  ;;  %v5390_v19 = vadd.f32 0.5, %v5358_v24  ;;  %v6160_v3 = vrot.slane %v6158_v29, 4  ;;  %v5405_v56 = vmul.f32 %v14560_v4, %v14398_v25  ;;  %10053 = vmatprep.subr.bf16.mxu0 %v10852_v30  ;;  %v14662_v24 = vld [vmem:[#allocation2 + $0x28] sm:$0xf] }
 0xb8a   : > { %v6165_v45 = vrot.slane %v6163_v35, 3  ;;  %v5391_v13 = vadd.f32 0.5, %v5359_v0  ;;  %v6168_v21 = vrot.slane %v6166_v5, 4  ;;  %v5406_v37 = vmul.f32 %v14566_v39, %v14401_v38  ;;  %v10853_v38 = vld [vmem:[%s15731_s11 + $0x30] sm:$0xff]  }
 0xb8b   : > { %v5407_v28 = vmul.f32 %v14572_v59, %v14405_v20  ;;  %v6161_v16 = vor.u32 %v6160_v3, %v6157_v9  ;;  %v5408_v61 = vmul.f32 %v5376_v55, %v14408_v47  ;;  %v5409_v14 = vmul.f32 %v5377_v33, %v14411_v58  ;;  %v15969_v59 = vld [vmem:[#allocation29_spill] sm:$0xff]  ;;  %v15971_v33 = vld [vmem:[#allocation31_spill] sm:$0xff] }
 0xb8c   : > { %v5410_v54 = vmul.f32 %v5378_v51, %v14415_v10  ;;  %v6169_v34 = vor.u32 %v6168_v21, %v6165_v45  ;;  %v5411_v44 = vmul.f32 %v5379_v15, %v14418_v43  ;;  %v5412_v25 = vmul.f32 %v5380_v2, %v14421_v27  ;;  %v10854_v43 = vld [vmem:[%s15731_s11 + $0x78] sm:$0xff]   ;;  %v15972_v51 = vld [vmem:[#allocation65_spill] sm:$0xff]  ;;  %10054 = vmatpush3.bf16.msra.mxu0 %v10853_v38  ;;  %v14671_v3 = vld [vmem:[#allocation2 + $0x20] sm:$0xf0] }
 0xb8d   : > { %v5413_v4 = vmul.f32 %v5381_v23, %v14425_v48  ;;  %v5414_v20 = vmul.f32 %v5382_v63, %v14428_v7  ;;  %v5415_v47 = vmul.f32 %v5383_v49, %v14432_v53  ;;  %v5416_v58 = vmul.f32 %v5384_v42, %v14435_v50  ;;  %v15970_v7 = vld [vmem:[#allocation30_spill] sm:$0xff]  ;;  %10055 = vmatprep.subr.bf16.mxu0 %v10854_v43 }
 0xb8e   : > { %v5417_v10 = vmul.f32 %v5385_v11, %v14439_v1  ;;  %v6170_v27 = vsel %vm635_vm6, %v6161_v16, %v6169_v34  ;;  %v5418_v48 = vmul.f32 %v5386_v8, %v14442_v12  ;;  %v5419_v39 = vmul.f32 %v5387_v57, %v14446_v6  ;;  %v10855_v63 = vld [vmem:[%s15731_s11 + $0x38] sm:$0xff]  }
 0xb8f   : > { %v5420_v55 = vmul.f32 %v5388_v62, %v15969_v59  ;;  %6827 = vrot.lane.b32.xlu0 %v6170_v27, %s11502_s29  ;;  %v5421_v53 = vmul.f32 %v5389_v40, %v15970_v7  ;;  %v5422_v50 = vmul.f32 %v5390_v19, %v15971_v33  ;;  %v5423_v1 = vmul.f32 %v5391_v13, %v15972_v51  ;;  %v10858_v62 = vld [vmem:[%s15731_s11 + $0xc0] sm:$0xff]   ;;  %v11117_v59 = vld [vmem:[%s11818_s18 + $0x8] sm:$0xff]  ;;  %v11118_v7 = vld [vmem:[%s11818_s18 + $0x10] sm:$0xff] }
 0xb90   : > { %v5426_v15 = vpack.c.bf16 %v14547_v32, %v14541_v17  ;;  %v5427_v2 = vpack.c.bf16 %v14563_v52, %v14551_v36  ;;  %v5428_v12 = vpack.c.bf16 %v14575_v46, %v14569_v18  ;;  %v5429_v6 = vpack.c.bf16 %v14582_v60, %v14579_v26  ;;  %v10856_v32 = vld [vmem:[%s15731_s11 + $0x40] sm:$0xff]   ;;  %v6273_v26 = vld [vmem:[#allocation2 + $0x10] sm:$0xf0]  ;;  %v14658_v60 = vld [vmem:[#allocation2 + $0x18] sm:$0x1f]  ;;  %10056 = vmatpush3.bf16.msra.mxu0 %v10855_v63 }
 0xb91   : > { %v5430_v23 = vpack.c.bf16 %v5405_v56, %v14585_v22  ;;  %v5431_v42 = vpack.c.bf16 %v5407_v28, %v5406_v37  ;;  %v5432_v11 = vpack.c.bf16 %v5409_v14, %v5408_v61  ;;  %v5433_v17 = vpack.c.bf16 %v5411_v44, %v5410_v54  ;;  %v6617_v40 = vld [vmem:[#allocation2 + $0x20] sm:$0xf0]  ;;  %10181 = vmatprep.subr.bf16.mxu0 %v10856_v32  ;;  %v14681_v37 = vld [vmem:[#allocation2 + $0x28] sm:$0x1f] }
 0xb92   : > { %v5458_v49 = vrot.slane %v5426_v15, 4  ;;  %v5434_v36 = vpack.c.bf16 %v5413_v4, %v5412_v25  ;;  %v5435_v52 = vpack.c.bf16 %v5415_v47, %v5414_v20  ;;  %v5436_v18 = vpack.c.bf16 %v5417_v10, %v5416_v58  ;;  %10105 = vmatprep.subr.bf16.mxu1 %v10858_v62  ;;  %v10859_v58 = vld [vmem:[%s15731_s11 + $0x80] sm:$0xff]   ;;  %v11121_v51 = vld [vmem:[%s11818_s18 + $0x28] sm:$0xff] }
 0xb93   : > { %v5437_v46 = vpack.c.bf16 %v5419_v39, %v5418_v48  ;;  %v5438_v22 = vpack.c.bf16 %v5421_v53, %v5420_v55  ;;  %v5439_v8 = vpack.c.bf16 %v5423_v1, %v5422_v50  ;;  %v5459_v57 = vrot.slane %v5427_v2, 4  ;;  %v11116_v39 = vld [vmem:[%s11818_s18] sm:$0xff]  ;;  %v11119_v53 = vld [vmem:[%s11818_s18 + $0x18] sm:$0xff]  ;;  %v10861_v15 = vld [vmem:[%s15731_s11 + $0xc8] sm:$0xff]  }
 0xb94   : > { %5494 = vst.msk [vmem:[#allocation2 + $0x30] sm:$0xf0] %vm5488_vm14, %v5458_v49  ;;  %v5460_v31 = vrot.slane %v5428_v12, 4  ;;  %v5461_v29 = vrot.slane %v5429_v6, 4  ;;  %v5462_v35 = vrot.slane %v5430_v23, 4  ;;  %v5463_v41 = vrot.slane %v5431_v42, 4 }
 0xb95   : > { %5495 = vst.msk [vmem:[#allocation2 + $0x38] sm:$0xf] %vm5490_vm15, %v5458_v49  ;;  %v5464_v0 = vrot.slane %v5432_v11, 4  ;;  %v5465_v9 = vrot.slane %v5433_v17, 4  ;;  %v5466_v5 = vrot.slane %v5434_v36, 4  ;;  %v5467_v30 = vrot.slane %v5435_v52, 4 }
 0xb96   : > { %v5468_v19 = vrot.slane %v5436_v18, 4  ;;  %5496 = vst.msk [vmem:[#allocation2 + $0x40] sm:$0xf0] %vm5488_vm14, %v5459_v57  ;;  %5498 = vst.msk [vmem:[#allocation2 + $0x50] sm:$0xf0] %vm5488_vm14, %v5460_v31  ;;  %v5469_v45 = vrot.slane %v5437_v46, 4  ;;  %v5522_v55 = vpack.c.bf16 %v11117_v59, %v11116_v39  ;;  %v5523_v33 = vpack.c.bf16 %v11119_v53, %v11118_v7 }
 0xb97   : > { %5497 = vst.msk [vmem:[#allocation2 + $0x48] sm:$0xf] %vm5490_vm15, %v5459_v57  ;;  %5499 = vst.msk [vmem:[#allocation2 + $0x58] sm:$0xf] %vm5490_vm15, %v5460_v31  ;;  %v5470_v56 = vrot.slane %v5438_v22, 4  ;;  %v5471_v13 = vrot.slane %v5439_v8, 4 }
 0xb98   : > { %5500 = vst.msk [vmem:[#allocation2 + $0x60] sm:$0xf0] %vm5488_vm14, %v5461_v29  ;;  %5502 = vst.msk [vmem:[#allocation2 + $0x70] sm:$0xf0] %vm5488_vm14, %v5462_v35  ;;  %v6330_v21 = vshrl.u32 %v6273_v26, 16  ;;  %v6333_v28 = vshll.u32 %v6273_v26, 16  ;;  %10469 = vmatprep.mubr.msk.bf16.mxu1 %vm727_vm1, %v5522_v55 }
 0xb99   : > { %5501 = vst.msk [vmem:[#allocation2 + $0x68] sm:$0xf] %vm5490_vm15, %v5461_v29  ;;  %5503 = vst.msk [vmem:[#allocation2 + $0x78] sm:$0xf] %vm5490_vm15, %v5462_v35  ;;  %v6338_v16 = vshrl.u32 %v14658_v60, 16  ;;  %v6341_v61 = vshll.u32 %v14658_v60, 16  ;;  %10470 = vmatmul.mubr.msk.bf16.vlgmr.msra.gmra.mrb[68].mxu1 %vm727_vm1, %v5523_v33 }
 0xb9a   : > { %5504 = vst.msk [vmem:[#allocation2 + $0x80] sm:$0xf0] %vm5488_vm14, %v5463_v41  ;;  %5506 = vst.msk [vmem:[#allocation2 + $0x90] sm:$0xf0] %vm5488_vm14, %v5464_v0  ;;  %v6641_v14 = vrot.slane %v6617_v40, 4  ;;  %v14699_v54 = vrot.slane %v6330_v21, 4  ;;  %10106 = vmatpush3.bf16.msra.mxu1 %v10859_v58 }
 0xb9b   : > { %5505 = vst.msk [vmem:[#allocation2 + $0x88] sm:$0xf] %vm5490_vm15, %v5463_v41  ;;  %5507 = vst.msk [vmem:[#allocation2 + $0x98] sm:$0xf] %vm5490_vm15, %v5464_v0  ;;  %v6642_v34 = vrot.slane %v14662_v24, 4  ;;  %v6347_v44 = vshrl.u32 %v14671_v3, 16  ;;  %10107 = vmatprep.subr.bf16.mxu1 %v10861_v15 }
 0xb9c   : > { %5508 = vst.msk [vmem:[#allocation2 + $0xa0] sm:$0xf0] %vm5488_vm14, %v5465_v9  ;;  %5510 = vst.msk [vmem:[#allocation2 + $0xb0] sm:$0xf0] %vm5488_vm14, %v5466_v5  ;;  %v6350_v25 = vshll.u32 %v14671_v3, 16  ;;  %v14704_v4 = vrot.slane %v6333_v28, 5 }
 0xb9d   : > { %5509 = vst.msk [vmem:[#allocation2 + $0xa8] sm:$0xf] %vm5490_vm15, %v5465_v9  ;;  %5511 = vst.msk [vmem:[#allocation2 + $0xb8] sm:$0xf] %vm5490_vm15, %v5466_v5  ;;  %v14706_v38 = vrot.slane %v6338_v16, 4  ;;  %v14708_v20 = vrot.slane %v6341_v61, 5  ;;  %v14715_v48 = vsel %vm1748_vm3, %v6641_v14, %v6642_v34 }
 0xb9e   : > { %5512 = vst.msk [vmem:[#allocation2 + $0xc0] sm:$0xf0] %vm5488_vm14, %v5467_v30  ;;  %5514 = vst.msk [vmem:[#allocation2 + $0xd0] sm:$0xf0] %vm5488_vm14, %v5468_v19  ;;  %v6355_v47 = vshrl.u32 %v14681_v37, 16  ;;  %v11120_v50 = vld [vmem:[%s11818_s18 + $0x20] sm:$0xff]  ;;  %v6336_v32 = vor.u32 %v14704_v4, %v14699_v54 }
 0xb9f   : > { %5513 = vst.msk [vmem:[#allocation2 + $0xc8] sm:$0xf] %vm5490_vm15, %v5467_v30  ;;  %5515 = vst.msk [vmem:[#allocation2 + $0xd8] sm:$0xf] %vm5490_vm15, %v5468_v19  ;;  %v5784_v10 = vld [vmem:[#allocation2 + $0x38] sm:$0xf]  ;;  %v5524_v1 = vpack.c.bf16 %v11121_v51, %v11120_v50  ;;  %v6344_v36 = vor.u32 %v14708_v20, %v14706_v38 }
 0xba0   : > { %5516 = vst.msk [vmem:[#allocation2 + $0xe0] sm:$0xf0] %vm5488_vm14, %v5469_v45  ;;  %5518 = vst.msk [vmem:[#allocation2 + $0xf0] sm:$0xf0] %vm5488_vm14, %v5470_v56  ;;  %v5932_v43 = vld [vmem:[#allocation2 + $0x30] sm:$0xf0] }
 0xba1   : > { %5517 = vst.msk [vmem:[#allocation2 + $0xe8] sm:$0xf] %vm5490_vm15, %v5469_v45  ;;  %5519 = vst.msk [vmem:[#allocation2 + $0xf8] sm:$0xf] %vm5490_vm15, %v5470_v56  ;;  %v6125_v27 = vld [vmem:[#allocation2 + $0x30] sm:$0xf8]  ;;  %10473 = vmatprep.mubr.msk.bf16.mxu1 %vm727_vm1, %v5524_v1 }
 0xba2   : > { %5520 = vst.msk [vmem:[#allocation2 + $0x100] sm:$0xf0] %vm5488_vm14, %v5471_v13  ;;  %v5962_v2 = vrot.slane %v5932_v43, 4  ;;  %v5963_v12 = vrot.slane %v5784_v10, 4  ;;  %v6126_v6 = vld [vmem:[#allocation2 + $0x38] sm:$0xf] }
 0xba3   : > { %5521 = vst.msk [vmem:[#allocation2 + $0x108] sm:$0xf] %vm5490_vm15, %v5471_v13  ;;  %v6172_v23 = vshrl.u32 %v6125_v27, 16  ;;  %v6175_v63 = vshll.u32 %v6125_v27, 16  ;;  %v6180_v49 = vshrl.u32 %v6126_v6, 16  ;;  %v6183_v42 = vshll.u32 %v6126_v6, 16 }
 0xba4   : > { %v5786_v11 = vld [vmem:[#allocation2 + $0x48] sm:$0xf]  ;;  %v5933_v17 = vld [vmem:[#allocation2 + $0x40] sm:$0xf0]  ;;  %v5964_v52 = vsel %vm1748_vm3, %v5962_v2, %v5963_v12  ;;  %v5788_v40 = vld [vmem:[#allocation2 + $0x58] sm:$0xf] }
 0xba5   : > { %v6174_v18 = vrot.slane %v6172_v23, 3  ;;  %v6177_v46 = vrot.slane %v6175_v63, 4  ;;  %v5965_v26 = vrot.slane %v5933_v17, 4  ;;  %v6127_v60 = vld [vmem:[#allocation2 + $0x40] sm:$0xf8]  ;;  %v10863_v22 = vld [vmem:[%s15731_s11 + $0x88] sm:$0xff]   ;;  %6815 = vrot.lane.b32.xlu1 %v5964_v52, %s11502_s29 }
 0xba6   : > { %v6182_v8 = vrot.slane %v6180_v49, 3  ;;  %v6185_v57 = vrot.slane %v6183_v42, 4  ;;  %v5966_v31 = vrot.slane %v5786_v11, 4  ;;  %v6128_v24 = vld [vmem:[#allocation2 + $0x48] sm:$0xf]  ;;  %v6189_v62 = vshrl.u32 %v6127_v60, 16  ;;  %10108 = vmatpush3.bf16.msra.mxu1 %v10863_v22 }
 0xba7   : > { %v6178_v29 = vor.u32 %v6177_v46, %v6174_v18  ;;  %v6192_v35 = vshll.u32 %v6127_v60, 16  ;;  %v6197_v41 = vshrl.u32 %v6128_v24, 16  ;;  %v6200_v0 = vshll.u32 %v6128_v24, 16  ;;  %v10864_v9 = vld [vmem:[%s15731_s11 + $0xd0] sm:$0xff]   ;;  %v6130_v14 = vld [vmem:[#allocation2 + $0x58] sm:$0xf] }
 0xba8   : > { %v6186_v5 = vor.u32 %v6185_v57, %v6182_v8  ;;  %v5967_v30 = vsel %vm1748_vm3, %v5965_v26, %v5966_v31  ;;  %v6191_v19 = vrot.slane %v6189_v62, 3  ;;  %v5934_v45 = vld [vmem:[#allocation2 + $0x50] sm:$0xf0]  ;;  %v5969_v56 = vrot.slane %v5788_v40, 4  ;;  %v5790_v27 = vld [vmem:[#allocation2 + $0x68] sm:$0xf]  ;;  %10109 = vmatprep.subr.bf16.mxu1 %v10864_v9 }
 0xba9   : > { %v6129_v13 = vld [vmem:[#allocation2 + $0x50] sm:$0xf8]  ;;  %v6194_v21 = vrot.slane %v6192_v35, 4  ;;  %v6199_v28 = vrot.slane %v6197_v41, 3  ;;  %v6202_v16 = vrot.slane %v6200_v0, 4  ;;  %v5968_v61 = vrot.slane %v5934_v45, 4  ;;  %6817 = vrot.lane.b32.xlu1 %v5967_v30, %s11502_s29 }
 0xbaa   : > { %v6187_v34 = vsel %vm635_vm6, %v6178_v29, %v6186_v5  ;;  %v6206_v58 = vshrl.u32 %v6129_v13, 16  ;;  %v6209_v10 = vshll.u32 %v6129_v13, 16  ;;  %v6214_v43 = vshrl.u32 %v6130_v14, 16  ;;  %v10865_v39 = vld [vmem:[%s15731_s11 + $0x90] sm:$0xff]   ;;  %v5935_v33 = vld [vmem:[#allocation2 + $0x60] sm:$0xf0] }
 0xbab   : > { %6829 = vrot.lane.b32.xlu0 %v6187_v34, %s11502_s29  ;;  %v6195_v59 = vor.u32 %v6194_v21, %v6191_v19  ;;  %v6203_v55 = vor.u32 %v6202_v16, %v6199_v28  ;;  %v5970_v7 = vsel %vm1748_vm3, %v5968_v61, %v5969_v56  ;;  %v6217_v53 = vshll.u32 %v6130_v14, 16  ;;  %v6131_v50 = vld [vmem:[#allocation2 + $0x60] sm:$0xf8]  ;;  %v10867_v51 = vld [vmem:[%s15731_s11 + $0xd8] sm:$0xff]   ;;  %v6132_v6 = vld [vmem:[#allocation2 + $0x68] sm:$0xf]  ;;  %10110 = vmatpush3.bf16.msra.mxu1 %v10865_v39 }
 0xbac   : > { %v6208_v1 = vrot.slane %v6206_v58, 3  ;;  %v6211_v15 = vrot.slane %v6209_v10, 4  ;;  %v6216_v2 = vrot.slane %v6214_v43, 3  ;;  %v5971_v12 = vrot.slane %v5935_v33, 4  ;;  %v5792_v11 = vld [vmem:[#allocation2 + $0x78] sm:$0xf]  ;;  %10111 = vmatprep.subr.bf16.mxu1 %v10867_v51 }
 0xbad   : > { %v6204_v23 = vsel %vm635_vm6, %v6195_v59, %v6203_v55  ;;  %v6219_v63 = vrot.slane %v6217_v53, 4  ;;  %v5972_v49 = vrot.slane %v5790_v27, 4  ;;  %v6223_v42 = vshrl.u32 %v6131_v50, 16  ;;  %6819 = vrot.lane.b32.xlu1 %v5970_v7, %s11502_s29  ;;  %v5936_v26 = vld [vmem:[#allocation2 + $0x70] sm:$0xf0]  ;;  %v10869_v60 = vld [vmem:[%s15731_s11 + $0x98] sm:$0xff]  }
 0xbae   : > { %v6212_v17 = vor.u32 %v6211_v15, %v6208_v1  ;;  %v6226_v52 = vshll.u32 %v6131_v50, 16  ;;  %v6231_v18 = vshrl.u32 %v6132_v6, 16  ;;  %v6234_v46 = vshll.u32 %v6132_v6, 16  ;;  %v6133_v24 = vld [vmem:[#allocation2 + $0x70] sm:$0xf8]  ;;  %v10870_v56 = vld [vmem:[%s15731_s11 + $0xe0] sm:$0xff]  }
 0xbaf   : > { %6831 = vrot.lane.b32.xlu0 %v6204_v23, %s11502_s29  ;;  %v6220_v22 = vor.u32 %v6219_v63, %v6216_v2  ;;  %v5973_v8 = vsel %vm1748_vm3, %v5971_v12, %v5972_v49  ;;  %v6225_v57 = vrot.slane %v6223_v42, 3  ;;  %v5974_v31 = vrot.slane %v5936_v26, 4  ;;  %v6134_v62 = vld [vmem:[#allocation2 + $0x78] sm:$0xf]  ;;  %v7637_v40 = vld [vmem:[#allocation2 + $0x88] sm:$0xf]  ;;  %10112 = vmatpush3.bf16.msra.mxu1 %v10869_v60 }
 0xbb0   : > { %v6228_v29 = vrot.slane %v6226_v52, 4  ;;  %v6233_v35 = vrot.slane %v6231_v18, 3  ;;  %v6236_v41 = vrot.slane %v6234_v46, 4  ;;  %v5975_v0 = vrot.slane %v5792_v11, 4  ;;  %v7788_v45 = vld [vmem:[#allocation2 + $0x80] sm:$0xf0]  ;;  %10113 = vmatprep.subr.bf16.mxu1 %v10870_v56 }
 0xbb1   : > { %v6221_v9 = vsel %vm635_vm6, %v6212_v17, %v6220_v22  ;;  %v6240_v5 = vshrl.u32 %v6133_v24, 16  ;;  %v6243_v30 = vshll.u32 %v6133_v24, 16  ;;  %v6248_v19 = vshrl.u32 %v6134_v62, 16  ;;  %6821 = vrot.lane.b32.xlu1 %v5973_v8, %s11502_s29  ;;  %v6135_v61 = vld [vmem:[#allocation2 + $0x80] sm:$0xf8]  ;;  %v10873_v2 = vld [vmem:[%s15731_s11 + $0xe8] sm:$0xff]  }
 0xbb2   : > { %v6229_v13 = vor.u32 %v6228_v29, %v6225_v57  ;;  %v6237_v21 = vor.u32 %v6236_v41, %v6233_v35  ;;  %v5976_v28 = vsel %vm1748_vm3, %v5974_v31, %v5975_v0  ;;  %v6251_v16 = vshll.u32 %v6134_v62, 16  ;;  %v6136_v14 = vld [vmem:[#allocation2 + $0x88] sm:$0xf]  ;;  %v10871_v27 = vld [vmem:[%s15731_s11 + $0xa0] sm:$0xff]   ;;  %v7980_v53 = vld [vmem:[#allocation2 + $0x90] sm:$0xf8] }
 0xbb3   : > { %6833 = vrot.lane.b32.xlu0 %v6221_v9, %s11502_s29  ;;  %v6242_v34 = vrot.slane %v6240_v5, 3  ;;  %v6245_v58 = vrot.slane %v6243_v30, 4  ;;  %v6250_v10 = vrot.slane %v6248_v19, 3  ;;  %v7812_v43 = vrot.slane %v7788_v45, 4  ;;  %v7981_v15 = vld [vmem:[#allocation2 + $0x98] sm:$0xf]  ;;  %10114 = vmatpush3.bf16.msra.mxu1 %v10871_v27 }
 0xbb4   : > { %v6238_v39 = vsel %vm635_vm6, %v6229_v13, %v6237_v21  ;;  %v6253_v59 = vrot.slane %v6251_v16, 4  ;;  %v7813_v55 = vrot.slane %v7637_v40, 4  ;;  %v6257_v7 = vshrl.u32 %v6135_v61, 16  ;;  %v7789_v49 = vld [vmem:[#allocation2 + $0x90] sm:$0xf0]  ;;  %10115 = vmatprep.subr.bf16.mxu1 %v10873_v2  ;;  %v10875_v54 = vld [vmem:[%s15731_s11 + $0xa8] sm:$0xff]  }
 0xbb5   : > { %v6246_v33 = vor.u32 %v6245_v58, %v6242_v34  ;;  %v6260_v50 = vshll.u32 %v6135_v61, 16  ;;  %v6265_v51 = vshrl.u32 %v6136_v14, 16  ;;  %v6268_v1 = vshll.u32 %v6136_v14, 16  ;;  %6823 = vrot.lane.b32.xlu1 %v5976_v28, %s11502_s29  ;;  %v7639_v18 = vld [vmem:[#allocation2 + $0x98] sm:$0xf]  ;;  %v10876_v9 = vld [vmem:[%s15731_s11 + $0xf0] sm:$0xff]  }
 0xbb6   : > { %v6254_v12 = vor.u32 %v6253_v59, %v6250_v10  ;;  %v7814_v6 = vsel %vm1748_vm3, %v7812_v43, %v7813_v55  ;;  %v6259_v23 = vrot.slane %v6257_v7, 3  ;;  %v6345_v63 = vsel %vm1781_vm4, %v6336_v32, %v6344_v36  ;;  %v7982_v36 = vld [vmem:[#allocation2 + $0xa0] sm:$0xf8]  ;;  %v7983_v62 = vld [vmem:[#allocation2 + $0xa8] sm:$0xf]  ;;  %v10877_v3 = vld [vmem:[%s15731_s11 + $0xb0] sm:$0xff]  }
 0xbb7   : > { %6835 = vrot.lane.b32.xlu0 %v6238_v39, %s11502_s29  ;;  %v6262_v42 = vrot.slane %v6260_v50, 4  ;;  %v6267_v11 = vrot.slane %v6265_v51, 3  ;;  %v6270_v17 = vrot.slane %v6268_v1, 4  ;;  %v7997_v52 = vshrl.u32 %v7980_v53, 16  ;;  %v7790_v40 = vld [vmem:[#allocation2 + $0xa0] sm:$0xf0]  ;;  %10116 = vmatpush3.bf16.msra.mxu1 %v10875_v54 }
 0xbb8   : > { %v6255_v46 = vsel %vm635_vm6, %v6246_v33, %v6254_v12  ;;  %v8000_v26 = vshll.u32 %v7980_v53, 16  ;;  %v8005_v60 = vshrl.u32 %v7981_v15, 16  ;;  %v8008_v22 = vshll.u32 %v7981_v15, 16  ;;  %v7641_v56 = vld [vmem:[#allocation2 + $0xa8] sm:$0xf]  ;;  %10117 = vmatprep.subr.bf16.mxu1 %v10876_v9 }
 0xbb9   : > { %v6263_v4 = vor.u32 %v6262_v42, %v6259_v23  ;;  %v6271_v38 = vor.u32 %v6270_v17, %v6267_v11  ;;  %v7999_v20 = vrot.slane %v7997_v52, 3  ;;  %v7815_v32 = vrot.slane %v7789_v49, 4  ;;  %8668 = vrot.lane.b32.xlu1 %v7814_v6, %s11502_s29  ;;  %v6618_v28 = vld [vmem:[#allocation2 + $0x30] sm:$0xf0]  ;;  %v6323_v33 = vld [vmem:[#allocation2 + $0x38] sm:$0x1f] }
 0xbba   : > { %v8002_v8 = vrot.slane %v8000_v26, 4  ;;  %v8007_v57 = vrot.slane %v8005_v60, 3  ;;  %v8010_v31 = vrot.slane %v8008_v22, 4  ;;  %v7816_v24 = vrot.slane %v7639_v18, 4  ;;  %v6275_v39 = vld [vmem:[#allocation2 + $0x30] sm:$0xf0] }
 0xbbb   : > { %6837 = vrot.lane.b32.xlu0 %v6255_v46, %s11502_s29  ;;  %v6272_v29 = vsel %vm635_vm6, %v6263_v4, %v6271_v38  ;;  %v6349_v35 = vrot.slane %v6347_v44, 4  ;;  %v6352_v41 = vrot.slane %v6350_v25, 5  ;;  %v6357_v0 = vrot.slane %v6355_v47, 4  ;;  %v6468_v44 = vld [vmem:[#allocation2 + $0x38] sm:$0xf]  ;;  %10118 = vmatpush3.bf16.msra.mxu1 %v10877_v3 }
 0xbbc   : > { %v8003_v5 = vor.u32 %v8002_v8, %v7999_v20  ;;  %v8011_v30 = vor.u32 %v8010_v31, %v8007_v57  ;;  %v7817_v19 = vsel %vm1748_vm3, %v7815_v32, %v7816_v24  ;;  %v6358_v45 = vshll.u32 %v14681_v37, 16  ;;  %v10879_v37 = vld [vmem:[%s15731_s11 + $0xf8] sm:$0xff]   ;;  %v7984_v2 = vld [vmem:[#allocation2 + $0xb0] sm:$0xf8]  ;;  %v6470_v38 = vld [vmem:[#allocation2 + $0x48] sm:$0xf] }
 0xbbd   : > { %v6353_v25 = vor.u32 %v6352_v41, %v6349_v35  ;;  %v8014_v47 = vshrl.u32 %v7982_v36, 16  ;;  %v8017_v13 = vshll.u32 %v7982_v36, 16  ;;  %v8022_v21 = vshrl.u32 %v7983_v62, 16  ;;  %6841 = vrot.lane.b32.xlu1 %v6345_v63, %s11502_s29  ;;  %10119 = vmatprep.subr.bf16.mxu1 %v10879_v37  ;;  %v7985_v49 = vld [vmem:[#allocation2 + $0xb8] sm:$0xf] }
 0xbbe   : > { %v8012_v16 = vsel %vm635_vm6, %v8003_v5, %v8011_v30  ;;  %v6360_v61 = vrot.slane %v6358_v45, 5  ;;  %v8025_v14 = vshll.u32 %v7983_v62, 16  ;;  %v7818_v34 = vrot.slane %v7790_v40, 4  ;;  %v7643_v42 = vld [vmem:[#allocation2 + $0xb8] sm:$0xf] }
 0xbbf   : > { %6839 = vrot.lane.b32.xlu0 %v6272_v29, %s11502_s29  ;;  %v8016_v58 = vrot.slane %v8014_v47, 3  ;;  %v8019_v10 = vrot.slane %v8017_v13, 4  ;;  %v8024_v43 = vrot.slane %v8022_v21, 3  ;;  %v7819_v27 = vrot.slane %v7641_v56, 4  ;;  %v10881_v11 = vld [vmem:[%s15731_s11 + $0xb8] sm:$0xff]  }
 0xbc0   : > { %v6361_v59 = vor.u32 %v6360_v61, %v6357_v0  ;;  %v8027_v55 = vrot.slane %v8025_v14, 4  ;;  %v6644_v7 = vrot.slane %v6618_v28, 4  ;;  %v6645_v53 = vrot.slane %v6468_v44, 4  ;;  %v7791_v26 = vld [vmem:[#allocation2 + $0xb0] sm:$0xf0]  ;;  %10120 = vmatpush3.bf16.msra.mxu1 %v10881_v11 }
 0xbc1   : > { %v8020_v50 = vor.u32 %v8019_v10, %v8016_v58  ;;  %v7820_v51 = vsel %vm1748_vm3, %v7818_v34, %v7819_v27  ;;  %v6691_v1 = vshrl.u32 %v6618_v28, 16  ;;  %v6694_v15 = vshll.u32 %v6618_v28, 16  ;;  %8670 = vrot.lane.b32.xlu1 %v7817_v19, %s11502_s29  ;;  %v6619_v57 = vld [vmem:[#allocation2 + $0x40] sm:$0xf0]  ;;  %v6324_v5 = vld [vmem:[#allocation2 + $0x48] sm:$0x1f] }
 0xbc2   : > { %v6362_v12 = vsel %vm1781_vm4, %v6353_v25, %v6361_v59  ;;  %v8028_v6 = vor.u32 %v8027_v55, %v8024_v43  ;;  %v14814_v23 = vsel %vm1748_vm3, %v6644_v7, %v6645_v53  ;;  %v6364_v63 = vshrl.u32 %v6275_v39, 16  ;;  %v6276_v35 = vld [vmem:[#allocation2 + $0x40] sm:$0xf0]  ;;  %v7987_v21 = vld [vmem:[#allocation2 + $0xc8] sm:$0xf] }
 0xbc3   : > { %8684 = vrot.lane.b32.xlu0 %v8012_v16, %s11502_s29  ;;  %v14820_v17 = vrot.slane %v6691_v1, 4  ;;  %v14822_v52 = vrot.slane %v6694_v15, 5  ;;  %v6367_v18 = vshll.u32 %v6275_v39, 16  ;;  %v6372_v46 = vshrl.u32 %v6323_v33, 16  ;;  %v7986_v44 = vld [vmem:[#allocation2 + $0xc0] sm:$0xf8] }
 0xbc4   : > { %v8029_v60 = vsel %vm635_vm6, %v8020_v50, %v8028_v6  ;;  %v6366_v22 = vrot.slane %v6364_v63, 4  ;;  %v6375_v54 = vshll.u32 %v6323_v33, 16  ;;  %v8031_v4 = vshrl.u32 %v7984_v2, 16  ;;  %v7645_v14 = vld [vmem:[#allocation2 + $0xc8] sm:$0xf] }
 0xbc5   : > { %v6369_v20 = vrot.slane %v6367_v18, 5  ;;  %v6374_v32 = vrot.slane %v6372_v46, 4  ;;  %v8034_v36 = vshll.u32 %v7984_v2, 16  ;;  %v8039_v8 = vshrl.u32 %v7985_v49, 16  ;;  %6843 = vrot.lane.b32.xlu1 %v6362_v12, %s11502_s29  ;;  %v7792_v34 = vld [vmem:[#allocation2 + $0xc0] sm:$0xf0] }
 0xbc6   : > { %v6377_v31 = vrot.slane %v6375_v54, 5  ;;  %v8033_v24 = vrot.slane %v8031_v4, 3  ;;  %v8042_v62 = vshll.u32 %v7985_v49, 16  ;;  %v7821_v29 = vrot.slane %v7791_v26, 4  ;;  %v6472_v27 = vld [vmem:[#allocation2 + $0x58] sm:$0xf] }
 0xbc7   : > { %6857 = vrot.lane.b32.xlu0 %v14715_v48, %s11502_s29  ;;  %v6370_v41 = vor.u32 %v6369_v20, %v6366_v22  ;;  %v8036_v0 = vrot.slane %v8034_v36, 4  ;;  %v8041_v40 = vrot.slane %v8039_v8, 3  ;;  %v7822_v9 = vrot.slane %v7643_v42, 4  ;;  %v6620_v53 = vld [vmem:[#allocation2 + $0x50] sm:$0xf0] }
 0xbc8   : > { %v6378_v30 = vor.u32 %v6377_v31, %v6374_v32  ;;  %v8044_v19 = vrot.slane %v8042_v62, 4  ;;  %v6647_v45 = vrot.slane %v6619_v57, 4  ;;  %v6648_v56 = vrot.slane %v6470_v38, 4  ;;  %v6277_v15 = vld [vmem:[#allocation2 + $0x50] sm:$0xf0] }
 0xbc9   : > { %v8037_v3 = vor.u32 %v8036_v0, %v8033_v24  ;;  %v7823_v25 = vsel %vm1748_vm3, %v7821_v29, %v7822_v9  ;;  %v6381_v47 = vshrl.u32 %v6276_v35, 16  ;;  %v6384_v13 = vshll.u32 %v6276_v35, 16  ;;  %8672 = vrot.lane.b32.xlu1 %v7820_v51, %s11502_s29  ;;  %v6325_v49 = vld [vmem:[#allocation2 + $0x58] sm:$0x1f]  ;;  %v7988_v26 = vld [vmem:[#allocation2 + $0xd0] sm:$0xf8] }
 0xbca   : > { %v6379_v48 = vsel %vm1781_vm4, %v6370_v41, %v6378_v30  ;;  %v8045_v28 = vor.u32 %v8044_v19, %v8041_v40  ;;  %v14832_v16 = vsel %vm1748_vm3, %v6647_v45, %v6648_v56  ;;  %v6389_v61 = vshrl.u32 %v6324_v5, 16  ;;  %v7989_v38 = vld [vmem:[#allocation2 + $0xd8] sm:$0xf]  ;;  %v6474_v35 = vld [vmem:[#allocation2 + $0x68] sm:$0xf] }
 0xbcb   : > { %8686 = vrot.lane.b32.xlu0 %v8029_v60, %s11502_s29  ;;  %v6383_v37 = vrot.slane %v6381_v47, 4  ;;  %v6386_v58 = vrot.slane %v6384_v13, 5  ;;  %v6392_v10 = vshll.u32 %v6324_v5, 16  ;;  %v8048_v43 = vshrl.u32 %v7986_v44, 16  ;;  %v7647_v57 = vld [vmem:[#allocation2 + $0xd8] sm:$0xf] }
 0xbcc   : > { %v8046_v39 = vsel %vm635_vm6, %v8037_v3, %v8045_v28  ;;  %v6391_v59 = vrot.slane %v6389_v61, 4  ;;  %v8051_v55 = vshll.u32 %v7986_v44, 16  ;;  %v8056_v7 = vshrl.u32 %v7987_v21, 16  ;;  %v6621_v5 = vld [vmem:[#allocation2 + $0x60] sm:$0xf0] }
 0xbcd   : > { %v6387_v33 = vor.u32 %v6386_v58, %v6383_v37  ;;  %v6394_v50 = vrot.slane %v6392_v10, 5  ;;  %v8050_v51 = vrot.slane %v8048_v43, 3  ;;  %v8059_v1 = vshll.u32 %v7987_v21, 16  ;;  %6845 = vrot.lane.b32.xlu1 %v6379_v48, %s11502_s29  ;;  %v6278_v44 = vld [vmem:[#allocation2 + $0x60] sm:$0xf0] }
 0xbce   : > { %v8053_v2 = vrot.slane %v8051_v55, 4  ;;  %v8058_v12 = vrot.slane %v8056_v7, 3  ;;  %v7824_v6 = vrot.slane %v7792_v34, 4  ;;  %v7825_v63 = vrot.slane %v7645_v14, 4  ;;  %v6326_v21 = vld [vmem:[#allocation2 + $0x68] sm:$0x1f] }
 0xbcf   : > { %6859 = vrot.lane.b32.xlu0 %v14814_v23, %s11502_s29  ;;  %v6395_v42 = vor.u32 %v6394_v50, %v6391_v59  ;;  %v8061_v11 = vrot.slane %v8059_v1, 4  ;;  %v6650_v18 = vrot.slane %v6620_v53, 4  ;;  %v6651_v46 = vrot.slane %v6472_v27, 4  ;;  %v7793_v23 = vld [vmem:[#allocation2 + $0xd0] sm:$0xf0] }
 0xbd0   : > { %v8054_v60 = vor.u32 %v8053_v2, %v8050_v51  ;;  %v7826_v22 = vsel %vm1748_vm3, %v7824_v6, %v7825_v63  ;;  %v6398_v54 = vshrl.u32 %v6277_v15, 16  ;;  %v6401_v4 = vshll.u32 %v6277_v15, 16  ;;  %v7990_v34 = vld [vmem:[#allocation2 + $0xe0] sm:$0xf8]  ;;  %v7991_v27 = vld [vmem:[#allocation2 + $0xe8] sm:$0xf] }
 0xbd1   : > { %v6396_v20 = vsel %vm1781_vm4, %v6387_v33, %v6395_v42  ;;  %v8062_v32 = vor.u32 %v8061_v11, %v8058_v12  ;;  %v14842_v36 = vsel %vm1748_vm3, %v6650_v18, %v6651_v46  ;;  %v6406_v8 = vshrl.u32 %v6325_v49, 16  ;;  %8674 = vrot.lane.b32.xlu1 %v7823_v25, %s11502_s29  ;;  %v7649_v53 = vld [vmem:[#allocation2 + $0xe8] sm:$0xf]  ;;  %v7794_v33 = vld [vmem:[#allocation2 + $0xe0] sm:$0xf0] }
 0xbd2   : > { %v6400_v31 = vrot.slane %v6398_v54, 4  ;;  %v6403_v24 = vrot.slane %v6401_v4, 5  ;;  %v6409_v62 = vshll.u32 %v6325_v49, 16  ;;  %v8065_v29 = vshrl.u32 %v7988_v26, 16  ;;  %v6622_v49 = vld [vmem:[#allocation2 + $0x70] sm:$0xf0] }
 0xbd3   : > { %8688 = vrot.lane.b32.xlu0 %v8046_v39, %s11502_s29  ;;  %v8063_v41 = vsel %vm635_vm6, %v8054_v60, %v8062_v32  ;;  %v6408_v0 = vrot.slane %v6406_v8, 4  ;;  %v8068_v40 = vshll.u32 %v7988_v26, 16  ;;  %v8073_v9 = vshrl.u32 %v7989_v38, 16  ;;  %v6279_v26 = vld [vmem:[#allocation2 + $0x70] sm:$0xf0] }
 0xbd4   : > { %v6404_v30 = vor.u32 %v6403_v24, %v6400_v31  ;;  %v6411_v19 = vrot.slane %v6409_v62, 5  ;;  %v8067_v45 = vrot.slane %v8065_v29, 3  ;;  %v8076_v56 = vshll.u32 %v7989_v38, 16 }
 0xbd5   : > { %v8070_v3 = vrot.slane %v8068_v40, 4  ;;  %v8075_v25 = vrot.slane %v8073_v9, 3  ;;  %v7827_v47 = vrot.slane %v7793_v23, 4  ;;  %v7828_v13 = vrot.slane %v7647_v57, 4  ;;  %6847 = vrot.lane.b32.xlu1 %v6396_v20, %s11502_s29  ;;  %v6327_v20 = vld [vmem:[#allocation2 + $0x78] sm:$0x1f] }
 0xbd6   : > { %v6412_v48 = vor.u32 %v6411_v19, %v6408_v0  ;;  %v8078_v28 = vrot.slane %v8076_v56, 4  ;;  %v6653_v61 = vrot.slane %v6621_v5, 4  ;;  %v6654_v14 = vrot.slane %v6474_v35, 4  ;;  %v7992_v23 = vld [vmem:[#allocation2 + $0xf0] sm:$0xf8]  ;;  %v10890_v19 = vld [vmem:[%s15731_s11 + $0x100] sm:$0xff]  }
 0xbd7   : > { %6861 = vrot.lane.b32.xlu0 %v14832_v16, %s11502_s29  ;;  %v8071_v37 = vor.u32 %v8070_v3, %v8067_v45  ;;  %v7829_v58 = vsel %vm1748_vm3, %v7827_v47, %v7828_v13  ;;  %v6415_v10 = vshrl.u32 %v6278_v44, 16  ;;  %v6418_v43 = vshll.u32 %v6278_v44, 16  ;;  %v6476_v16 = vld [vmem:[#allocation2 + $0x78] sm:$0xf]  ;;  %10501 = vmatprep.subr.bf16.mxu1 %v10890_v19 }
 0xbd8   : > { %v6413_v39 = vsel %vm1781_vm4, %v6404_v30, %v6412_v48  ;;  %v8079_v59 = vor.u32 %v8078_v28, %v8075_v25  ;;  %v14853_v55 = vsel %vm1748_vm3, %v6653_v61, %v6654_v14  ;;  %v6423_v7 = vshrl.u32 %v6326_v21, 16  ;;  %v7993_v35 = vld [vmem:[#allocation2 + $0xf8] sm:$0xf]  ;;  %v7795_v30 = vld [vmem:[#allocation2 + $0xf0] sm:$0xf0] }
 0xbd9   : > { %v6417_v50 = vrot.slane %v6415_v10, 4  ;;  %v6420_v51 = vrot.slane %v6418_v43, 5  ;;  %v6426_v1 = vshll.u32 %v6326_v21, 16  ;;  %v8082_v15 = vshrl.u32 %v7990_v34, 16  ;;  %8676 = vrot.lane.b32.xlu1 %v7826_v22, %s11502_s29  ;;  %v7651_v5 = vld [vmem:[#allocation2 + $0xf8] sm:$0xf] }
 0xbda   : > { %v8080_v2 = vsel %vm635_vm6, %v8071_v37, %v8079_v59  ;;  %v6425_v12 = vrot.slane %v6423_v7, 4  ;;  %v8085_v6 = vshll.u32 %v7990_v34, 16  ;;  %v8090_v63 = vshrl.u32 %v7991_v27, 16  ;;  %v6478_v25 = vld [vmem:[#allocation2 + $0x88] sm:$0xf] }
 0xbdb   : > { %8690 = vrot.lane.b32.xlu0 %v8063_v41, %s11502_s29  ;;  %v6421_v42 = vor.u32 %v6420_v51, %v6417_v50  ;;  %v6428_v11 = vrot.slane %v6426_v1, 5  ;;  %v8084_v18 = vrot.slane %v8082_v15, 3  ;;  %v8093_v46 = vshll.u32 %v7991_v27, 16  ;;  %v6623_v48 = vld [vmem:[#allocation2 + $0x80] sm:$0xf0] }
 0xbdc   : > { %v8087_v60 = vrot.slane %v8085_v6, 4  ;;  %v8092_v54 = vrot.slane %v8090_v63, 3  ;;  %v7830_v4 = vrot.slane %v7794_v33, 4  ;;  %v7831_v38 = vrot.slane %v7649_v53, 4  ;;  %v6280_v37 = vld [vmem:[#allocation2 + $0x80] sm:$0xf0] }
 0xbdd   : > { %v6429_v32 = vor.u32 %v6428_v11, %v6425_v12  ;;  %v8095_v22 = vrot.slane %v8093_v46, 4  ;;  %v6656_v8 = vrot.slane %v6622_v49, 4  ;;  %v6657_v57 = vrot.slane %v6476_v16, 4  ;;  %6849 = vrot.lane.b32.xlu1 %v6413_v39, %s11502_s29  ;;  %v6328_v59 = vld [vmem:[#allocation2 + $0x88] sm:$0x1f] }
 0xbde   : > { %v8088_v31 = vor.u32 %v8087_v60, %v8084_v18  ;;  %v14860_v24 = vsel %vm1748_vm3, %v7830_v4, %v7831_v38  ;;  %v6432_v62 = vshrl.u32 %v6279_v26, 16  ;;  %v6435_v29 = vshll.u32 %v6279_v26, 16  ;;  %v7994_v51 = vld [vmem:[#allocation2 + $0x100] sm:$0xf8]  ;;  %v7995_v12 = vld [vmem:[#allocation2 + $0x108] sm:$0xf] }
 0xbdf   : > { %6863 = vrot.lane.b32.xlu0 %v14842_v36, %s11502_s29  ;;  %v6430_v41 = vsel %vm1781_vm4, %v6421_v42, %v6429_v32  ;;  %v8096_v0 = vor.u32 %v8095_v22, %v8092_v54  ;;  %v14866_v40 = vsel %vm1748_vm3, %v6656_v8, %v6657_v57  ;;  %v6440_v9 = vshrl.u32 %v6327_v20, 16  ;;  %v8132_v26 = vld [vmem:[#allocation2 + $0x90] sm:$0xf0] }
 0xbe0   : > { %v6434_v45 = vrot.slane %v6432_v62, 4  ;;  %v6437_v56 = vrot.slane %v6435_v29, 5  ;;  %v6443_v44 = vshll.u32 %v6327_v20, 16  ;;  %v8099_v3 = vshrl.u32 %v7992_v23, 16  ;;  %v8180_v20 = vld [vmem:[#allocation2 + $0x98] sm:$0x1f] }
 0xbe1   : > { %v8097_v36 = vsel %vm635_vm6, %v8088_v31, %v8096_v0  ;;  %v6442_v47 = vrot.slane %v6440_v9, 4  ;;  %v8102_v13 = vshll.u32 %v7992_v23, 16  ;;  %v8107_v21 = vshrl.u32 %v7993_v35, 16  ;;  %8678 = vrot.lane.b32.xlu1 %v7829_v58, %s11502_s29  ;;  %v6624_v23 = vld [vmem:[#allocation2 + $0x90] sm:$0xf0] }
 0xbe2   : > { %v6438_v28 = vor.u32 %v6437_v56, %v6434_v45  ;;  %v6445_v61 = vrot.slane %v6443_v44, 5  ;;  %v8101_v14 = vrot.slane %v8099_v3, 3  ;;  %v8110_v34 = vshll.u32 %v7993_v35, 16  ;;  %v6480_v35 = vld [vmem:[#allocation2 + $0x98] sm:$0xf] }
 0xbe3   : > { %8692 = vrot.lane.b32.xlu0 %v8080_v2, %s11502_s29  ;;  %v8104_v10 = vrot.slane %v8102_v13, 4  ;;  %v8109_v43 = vrot.slane %v8107_v21, 3  ;;  %v7833_v27 = vrot.slane %v7795_v30, 4  ;;  %v7834_v39 = vrot.slane %v7651_v5, 4  ;;  %v8133_v30 = vld [vmem:[#allocation2 + $0xa0] sm:$0xf0] }
 0xbe4   : > { %v6446_v7 = vor.u32 %v6445_v61, %v6442_v47  ;;  %v8112_v53 = vrot.slane %v8110_v34, 4  ;;  %v6659_v33 = vrot.slane %v6623_v48, 4  ;;  %v6660_v50 = vrot.slane %v6478_v25, 4  ;;  %v8181_v3 = vld [vmem:[#allocation2 + $0xa8] sm:$0x1f] }
 0xbe5   : > { %v8105_v1 = vor.u32 %v8104_v10, %v8101_v14  ;;  %v14875_v58 = vsel %vm1748_vm3, %v7833_v27, %v7834_v39  ;;  %v6449_v15 = vshrl.u32 %v6280_v37, 16  ;;  %v6452_v16 = vshll.u32 %v6280_v37, 16  ;;  %6851 = vrot.lane.b32.xlu1 %v6430_v41, %s11502_s29  ;;  %v8476_v21 = vld [vmem:[#allocation2 + $0xa0] sm:$0xf0]  ;;  %v8325_v14 = vld [vmem:[#allocation2 + $0xa8] sm:$0xf] }
 0xbe6   : > { %v6447_v2 = vsel %vm1781_vm4, %v6438_v28, %v6446_v7  ;;  %v8113_v6 = vor.u32 %v8112_v53, %v8109_v43  ;;  %v14880_v63 = vsel %vm1748_vm3, %v6659_v33, %v6660_v50  ;;  %v6457_v49 = vshrl.u32 %v6328_v59, 16  ;;  %v8134_v27 = vld [vmem:[#allocation2 + $0xb0] sm:$0xf0]  ;;  %v8182_v39 = vld [vmem:[#allocation2 + $0xb8] sm:$0x1f] }
 0xbe7   : > { %6865 = vrot.lane.b32.xlu0 %v14853_v55, %s11502_s29  ;;  %v6451_v42 = vrot.slane %v6449_v15, 4  ;;  %v6454_v11 = vrot.slane %v6452_v16, 5  ;;  %v6460_v18 = vshll.u32 %v6328_v59, 16  ;;  %v8116_v46 = vshrl.u32 %v7994_v51, 16  ;;  %v8477_v15 = vld [vmem:[#allocation2 + $0xb0] sm:$0xf0] }
 0xbe8   : > { %v8114_v60 = vsel %vm635_vm6, %v8105_v1, %v8113_v6  ;;  %v6459_v54 = vrot.slane %v6457_v49, 4  ;;  %v8119_v4 = vshll.u32 %v7994_v51, 16  ;;  %v8124_v38 = vshrl.u32 %v7995_v12, 16  ;;  %v8327_v49 = vld [vmem:[#allocation2 + $0xb8] sm:$0xf] }
 0xbe9   : > { %v6455_v32 = vor.u32 %v6454_v11, %v6451_v42  ;;  %v6462_v22 = vrot.slane %v6460_v18, 5  ;;  %v8118_v8 = vrot.slane %v8116_v46, 3  ;;  %v8127_v57 = vshll.u32 %v7995_v12, 16  ;;  %8680 = vrot.lane.b32.xlu1 %v14860_v24, %s11502_s29  ;;  %v11122_v46 = vld [vmem:[%s11818_s18 + $0x30] sm:$0xff] }
 0xbea   : > { %v8121_v55 = vrot.slane %v8119_v4, 4  ;;  %v8126_v31 = vrot.slane %v8124_v38, 3  ;;  %v8189_v62 = vshrl.u32 %v8132_v26, 16  ;;  %v8192_v29 = vshll.u32 %v8132_v26, 16  ;;  %v11123_v26 = vld [vmem:[%s11818_s18 + $0x38] sm:$0xff] }
 0xbeb   : > { %8694 = vrot.lane.b32.xlu0 %v8097_v36, %s11502_s29  ;;  %v6463_v41 = vor.u32 %v6462_v22, %v6459_v54  ;;  %v8129_v0 = vrot.slane %v8127_v57, 4  ;;  %v8197_v9 = vshrl.u32 %v8180_v20, 16  ;;  %v8200_v5 = vshll.u32 %v8180_v20, 16  ;;  %v8135_v4 = vld [vmem:[#allocation2 + $0xc0] sm:$0xf0] }
 0xbec   : > { %v8122_v19 = vor.u32 %v8121_v55, %v8118_v8  ;;  %v8191_v45 = vrot.slane %v8189_v62, 4  ;;  %v8194_v56 = vrot.slane %v8192_v29, 5  ;;  %v6662_v44 = vrot.slane %v6624_v23, 4  ;;  %v8183_v22 = vld [vmem:[#allocation2 + $0xc8] sm:$0x1f] }
 0xbed   : > { %v6464_v25 = vsel %vm1781_vm4, %v6455_v32, %v6463_v41  ;;  %v8130_v24 = vor.u32 %v8129_v0, %v8126_v31  ;;  %v8199_v47 = vrot.slane %v8197_v9, 4  ;;  %v8202_v13 = vrot.slane %v8200_v5, 5  ;;  %6853 = vrot.lane.b32.xlu1 %v6447_v2, %s11502_s29 }
 0xbee   : > { %v8195_v48 = vor.u32 %v8194_v56, %v8191_v45  ;;  %v6663_v36 = vrot.slane %v6480_v35, 4  ;;  %v8206_v28 = vshrl.u32 %v8133_v30, 16  ;;  %v8209_v61 = vshll.u32 %v8133_v30, 16  ;;  %v8478_v35 = vld [vmem:[#allocation2 + $0xc0] sm:$0xf0] }
 0xbef   : > { %6867 = vrot.lane.b32.xlu0 %v14866_v40, %s11502_s29  ;;  %v14893_v34 = vsel %vm635_vm6, %v8122_v19, %v8130_v24  ;;  %v8203_v37 = vor.u32 %v8202_v13, %v8199_v47  ;;  %v8214_v10 = vshrl.u32 %v8181_v3, 16  ;;  %v8217_v43 = vshll.u32 %v8181_v3, 16  ;;  %v8329_v30 = vld [vmem:[#allocation2 + $0xc8] sm:$0xf]  ;;  %v8136_v19 = vld [vmem:[#allocation2 + $0xd0] sm:$0xf0] }
 0xbf0   : > { %v14896_v59 = vsel %vm1748_vm3, %v6662_v44, %v6663_v36  ;;  %v8208_v7 = vrot.slane %v8206_v28, 4  ;;  %v8211_v53 = vrot.slane %v8209_v61, 5  ;;  %v8500_v33 = vrot.slane %v8476_v21, 4  ;;  %v11125_v13 = vld [vmem:[%s11818_s18 + $0x48] sm:$0xff]  ;;  %v5777_v36 = vld [vmem:[#allocation2] sm:$0xf8] }
 0xbf1   : > { %v8204_v50 = vsel %vm1781_vm4, %v8195_v48, %v8203_v37  ;;  %v8216_v51 = vrot.slane %v8214_v10, 4  ;;  %v8219_v40 = vrot.slane %v8217_v43, 5  ;;  %v8501_v1 = vrot.slane %v8325_v14, 4  ;;  %8682 = vrot.lane.b32.xlu1 %v14875_v58, %s11502_s29 }
 0xbf2   : > { %v8212_v16 = vor.u32 %v8211_v53, %v8208_v7  ;;  %v8223_v12 = vshrl.u32 %v8134_v27, 16  ;;  %v8226_v2 = vshll.u32 %v8134_v27, 16  ;;  %v8231_v6 = vshrl.u32 %v8182_v39, 16  ;;  %v11127_v7 = vld [vmem:[%s11818_s18 + $0x58] sm:$0xff] }
 0xbf3   : > { %8696 = vrot.lane.b32.xlu0 %v8114_v60, %s11502_s29  ;;  %v8220_v42 = vor.u32 %v8219_v40, %v8216_v51  ;;  %v14903_v11 = vsel %vm1748_vm3, %v8500_v33, %v8501_v1  ;;  %v8234_v18 = vshll.u32 %v8182_v39, 16  ;;  %v5525_v54 = vpack.c.bf16 %v11123_v26, %v11122_v46  ;;  %v11126_v39 = vld [vmem:[%s11818_s18 + $0x50] sm:$0xff]  ;;  %v8331_v1 = vld [vmem:[#allocation2 + $0xd8] sm:$0xf] }
 0xbf4   : > { %v8225_v38 = vrot.slane %v8223_v12, 4  ;;  %v8228_v20 = vrot.slane %v8226_v2, 5  ;;  %v8233_v32 = vrot.slane %v8231_v6, 4  ;;  %v8503_v58 = vrot.slane %v8477_v15, 4  ;;  %v8137_v6 = vld [vmem:[#allocation2 + $0xe0] sm:$0xf0] }
 0xbf5   : > { %v8221_v8 = vsel %vm1781_vm4, %v8212_v16, %v8220_v42  ;;  %v8236_v57 = vrot.slane %v8234_v18, 5  ;;  %10474 = vmatmul.mubr.msk.bf16.gmra.mrb[72].mxu1 %vm727_vm1, %v5525_v54  ;;  %v8504_v60 = vrot.slane %v8327_v49, 4  ;;  %v8550_v23 = vshrl.u32 %v8477_v15, 16  ;;  %6855 = vrot.lane.b32.xlu1 %v6464_v25, %s11502_s29  ;;  %v8184_v25 = vld [vmem:[#allocation2 + $0xd8] sm:$0x1f]  ;;  %v15973_v18 = vld [vmem:[#allocation28_spill] sm:$0xff] }
 0xbf6   : > { %v8229_v55 = vor.u32 %v8228_v20, %v8225_v38  ;;  %v8553_v31 = vshll.u32 %v8477_v15, 16  ;;  %v8240_v62 = vshrl.u32 %v8135_v4, 16  ;;  %v8243_v29 = vshll.u32 %v8135_v4, 16  ;;  %v8479_v15 = vld [vmem:[#allocation2 + $0xd0] sm:$0xf0] }
 0xbf7   : > { %6869 = vrot.lane.b32.xlu0 %v14880_v63, %s11502_s29  ;;  %v8237_v41 = vor.u32 %v8236_v57, %v8233_v32  ;;  %v14913_v0 = vsel %vm1748_vm3, %v8503_v58, %v8504_v60  ;;  %v14915_v9 = vrot.slane %v8550_v23, 4  ;;  %v8248_v5 = vshrl.u32 %v8183_v22, 16  ;;  %v11124_v63 = vld [vmem:[%s11818_s18 + $0x40] sm:$0xff]  ;;  %v8185_v38 = vld [vmem:[#allocation2 + $0xe8] sm:$0x1f] }
 0xbf8   : > { %v14917_v45 = vrot.slane %v8553_v31, 5  ;;  %v8242_v56 = vrot.slane %v8240_v62, 4  ;;  %v8245_v44 = vrot.slane %v8243_v29, 5  ;;  %v8251_v3 = vshll.u32 %v8183_v22, 16 }
 0xbf9   : > { %v8238_v24 = vsel %vm1781_vm4, %v8229_v55, %v8237_v41  ;;  %v8250_v47 = vrot.slane %v8248_v5, 4  ;;  %v5526_v21 = vpack.c.bf16 %v11125_v13, %v11124_v63  ;;  %v8506_v48 = vrot.slane %v8478_v35, 4  ;;  %8700 = vrot.lane.b32.xlu1 %v8204_v50, %s11502_s29  ;;  %v8480_v55 = vld [vmem:[#allocation2 + $0xe0] sm:$0xf0]  ;;  %v8333_v41 = vld [vmem:[#allocation2 + $0xe8] sm:$0xf]  ;;  %v6810_v63 = vpop.permute.xlu1 %6809 }
 0xbfa   : > { %v8246_v28 = vor.u32 %v8245_v44, %v8242_v56  ;;  %v8253_v61 = vrot.slane %v8251_v3, 5  ;;  %v8507_v14 = vrot.slane %v8329_v30, 4  ;;  %v8257_v37 = vshrl.u32 %v8136_v19, 16  ;;  %v8138_v5 = vld [vmem:[#allocation2 + $0xf0] sm:$0xf0]  ;;  %v11128_v56 = vld [vmem:[%s11818_s18 + $0x60] sm:$0xff] }
 0xbfb   : > { %8698 = vrot.lane.b32.xlu0 %v14893_v34, %s11502_s29  ;;  %10477 = vmatprep.mubr.msk.bf16.mxu1 %vm727_vm1, %v5526_v21  ;;  %v8260_v10 = vshll.u32 %v8136_v19, 16  ;;  %v8265_v43 = vshrl.u32 %v8184_v25, 16  ;;  %v8268_v27 = vshll.u32 %v8184_v25, 16  ;;  %v5527_v53 = vpack.c.bf16 %v11127_v7, %v11126_v39  ;;  %v11129_v44 = vld [vmem:[%s11818_s18 + $0x68] sm:$0xff]  ;;  %v8186_v25 = vld [vmem:[#allocation2 + $0xf8] sm:$0x1f] }
 0xbfc   : > { %v8254_v33 = vor.u32 %v8253_v61, %v8250_v47  ;;  %v14929_v51 = vsel %vm1748_vm3, %v8506_v48, %v8507_v14  ;;  %v8259_v50 = vrot.slane %v8257_v37, 4  ;;  %v5794_v40 = vshrl.u32 %v5777_v36, 16  ;;  %v5977_v37 = vld [vmem:[#allocation2 + $0x8] sm:$0x1f]  ;;  %v8335_v39 = vld [vmem:[#allocation2 + $0xf8] sm:$0xf] }
 0xbfd   : > { %v8262_v16 = vrot.slane %v8260_v10, 5  ;;  %v8267_v12 = vrot.slane %v8265_v43, 4  ;;  %v8270_v2 = vrot.slane %v8268_v27, 5  ;;  %10478 = vmatmul.mubr.msk.bf16.gmra.mrb[76].mxu1 %vm727_vm1, %v5527_v53  ;;  %v5797_v34 = vshll.u32 %v5777_v36, 16  ;;  %8702 = vrot.lane.b32.xlu1 %v8221_v8, %s11502_s29 }
 0xbfe   : > { %v8255_v49 = vsel %vm1781_vm4, %v8246_v28, %v8254_v33  ;;  %v5796_v42 = vrot.slane %v5794_v40, 3  ;;  %v15974_v46 = vshrl.u32 %v15973_v18, 16  ;;  %v15975_v54 = vshll.u32 %v15973_v18, 16  ;;  %v11130_v33 = vld [vmem:[%s11818_s18 + $0x70] sm:$0xff] }
 0xbff   : > { %6871 = vrot.lane.b32.xlu0 %v14896_v59, %s11502_s29  ;;  %v8263_v20 = vor.u32 %v8262_v16, %v8259_v50  ;;  %v8271_v32 = vor.u32 %v8270_v2, %v8267_v12  ;;  %v5799_v58 = vrot.slane %v5797_v34, 4  ;;  %v8509_v22 = vrot.slane %v8479_v15, 4  ;;  %v11131_v50 = vld [vmem:[%s11818_s18 + $0x78] sm:$0xff]  ;;  %v8139_v15 = vld [vmem:[#allocation2 + $0x100] sm:$0xf0] }
 0xc00   : > { %v5804_v26 = vrot.slane %v15974_v46, 3  ;;  %v5807_v4 = vrot.slane %v15975_v54, 4  ;;  %v8510_v8 = vrot.slane %v8331_v1, 4  ;;  %v8274_v60 = vshrl.u32 %v8137_v6, 16 }
 0xc01   : > { %v8277_v23 = vshll.u32 %v8137_v6, 16  ;;  %v8272_v31 = vsel %vm1781_vm4, %v8263_v20, %v8271_v32  ;;  %v5800_v62 = vor.u32 %v5799_v58, %v5796_v42  ;;  %v8282_v29 = vshrl.u32 %v8185_v38, 16  ;;  %8704 = vrot.lane.b32.xlu1 %v8238_v24, %s11502_s29  ;;  %v8481_v24 = vld [vmem:[#allocation2 + $0xf0] sm:$0xf0]  ;;  %v8482_v58 = vld [vmem:[#allocation2 + $0x100] sm:$0xf0] }
 0xc02   : > { %v5808_v57 = vor.u32 %v5807_v4, %v5804_v26  ;;  %v8285_v35 = vshll.u32 %v8185_v38, 16  ;;  %v14943_v59 = vsel %vm1748_vm3, %v8509_v22, %v8510_v8  ;;  %v8276_v30 = vrot.slane %v8274_v60, 4  ;;  %v8187_v4 = vld [vmem:[#allocation2 + $0x108] sm:$0x1f] }
 0xc03   : > { %v8279_v19 = vrot.slane %v8277_v23, 5  ;;  %v5528_v3 = vpack.c.bf16 %v11129_v44, %v11128_v56  ;;  %8716 = vrot.lane.b32.xlu0 %v14903_v11, %s11502_s29  ;;  %v8284_v13 = vrot.slane %v8282_v29, 4  ;;  %v8512_v48 = vrot.slane %v8480_v55, 4  ;;  %v8337_v23 = vld [vmem:[#allocation2 + $0x108] sm:$0xf] }
 0xc04   : > { %v5809_v47 = vsel %vm635_vm6, %v5800_v62, %v5808_v57  ;;  %v8287_v21 = vrot.slane %v8285_v35, 5  ;;  %v8513_v61 = vrot.slane %v8333_v41, 4  ;;  %v8291_v14 = vshrl.u32 %v8138_v5, 16  ;;  %v5978_v41 = vld [vmem:[#allocation2 + $0x18] sm:$0x1f]  ;;  %v11133_v56 = vld [vmem:[%s11818_s18 + $0x88] sm:$0xff] }
 0xc05   : > { %v14951_v36 = vsel %vm576_vm2, %v5809_v47, %v6810_v63  ;;  %v8280_v28 = vor.u32 %v8279_v19, %v8276_v30  ;;  %10481 = vmatprep.mubr.msk.bf16.mxu1 %vm727_vm1, %v5528_v3  ;;  %v8294_v11 = vshll.u32 %v8138_v5, 16  ;;  %v8299_v43 = vshrl.u32 %v8186_v25, 16  ;;  %8706 = vrot.lane.b32.xlu1 %v8255_v49, %s11502_s29  ;;  %v15976_v49 = vld [vmem:[#allocation55_spill] sm:$0xff]  ;;  %v14975_v5 = vpop.permute.xlu1 %6811 }
 0xc06   : > { %v8288_v10 = vor.u32 %v8287_v21, %v8284_v13  ;;  %v8302_v27 = vshll.u32 %v8186_v25, 16  ;;  %v14956_v7 = vsel %vm1748_vm3, %v8512_v48, %v8513_v61  ;;  %v8293_v53 = vrot.slane %v8291_v14, 4  ;;  %v11132_v19 = vld [vmem:[%s11818_s18 + $0x80] sm:$0xff]  ;;  %v6826_v25 = vpop.permute.xlu0 %6825  ;;  %v11134_v21 = vld [vmem:[#allocation2 + $0x10] sm:$0xf0] }
 0xc07   : > { %v5529_v40 = vpack.c.bf16 %v11131_v50, %v11130_v33  ;;  %v8515_v1 = vrot.slane %v8481_v24, 4  ;;  %8718 = vrot.lane.b32.xlu0 %v14913_v0, %s11502_s29  ;;  %v8296_v12 = vrot.slane %v8294_v11, 5  ;;  %v8301_v2 = vrot.slane %v8299_v43, 4  ;;  %v5779_v14 = vld [vmem:[#allocation2 + $0x10] sm:$0xf8] }
 0xc08   : > { %v8289_v16 = vsel %vm1781_vm4, %v8280_v28, %v8288_v10  ;;  %v8304_v34 = vrot.slane %v8302_v27, 5  ;;  %v8516_v6 = vrot.slane %v8335_v39, 4  ;;  %v15977_v42 = vshrl.u32 %v15976_v49, 16  ;;  %v10857_v10 = vld [vmem:[%s15731_s11] sm:$0xff]  }
 0xc09   : > { %10482 = vmatmul.mubr.msk.bf16.gmra.mrb[80].mxu1 %vm727_vm1, %v5529_v40  ;;  %v15978_v46 = vshll.u32 %v15976_v49, 16  ;;  %v5994_v54 = vshrl.u32 %v5977_v37, 16  ;;  %v8297_v38 = vor.u32 %v8296_v12, %v8293_v53  ;;  %v5997_v32 = vshll.u32 %v5977_v37, 16  ;;  %8708 = vrot.lane.b32.xlu1 %v8272_v31, %s11502_s29 }
 0xc0a   : > { %v5988_v18 = vrot.slane %v15977_v42, 4  ;;  %v8305_v20 = vor.u32 %v8304_v34, %v8301_v2  ;;  %v8308_v0 = vshrl.u32 %v8139_v15, 16  ;;  %v14970_v22 = vsel %vm1748_vm3, %v8515_v1, %v8516_v6  ;;  %v11135_v1 = vld [vmem:[%s11818_s18 + $0x90] sm:$0xff]  ;;  %v5979_v34 = vld [vmem:[#allocation2 + $0x28] sm:$0x1f]  ;;  %v14997_v6 = vpop.permute.xlu1 %6813 }
 0xc0b   : > { %v5991_v26 = vrot.slane %v15978_v46, 5  ;;  %v5996_v8 = vrot.slane %v5994_v54, 4  ;;  %v8311_v60 = vshll.u32 %v8139_v15, 16  ;;  %8720 = vrot.lane.b32.xlu0 %v14929_v51, %s11502_s29  ;;  %v5999_v62 = vrot.slane %v5997_v32, 5  ;;  %v11136_v15 = vld [vmem:[%s11818_s18 + $0x98] sm:$0xff]  ;;  %v6828_v54 = vpop.permute.xlu0 %6827  ;;  %v10862_v32 = vld [vmem:[%s15731_s11 + $0x8] sm:$0xff]  }
 0xc0c   : > { %v8306_v55 = vsel %vm1781_vm4, %v8297_v38, %v8305_v20  ;;  %v8310_v29 = vrot.slane %v8308_v0, 4  ;;  %v8316_v35 = vshrl.u32 %v8187_v4, 16  ;;  %v8319_v30 = vshll.u32 %v8187_v4, 16  ;;  %v11138_v0 = vld [vmem:[#allocation2 + $0x20] sm:$0xf0] }
 0xc0d   : > { %v5992_v57 = vor.u32 %v5991_v26, %v5988_v18  ;;  %v8313_v31 = vrot.slane %v8311_v60, 5  ;;  %v5530_v44 = vpack.c.bf16 %v11133_v56, %v11132_v19  ;;  %v8518_v3 = vrot.slane %v8482_v58, 4  ;;  %8710 = vrot.lane.b32.xlu1 %v8289_v16, %s11502_s29  ;;  %v11137_v18 = vld [vmem:[#allocation2 + $0x18] sm:$0xf] }
 0xc0e   : > { %v6000_v47 = vor.u32 %v5999_v62, %v5996_v8  ;;  %v8318_v63 = vrot.slane %v8316_v35, 4  ;;  %v8519_v13 = vrot.slane %v8337_v23, 4  ;;  %v6003_v51 = vshrl.u32 %v11134_v21, 16  ;;  %v10866_v35 = vld [vmem:[%s15731_s11 + $0x50] sm:$0xff]  }
 0xc0f   : > { %v8314_v48 = vor.u32 %v8313_v31, %v8310_v29  ;;  %v8321_v24 = vrot.slane %v8319_v30, 5  ;;  %10485 = vmatprep.mubr.msk.bf16.mxu1 %vm727_vm1, %v5530_v44  ;;  %v6006_v28 = vshll.u32 %v11134_v21, 16  ;;  %v6011_v61 = vshrl.u32 %v5978_v41, 16  ;;  %8722 = vrot.lane.b32.xlu0 %v14943_v59, %s11502_s29  ;;  %v10860_v59 = vld [vmem:[%s15731_s11 + $0x48] sm:$0xff]   ;;  %v11139_v44 = vld [vmem:[%s11818_s18 + $0xa0] sm:$0xff] }
 0xc10   : > { %v6001_v37 = vsel %vm1781_vm4, %v5992_v57, %v6000_v47  ;;  %v14988_v11 = vsel %vm1748_vm3, %v8518_v3, %v8519_v13  ;;  %v6005_v43 = vrot.slane %v6003_v51, 4  ;;  %v6014_v27 = vshll.u32 %v5978_v41, 16  ;;  %v11140_v3 = vld [vmem:[%s11818_s18 + $0xa8] sm:$0xff]  ;;  %v11141_v47 = vld [vmem:[%s11818_s18 + $0xb0] sm:$0xff] }
 0xc11   : > { %v6907_v39 = vsel %vm576_vm2, %v6001_v37, %v6826_v25  ;;  %v8322_v53 = vor.u32 %v8321_v24, %v8318_v63  ;;  %v6008_v33 = vrot.slane %v6006_v28, 5  ;;  %v6013_v50 = vrot.slane %v6011_v61, 4  ;;  %8712 = vrot.lane.b32.xlu1 %v8306_v55, %s11502_s29  ;;  %v11142_v63 = vld [vmem:[%s11818_s18 + $0xb8] sm:$0xff]  ;;  %v11143_v61 = vld [vmem:[#allocation2 + $0x28] sm:$0xf] }
 0xc12   : > { %7345 = vmatprep.mubr.bf16.mxu0 %v6907_v39  ;;  %v6016_v40 = vrot.slane %v6014_v27, 5  ;;  %v5531_v16 = vpack.c.bf16 %v11136_v15, %v11135_v1  ;;  %v5811_v12 = vshrl.u32 %v5779_v14, 16  ;;  %v5814_v2 = vshll.u32 %v5779_v14, 16  ;;  %v5980_v37 = vld [vmem:[#allocation2 + $0x38] sm:$0x1f] }
 0xc13   : > { %v8323_v49 = vsel %vm1781_vm4, %v8314_v48, %v8322_v53  ;;  %7346 = vmatmul.mubr.bf16.vlgmr.msra.gmra.mrb[48].mxu0 %v14951_v36  ;;  %v6009_v42 = vor.u32 %v6008_v33, %v6005_v43  ;;  %v5819_v46 = vshrl.u32 %v11137_v18, 16  ;;  %v5822_v26 = vshll.u32 %v11137_v18, 16  ;;  %8724 = vrot.lane.b32.xlu0 %v14956_v7, %s11502_s29  ;;  %v5781_v7 = vld [vmem:[#allocation2 + $0x20] sm:$0xf8]  ;;  %v10872_v53 = vld [vmem:[%s15731_s11 + $0x58] sm:$0xff]  }
 0xc14   : > { %10182 = vmatpush3.bf16.msra.mxu0 %v10857_v10  ;;  %v6017_v4 = vor.u32 %v6016_v40, %v6013_v50  ;;  %v5813_v38 = vrot.slane %v5811_v12, 3  ;;  %v5816_v20 = vrot.slane %v5814_v2, 4  ;;  %v6020_v58 = vshrl.u32 %v11138_v0, 16  ;;  %10486 = vmatmul.mubr.msk.bf16.gmra.mrb[84].mxu1 %vm727_vm1, %v5531_v16  ;;  %v7636_v2 = vld [vmem:[#allocation2 + $0x80] sm:$0xf8] }
 0xc15   : > { %10183 = vmatprep.subr.bf16.mxu0 %v10860_v59  ;;  %v5821_v36 = vrot.slane %v5819_v46, 3  ;;  %v5824_v57 = vrot.slane %v5822_v26, 4  ;;  %v6023_v8 = vshll.u32 %v11138_v0, 16  ;;  %v6028_v60 = vshrl.u32 %v5979_v34, 16  ;;  %8714 = vrot.lane.b32.xlu1 %v8323_v49, %s11502_s29  ;;  %v11144_v59 = vld [vmem:[#allocation2 + $0x30] sm:$0xf0] }
 0xc16   : > { %v6018_v23 = vsel %vm1781_vm4, %v6009_v42, %v6017_v4  ;;  %v5817_v55 = vor.u32 %v5816_v20, %v5813_v38  ;;  %v6022_v62 = vrot.slane %v6020_v58, 4  ;;  %v6031_v29 = vshll.u32 %v5979_v34, 16  ;;  %v11145_v46 = vld [vmem:[%s11818_s18 + $0xc0] sm:$0xff]  ;;  %v11146_v26 = vld [vmem:[%s11818_s18 + $0xc8] sm:$0xff]  ;;  %v11147_v0 = vld [vmem:[%s11818_s18 + $0xd0] sm:$0xff] }
 0xc17   : > { %v6911_v41 = vsel %vm576_vm2, %v6018_v23, %v6828_v54  ;;  %v5825_v31 = vor.u32 %v5824_v57, %v5821_v36  ;;  %v6025_v30 = vrot.slane %v6023_v8, 5  ;;  %v6030_v19 = vrot.slane %v6028_v60, 4  ;;  %8726 = vrot.lane.b32.xlu0 %v14970_v22, %s11502_s29  ;;  %v15019_v51 = vpop.permute.xlu1 %6815  ;;  %v10868_v22 = vld [vmem:[%s15731_s11 + $0x10] sm:$0xff]   ;;  %v11148_v58 = vld [vmem:[%s11818_s18 + $0xd8] sm:$0xff]  ;;  %v10878_v8 = vld [vmem:[%s15731_s11 + $0x60] sm:$0xff]  }
 0xc18   : > { %7353 = vmatprep.mubr.bf16.mxu0 %v6911_v41  ;;  %v6033_v56 = vrot.slane %v6031_v29, 5  ;;  %v5532_v25 = vpack.c.bf16 %v11140_v3, %v11139_v44  ;;  %v5533_v13 = vpack.c.bf16 %v11142_v63, %v11141_v47  ;;  %v5828_v21 = vshrl.u32 %v5781_v7, 16  ;;  %10184 = vmatpush3.bf16.msra.mxu0 %v10862_v32  ;;  %v5783_v57 = vld [vmem:[#allocation2 + $0x30] sm:$0xf8] }
 0xc19   : > { %v5826_v48 = vsel %vm635_vm6, %v5817_v55, %v5825_v31  ;;  %v6026_v24 = vor.u32 %v6025_v30, %v6022_v62  ;;  %v5831_v28 = vshll.u32 %v5781_v7, 16  ;;  %v5836_v14 = vshrl.u32 %v11143_v61, 16  ;;  %10185 = vmatprep.subr.bf16.mxu0 %v10866_v35  ;;  %v11149_v35 = vld [vmem:[#allocation2 + $0x88] sm:$0xf] }
 0xc1a   : > { %v6879_v10 = vsel %vm576_vm2, %v5826_v48, %v14975_v5  ;;  %v6034_v43 = vor.u32 %v6033_v56, %v6030_v19  ;;  %10489 = vmatprep.mubr.msk.bf16.mxu1 %vm727_vm1, %v5532_v25  ;;  %v5830_v27 = vrot.slane %v5828_v21, 3  ;;  %v5839_v39 = vshll.u32 %v11143_v61, 16  ;;  %v10880_v25 = vld [vmem:[%s15731_s11 + $0x20] sm:$0xff]  }
 0xc1b   : > { %7354 = vmatmul.mubr.bf16.gmra.mrb[52].mxu0 %v6879_v10  ;;  %v5833_v33 = vrot.slane %v5831_v28, 4  ;;  %v5838_v50 = vrot.slane %v5836_v14, 3  ;;  %v6037_v40 = vshrl.u32 %v11144_v59, 16  ;;  %v6040_v1 = vshll.u32 %v11144_v59, 16  ;;  %8728 = vrot.lane.b32.xlu0 %v14988_v11, %s11502_s29  ;;  %v15034_v34 = vpop.permute.xlu1 %6817  ;;  %v10874_v11 = vld [vmem:[%s15731_s11 + $0x18] sm:$0xff]  }
 0xc1c   : > { %v6035_v5 = vsel %vm1781_vm4, %v6026_v24, %v6034_v43  ;;  %v5841_v15 = vrot.slane %v5839_v39, 4  ;;  %v6045_v16 = vshrl.u32 %v5980_v37, 16  ;;  %v6048_v12 = vshll.u32 %v5980_v37, 16  ;;  %10490 = vmatmul.mubr.msk.bf16.gmra.mrb[88].mxu1 %vm727_vm1, %v5533_v13  ;;  %10186 = vmatpush3.bf16.msra.mxu0 %v10868_v22  ;;  %v10882_v24 = vld [vmem:[%s15731_s11 + $0x68] sm:$0xff]   ;;  %v11150_v14 = vld [vmem:[#allocation2 + $0x38] sm:$0xf] }
 0xc1d   : > { %v5834_v49 = vor.u32 %v5833_v33, %v5830_v27  ;;  %v6039_v42 = vrot.slane %v6037_v40, 4  ;;  %v6042_v18 = vrot.slane %v6040_v1, 5  ;;  %v5534_v54 = vpack.c.bf16 %v11146_v26, %v11145_v46  ;;  %v6830_v4 = vpop.permute.xlu0 %6829  ;;  %10187 = vmatprep.subr.bf16.mxu0 %v10872_v53  ;;  %v5981_v37 = vld [vmem:[#allocation2 + $0x48] sm:$0x1f]  ;;  %v11151_v39 = vld [vmem:[#allocation2 + $0x10] sm:$0xf0] }
 0xc1e   : > { %v5842_v38 = vor.u32 %v5841_v15, %v5838_v50  ;;  %v6047_v20 = vrot.slane %v6045_v16, 4  ;;  %v6050_v32 = vrot.slane %v6048_v12, 5  ;;  %v5535_v36 = vpack.c.bf16 %v11148_v58, %v11147_v0  ;;  %v11152_v59 = vld [vmem:[#allocation2 + $0x18] sm:$0xf]  ;;  %v11153_v1 = vld [vmem:[#allocation2 + $0x40] sm:$0xf0] }
 0xc1f   : > { %v6915_v60 = vsel %vm576_vm2, %v6035_v5, %v6830_v4  ;;  %v6043_v7 = vor.u32 %v6042_v18, %v6039_v42  ;;  %10493 = vmatprep.mubr.msk.bf16.mxu1 %vm727_vm1, %v5534_v54  ;;  %v7653_v23 = vshrl.u32 %v7636_v2, 16  ;;  %v7656_v55 = vshll.u32 %v7636_v2, 16  ;;  %v15050_v30 = vpop.permute.xlu1 %6819  ;;  %v10883_v16 = vld [vmem:[%s15731_s11 + $0x28] sm:$0xff]   ;;  %v5785_v46 = vld [vmem:[#allocation2 + $0x40] sm:$0xf8]  ;;  %v10884_v26 = vld [vmem:[%s15731_s11 + $0x70] sm:$0xff]  }
 0xc20   : > { %7361 = vmatprep.mubr.bf16.mxu0 %v6915_v60  ;;  %v5843_v62 = vsel %vm635_vm6, %v5834_v49, %v5842_v38  ;;  %v6051_v29 = vor.u32 %v6050_v32, %v6047_v20  ;;  %v7661_v41 = vshrl.u32 %v11149_v35, 16  ;;  %v7664_v31 = vshll.u32 %v11149_v35, 16  ;;  %10188 = vmatpush3.bf16.msra.mxu0 %v10874_v11  ;;  %v11154_v0 = vld [vmem:[%s11818_s18 + $0xe0] sm:$0xff]  ;;  %v11155_v58 = vld [vmem:[%s11818_s18 + $0xe8] sm:$0xff]  ;;  %v10885_v35 = vld [vmem:[%s15731_s11 + $0x30] sm:$0xff]  }
 0xc21   : > { %v6883_v19 = vsel %vm576_vm2, %v5843_v62, %v14997_v6  ;;  %v7655_v56 = vrot.slane %v7653_v23, 3  ;;  %v7658_v44 = vrot.slane %v7656_v55, 4  ;;  %v5845_v3 = vshrl.u32 %v5783_v57, 16  ;;  %v6832_v47 = vpop.permute.xlu0 %6831  ;;  %10189 = vmatprep.subr.bf16.mxu0 %v10878_v8  ;;  %v11157_v8 = vld [vmem:[%s11818_s18 + $0xf8] sm:$0xff] }
 0xc22   : > { %v6052_v63 = vsel %vm1781_vm4, %v6043_v7, %v6051_v29  ;;  %v7663_v13 = vrot.slane %v7661_v41, 3  ;;  %v7666_v21 = vrot.slane %v7664_v31, 4  ;;  %v5848_v48 = vshll.u32 %v5783_v57, 16  ;;  %v11156_v57 = vld [vmem:[%s11818_s18 + $0xf0] sm:$0xff]  ;;  %s11413_s18 = sshll.u32 %s11504_s16, 4  ;;  %s11414_s18 = int_to_ptr.vmem [resolvable:$false] %s11413_s18 }
 0xc23   : > { %7362 = vmatmul.mubr.bf16.gmra.mrb[56].mxu0 %v6883_v19  ;;  %v6919_v6 = vsel %vm576_vm2, %v6052_v63, %v6832_v47  ;;  %v7659_v28 = vor.u32 %v7658_v44, %v7655_v56  ;;  %v5847_v61 = vrot.slane %v5845_v3, 3  ;;  %v5853_v22 = vshrl.u32 %v11150_v14, 16  ;;  %v15062_v33 = vpop.permute.xlu1 %6821  ;;  %v11158_v19 = vld [vmem:[#allocation2 + $0x48] sm:$0xf]  ;;  %v5982_v3 = vld [vmem:[#allocation2 + $0x58] sm:$0x1f]  ;;  %p11416_p5 = scmp.lt.s32.totalorder %s15670_s24, %s11414_s18 }
 0xc24   : > { %7369 = vmatprep.mubr.bf16.mxu0 %v6919_v6  ;;  %v7667_v10 = vor.u32 %v7666_v21, %v7663_v13  ;;  %v5850_v43 = vrot.slane %v5848_v48, 4  ;;  %v5856_v27 = vshll.u32 %v11150_v14, 16  ;;  %v6297_v53 = vrot.slane %v11151_v39, 4  ;;  %10494 = vmatmul.mubr.msk.bf16.gmra.mrb[92].mxu1 %vm727_vm1, %v5535_v36  ;;  %v10886_v63 = vld [vmem:[%s15731_s11 + $0x78] sm:$0xff]  }
 0xc25   : > { %v5855_v50 = vrot.slane %v5853_v22, 3  ;;  %v6298_v40 = vrot.slane %v11152_v59, 4  ;;  %v6054_v5 = vshrl.u32 %v11153_v1, 16  ;;  %v6057_v15 = vshll.u32 %v11153_v1, 16  ;;  %10190 = vmatpush3.bf16.msra.mxu0 %v10880_v25  ;;  %v6834_v12 = vpop.permute.xlu0 %6833  ;;  %v11159_v25 = vld [vmem:[#allocation2 + $0x50] sm:$0xf0] }
 0xc26   : > { %v7668_v2 = vsel %vm635_vm6, %v7659_v28, %v7667_v10  ;;  %v5851_v49 = vor.u32 %v5850_v43, %v5847_v61  ;;  %v5858_v42 = vrot.slane %v5856_v27, 4  ;;  %v6062_v18 = vshrl.u32 %v5981_v37, 16  ;;  %10191 = vmatprep.subr.bf16.mxu0 %v10882_v24  ;;  %v6465_v22 = vld [vmem:[#allocation2 + $0x20] sm:$0xf8] }
 0xc27   : > { %v15073_v54 = vsel %vm1748_vm3, %v6297_v53, %v6298_v40  ;;  %v6056_v11 = vrot.slane %v6054_v5, 4  ;;  %v6059_v4 = vrot.slane %v6057_v15, 5  ;;  %v6065_v38 = vshll.u32 %v5981_v37, 16  ;;  %v15079_v7 = vpop.permute.xlu1 %6823  ;;  %v10888_v5 = vld [vmem:[%s15731_s11 + $0xc0] sm:$0xff]  }
 0xc28   : > { %v5859_v20 = vor.u32 %v5858_v42, %v5855_v50  ;;  %v6064_v32 = vrot.slane %v6062_v18, 4  ;;  %v5536_v36 = vpack.c.bf16 %v11155_v58, %v11154_v0  ;;  %v5537_v60 = vpack.c.bf16 %v11157_v8, %v11156_v57  ;;  %v5787_v18 = vld [vmem:[#allocation2 + $0x50] sm:$0xf8] }
 0xc29   : > { %v6060_v23 = vor.u32 %v6059_v4, %v6056_v11  ;;  %v6067_v55 = vrot.slane %v6065_v38, 5  ;;  %v5862_v62 = vshrl.u32 %v5785_v46, 16  ;;  %v5865_v29 = vshll.u32 %v5785_v46, 16  ;;  %10192 = vmatpush3.bf16.msra.mxu0 %v10883_v16  ;;  %v15084_v41 = vpop.permute.xlu0 %6835 }
 0xc2a   : > { %v5860_v31 = vsel %vm635_vm6, %v5851_v49, %v5859_v20  ;;  %10497 = vmatprep.mubr.msk.bf16.mxu1 %vm727_vm1, %v5536_v36  ;;  %v5870_v56 = vshrl.u32 %v11158_v19, 16  ;;  %v5873_v44 = vshll.u32 %v11158_v19, 16  ;;  %v6071_v47 = vshrl.u32 %v11159_v25, 16  ;;  %10193 = vmatprep.subr.bf16.mxu0 %v10884_v26 }
 0xc2b   : > { %v6887_v13 = vsel %vm576_vm2, %v5860_v31, %v15019_v51  ;;  %v6068_v21 = vor.u32 %v6067_v55, %v6064_v32  ;;  %v5864_v48 = vrot.slane %v5862_v62, 3  ;;  %v5867_v24 = vrot.slane %v5865_v29, 4  ;;  %v8669_v37 = vpop.permute.xlu1 %8668  ;;  %v10887_v51 = vld [vmem:[%s15731_s11 + $0x38] sm:$0xff]  }
 0xc2c   : > { %7370 = vmatmul.mubr.bf16.gmra.mrb[60].mxu0 %v6887_v13  ;;  %v5872_v6 = vrot.slane %v5870_v56, 3  ;;  %v5875_v28 = vrot.slane %v5873_v44, 4  ;;  %v6073_v61 = vrot.slane %v6071_v47, 4  ;;  %v6074_v14 = vshll.u32 %v11159_v25, 16  ;;  %10498 = vmatmul.mubr.msk.bf16.gmra.mrb[96].mxu1 %vm727_vm1, %v5537_v60  ;;  %v11161_v29 = vld [vmem:[#allocation2 + $0x58] sm:$0xf] }
 0xc2d   : > { %v6069_v10 = vsel %vm1781_vm4, %v6060_v23, %v6068_v21  ;;  %v5868_v43 = vor.u32 %v5867_v24, %v5864_v48  ;;  %v6079_v27 = vshrl.u32 %v5982_v3, 16  ;;  %v6082_v39 = vshll.u32 %v5982_v3, 16  ;;  %10194 = vmatpush3.bf16.msra.mxu0 %v10885_v35  ;;  %v15098_v53 = vpop.permute.xlu0 %6837  ;;  %v6467_v3 = vld [vmem:[#allocation2 + $0x30] sm:$0xf8] }
 0xc2e   : > { %v15101_v50 = vsel %vm576_vm2, %v7668_v2, %v8669_v37  ;;  %v6923_v59 = vsel %vm576_vm2, %v6069_v10, %v6834_v12  ;;  %v5876_v40 = vor.u32 %v5875_v28, %v5872_v6  ;;  %v6076_v1 = vrot.slane %v6074_v14, 5  ;;  %10195 = vmatprep.subr.bf16.mxu0 %v10886_v63  ;;  %v11160_v2 = vld [vmem:[#allocation2 + $0x28] sm:$0xf]  ;;  %v11162_v63 = vld [vmem:[#allocation2 + $0x60] sm:$0xf0] }
 0xc2f   : > { %7377 = vmatprep.mubr.bf16.mxu0 %v6923_v59  ;;  %v6081_v15 = vrot.slane %v6079_v27, 4  ;;  %v6084_v16 = vrot.slane %v6082_v39, 5  ;;  %v6482_v49 = vshrl.u32 %v6465_v22, 16  ;;  %v6485_v42 = vshll.u32 %v6465_v22, 16  ;;  %v6842_v12 = vpop.permute.xlu1 %6841 }
 0xc30   : > { %v5877_v46 = vsel %vm635_vm6, %v5868_v43, %v5876_v40  ;;  %v6077_v26 = vor.u32 %v6076_v1, %v6073_v61  ;;  %v6490_v11 = vshrl.u32 %v11160_v2, 16  ;;  %v6493_v4 = vshll.u32 %v11160_v2, 16  ;;  %v11163_v1 = vld [vmem:[#allocation2 + $0x38] sm:$0xf] }
 0xc31   : > { %v6891_v38 = vsel %vm576_vm2, %v5877_v46, %v15034_v34  ;;  %v6085_v20 = vor.u32 %v6084_v16, %v6081_v15  ;;  %v6484_v32 = vrot.slane %v6482_v49, 3  ;;  %v6487_v0 = vrot.slane %v6485_v42, 4  ;;  %10196 = vmatpush3.bf16.msra.mxu0 %v10887_v51  ;;  %v15110_v58 = vpop.permute.xlu0 %6839  ;;  %v5983_v34 = vld [vmem:[#allocation2 + $0x68] sm:$0x1f]  ;;  %v5789_v16 = vld [vmem:[#allocation2 + $0x60] sm:$0xf8] }
 0xc32   : > { %v6939_v36 = vsel %vm576_vm2, %v15073_v54, %v6842_v12  ;;  %v6492_v57 = vrot.slane %v6490_v11, 3  ;;  %v6495_v8 = vrot.slane %v6493_v4, 4  ;;  %v5879_v60 = vshrl.u32 %v5787_v18, 16  ;;  %10245 = vmatprep.subr.bf16.mxu0 %v10888_v5 }
 0xc33   : > { %v6086_v23 = vsel %vm1781_vm4, %v6077_v26, %v6085_v20  ;;  %v6488_v55 = vor.u32 %v6487_v0, %v6484_v32  ;;  %v5882_v62 = vshll.u32 %v5787_v18, 16  ;;  %v5887_v35 = vshrl.u32 %v11161_v29, 16  ;;  %v15117_v54 = vpop.permute.xlu1 %8670  ;;  %v11164_v26 = vld [vmem:[#allocation2 + $0x20] sm:$0xf0]  ;;  %v10895_v20 = vld [vmem:[%s15731_s11 + $0x108] sm:$0xff]  }
 0xc34   : > { %7378 = vmatmul.mubr.bf16.gmra.mrb[64].mxu0 %v6891_v38  ;;  %v6927_v31 = vsel %vm576_vm2, %v6086_v23, %v15084_v41  ;;  %v6496_v19 = vor.u32 %v6495_v8, %v6492_v57  ;;  %v5881_v56 = vrot.slane %v5879_v60, 3  ;;  %v5890_v44 = vshll.u32 %v11161_v29, 16  ;;  %v11165_v57 = vld [vmem:[#allocation2 + $0x28] sm:$0xf] }
 0xc35   : > { %7385 = vmatprep.mubr.bf16.mxu0 %v6927_v31  ;;  %v5884_v25 = vrot.slane %v5882_v62, 4  ;;  %v5889_v47 = vrot.slane %v5887_v35, 3  ;;  %v6088_v13 = vshrl.u32 %v11162_v63, 16  ;;  %v6091_v21 = vshll.u32 %v11162_v63, 16  ;;  %v15119_v48 = vpop.permute.xlu0 %8684  ;;  %v11166_v29 = vld [vmem:[#allocation2 + $0x68] sm:$0xf] }
 0xc36   : > { %v6497_v24 = vsel %vm635_vm6, %v6488_v55, %v6496_v19  ;;  %v5892_v6 = vrot.slane %v5890_v44, 4  ;;  %v6096_v28 = vshrl.u32 %v5983_v34, 16  ;;  %v6099_v61 = vshll.u32 %v5983_v34, 16  ;;  %v5984_v34 = vld [vmem:[#allocation2 + $0x78] sm:$0x1f] }
 0xc37   : > { %v5885_v41 = vor.u32 %v5884_v25, %v5881_v56  ;;  %v6090_v14 = vrot.slane %v6088_v13, 4  ;;  %v6093_v22 = vrot.slane %v6091_v21, 5  ;;  %v6499_v37 = vshrl.u32 %v6467_v3, 16  ;;  %v6844_v51 = vpop.permute.xlu1 %6843 }
 0xc38   : > { %v5893_v10 = vor.u32 %v5892_v6, %v5889_v47  ;;  %v6098_v43 = vrot.slane %v6096_v28, 4  ;;  %v6101_v27 = vrot.slane %v6099_v61, 5  ;;  %v6502_v39 = vshll.u32 %v6467_v3, 16  ;;  %v11167_v3 = vld [vmem:[#allocation2 + $0x70] sm:$0xf0]  ;;  %v11168_v47 = vld [vmem:[%s15731_s11 + $0x100] sm:$0xff]  }
 0xc39   : > { %v6094_v59 = vor.u32 %v6093_v22, %v6090_v14  ;;  %v6501_v40 = vrot.slane %v6499_v37, 3  ;;  %v6507_v5 = vshrl.u32 %v11163_v1, 16  ;;  %v6510_v15 = vshll.u32 %v11163_v1, 16  ;;  %v6858_v49 = vpop.permute.xlu0 %6857 }
 0xc3a   : > { %v5894_v42 = vsel %vm635_vm6, %v5885_v41, %v5893_v10  ;;  %v6102_v18 = vor.u32 %v6101_v27, %v6098_v43  ;;  %v6504_v46 = vrot.slane %v6502_v39, 4  ;;  %v6300_v2 = vrot.slane %v11164_v26, 4 }
 0xc3b   : > { %v6971_v11 = vsel %vm576_vm2, %v6497_v24, %v6858_v49  ;;  %v6895_v4 = vsel %vm576_vm2, %v5894_v42, %v15050_v30  ;;  %v6509_v12 = vrot.slane %v6507_v5, 3  ;;  %v6512_v38 = vrot.slane %v6510_v15, 4  ;;  %v15130_v23 = vpop.permute.xlu1 %8672  ;;  %v10898_v24 = vld [vmem:[%s15731_s11 + $0x110] sm:$0xff]  }
 0xc3c   : > { %7442 = vmatprep.mubr.bf16.mxu1 %v6971_v11  ;;  %7386 = vmatmul.mubr.bf16.gmra.mrb[68].mxu0 %v6895_v4  ;;  %v6103_v32 = vsel %vm1781_vm4, %v6094_v59, %v6102_v18  ;;  %v6505_v0 = vor.u32 %v6504_v46, %v6501_v40  ;;  %v6301_v8 = vrot.slane %v11165_v57, 4  ;;  %v5896_v60 = vshrl.u32 %v5789_v16, 16  ;;  %v11169_v40 = vld [vmem:[#allocation2 + $0x48] sm:$0xf]  ;;  %v5791_v42 = vld [vmem:[#allocation2 + $0x70] sm:$0xf8] }
 0xc3d   : > { %7443 = vmatmul.mubr.bf16.vlgmr.msra.gmra.mrb[100].mxu1 %v6939_v36  ;;  %v6931_v30 = vsel %vm576_vm2, %v6103_v32, %v15098_v53  ;;  %v6513_v55 = vor.u32 %v6512_v38, %v6509_v12  ;;  %v5899_v62 = vshll.u32 %v5789_v16, 16  ;;  %v5904_v35 = vshrl.u32 %v11166_v29, 16  ;;  %v15134_v31 = vpop.permute.xlu0 %8686  ;;  %v6469_v36 = vld [vmem:[#allocation2 + $0x40] sm:$0xf8]  ;;  %v10900_v18 = vld [vmem:[%s15731_s11 + $0x118] sm:$0xff]  }
 0xc3e   : > { %7393 = vmatprep.mubr.bf16.mxu0 %v6931_v30  ;;  %v6302_v19 = vsel %vm1748_vm3, %v6300_v2, %v6301_v8  ;;  %v5898_v56 = vrot.slane %v5896_v60, 3  ;;  %v5907_v44 = vshll.u32 %v11166_v29, 16  ;;  %v6105_v25 = vshrl.u32 %v11167_v3, 16  ;;  %10502 = vmatpush3.bf16.msra.mxu1 %v11168_v47  ;;  %v11170_v32 = vld [vmem:[#allocation2 + $0x30] sm:$0xf0] }
 0xc3f   : > { %v6514_v53 = vsel %vm635_vm6, %v6505_v0, %v6513_v55  ;;  %v6943_v63 = vsel %vm576_vm2, %v6302_v19, %v6844_v51  ;;  %v5901_v13 = vrot.slane %v5899_v62, 4  ;;  %v5906_v21 = vrot.slane %v5904_v35, 3  ;;  %10503 = vmatprep.subr.bf16.mxu1 %v10895_v20  ;;  %v6846_v14 = vpop.permute.xlu1 %6845  ;;  %v11171_v60 = vld [vmem:[#allocation2 + $0x38] sm:$0xf] }
 0xc40   : > { %v5909_v6 = vrot.slane %v5907_v44, 4  ;;  %v6107_v28 = vrot.slane %v6105_v25, 4  ;;  %v6108_v61 = vshll.u32 %v11167_v3, 16  ;;  %v6113_v41 = vshrl.u32 %v5984_v34, 16  ;;  %v11172_v35 = vld [vmem:[#allocation2 + $0x78] sm:$0xf] }
 0xc41   : > { %v5902_v22 = vor.u32 %v5901_v13, %v5898_v56  ;;  %v6116_v37 = vshll.u32 %v5984_v34, 16  ;;  %v6516_v10 = vshrl.u32 %v6469_v36, 16  ;;  %v6519_v43 = vshll.u32 %v6469_v36, 16  ;;  %v6860_v27 = vpop.permute.xlu0 %6859  ;;  %v7836_v56 = vld [vmem:[#allocation2 + $0x88] sm:$0x1f]  ;;  %v15160_v3 = vld [vmem:[%s15731_s11 + $0x100] sm:$0xff]  }
 0xc42   : > { %v5910_v39 = vor.u32 %v5909_v6, %v5906_v21  ;;  %v6110_v59 = vrot.slane %v6108_v61, 5  ;;  %v6115_v51 = vrot.slane %v6113_v41, 4  ;;  %v6524_v1 = vshrl.u32 %v11169_v40, 16  ;;  %10504 = vmatpush3.bf16.msra.mxu1 %v10895_v20 }
 0xc43   : > { %v6975_v5 = vsel %vm576_vm2, %v6514_v53, %v6860_v27  ;;  %v6118_v15 = vrot.slane %v6116_v37, 5  ;;  %v6518_v16 = vrot.slane %v6516_v10, 3  ;;  %v6521_v49 = vrot.slane %v6519_v43, 4  ;;  %10505 = vmatprep.subr.bf16.mxu1 %v10898_v24  ;;  %v15150_v4 = vpop.permute.xlu1 %8674 }
 0xc44   : > { %7450 = vmatprep.mubr.bf16.mxu1 %v6975_v5  ;;  %v5911_v46 = vsel %vm635_vm6, %v5902_v22, %v5910_v39  ;;  %v6111_v26 = vor.u32 %v6110_v59, %v6107_v28  ;;  %v6526_v2 = vrot.slane %v6524_v1, 3  ;;  %v6527_v11 = vshll.u32 %v11169_v40, 16  ;;  %v6471_v28 = vld [vmem:[#allocation2 + $0x50] sm:$0xf8] }
 0xc45   : > { %7451 = vmatmul.mubr.bf16.gmra.mrb[104].mxu1 %v6943_v63  ;;  %v6899_v12 = vsel %vm576_vm2, %v5911_v46, %v15062_v33  ;;  %v6119_v38 = vor.u32 %v6118_v15, %v6115_v51  ;;  %v6522_v20 = vor.u32 %v6521_v49, %v6518_v16  ;;  %v6303_v0 = vrot.slane %v11170_v32, 4  ;;  %v15154_v57 = vpop.permute.xlu0 %8688  ;;  %v11173_v33 = vld [vmem:[#allocation2 + $0x80] sm:$0xf0]  ;;  %v11174_v16 = vld [vmem:[#allocation2 + $0x58] sm:$0xf] }
 0xc46   : > { %7394 = vmatmul.mubr.bf16.gmra.mrb[72].mxu0 %v6899_v12  ;;  %v6529_v8 = vrot.slane %v6527_v11, 4  ;;  %v6304_v30 = vrot.slane %v11171_v60, 4  ;;  %v5913_v55 = vshrl.u32 %v5791_v42, 16  ;;  %v5916_v62 = vshll.u32 %v5791_v42, 16  ;;  %10506 = vmatpush3.bf16.msra.mxu1 %v10898_v24  ;;  %v7837_v12 = vld [vmem:[#allocation2 + $0x98] sm:$0x1f] }
 0xc47   : > { %v6120_v29 = vsel %vm1781_vm4, %v6111_v26, %v6119_v38  ;;  %v5921_v34 = vshrl.u32 %v11172_v35, 16  ;;  %v5924_v19 = vshll.u32 %v11172_v35, 16  ;;  %v7845_v44 = vshrl.u32 %v11173_v33, 16  ;;  %10507 = vmatprep.subr.bf16.mxu1 %v10900_v18  ;;  %v15165_v63 = vpop.permute.xlu1 %6847 }
 0xc48   : > { %v6935_v25 = vsel %vm576_vm2, %v6120_v29, %v15110_v58  ;;  %v6530_v36 = vor.u32 %v6529_v8, %v6526_v2  ;;  %v6305_v47 = vsel %vm1748_vm3, %v6303_v0, %v6304_v30  ;;  %v5915_v53 = vrot.slane %v5913_v55, 3  ;;  %v11175_v0 = vld [vmem:[#allocation2 + $0x40] sm:$0xf0]  ;;  %v11176_v30 = vld [vmem:[#allocation2 + $0x48] sm:$0xf] }
 0xc49   : > { %7401 = vmatprep.mubr.bf16.mxu0 %v6935_v25  ;;  %v6947_v13 = vsel %vm576_vm2, %v6305_v47, %v6846_v14  ;;  %v5918_v21 = vrot.slane %v5916_v62, 4  ;;  %v5923_v24 = vrot.slane %v5921_v34, 3  ;;  %v5926_v6 = vrot.slane %v5924_v19, 4  ;;  %v6862_v61 = vpop.permute.xlu0 %6861  ;;  %v11177_v62 = vld [vmem:[#allocation2 + $0x90] sm:$0xf0] }
 0xc4a   : > { %v6531_v41 = vsel %vm635_vm6, %v6522_v20, %v6530_v36  ;;  %v7847_v22 = vrot.slane %v7845_v44, 4  ;;  %v7848_v37 = vshll.u32 %v11173_v33, 16  ;;  %v7853_v10 = vshrl.u32 %v7836_v56, 16  ;;  %10508 = vmatpush3.bf16.msra.mxu1 %v10900_v18  ;;  %v8339_v44 = vld [vmem:[#allocation2 + $0x118] sm:$0xf] }
 0xc4b   : > { %v6979_v58 = vsel %vm576_vm2, %v6531_v41, %v6862_v61  ;;  %v5919_v43 = vor.u32 %v5918_v21, %v5915_v53  ;;  %v5927_v27 = vor.u32 %v5926_v6, %v5923_v24  ;;  %v7856_v39 = vshll.u32 %v7836_v56, 16  ;;  %10525 = vmatprep.subr.bf16.mxu1 %v15160_v3  ;;  %v15171_v1 = vpop.permute.xlu1 %8676  ;;  %v8483_v25 = vld [vmem:[#allocation2 + $0x110] sm:$0xf0]  ;;  %v6473_v24 = vld [vmem:[#allocation2 + $0x60] sm:$0xf8] }
 0xc4c   : > { %7458 = vmatprep.mubr.bf16.mxu1 %v6979_v58  ;;  %v7850_v14 = vrot.slane %v7848_v37, 5  ;;  %v7855_v59 = vrot.slane %v7853_v10, 4  ;;  %v6533_v51 = vshrl.u32 %v6471_v28, 16  ;;  %v6536_v40 = vshll.u32 %v6471_v28, 16  ;;  %v10889_v37 = vld [vmem:[%s15731_s11 + $0x80] sm:$0xff]  }
 0xc4d   : > { %7459 = vmatmul.mubr.bf16.gmra.mrb[108].mxu1 %v6947_v13  ;;  %v5928_v5 = vsel %vm635_vm6, %v5919_v43, %v5927_v27  ;;  %v7858_v15 = vrot.slane %v7856_v39, 5  ;;  %v6541_v49 = vshrl.u32 %v11174_v16, 16  ;;  %v6544_v42 = vshll.u32 %v11174_v16, 16  ;;  %v15174_v18 = vpop.permute.xlu0 %8690 }
 0xc4e   : > { %v6903_v46 = vsel %vm576_vm2, %v5928_v5, %v15079_v7  ;;  %v7851_v26 = vor.u32 %v7850_v14, %v7847_v22  ;;  %v6535_v2 = vrot.slane %v6533_v51, 3  ;;  %v6538_v11 = vrot.slane %v6536_v40, 4  ;;  %v7638_v40 = vld [vmem:[#allocation2 + $0x90] sm:$0xf8] }
 0xc4f   : > { %7402 = vmatmul.mubr.bf16.gmra.mrb[76].mxu0 %v6903_v46  ;;  %v7859_v38 = vor.u32 %v7858_v15, %v7855_v59  ;;  %v6543_v20 = vrot.slane %v6541_v49, 3  ;;  %v6546_v32 = vrot.slane %v6544_v42, 4  ;;  %v6306_v8 = vrot.slane %v11175_v0, 4  ;;  %v6850_v34 = vpop.permute.xlu1 %6849  ;;  %v11178_v59 = vld [vmem:[#allocation2 + $0x68] sm:$0xf] }
 0xc50   : > { %v6539_v60 = vor.u32 %v6538_v11, %v6535_v2  ;;  %v6307_v55 = vrot.slane %v11176_v30, 4  ;;  %v7862_v29 = vshrl.u32 %v11177_v62, 16  ;;  %v7865_v35 = vshll.u32 %v11177_v62, 16  ;;  %v11179_v49 = vld [vmem:[#allocation2 + $0x50] sm:$0xf0] }
 0xc51   : > { %v7860_v19 = vsel %vm1781_vm4, %v7851_v26, %v7859_v38  ;;  %v6547_v7 = vor.u32 %v6546_v32, %v6543_v20  ;;  %v7870_v56 = vshrl.u32 %v7837_v12, 16  ;;  %v7873_v33 = vshll.u32 %v7837_v12, 16  ;;  %v6864_v36 = vpop.permute.xlu0 %6863  ;;  %v11180_v46 = vld [vmem:[#allocation2 + $0x58] sm:$0xf] }
 0xc52   : > { %v8766_v47 = vsel %vm576_vm2, %v7860_v19, %v15119_v48  ;;  %v6308_v53 = vsel %vm1748_vm3, %v6306_v8, %v6307_v55  ;;  %v7864_v13 = vrot.slane %v7862_v29, 4  ;;  %v7867_v21 = vrot.slane %v7865_v35, 5  ;;  %v11181_v35 = vld [vmem:[#allocation2 + $0x98] sm:$0xf] }
 0xc53   : > { %9204 = vmatprep.mubr.bf16.mxu0 %v8766_v47  ;;  %v6548_v6 = vsel %vm635_vm6, %v6539_v60, %v6547_v7  ;;  %v6951_v28 = vsel %vm576_vm2, %v6308_v53, %v15165_v63  ;;  %v7872_v61 = vrot.slane %v7870_v56, 4  ;;  %v7875_v41 = vrot.slane %v7873_v33, 5  ;;  %v15189_v43 = vpop.permute.xlu1 %8678  ;;  %v10891_v63 = vld [vmem:[%s15731_s11 + $0xc8] sm:$0xff]  }
 0xc54   : > { %v6983_v22 = vsel %vm576_vm2, %v6548_v6, %v6864_v36  ;;  %v7868_v48 = vor.u32 %v7867_v21, %v7864_v13  ;;  %v8521_v10 = vrot.slane %v8483_v25, 4  ;;  %v8522_v58 = vrot.slane %v8339_v44, 4  ;;  %v10892_v60 = vld [vmem:[%s15731_s11 + $0x88] sm:$0xff]   ;;  %v11182_v25 = vld [vmem:[#allocation2 + $0xa0] sm:$0xf0] }
 0xc55   : > { %7466 = vmatprep.mubr.bf16.mxu1 %v6983_v22  ;;  %v7876_v27 = vor.u32 %v7875_v41, %v7872_v61  ;;  %v6550_v39 = vshrl.u32 %v6473_v24, 16  ;;  %v6553_v14 = vshll.u32 %v6473_v24, 16  ;;  %v6558_v51 = vshrl.u32 %v11178_v59, 16  ;;  %v15194_v5 = vpop.permute.xlu0 %8692  ;;  %v6475_v24 = vld [vmem:[#allocation2 + $0x70] sm:$0xf8] }
 0xc56   : > { %7467 = vmatmul.mubr.bf16.gmra.mrb[112].mxu1 %v6951_v28  ;;  %v8523_v15 = vsel %vm1748_vm3, %v8521_v10, %v8522_v58  ;;  %v6561_v16 = vshll.u32 %v11178_v59, 16  ;;  %v6309_v42 = vrot.slane %v11179_v49, 4  ;;  %v6310_v26 = vrot.slane %v11180_v46, 4  ;;  %v10894_v41 = vld [vmem:[%s15731_s11 + $0x90] sm:$0xff]  }
 0xc57   : > { %9205 = vmatmul.mubr.bf16.vlgmr.msra.gmra.mrb[80].mxu0 %v15101_v50  ;;  %v7877_v2 = vsel %vm1781_vm4, %v7868_v48, %v7876_v27  ;;  %8730 = vrot.lane.b32.xlu0 %v8523_v15, %s11502_s29  ;;  %v6552_v11 = vrot.slane %v6550_v39, 3  ;;  %v6555_v12 = vrot.slane %v6553_v14, 4  ;;  %v6560_v38 = vrot.slane %v6558_v51, 3  ;;  %v7838_v50 = vld [vmem:[#allocation2 + $0xa8] sm:$0x1f]  ;;  %v15206_v30 = vpop.permute.xlu1 %6851  ;;  %v10896_v27 = vld [vmem:[%s15731_s11 + $0xd8] sm:$0xff]  }
 0xc58   : > { %10246 = vmatpush3.bf16.msra.mxu0 %v10889_v37  ;;  %v8770_v20 = vsel %vm576_vm2, %v7877_v2, %v15134_v31  ;;  %v6563_v32 = vrot.slane %v6561_v16, 4  ;;  %v6311_v0 = vsel %vm1748_vm3, %v6309_v42, %v6310_v26  ;;  %v7670_v8 = vshrl.u32 %v7638_v40, 16  ;;  %v10893_v31 = vld [vmem:[%s15731_s11 + $0xd0] sm:$0xff]   ;;  %v11183_v15 = vld [vmem:[#allocation2 + $0x78] sm:$0xf] }
 0xc59   : > { %9212 = vmatprep.mubr.bf16.mxu0 %v8770_v20  ;;  %v6556_v55 = vor.u32 %v6555_v12, %v6552_v11  ;;  %v6955_v62 = vsel %vm576_vm2, %v6311_v0, %v6850_v34  ;;  %10247 = vmatprep.subr.bf16.mxu0 %v10891_v63  ;;  %v7673_v29 = vshll.u32 %v7638_v40, 16  ;;  %v7678_v19 = vshrl.u32 %v11181_v35, 16  ;;  %v6866_v7 = vpop.permute.xlu0 %6865  ;;  %v11184_v42 = vld [vmem:[#allocation2 + $0x60] sm:$0xf0]  ;;  %v10897_v20 = vld [vmem:[%s15731_s11 + $0x98] sm:$0xff]  }
 0xc5a   : > { %v6564_v56 = vor.u32 %v6563_v32, %v6560_v38  ;;  %v7672_v33 = vrot.slane %v7670_v8, 3  ;;  %v7681_v44 = vshll.u32 %v11181_v35, 16  ;;  %v7879_v36 = vshrl.u32 %v11182_v25, 16  ;;  %v7640_v26 = vld [vmem:[#allocation2 + $0xa0] sm:$0xf8] }
 0xc5b   : > { %v7675_v47 = vrot.slane %v7673_v29, 4  ;;  %v7680_v53 = vrot.slane %v7678_v19, 3  ;;  %v7882_v13 = vshll.u32 %v11182_v25, 16  ;;  %v7887_v21 = vshrl.u32 %v7838_v50, 16  ;;  %v15217_v37 = vpop.permute.xlu1 %8680 }
 0xc5c   : > { %v6565_v34 = vsel %vm635_vm6, %v6556_v55, %v6564_v56  ;;  %v7683_v6 = vrot.slane %v7681_v44, 4  ;;  %10248 = vmatpush3.bf16.msra.mxu0 %v10892_v60  ;;  %v7881_v28 = vrot.slane %v7879_v36, 4  ;;  %v7890_v61 = vshll.u32 %v7838_v50, 16  ;;  %v11185_v50 = vld [vmem:[#allocation2 + $0x68] sm:$0xf] }
 0xc5d   : > { %v6987_v22 = vsel %vm576_vm2, %v6565_v34, %v6866_v7  ;;  %v7676_v48 = vor.u32 %v7675_v47, %v7672_v33  ;;  %v7884_v10 = vrot.slane %v7882_v13, 5  ;;  %v7889_v58 = vrot.slane %v7887_v21, 4  ;;  %10249 = vmatprep.subr.bf16.mxu0 %v10893_v31  ;;  %v15222_v39 = vpop.permute.xlu0 %8694  ;;  %v11186_v44 = vld [vmem:[#allocation2 + $0xa8] sm:$0xf]  ;;  %v7839_v36 = vld [vmem:[#allocation2 + $0xb8] sm:$0x1f] }
 0xc5e   : > { %7474 = vmatprep.mubr.bf16.mxu1 %v6987_v22  ;;  %v7684_v14 = vor.u32 %v7683_v6, %v7680_v53  ;;  %v7892_v59 = vrot.slane %v7890_v61, 5  ;;  %v6567_v51 = vshrl.u32 %v6475_v24, 16  ;;  %v6570_v63 = vshll.u32 %v6475_v24, 16  ;;  %v6477_v24 = vld [vmem:[#allocation2 + $0x80] sm:$0xf8] }
 0xc5f   : > { %7475 = vmatmul.mubr.bf16.gmra.mrb[116].mxu1 %v6955_v62  ;;  %v7885_v40 = vor.u32 %v7884_v10, %v7881_v28  ;;  %v6575_v16 = vshrl.u32 %v11183_v15, 16  ;;  %v6578_v49 = vshll.u32 %v11183_v15, 16  ;;  %v6312_v46 = vrot.slane %v11184_v42, 4  ;;  %v15230_v0 = vpop.permute.xlu1 %6853  ;;  %v10899_v62 = vld [vmem:[%s15731_s11 + $0xe0] sm:$0xff]   ;;  %v11187_v61 = vld [vmem:[#allocation2 + $0xb0] sm:$0xf0] }
 0xc60   : > { %v7685_v2 = vsel %vm635_vm6, %v7676_v48, %v7684_v14  ;;  %v7893_v11 = vor.u32 %v7892_v59, %v7889_v58  ;;  %v6569_v12 = vrot.slane %v6567_v51, 3  ;;  %v6572_v38 = vrot.slane %v6570_v63, 4  ;;  %10250 = vmatpush3.bf16.msra.mxu0 %v10894_v41  ;;  %v10901_v34 = vld [vmem:[%s15731_s11 + $0xa0] sm:$0xff]   ;;  %v11188_v42 = vld [vmem:[#allocation2 + $0x88] sm:$0xf] }
 0xc61   : > { %v8738_v32 = vsel %vm576_vm2, %v7685_v2, %v15117_v54  ;;  %v6577_v8 = vrot.slane %v6575_v16, 3  ;;  %v6580_v60 = vrot.slane %v6578_v49, 4  ;;  %v6313_v55 = vrot.slane %v11185_v50, 4  ;;  %10251 = vmatprep.subr.bf16.mxu0 %v10896_v27  ;;  %v6868_v29 = vpop.permute.xlu0 %6867 }
 0xc62   : > { %9213 = vmatmul.mubr.bf16.gmra.mrb[84].mxu0 %v8738_v32  ;;  %v7894_v35 = vsel %vm1781_vm4, %v7885_v40, %v7893_v11  ;;  %v6573_v19 = vor.u32 %v6572_v38, %v6569_v12  ;;  %v7687_v31 = vshrl.u32 %v7640_v26, 16  ;;  %v7690_v7 = vshll.u32 %v7640_v26, 16  ;;  %v10903_v32 = vld [vmem:[%s15731_s11 + $0xa8] sm:$0xff]  }
 0xc63   : > { %v8774_v54 = vsel %vm576_vm2, %v7894_v35, %v15154_v57  ;;  %v6581_v56 = vor.u32 %v6580_v60, %v6577_v8  ;;  %v6314_v33 = vsel %vm1748_vm3, %v6312_v46, %v6313_v55  ;;  %v7695_v25 = vshrl.u32 %v11186_v44, 16  ;;  %v15245_v6 = vpop.permute.xlu1 %8682  ;;  %v11189_v55 = vld [vmem:[#allocation2 + $0x70] sm:$0xf0] }
 0xc64   : > { %9220 = vmatprep.mubr.bf16.mxu0 %v8774_v54  ;;  %v6959_v47 = vsel %vm576_vm2, %v6314_v33, %v15206_v30  ;;  %v7689_v53 = vrot.slane %v7687_v31, 3  ;;  %v7692_v13 = vrot.slane %v7690_v7, 4  ;;  %v7698_v21 = vshll.u32 %v11186_v44, 16  ;;  %10252 = vmatpush3.bf16.msra.mxu0 %v10897_v20  ;;  %v10902_v30 = vld [vmem:[%s15731_s11 + $0xe8] sm:$0xff]   ;;  %v7642_v20 = vld [vmem:[#allocation2 + $0xb0] sm:$0xf8] }
 0xc65   : > { %v6582_v57 = vsel %vm635_vm6, %v6573_v19, %v6581_v56  ;;  %v7697_v28 = vrot.slane %v7695_v25, 3  ;;  %v7896_v41 = vshrl.u32 %v11187_v61, 16  ;;  %v7899_v22 = vshll.u32 %v11187_v61, 16  ;;  %10253 = vmatprep.subr.bf16.mxu0 %v10899_v62  ;;  %v15251_v10 = vpop.permute.xlu0 %8696  ;;  %v11190_v7 = vld [vmem:[#allocation2 + $0x78] sm:$0xf] }
 0xc66   : > { %v6991_v48 = vsel %vm576_vm2, %v6582_v57, %v6868_v29  ;;  %v7693_v58 = vor.u32 %v7692_v13, %v7689_v53  ;;  %v7700_v27 = vrot.slane %v7698_v21, 4  ;;  %v7904_v14 = vshrl.u32 %v7839_v36, 16  ;;  %v10904_v29 = vld [vmem:[%s15731_s11 + $0xf0] sm:$0xff]  }
 0xc67   : > { %7482 = vmatprep.mubr.bf16.mxu1 %v6991_v48  ;;  %v7898_v59 = vrot.slane %v7896_v41, 4  ;;  %v7901_v51 = vrot.slane %v7899_v22, 5  ;;  %v7907_v63 = vshll.u32 %v7839_v36, 16  ;;  %v6584_v40 = vshrl.u32 %v6477_v24, 16  ;;  %v15253_v26 = vpop.permute.xlu1 %6855  ;;  %v11191_v44 = vld [vmem:[#allocation2 + $0x90] sm:$0xf0] }
 0xc68   : > { %7483 = vmatmul.mubr.bf16.gmra.mrb[120].mxu1 %v6959_v47  ;;  %v7701_v15 = vor.u32 %v7700_v27, %v7697_v28  ;;  %v7906_v16 = vrot.slane %v7904_v14, 4  ;;  %v6587_v49 = vshll.u32 %v6477_v24, 16  ;;  %v6592_v46 = vshrl.u32 %v11188_v42, 16  ;;  %10254 = vmatpush3.bf16.msra.mxu0 %v10901_v34  ;;  %v11192_v36 = vld [vmem:[#allocation2 + $0x98] sm:$0xf] }
 0xc69   : > { %v7902_v2 = vor.u32 %v7901_v51, %v7898_v59  ;;  %v7909_v11 = vrot.slane %v7907_v63, 5  ;;  %v6586_v12 = vrot.slane %v6584_v40, 3  ;;  %v6595_v38 = vshll.u32 %v11188_v42, 16  ;;  %10255 = vmatprep.subr.bf16.mxu0 %v10902_v30  ;;  %v6870_v56 = vpop.permute.xlu0 %6869  ;;  %v7840_v30 = vld [vmem:[#allocation2 + $0xc8] sm:$0x1f]  ;;  %v10907_v48 = vld [vmem:[%s15731_s11 + $0xf8] sm:$0xff]  }
 0xc6a   : > { %v7702_v8 = vsel %vm635_vm6, %v7693_v58, %v7701_v15  ;;  %v6589_v60 = vrot.slane %v6587_v49, 4  ;;  %v6594_v50 = vrot.slane %v6592_v46, 3  ;;  %v6315_v62 = vrot.slane %v11189_v55, 4  ;;  %v6479_v51 = vld [vmem:[#allocation2 + $0x90] sm:$0xf8] }
 0xc6b   : > { %v8742_v35 = vsel %vm576_vm2, %v7702_v8, %v15130_v23  ;;  %v7910_v19 = vor.u32 %v7909_v11, %v7906_v16  ;;  %v6597_v31 = vrot.slane %v6595_v38, 4  ;;  %v6316_v54 = vrot.slane %v11190_v7, 4  ;;  %v8701_v34 = vpop.permute.xlu1 %8700  ;;  %v10905_v23 = vld [vmem:[%s15731_s11 + $0xb0] sm:$0xff]   ;;  %v11194_v40 = vld [vmem:[#allocation2 + $0xc0] sm:$0xf0]  ;;  %v10908_v11 = vld [vmem:[%s15731_s11 + $0xb8] sm:$0xff]  }
 0xc6c   : > { %9221 = vmatmul.mubr.bf16.gmra.mrb[88].mxu0 %v8742_v35  ;;  %v6590_v33 = vor.u32 %v6589_v60, %v6586_v12  ;;  %v8156_v25 = vrot.slane %v11191_v44, 4  ;;  %v8157_v47 = vrot.slane %v11192_v36, 4  ;;  %v7704_v53 = vshrl.u32 %v7642_v20, 16  ;;  %v11196_v44 = vld [vmem:[#allocation2 + $0x80] sm:$0xf0] }
 0xc6d   : > { %v7911_v13 = vsel %vm1781_vm4, %v7902_v2, %v7910_v19  ;;  %v6598_v21 = vor.u32 %v6597_v31, %v6594_v50  ;;  %v6317_v24 = vsel %vm1748_vm3, %v6315_v62, %v6316_v54  ;;  %v7707_v57 = vshll.u32 %v7642_v20, 16  ;;  %10256 = vmatpush3.bf16.msra.mxu0 %v10903_v32  ;;  %v15285_v12 = vpop.permute.xlu0 %8698  ;;  %v11195_v62 = vld [vmem:[#allocation2 + $0x98] sm:$0xf] }
 0xc6e   : > { %v8778_v28 = vsel %vm576_vm2, %v7911_v13, %v15174_v18  ;;  %v6963_v61 = vsel %vm576_vm2, %v6317_v24, %v15230_v0  ;;  %v8158_v41 = vsel %vm1748_vm3, %v8156_v25, %v8157_v47  ;;  %v7706_v22 = vrot.slane %v7704_v53, 3  ;;  %10257 = vmatprep.subr.bf16.mxu0 %v10904_v29  ;;  %v11193_v18 = vld [vmem:[#allocation2 + $0xb8] sm:$0xf]  ;;  %v11197_v53 = vld [vmem:[#allocation2 + $0x88] sm:$0xf] }
 0xc6f   : > { %9228 = vmatprep.mubr.bf16.mxu0 %v8778_v28  ;;  %v6599_v58 = vsel %vm635_vm6, %v6590_v33, %v6598_v21  ;;  %v15279_v27 = vsel %vm576_vm2, %v8158_v41, %v8701_v34  ;;  %v7709_v14 = vrot.slane %v7707_v57, 4  ;;  %v7712_v59 = vshrl.u32 %v11193_v18, 16  ;;  %v6665_v21 = vld [vmem:[#allocation2 + $0x28] sm:$0x1f]  ;;  %v11198_v24 = vld [vmem:[#allocation2 + $0x20] sm:$0xf0] }
 0xc70   : > { %v6995_v0 = vsel %vm576_vm2, %v6599_v58, %v6870_v56  ;;  %v7715_v63 = vshll.u32 %v11193_v18, 16  ;;  %v7913_v15 = vshrl.u32 %v11194_v40, 16  ;;  %v7916_v16 = vshll.u32 %v11194_v40, 16  ;;  %v7644_v41 = vld [vmem:[#allocation2 + $0xc0] sm:$0xf8] }
 0xc71   : > { %7490 = vmatprep.mubr.bf16.mxu1 %v6995_v0  ;;  %v7710_v49 = vor.u32 %v7709_v14, %v7706_v22  ;;  %v7714_v42 = vrot.slane %v7712_v59, 3  ;;  %v7921_v46 = vshrl.u32 %v7840_v30, 16  ;;  %v7924_v2 = vshll.u32 %v7840_v30, 16  ;;  %10258 = vmatpush3.bf16.msra.mxu0 %v10905_v23  ;;  %v6872_v22 = vpop.permute.xlu0 %6871 }
 0xc72   : > { %7491 = vmatmul.mubr.bf16.gmra.mrb[124].mxu1 %v6963_v61  ;;  %v7717_v38 = vrot.slane %v7715_v63, 4  ;;  %v7915_v20 = vrot.slane %v7913_v15, 4  ;;  %v7918_v32 = vrot.slane %v7916_v16, 5  ;;  %v6601_v8 = vshrl.u32 %v6479_v51, 16  ;;  %10259 = vmatprep.subr.bf16.mxu0 %v10907_v48  ;;  %v11199_v15 = vld [vmem:[#allocation2 + $0xc8] sm:$0xf] }
 0xc73   : > { %v7923_v60 = vrot.slane %v7921_v46, 4  ;;  %v7926_v50 = vrot.slane %v7924_v2, 5  ;;  %v6604_v55 = vshll.u32 %v6479_v51, 16  ;;  %v6609_v29 = vshrl.u32 %v11195_v62, 16 }
 0xc74   : > { %v7718_v35 = vor.u32 %v7717_v38, %v7714_v42  ;;  %v7919_v19 = vor.u32 %v7918_v32, %v7915_v20  ;;  %v6603_v31 = vrot.slane %v6601_v8, 3  ;;  %v6612_v7 = vshll.u32 %v11195_v62, 16  ;;  %v11200_v8 = vld [vmem:[#allocation2 + $0xd0] sm:$0xf0]  ;;  %v6666_v62 = vld [vmem:[#allocation2 + $0x38] sm:$0x1f] }
 0xc75   : > { %v7927_v54 = vor.u32 %v7926_v50, %v7923_v60  ;;  %v6606_v56 = vrot.slane %v6604_v55, 4  ;;  %v6611_v33 = vrot.slane %v6609_v29, 3  ;;  %v6318_v25 = vrot.slane %v11196_v44, 4  ;;  %10260 = vmatpush3.bf16.msra.mxu0 %v10908_v11 }
 0xc76   : > { %v7719_v36 = vsel %vm635_vm6, %v7710_v49, %v7718_v35  ;;  %v6614_v47 = vrot.slane %v6612_v7, 4  ;;  %v6319_v13 = vrot.slane %v11197_v53, 4  ;;  %v6674_v34 = vshrl.u32 %v11198_v24, 16  ;;  %v7841_v49 = vld [vmem:[#allocation2 + $0xd8] sm:$0x1f] }
 0xc77   : > { %v8746_v57 = vsel %vm576_vm2, %v7719_v36, %v15150_v4  ;;  %v7928_v23 = vsel %vm1781_vm4, %v7919_v19, %v7927_v54  ;;  %v6607_v28 = vor.u32 %v6606_v56, %v6603_v31  ;;  %v6677_v61 = vshll.u32 %v11198_v24, 16  ;;  %v6667_v7 = vld [vmem:[#allocation2 + $0x48] sm:$0x1f] }
 0xc78   : > { %9229 = vmatmul.mubr.bf16.gmra.mrb[92].mxu0 %v8746_v57  ;;  %v8782_v30 = vsel %vm576_vm2, %v7928_v23, %v15194_v5  ;;  %v6615_v48 = vor.u32 %v6614_v47, %v6611_v33  ;;  %v6320_v58 = vsel %vm1748_vm3, %v6318_v25, %v6319_v13  ;;  %v6676_v14 = vrot.slane %v6674_v34, 4  ;;  %v7646_v23 = vld [vmem:[#allocation2 + $0xd0] sm:$0xf8] }
 0xc79   : > { %9236 = vmatprep.mubr.bf16.mxu0 %v8782_v30  ;;  %v6967_v18 = vsel %vm576_vm2, %v6320_v58, %v15253_v26  ;;  %v6679_v59 = vrot.slane %v6677_v61, 5  ;;  %v6682_v4 = vshrl.u32 %v6665_v21, 16  ;;  %v6685_v51 = vshll.u32 %v6665_v21, 16  ;;  %v11201_v21 = vld [vmem:[#allocation2 + $0x40] sm:$0xf0] }
 0xc7a   : > { %v6616_v0 = vsel %vm635_vm6, %v6607_v28, %v6615_v48  ;;  %v7721_v63 = vshrl.u32 %v7644_v41, 16  ;;  %v7724_v40 = vshll.u32 %v7644_v41, 16  ;;  %v7729_v16 = vshrl.u32 %v11199_v15, 16 }
 0xc7b   : > { %v6999_v5 = vsel %vm576_vm2, %v6616_v0, %v6872_v22  ;;  %v6680_v42 = vor.u32 %v6679_v59, %v6676_v14  ;;  %v6684_v46 = vrot.slane %v6682_v4, 4  ;;  %v6687_v2 = vrot.slane %v6685_v51, 5 }
 0xc7c   : > { %7498 = vmatprep.mubr.bf16.mxu1 %v6999_v5  ;;  %v7723_v11 = vrot.slane %v7721_v63, 3  ;;  %v7726_v38 = vrot.slane %v7724_v40, 4  ;;  %v7731_v20 = vrot.slane %v7729_v16, 3  ;;  %v7732_v26 = vshll.u32 %v11199_v15, 16  ;;  %v11202_v63 = vld [vmem:[#allocation2 + $0xd8] sm:$0xf] }
 0xc7d   : > { %7499 = vmatmul.mubr.bf16.gmra.mrb[128].mxu1 %v6967_v18  ;;  %v6688_v32 = vor.u32 %v6687_v2, %v6684_v46  ;;  %v7930_v60 = vshrl.u32 %v11200_v8, 16  ;;  %v7933_v50 = vshll.u32 %v11200_v8, 16  ;;  %v7938_v55 = vshrl.u32 %v7841_v49, 16  ;;  %v7842_v15 = vld [vmem:[#allocation2 + $0xe8] sm:$0x1f] }
 0xc7e   : > { %v7727_v29 = vor.u32 %v7726_v38, %v7723_v11  ;;  %v7734_v35 = vrot.slane %v7732_v26, 4  ;;  %v7941_v19 = vshll.u32 %v7841_v49, 16  ;;  %v6697_v31 = vor.u32 %v14822_v52, %v14820_v17 }
 0xc7f   : > { %v6689_v54 = vsel %vm1781_vm4, %v6680_v42, %v6688_v32  ;;  %v7932_v56 = vrot.slane %v7930_v60, 4  ;;  %v7935_v33 = vrot.slane %v7933_v50, 5  ;;  %v7940_v44 = vrot.slane %v7938_v55, 4  ;;  %v6668_v60 = vld [vmem:[#allocation2 + $0x58] sm:$0x1f] }
 0xc80   : > { %10509 = vmatprep.mubr.msk.bf16.mxu1 %vm576_vm2, %v6689_v54  ;;  %v7735_v25 = vor.u32 %v7734_v35, %v7731_v20  ;;  %v7943_v36 = vrot.slane %v7941_v19, 5  ;;  %v6699_v47 = vshrl.u32 %v6666_v62, 16  ;;  %v6702_v53 = vshll.u32 %v6666_v62, 16  ;;  %v10910_v19 = vld [vmem:[%s15731_s11 + $0x110] sm:$0xff]  }
 0xc81   : > { %v7936_v13 = vor.u32 %v7935_v33, %v7932_v56  ;;  %v6708_v24 = vshrl.u32 %v11201_v21, 16  ;;  %v6711_v34 = vshll.u32 %v11201_v21, 16  ;;  %v6716_v57 = vshrl.u32 %v6667_v7, 16  ;;  %v11205_v21 = vld [vmem:[#allocation2 + $0x60] sm:$0xf0] }
 0xc82   : > { %v7736_v17 = vsel %vm635_vm6, %v7727_v29, %v7735_v25  ;;  %v7944_v52 = vor.u32 %v7943_v36, %v7940_v44  ;;  %v6701_v28 = vrot.slane %v6699_v47, 4  ;;  %v6704_v61 = vrot.slane %v6702_v53, 5  ;;  %v11204_v29 = vld [vmem:[#allocation2 + $0x50] sm:$0xf0]  ;;  %v6669_v36 = vld [vmem:[#allocation2 + $0x68] sm:$0x1f] }
 0xc83   : > { %v8750_v41 = vsel %vm576_vm2, %v7736_v17, %v15171_v1  ;;  %v6710_v22 = vrot.slane %v6708_v24, 4  ;;  %v6713_v30 = vrot.slane %v6711_v34, 5  ;;  %v6718_v48 = vrot.slane %v6716_v57, 4  ;;  %v10909_v1 = vld [vmem:[%s15731_s11 + $0x108] sm:$0xff]  }
 0xc84   : > { %9237 = vmatmul.mubr.bf16.gmra.mrb[96].mxu0 %v8750_v41  ;;  %v7945_v58 = vsel %vm1781_vm4, %v7936_v13, %v7944_v52  ;;  %v6705_v14 = vor.u32 %v6704_v61, %v6701_v28  ;;  %v6719_v18 = vshll.u32 %v6667_v7, 16  ;;  %v7738_v59 = vshrl.u32 %v7646_v23, 16  ;;  %v7648_v52 = vld [vmem:[#allocation2 + $0xe0] sm:$0xf8]  ;;  %v10911_v28 = vld [vmem:[%s15731_s11 + $0x118] sm:$0xff]  }
 0xc85   : > { %v8786_v4 = vsel %vm576_vm2, %v7945_v58, %v15222_v39  ;;  %v6714_v51 = vor.u32 %v6713_v30, %v6710_v22  ;;  %v7741_v0 = vshll.u32 %v7646_v23, 16  ;;  %v7746_v40 = vshrl.u32 %v11202_v63, 16  ;;  %v11203_v39 = vld [vmem:[#allocation2 + $0xe0] sm:$0xf0] }
 0xc86   : > { %9244 = vmatprep.mubr.bf16.mxu0 %v8786_v4  ;;  %v6706_v16 = vsel %vm1781_vm4, %v6697_v31, %v6705_v14  ;;  %v6721_v49 = vrot.slane %v6719_v18, 5  ;;  %v7740_v5 = vrot.slane %v7738_v59, 3  ;;  %v7749_v42 = vshll.u32 %v11202_v63, 16 }
 0xc87   : > { %10510 = vmatmul.mubr.msk.bf16.vlgmr.msra.gmra.mrb[68].mxu1 %vm576_vm2, %v6706_v16  ;;  %v7743_v46 = vrot.slane %v7741_v0, 4  ;;  %v7748_v2 = vrot.slane %v7746_v40, 3  ;;  %v7947_v11 = vshrl.u32 %v11203_v39, 16  ;;  %v7950_v38 = vshll.u32 %v11203_v39, 16  ;;  %v11206_v40 = vld [vmem:[#allocation2 + $0xe8] sm:$0xf] }
 0xc88   : > { %v6722_v20 = vor.u32 %v6721_v49, %v6718_v48  ;;  %v7751_v26 = vrot.slane %v7749_v42, 4  ;;  %v7955_v32 = vshrl.u32 %v7842_v15, 16  ;;  %v7958_v8 = vshll.u32 %v7842_v15, 16  ;;  %10526 = vmatpush3.bf16.msra.mxu1 %v15160_v3  ;;  %v7843_v16 = vld [vmem:[#allocation2 + $0xf8] sm:$0x1f] }
 0xc89   : > { %v7744_v50 = vor.u32 %v7743_v46, %v7740_v5  ;;  %v7949_v55 = vrot.slane %v7947_v11, 4  ;;  %v7952_v62 = vrot.slane %v7950_v38, 5  ;;  %v6725_v35 = vshrl.u32 %v11204_v29, 16  ;;  %10527 = vmatprep.subr.bf16.mxu1 %v10909_v1  ;;  %v11207_v42 = vld [vmem:[#allocation2 + $0xf0] sm:$0xf0] }
 0xc8a   : > { %v6723_v31 = vsel %vm1781_vm4, %v6714_v51, %v6722_v20  ;;  %v7752_v7 = vor.u32 %v7751_v26, %v7748_v2  ;;  %v7957_v54 = vrot.slane %v7955_v32, 4  ;;  %v7960_v56 = vrot.slane %v7958_v8, 5  ;;  %v6670_v20 = vld [vmem:[#allocation2 + $0x78] sm:$0x1f] }
 0xc8b   : > { %10513 = vmatprep.mubr.msk.bf16.mxu1 %vm576_vm2, %v6723_v31  ;;  %v7953_v33 = vor.u32 %v7952_v62, %v7949_v55  ;;  %v6727_v44 = vrot.slane %v6725_v35, 4  ;;  %v6728_v3 = vshll.u32 %v11204_v29, 16  ;;  %v6733_v25 = vshrl.u32 %v6668_v60, 16  ;;  %v11208_v29 = vld [vmem:[#allocation2 + $0x70] sm:$0xf0] }
 0xc8c   : > { %v7753_v47 = vsel %vm635_vm6, %v7744_v50, %v7752_v7  ;;  %v7961_v53 = vor.u32 %v7960_v56, %v7957_v54  ;;  %v6736_v13 = vshll.u32 %v6668_v60, 16  ;;  %v6742_v24 = vshrl.u32 %v11205_v21, 16  ;;  %10528 = vmatpush3.bf16.msra.mxu1 %v10909_v1  ;;  %v6671_v56 = vld [vmem:[#allocation2 + $0x88] sm:$0x1f] }
 0xc8d   : > { %v8754_v34 = vsel %vm576_vm2, %v7753_v47, %v15189_v43  ;;  %v6730_v57 = vrot.slane %v6728_v3, 5  ;;  %v6735_v23 = vrot.slane %v6733_v25, 4  ;;  %v6745_v17 = vshll.u32 %v11205_v21, 16  ;;  %10529 = vmatprep.subr.bf16.mxu1 %v10910_v19 }
 0xc8e   : > { %9245 = vmatmul.mubr.bf16.gmra.mrb[100].mxu0 %v8754_v34  ;;  %v7962_v61 = vsel %vm1781_vm4, %v7953_v33, %v7961_v53  ;;  %v6738_v41 = vrot.slane %v6736_v13, 5  ;;  %v6744_v22 = vrot.slane %v6742_v24, 4  ;;  %v6750_v30 = vshrl.u32 %v6669_v36, 16  ;;  %v11209_v34 = vld [vmem:[#allocation2 + $0x80] sm:$0xf0] }
 0xc8f   : > { %v8790_v48 = vsel %vm576_vm2, %v7962_v61, %v15251_v10  ;;  %v6731_v58 = vor.u32 %v6730_v57, %v6727_v44  ;;  %v6747_v43 = vrot.slane %v6745_v17, 5  ;;  %v6753_v14 = vshll.u32 %v6669_v36, 16  ;;  %v7650_v36 = vld [vmem:[#allocation2 + $0xf0] sm:$0xf8] }
 0xc90   : > { %9252 = vmatprep.mubr.bf16.mxu0 %v8790_v48  ;;  %v6739_v18 = vor.u32 %v6738_v41, %v6735_v23  ;;  %v6752_v59 = vrot.slane %v6750_v30, 4  ;;  %v7755_v4 = vshrl.u32 %v7648_v52, 16  ;;  %v7758_v51 = vshll.u32 %v7648_v52, 16  ;;  %10530 = vmatpush3.bf16.msra.mxu1 %v10910_v19 }
 0xc91   : > { %v6748_v0 = vor.u32 %v6747_v43, %v6744_v22  ;;  %v6755_v63 = vrot.slane %v6753_v14, 5  ;;  %v7763_v15 = vshrl.u32 %v11206_v40, 16  ;;  %v7766_v1 = vshll.u32 %v11206_v40, 16  ;;  %10531 = vmatprep.subr.bf16.mxu1 %v10911_v28 }
 0xc92   : > { %v6740_v49 = vsel %vm1781_vm4, %v6731_v58, %v6739_v18  ;;  %v7757_v5 = vrot.slane %v7755_v4, 3  ;;  %v7760_v10 = vrot.slane %v7758_v51, 4  ;;  %v7964_v46 = vshrl.u32 %v11207_v42, 16  ;;  %v8324_v58 = vld [vmem:[#allocation2 + $0xa0] sm:$0xf8] }
 0xc93   : > { %10514 = vmatmul.mubr.msk.bf16.gmra.mrb[72].mxu1 %vm576_vm2, %v6740_v49  ;;  %v6756_v2 = vor.u32 %v6755_v63, %v6752_v59  ;;  %v7765_v39 = vrot.slane %v7763_v15, 3  ;;  %v7768_v11 = vrot.slane %v7766_v1, 4  ;;  %v7967_v38 = vshll.u32 %v11207_v42, 16 }
 0xc94   : > { %v7761_v26 = vor.u32 %v7760_v10, %v7757_v5  ;;  %v7966_v32 = vrot.slane %v7964_v46, 4  ;;  %v7972_v8 = vshrl.u32 %v7843_v16, 16  ;;  %v7975_v60 = vshll.u32 %v7843_v16, 16  ;;  %10532 = vmatpush3.bf16.msra.mxu1 %v10911_v28  ;;  %v11211_v10 = vld [vmem:[#allocation2 + $0xa8] sm:$0xf] }
 0xc95   : > { %v6757_v50 = vsel %vm1781_vm4, %v6748_v0, %v6756_v2  ;;  %v7769_v55 = vor.u32 %v7768_v11, %v7765_v39  ;;  %v7969_v62 = vrot.slane %v7967_v38, 5  ;;  %v6759_v35 = vshrl.u32 %v11208_v29, 16  ;;  %v11210_v0 = vld [vmem:[#allocation2 + $0xf8] sm:$0xf] }
 0xc96   : > { %10517 = vmatprep.mubr.msk.bf16.mxu1 %vm576_vm2, %v6757_v50  ;;  %v7974_v19 = vrot.slane %v7972_v8, 4  ;;  %v7977_v31 = vrot.slane %v7975_v60, 5  ;;  %v6762_v7 = vshll.u32 %v11208_v29, 16  ;;  %v6767_v54 = vshrl.u32 %v6670_v20, 16  ;;  %v6672_v2 = vld [vmem:[#allocation2 + $0x98] sm:$0x1f] }
 0xc97   : > { %v7770_v33 = vsel %vm635_vm6, %v7761_v26, %v7769_v55  ;;  %v7970_v44 = vor.u32 %v7969_v62, %v7966_v32  ;;  %v6761_v3 = vrot.slane %v6759_v35, 4  ;;  %v6770_v25 = vshll.u32 %v6670_v20, 16  ;;  %v11212_v60 = vld [vmem:[#allocation2 + $0x90] sm:$0xf0] }
 0xc98   : > { %v8758_v47 = vsel %vm576_vm2, %v7770_v33, %v15217_v37  ;;  %v7978_v53 = vor.u32 %v7977_v31, %v7974_v19  ;;  %v6764_v13 = vrot.slane %v6762_v7, 5  ;;  %v6769_v21 = vrot.slane %v6767_v54, 4  ;;  %v8524_v19 = vld [vmem:[#allocation2 + $0xa8] sm:$0x1f]  ;;  %v8717_v31 = vpop.permute.xlu0 %8716  ;;  %v11213_v33 = vld [vmem:[#allocation2 + $0xa0] sm:$0xf0] }
 0xc99   : > { %9253 = vmatmul.mubr.bf16.gmra.mrb[104].mxu0 %v8758_v47  ;;  %v6772_v24 = vrot.slane %v6770_v25, 5  ;;  %v6776_v57 = vshrl.u32 %v11209_v34, 16  ;;  %v6779_v23 = vshll.u32 %v11209_v34, 16  ;;  %v6784_v17 = vshrl.u32 %v6671_v56, 16 }
 0xc9a   : > { %v7979_v52 = vsel %vm1781_vm4, %v7970_v44, %v7978_v53  ;;  %v6765_v28 = vor.u32 %v6764_v13, %v6761_v3  ;;  %v6787_v61 = vshll.u32 %v6671_v56, 16  ;;  %v7772_v41 = vshrl.u32 %v7650_v36, 16  ;;  %v8326_v53 = vld [vmem:[#allocation2 + $0xb0] sm:$0xf8] }
 0xc9b   : > { %v8794_v22 = vsel %vm576_vm2, %v7979_v52, %v15285_v12  ;;  %v6773_v30 = vor.u32 %v6772_v24, %v6769_v21  ;;  %v6778_v48 = vrot.slane %v6776_v57, 4  ;;  %v6781_v37 = vrot.slane %v6779_v23, 5 }
 0xc9c   : > { %9260 = vmatprep.mubr.bf16.mxu0 %v8794_v22  ;;  %v6786_v43 = vrot.slane %v6784_v17, 4  ;;  %v6789_v14 = vrot.slane %v6787_v61, 5  ;;  %v7774_v18 = vrot.slane %v7772_v41, 3  ;;  %v7775_v59 = vshll.u32 %v7650_v36, 16  ;;  %v8525_v22 = vld [vmem:[#allocation2 + $0xb8] sm:$0x1f] }
 0xc9d   : > { %v6774_v4 = vsel %vm1781_vm4, %v6765_v28, %v6773_v30  ;;  %v6782_v51 = vor.u32 %v6781_v37, %v6778_v48  ;;  %v7780_v63 = vshrl.u32 %v11210_v0, 16  ;;  %v7783_v40 = vshll.u32 %v11210_v0, 16  ;;  %v11214_v37 = vld [vmem:[#allocation2 + $0xb8] sm:$0xf] }
 0xc9e   : > { %10518 = vmatmul.mubr.msk.bf16.gmra.mrb[76].mxu1 %vm576_vm2, %v6774_v4  ;;  %v6790_v15 = vor.u32 %v6789_v14, %v6786_v43  ;;  %v7777_v1 = vrot.slane %v7775_v59, 4  ;;  %v8341_v12 = vshrl.u32 %v8324_v58, 16  ;;  %v8344_v16 = vshll.u32 %v8324_v58, 16 }
 0xc9f   : > { %v7782_v49 = vrot.slane %v7780_v63, 3  ;;  %v7785_v5 = vrot.slane %v7783_v40, 4  ;;  %v8349_v42 = vshrl.u32 %v11211_v10, 16  ;;  %v8352_v46 = vshll.u32 %v11211_v10, 16  ;;  %v8719_v10 = vpop.permute.xlu0 %8718 }
 0xca0   : > { %v6791_v39 = vsel %vm1781_vm4, %v6782_v51, %v6790_v15  ;;  %v7778_v11 = vor.u32 %v7777_v1, %v7774_v18  ;;  %v8343_v38 = vrot.slane %v8341_v12, 3  ;;  %v8346_v20 = vrot.slane %v8344_v16, 4  ;;  %v8526_v51 = vld [vmem:[#allocation2 + $0xc8] sm:$0x1f]  ;;  %v11215_v16 = vld [vmem:[#allocation2 + $0xc0] sm:$0xf0] }
 0xca1   : > { %10521 = vmatprep.mubr.msk.bf16.mxu1 %vm576_vm2, %v6791_v39  ;;  %v7786_v26 = vor.u32 %v7785_v5, %v7782_v49  ;;  %v8351_v32 = vrot.slane %v8349_v42, 3  ;;  %v8354_v8 = vrot.slane %v8352_v46, 4  ;;  %v6793_v50 = vshrl.u32 %v11212_v60, 16 }
 0xca2   : > { %v8347_v55 = vor.u32 %v8346_v20, %v8343_v38  ;;  %v6796_v62 = vshll.u32 %v11212_v60, 16  ;;  %v6801_v29 = vshrl.u32 %v6672_v2, 16  ;;  %v6804_v35 = vshll.u32 %v6672_v2, 16  ;;  %v8328_v20 = vld [vmem:[#allocation2 + $0xc0] sm:$0xf8] }
 0xca3   : > { %v7787_v7 = vsel %vm635_vm6, %v7778_v11, %v7786_v26  ;;  %v8355_v54 = vor.u32 %v8354_v8, %v8351_v32  ;;  %v6795_v56 = vrot.slane %v6793_v50, 4  ;;  %v8533_v44 = vshrl.u32 %v11213_v33, 16  ;;  %v8703_v26 = vpop.permute.xlu1 %8702  ;;  %v11216_v60 = vld [vmem:[#allocation2 + $0xa0] sm:$0xf0] }
 0xca4   : > { %v8762_v3 = vsel %vm576_vm2, %v7787_v7, %v15245_v6  ;;  %v6798_v25 = vrot.slane %v6796_v62, 5  ;;  %v6803_v36 = vrot.slane %v6801_v29, 4  ;;  %v6806_v47 = vrot.slane %v6804_v35, 5 }
 0xca5   : > { %9261 = vmatmul.mubr.bf16.gmra.mrb[108].mxu0 %v8762_v3  ;;  %v8356_v13 = vsel %vm635_vm6, %v8347_v55, %v8355_v54  ;;  %v8535_v21 = vrot.slane %v8533_v44, 4  ;;  %v8536_v24 = vshll.u32 %v11213_v33, 16  ;;  %v8541_v34 = vshrl.u32 %v8524_v19, 16  ;;  %v11217_v55 = vld [vmem:[#allocation2 + $0xa8] sm:$0xf] }
 0xca6   : > { %v8830_v57 = vsel %vm576_vm2, %v8356_v13, %v8717_v31  ;;  %v6799_v23 = vor.u32 %v6798_v25, %v6795_v56  ;;  %v6807_v17 = vor.u32 %v6806_v47, %v6803_v36  ;;  %v8544_v52 = vshll.u32 %v8524_v19, 16  ;;  %v11218_v56 = vld [vmem:[#allocation2 + $0xc8] sm:$0xf]  ;;  %v8527_v44 = vld [vmem:[#allocation2 + $0xd8] sm:$0x1f] }
 0xca7   : > { %9301 = vmatprep.mubr.bf16.mxu0 %v8830_v57  ;;  %v8538_v28 = vrot.slane %v8536_v24, 5  ;;  %v8543_v61 = vrot.slane %v8541_v34, 4  ;;  %v8358_v41 = vshrl.u32 %v8326_v53, 16  ;;  %v8361_v6 = vshll.u32 %v8326_v53, 16  ;;  %v11219_v24 = vld [vmem:[#allocation2 + $0xd0] sm:$0xf0] }
 0xca8   : > { %v6808_v30 = vsel %vm1781_vm4, %v6799_v23, %v6807_v17  ;;  %v8546_v48 = vrot.slane %v8544_v52, 5  ;;  %v8366_v58 = vshrl.u32 %v11214_v37, 16  ;;  %v8369_v43 = vshll.u32 %v11214_v37, 16 }
 0xca9   : > { %10522 = vmatmul.mubr.msk.bf16.gmra.mrb[80].mxu1 %vm576_vm2, %v6808_v30  ;;  %v8539_v14 = vor.u32 %v8538_v28, %v8535_v21  ;;  %v8360_v18 = vrot.slane %v8358_v41, 3  ;;  %v8363_v59 = vrot.slane %v8361_v6, 4  ;;  %v8556_v4 = vor.u32 %v14917_v45, %v14915_v9  ;;  %v8528_v28 = vld [vmem:[#allocation2 + $0xe8] sm:$0x1f] }
 0xcaa   : > { %v8547_v0 = vor.u32 %v8546_v48, %v8543_v61  ;;  %v8368_v63 = vrot.slane %v8366_v58, 3  ;;  %v8371_v40 = vrot.slane %v8369_v43, 4  ;;  %v8558_v15 = vshrl.u32 %v8525_v22, 16  ;;  %v8721_v48 = vpop.permute.xlu0 %8720 }
 0xcab   : > { %v8364_v1 = vor.u32 %v8363_v59, %v8360_v18  ;;  %v8561_v12 = vshll.u32 %v8525_v22, 16  ;;  %v8567_v49 = vshrl.u32 %v11215_v16, 16  ;;  %v8570_v5 = vshll.u32 %v11215_v16, 16  ;;  %v11220_v22 = vld [vmem:[#allocation2 + $0xe0] sm:$0xf0] }
 0xcac   : > { %v8548_v42 = vsel %vm1781_vm4, %v8539_v14, %v8547_v0  ;;  %v8372_v46 = vor.u32 %v8371_v40, %v8368_v63  ;;  %v8560_v2 = vrot.slane %v8558_v15, 4  ;;  %v8575_v39 = vshrl.u32 %v8526_v51, 16  ;;  %v8330_v0 = vld [vmem:[#allocation2 + $0xd0] sm:$0xf8] }
 0xcad   : > { %10533 = vmatprep.mubr.msk.bf16.mxu1 %vm576_vm2, %v8548_v42  ;;  %9302 = vmatmul.mubr.bf16.vlgmr.msra.gmra.mrb[112].mxu0 %v15279_v27  ;;  %v8563_v9 = vrot.slane %v8561_v12, 5  ;;  %v8569_v45 = vrot.slane %v8567_v49, 4  ;;  %v8572_v11 = vrot.slane %v8570_v5, 5  ;;  %v8578_v38 = vshll.u32 %v8526_v51, 16  ;;  %v8705_v42 = vpop.permute.xlu1 %8704 }
 0xcae   : > { %v8373_v32 = vsel %vm635_vm6, %v8364_v1, %v8372_v46  ;;  %v8577_v8 = vrot.slane %v8575_v39, 4  ;;  %v8159_v50 = vrot.slane %v11216_v60, 4  ;;  %v8160_v62 = vrot.slane %v11217_v55, 4  ;;  %v11221_v1 = vld [vmem:[#allocation2 + $0xb0] sm:$0xf0] }
 0xcaf   : > { %v8834_v29 = vsel %vm576_vm2, %v8373_v32, %v8719_v10  ;;  %v8564_v35 = vor.u32 %v8563_v9, %v8560_v2  ;;  %v8573_v19 = vor.u32 %v8572_v11, %v8569_v45  ;;  %v8580_v31 = vrot.slane %v8578_v38, 5  ;;  %v11222_v2 = vld [vmem:[#allocation2 + $0xb8] sm:$0xf] }
 0xcb0   : > { %9309 = vmatprep.mubr.bf16.mxu0 %v8834_v29  ;;  %v8161_v27 = vsel %vm1748_vm3, %v8159_v50, %v8160_v62  ;;  %v8375_v7 = vshrl.u32 %v8328_v20, 16  ;;  %v8378_v54 = vshll.u32 %v8328_v20, 16  ;;  %v8383_v33 = vshrl.u32 %v11218_v56, 16  ;;  %v11223_v20 = vld [vmem:[#allocation2 + $0xd8] sm:$0xf] }
 0xcb1   : > { %v8565_v3 = vsel %vm1781_vm4, %v8556_v4, %v8564_v35  ;;  %v8581_v25 = vor.u32 %v8580_v31, %v8577_v8  ;;  %v8802_v36 = vsel %vm576_vm2, %v8161_v27, %v8703_v26  ;;  %v8386_v47 = vshll.u32 %v11218_v56, 16  ;;  %v8529_v8 = vld [vmem:[#allocation2 + $0xf8] sm:$0x1f]  ;;  %v11224_v62 = vld [vmem:[#allocation2 + $0xf0] sm:$0xf0] }
 0xcb2   : > { %10534 = vmatmul.mubr.msk.bf16.vlgmr.msra.gmra.mrb[84].mxu1 %vm576_vm2, %v8565_v3  ;;  %v8377_v53 = vrot.slane %v8375_v7, 3  ;;  %v8380_v13 = vrot.slane %v8378_v54, 4  ;;  %v8385_v21 = vrot.slane %v8383_v33, 3  ;;  %v8584_v34 = vshrl.u32 %v11219_v24, 16  ;;  %v8530_v7 = vld [vmem:[#allocation2 + $0x108] sm:$0x1f]  ;;  %v8723_v3 = vpop.permute.xlu0 %8722 }
 0xcb3   : > { %v8582_v57 = vsel %vm1781_vm4, %v8573_v19, %v8581_v25  ;;  %v8388_v23 = vrot.slane %v8386_v47, 4  ;;  %v8587_v17 = vshll.u32 %v11219_v24, 16  ;;  %v8592_v52 = vshrl.u32 %v8527_v44, 16  ;;  %v11225_v47 = vld [vmem:[#allocation2 + $0x100] sm:$0xf0] }
 0xcb4   : > { %10537 = vmatprep.mubr.msk.bf16.mxu1 %vm576_vm2, %v8582_v57  ;;  %v8381_v61 = vor.u32 %v8380_v13, %v8377_v53  ;;  %v8586_v41 = vrot.slane %v8584_v34, 4  ;;  %v8595_v6 = vshll.u32 %v8527_v44, 16  ;;  %v8601_v30 = vshrl.u32 %v11220_v22, 16 }
 0xcb5   : > { %9310 = vmatmul.mubr.bf16.gmra.mrb[116].mxu0 %v8802_v36  ;;  %v8389_v37 = vor.u32 %v8388_v23, %v8385_v21  ;;  %v8589_v58 = vrot.slane %v8587_v17, 5  ;;  %v8594_v43 = vrot.slane %v8592_v52, 4  ;;  %v8604_v14 = vshll.u32 %v11220_v22, 16 }
 0xcb6   : > { %v8597_v18 = vrot.slane %v8595_v6, 5  ;;  %v8603_v59 = vrot.slane %v8601_v30, 4  ;;  %v8609_v4 = vshrl.u32 %v8528_v28, 16  ;;  %v8612_v51 = vshll.u32 %v8528_v28, 16 }
 0xcb7   : > { %v8390_v63 = vsel %vm635_vm6, %v8381_v61, %v8389_v37  ;;  %v8590_v40 = vor.u32 %v8589_v58, %v8586_v41  ;;  %v8606_v15 = vrot.slane %v8604_v14, 5  ;;  %v8162_v12 = vrot.slane %v11221_v1, 4  ;;  %v8332_v61 = vld [vmem:[#allocation2 + $0xe0] sm:$0xf8] }
 0xcb8   : > { %v8838_v16 = vsel %vm576_vm2, %v8390_v63, %v8721_v48  ;;  %v8598_v49 = vor.u32 %v8597_v18, %v8594_v43  ;;  %v8611_v5 = vrot.slane %v8609_v4, 4  ;;  %v8614_v10 = vrot.slane %v8612_v51, 5  ;;  %v8707_v48 = vpop.permute.xlu1 %8706  ;;  %v11226_v43 = vld [vmem:[#allocation2 + $0xc0] sm:$0xf0]  ;;  %v11227_v18 = vld [vmem:[#allocation2 + $0xc8] sm:$0xf] }
 0xcb9   : > { %9317 = vmatprep.mubr.bf16.mxu0 %v8838_v16  ;;  %v8607_v46 = vor.u32 %v8606_v15, %v8603_v59  ;;  %v8163_v39 = vrot.slane %v11222_v2, 4  ;;  %v8392_v9 = vshrl.u32 %v8330_v0, 16  ;;  %v8395_v45 = vshll.u32 %v8330_v0, 16  ;;  %v11228_v63 = vld [vmem:[#allocation2 + $0xe8] sm:$0xf] }
 0xcba   : > { %v8599_v11 = vsel %vm1781_vm4, %v8590_v40, %v8598_v49  ;;  %v8615_v38 = vor.u32 %v8614_v10, %v8611_v5  ;;  %v8400_v26 = vshrl.u32 %v11223_v20, 16  ;;  %v8403_v32 = vshll.u32 %v11223_v20, 16  ;;  %v8531_v16 = vld [vmem:[#allocation2 + $0x118] sm:$0x1f]  ;;  %v11229_v49 = vld [vmem:[#allocation2 + $0x110] sm:$0xf0]  ;;  %v8725_v20 = vpop.permute.xlu0 %8724 }
 0xcbb   : > { %10538 = vmatmul.mubr.msk.bf16.gmra.mrb[88].mxu1 %vm576_vm2, %v8599_v11  ;;  %v8164_v60 = vsel %vm1748_vm3, %v8162_v12, %v8163_v39  ;;  %v8394_v50 = vrot.slane %v8392_v9, 3  ;;  %v8397_v55 = vrot.slane %v8395_v45, 4  ;;  %v8618_v29 = vshrl.u32 %v11224_v62, 16  ;;  %v8334_v39 = vld [vmem:[#allocation2 + $0xf0] sm:$0xf8] }
 0xcbc   : > { %v8616_v35 = vsel %vm1781_vm4, %v8607_v46, %v8615_v38  ;;  %v8806_v19 = vsel %vm576_vm2, %v8164_v60, %v8705_v42  ;;  %v8402_v31 = vrot.slane %v8400_v26, 3  ;;  %v8405_v27 = vrot.slane %v8403_v32, 4  ;;  %v11230_v60 = vld [vmem:[#allocation2 + $0xd0] sm:$0xf0] }
 0xcbd   : > { %10541 = vmatprep.mubr.msk.bf16.mxu1 %vm576_vm2, %v8616_v35  ;;  %9318 = vmatmul.mubr.bf16.gmra.mrb[120].mxu0 %v8806_v19  ;;  %v8398_v54 = vor.u32 %v8397_v55, %v8394_v50  ;;  %v8620_v56 = vrot.slane %v8618_v29, 4  ;;  %v8621_v33 = vshll.u32 %v11224_v62, 16  ;;  %v8626_v44 = vshrl.u32 %v8529_v8, 16  ;;  %v11231_v29 = vld [vmem:[#allocation2 + $0xd8] sm:$0xf] }
 0xcbe   : > { %v8406_v25 = vor.u32 %v8405_v27, %v8402_v31  ;;  %v8629_v36 = vshll.u32 %v8529_v8, 16  ;;  %v8635_v53 = vshrl.u32 %v11225_v47, 16  ;;  %v8638_v13 = vshll.u32 %v11225_v47, 16 }
 0xcbf   : > { %v8623_v21 = vrot.slane %v8621_v33, 5  ;;  %v8628_v24 = vrot.slane %v8626_v44, 4  ;;  %v8643_v34 = vshrl.u32 %v8530_v7, 16  ;;  %v8646_v57 = vshll.u32 %v8530_v7, 16  ;;  %v8709_v33 = vpop.permute.xlu1 %8708 }
 0xcc0   : > { %v8407_v23 = vsel %vm635_vm6, %v8398_v54, %v8406_v25  ;;  %v8631_v17 = vrot.slane %v8629_v36, 5  ;;  %v8637_v52 = vrot.slane %v8635_v53, 4  ;;  %v8640_v28 = vrot.slane %v8638_v13, 5  ;;  %v11232_v54 = vld [vmem:[#allocation2 + $0xf8] sm:$0xf] }
 0xcc1   : > { %v8842_v41 = vsel %vm576_vm2, %v8407_v23, %v8723_v3  ;;  %v8624_v6 = vor.u32 %v8623_v21, %v8620_v56  ;;  %v8645_v22 = vrot.slane %v8643_v34, 4  ;;  %v8648_v30 = vrot.slane %v8646_v57, 5  ;;  %v8336_v36 = vld [vmem:[#allocation2 + $0x100] sm:$0xf8]  ;;  %v8727_v57 = vpop.permute.xlu0 %8726 }
 0xcc2   : > { %9325 = vmatprep.mubr.bf16.mxu0 %v8842_v41  ;;  %v8632_v37 = vor.u32 %v8631_v17, %v8628_v24  ;;  %v8641_v58 = vor.u32 %v8640_v28, %v8637_v52  ;;  %v8165_v14 = vrot.slane %v11226_v43, 4  ;;  %v8166_v59 = vrot.slane %v11227_v18, 4 }
 0xcc3   : > { %v8649_v4 = vor.u32 %v8648_v30, %v8645_v22  ;;  %v8409_v51 = vshrl.u32 %v8332_v61, 16  ;;  %v8412_v0 = vshll.u32 %v8332_v61, 16  ;;  %v8417_v40 = vshrl.u32 %v11228_v63, 16 }
 0xcc4   : > { %v8633_v15 = vsel %vm1781_vm4, %v8624_v6, %v8632_v37  ;;  %v8167_v1 = vsel %vm1748_vm3, %v8165_v14, %v8166_v59  ;;  %v8420_v12 = vshll.u32 %v11228_v63, 16  ;;  %v8652_v5 = vshrl.u32 %v11229_v49, 16  ;;  %v11233_v6 = vld [vmem:[#allocation2 + $0x108] sm:$0xf]  ;;  %v11234_v37 = vld [vmem:[#allocation2 + $0xe0] sm:$0xf0] }
 0xcc5   : > { %10542 = vmatmul.mubr.msk.bf16.gmra.mrb[92].mxu1 %vm576_vm2, %v8633_v15  ;;  %v8650_v10 = vsel %vm1781_vm4, %v8641_v58, %v8649_v4  ;;  %v8810_v42 = vsel %vm576_vm2, %v8167_v1, %v8707_v48  ;;  %v8411_v46 = vrot.slane %v8409_v51, 3  ;;  %v8414_v2 = vrot.slane %v8412_v0, 4  ;;  %v8338_v48 = vld [vmem:[#allocation2 + $0x110] sm:$0xf8]  ;;  %v11235_v59 = vld [vmem:[#allocation2 + $0xe8] sm:$0xf] }
 0xcc6   : > { %10545 = vmatprep.mubr.msk.bf16.mxu1 %vm576_vm2, %v8650_v10  ;;  %9326 = vmatmul.mubr.bf16.gmra.mrb[124].mxu0 %v8810_v42  ;;  %v8419_v9 = vrot.slane %v8417_v40, 3  ;;  %v8422_v45 = vrot.slane %v8420_v12, 4  ;;  %v8654_v11 = vrot.slane %v8652_v5, 4  ;;  %v8655_v38 = vshll.u32 %v11229_v49, 16  ;;  %v11236_v1 = vld [vmem:[#allocation2 + $0x118] sm:$0xf]  ;;  %v8729_v42 = vpop.permute.xlu0 %8728 }
 0xcc7   : > { %v8415_v26 = vor.u32 %v8414_v2, %v8411_v46  ;;  %v8660_v32 = vshrl.u32 %v8531_v16, 16  ;;  %v8663_v8 = vshll.u32 %v8531_v16, 16  ;;  %v8168_v50 = vrot.slane %v11230_v60, 4  ;;  %v8711_v16 = vpop.permute.xlu1 %8710  ;;  %v11237_v60 = vld [vmem:[#allocation2 + $0xf0] sm:$0xf0] }
 0xcc8   : > { %v8423_v55 = vor.u32 %v8422_v45, %v8419_v9  ;;  %v8657_v62 = vrot.slane %v8655_v38, 5  ;;  %v8169_v35 = vrot.slane %v11231_v29, 4  ;;  %v8426_v19 = vshrl.u32 %v8334_v39, 16 }
 0xcc9   : > { %v8662_v31 = vrot.slane %v8660_v32, 4  ;;  %v8665_v27 = vrot.slane %v8663_v8, 5  ;;  %v8429_v7 = vshll.u32 %v8334_v39, 16  ;;  %v8434_v56 = vshrl.u32 %v11232_v54, 16 }
 0xcca   : > { %v8424_v44 = vsel %vm635_vm6, %v8415_v26, %v8423_v55  ;;  %v8658_v3 = vor.u32 %v8657_v62, %v8654_v11  ;;  %v8428_v25 = vrot.slane %v8426_v19, 3  ;;  %v8170_v21 = vsel %vm1748_vm3, %v8168_v50, %v8169_v35  ;;  %v11238_v55 = vld [vmem:[#allocation2 + $0xf8] sm:$0xf]  ;;  %v8731_v29 = vpop.permute.xlu0 %8730 }
 0xccb   : > { %v8846_v47 = vsel %vm576_vm2, %v8424_v44, %v8725_v20  ;;  %v8666_v53 = vor.u32 %v8665_v27, %v8662_v31  ;;  %v8431_v13 = vrot.slane %v8429_v7, 4  ;;  %v8436_v24 = vrot.slane %v8434_v56, 3  ;;  %v8713_v19 = vpop.permute.xlu1 %8712 }
 0xccc   : > { %9333 = vmatprep.mubr.bf16.mxu0 %v8846_v47  ;;  %v8437_v34 = vshll.u32 %v11232_v54, 16  ;;  %v8814_v17 = vsel %vm576_vm2, %v8170_v21, %v8709_v33  ;;  %v8443_v52 = vshrl.u32 %v8336_v36, 16  ;;  %v8446_v28 = vshll.u32 %v8336_v36, 16  ;;  %v11239_v54 = vld [vmem:[#allocation2 + $0x100] sm:$0xf0] }
 0xccd   : > { %v8667_v23 = vsel %vm1781_vm4, %v8658_v3, %v8666_v53  ;;  %v8432_v61 = vor.u32 %v8431_v13, %v8428_v25  ;;  %v8451_v22 = vshrl.u32 %v11233_v6, 16  ;;  %v8454_v30 = vshll.u32 %v11233_v6, 16  ;;  %v11240_v33 = vld [vmem:[#allocation2 + $0x108] sm:$0xf] }
 0xcce   : > { %10546 = vmatmul.mubr.msk.bf16.gmra.mrb[96].mxu1 %vm576_vm2, %v8667_v23  ;;  %9334 = vmatmul.mubr.bf16.gmra.mrb[128].mxu0 %v8814_v17  ;;  %v8439_v41 = vrot.slane %v8437_v34, 4  ;;  %v8171_v58 = vrot.slane %v11234_v37, 4  ;;  %v8445_v43 = vrot.slane %v8443_v52, 3  ;;  %v8448_v14 = vrot.slane %v8446_v28, 4 }
 0xccf   : > { %v8172_v4 = vrot.slane %v11235_v59, 4  ;;  %v8453_v51 = vrot.slane %v8451_v22, 3  ;;  %v8456_v0 = vrot.slane %v8454_v30, 4  ;;  %v8460_v40 = vshrl.u32 %v8338_v48, 16  ;;  %v8715_v3 = vpop.permute.xlu1 %8714 }
 0xcd0   : > { %v8440_v18 = vor.u32 %v8439_v41, %v8436_v24  ;;  %v8449_v63 = vor.u32 %v8448_v14, %v8445_v43  ;;  %v8463_v15 = vshll.u32 %v8338_v48, 16  ;;  %v8468_v12 = vshrl.u32 %v11236_v1, 16 }
 0xcd1   : > { %v8457_v5 = vor.u32 %v8456_v0, %v8453_v51  ;;  %v8471_v10 = vshll.u32 %v11236_v1, 16  ;;  %v8462_v2 = vrot.slane %v8460_v40, 3  ;;  %v8173_v9 = vsel %vm1748_vm3, %v8171_v58, %v8172_v4 }
 0xcd2   : > { %v8441_v49 = vsel %vm635_vm6, %v8432_v61, %v8440_v18  ;;  %v8465_v39 = vrot.slane %v8463_v15, 4  ;;  %v8470_v45 = vrot.slane %v8468_v12, 3  ;;  %v8818_v38 = vsel %vm576_vm2, %v8173_v9, %v8711_v16  ;;  %v15405_v12 = vld [vmem:[%s15979_s17] ss:$0 sm:$0xff]  ;;  %s11415_s17 = scalar_lea.vmem %s11414_s18, 8192 }
 0xcd3   : > { %v8850_v46 = vsel %vm576_vm2, %v8441_v49, %v8727_v57  ;;  %v8473_v11 = vrot.slane %v8471_v10, 4  ;;  %v8458_v20 = vsel %vm635_vm6, %v8449_v63, %v8457_v5  ;;  %v8174_v50 = vrot.slane %v11237_v60, 4  ;;  %p11417_p0 = scmp.lt.s32.totalorder %s11415_s17, %s11409_s19 }
 0xcd4   : > { %9341 = vmatprep.mubr.bf16.mxu0 %v8850_v46  ;;  %v8466_v26 = vor.u32 %v8465_v39, %v8462_v2  ;;  %v8854_v32 = vsel %vm576_vm2, %v8458_v20, %v8729_v42  ;;  %v8175_v62 = vrot.slane %v11238_v55, 4  ;;  %v8177_v56 = vrot.slane %v11239_v54, 4 }
 0xcd5   : > { %v8474_v8 = vor.u32 %v8473_v11, %v8470_v45  ;;  %v8178_v44 = vrot.slane %v11240_v33, 4  ;;  %p11418_p10 = por %p11417_p0, %p11416_p5 }
 0xcd6   : > { %9342 = vmatmul.mubr.bf16.gmra.mrb[132].mxu0 %v8818_v38  ;;  %v8176_v31 = vsel %vm1748_vm3, %v8174_v50, %v8175_v62 }
 0xcd7   : > { %9349 = vmatprep.mubr.bf16.mxu0 %v8854_v32  ;;  %v8475_v35 = vsel %vm635_vm6, %v8466_v26, %v8474_v8  ;;  %v8822_v7 = vsel %vm576_vm2, %v8176_v31, %v8713_v19  ;;  %v8179_v25 = vsel %vm1748_vm3, %v8177_v56, %v8178_v44  ;;  %p11419_p2 = pnand %p11418_p10, %p11412_p9 }
 0xcd8   : > { %v8858_v27 = vsel %vm576_vm2, %v8475_v35, %v8731_v29  ;;  %v8826_v36 = vsel %vm576_vm2, %v8179_v25, %v8715_v3 }
 0xcde   : > { %9350 = vmatmul.mubr.bf16.gmra.mrb[136].mxu0 %v8822_v7 }
 0xcdf   : > { %9357 = vmatprep.mubr.bf16.mxu0 %v8858_v27 }
 0xce6   : > { %9358 = vmatmul.mubr.bf16.gmra.mrb[140].mxu0 %v8826_v36  ;;  %v10057_v47 = vpop.f32.mrb[48].mxu0 }
 0xce7   : > { %v10058_v53 = vpop.f32.mrb[49].mxu0 }
 0xce8   : > { %v10059_v13 = vadd.f32 %v10058_v53, %v10057_v47  ;;  %v10060_v21 = vpop.f32.mrb[50].mxu0 }
 0xce9   : > { %v10061_v24 = vpop.f32.mrb[51].mxu0 }
 0xcea   : > { %v10062_v34 = vadd.f32 %v10061_v24, %v10060_v21  ;;  %v7348_v2 = vadd.f32 %v10059_v13, %v15405_v12 }
 0xcec   : > { %v7351_v20 = vadd.f32 %v10062_v34, %v15405_v12 }
 0xcee   : > { %v10063_v57 = vpop.f32.mrb[52].mxu0 }
 0xcef   : > { %v10064_v23 = vpop.f32.mrb[53].mxu0 }
 0xcf0   : > { %v10065_v17 = vadd.f32 %v10064_v23, %v10063_v57  ;;  %v10066_v52 = vpop.f32.mrb[54].mxu0 }
 0xcf1   : > { %v10067_v28 = vpop.f32.mrb[55].mxu0 }
 0xcf2   : > { %v10068_v61 = vadd.f32 %v10067_v28, %v10066_v52  ;;  %v7356_v62 = vadd.f32 %v10065_v17, %v15405_v12 }
 0xcf4   : > { %v7359_v54 = vadd.f32 %v10068_v61, %v15405_v12 }
 0xcf6   : > { %v10069_v41 = vpop.f32.mrb[56].mxu0 }
 0xcf7   : > { %v10070_v6 = vpop.f32.mrb[57].mxu0 }
 0xcf8   : > { %v10071_v22 = vadd.f32 %v10070_v6, %v10069_v41  ;;  %v10072_v30 = vpop.f32.mrb[58].mxu0 }
 0xcf9   : > { %v10073_v48 = vpop.f32.mrb[59].mxu0 }
 0xcfa   : > { %v10074_v37 = vadd.f32 %v10073_v48, %v10072_v30  ;;  %v7364_v53 = vadd.f32 %v10071_v22, %v15405_v12 }
 0xcfc   : > { %v7367_v23 = vadd.f32 %v10074_v37, %v15405_v12 }
 0xcff   : > { %v10075_v58 = vpop.f32.mrb[60].mxu0 }
 0xd00   : > { %v10076_v43 = vpop.f32.mrb[61].mxu0 }
 0xd01   : > { %v10077_v14 = vadd.f32 %v10076_v43, %v10075_v58  ;;  %v10078_v18 = vpop.f32.mrb[62].mxu0 }
 0xd02   : > { %v10079_v59 = vpop.f32.mrb[63].mxu0 }
 0xd03   : > { %v15396_v4 = vadd.f32 %v10079_v59, %v10078_v18  ;;  %v7372_v43 = vadd.f32 %v10077_v14, %v15405_v12 }
 0xd07   : > { %v10081_v51 = vpop.f32.mrb[64].mxu0 }
 0xd08   : > { %v10082_v0 = vpop.f32.mrb[65].mxu0 }
 0xd09   : > { %v15398_v63 = vadd.f32 %v10082_v0, %v10081_v51  ;;  %v10084_v40 = vpop.f32.mrb[66].mxu0 }
 0xd0a   : > { %v10085_v15 = vpop.f32.mrb[67].mxu0 }
 0xd0b   : > { %v15400_v1 = vadd.f32 %v10085_v15, %v10084_v40  ;;  %v7375_v15 = vadd.f32 %v15396_v4, %v15405_v12 }
 0xd0d   : > { %v7383_v4 = vadd.f32 %v15400_v1, %v15405_v12 }
 0xd0f   : > { %v10087_v16 = vpop.f32.mrb[68].mxu0 }
 0xd10   : > { %v10121_v49 = vpop.f32.mrb[100].mxu1  ;;  %v10088_v5 = vpop.f32.mrb[69].mxu0 }
 0xd11   : > { %v10122_v10 = vpop.f32.mrb[101].mxu1  ;;  %v15407_v42 = vadd.f32 %v10088_v5, %v10087_v16  ;;  %v10090_v46 = vpop.f32.mrb[70].mxu0 }
 0xd12   : > { %v10123_v39 = vadd.f32 %v10122_v10, %v10121_v49  ;;  %v10124_v9 = vpop.f32.mrb[102].mxu1  ;;  %v10091_v45 = vpop.f32.mrb[71].mxu0 }
 0xd13   : > { %v10125_v11 = vpop.f32.mrb[103].mxu1  ;;  %v15410_v38 = vadd.f32 %v10091_v45, %v10090_v46 }
 0xd14   : > { %v15413_v26 = vadd.f32 %v10123_v39, %v7348_v2  ;;  %v10126_v32 = vadd.f32 %v10125_v11, %v10124_v9  ;;  %v7380_v39 = vadd.f32 %v15398_v63, %v15405_v12 }
 0xd16   : > { %v15415_v8 = vadd.f32 %v10126_v32, %v7351_v20 }
 0xd18   : > { %v10127_v60 = vpop.f32.mrb[104].mxu1 }
 0xd19   : > { %v10128_v50 = vpop.f32.mrb[105].mxu1  ;;  %v10093_v55 = vpop.f32.mrb[72].mxu0 }
 0xd1a   : > { %v10129_v29 = vadd.f32 %v10128_v50, %v10127_v60  ;;  %v10130_v35 = vpop.f32.mrb[106].mxu1  ;;  %v10094_v19 = vpop.f32.mrb[73].mxu0 }
 0xd1b   : > { %v10131_v31 = vpop.f32.mrb[107].mxu1  ;;  %v15418_v27 = vadd.f32 %v10094_v19, %v10093_v55  ;;  %v10096_v7 = vpop.f32.mrb[74].mxu0 }
 0xd1c   : > { %v15421_v56 = vadd.f32 %v10129_v29, %v7356_v62  ;;  %v10132_v33 = vadd.f32 %v10131_v31, %v10130_v35  ;;  %v10097_v44 = vpop.f32.mrb[75].mxu0 }
 0xd1d   : > { %v15423_v3 = vadd.f32 %v10097_v44, %v10096_v7  ;;  %v7388_v7 = vadd.f32 %v15407_v42, %v15405_v12  ;;  %v7391_v44 = vadd.f32 %v15410_v38, %v15405_v12 }
 0xd1e   : > { %v15425_v25 = vadd.f32 %v10132_v33, %v7359_v54 }
 0xd20   : > { %v10133_v36 = vpop.f32.mrb[108].mxu1 }
 0xd21   : > { %v10134_v47 = vpop.f32.mrb[109].mxu1 }
 0xd22   : > { %v10135_v13 = vadd.f32 %v10134_v47, %v10133_v36  ;;  %v10136_v21 = vpop.f32.mrb[110].mxu1  ;;  %v10099_v24 = vpop.f32.mrb[76].mxu0 }
 0xd23   : > { %v10137_v34 = vpop.f32.mrb[111].mxu1  ;;  %v10100_v57 = vpop.f32.mrb[77].mxu0 }
 0xd24   : > { %v15429_v17 = vadd.f32 %v10135_v13, %v7364_v53  ;;  %v10138_v52 = vadd.f32 %v10137_v34, %v10136_v21  ;;  %v15431_v28 = vadd.f32 %v10100_v57, %v10099_v24  ;;  %v10102_v61 = vpop.f32.mrb[78].mxu0 }
 0xd25   : > { %v10103_v41 = vpop.f32.mrb[79].mxu0 }
 0xd26   : > { %v15433_v6 = vadd.f32 %v10138_v52, %v7367_v23  ;;  %v15435_v30 = vadd.f32 %v10103_v41, %v10102_v61  ;;  %v7396_v61 = vadd.f32 %v15418_v27, %v15405_v12 }
 0xd29   : > { %v10139_v48 = vpop.f32.mrb[112].mxu1 }
 0xd2a   : > { %v10140_v22 = vpop.f32.mrb[113].mxu1  ;;  %v10197_v58 = vpop.f32.mrb[80].mxu0 }
 0xd2b   : > { %v10141_v18 = vadd.f32 %v10140_v22, %v10139_v48  ;;  %v10142_v59 = vpop.f32.mrb[114].mxu1  ;;  %v10198_v51 = vpop.f32.mrb[81].mxu0  ;;  %v7399_v22 = vadd.f32 %v15423_v3, %v15405_v12  ;;  %v7404_v3 = vadd.f32 %v15431_v28, %v15405_v12 }
 0xd2c   : > { %v10143_v37 = vpop.f32.mrb[115].mxu1  ;;  %v15438_v0 = vadd.f32 %v10198_v51, %v10197_v58  ;;  %v10200_v40 = vpop.f32.mrb[82].mxu0 }
 0xd2d   : > { %v15442_v16 = vadd.f32 %v10141_v18, %v7372_v43  ;;  %v10144_v49 = vadd.f32 %v10143_v37, %v10142_v59  ;;  %v10201_v5 = vpop.f32.mrb[83].mxu0 }
 0xd2e   : > { %v15444_v10 = vadd.f32 %v10201_v5, %v10200_v40 }
 0xd2f   : > { %v15446_v46 = vadd.f32 %v10144_v49, %v7375_v15 }
 0xd32   : > { %v10145_v2 = vpop.f32.mrb[116].mxu1 }
 0xd33   : > { %v10146_v14 = vpop.f32.mrb[117].mxu1 }
 0xd34   : > { %v10147_v9 = vadd.f32 %v10146_v14, %v10145_v2  ;;  %v10148_v45 = vpop.f32.mrb[118].mxu1 }
 0xd35   : > { %v10149_v11 = vpop.f32.mrb[119].mxu1  ;;  %v10203_v20 = vpop.f32.mrb[84].mxu0 }
 0xd36   : > { %v15452_v32 = vadd.f32 %v10147_v9, %v7380_v39  ;;  %v10150_v60 = vadd.f32 %v10149_v11, %v10148_v45  ;;  %v10204_v50 = vpop.f32.mrb[85].mxu0  ;;  %v7407_v9 = vadd.f32 %v15435_v30, %v15405_v12 }
 0xd37   : > { %v15454_v55 = vadd.f32 %v10204_v50, %v10203_v20  ;;  %v10206_v62 = vpop.f32.mrb[86].mxu0 }
 0xd38   : > { %v15456_v29 = vadd.f32 %v10150_v60, %v7383_v4  ;;  %v10207_v35 = vpop.f32.mrb[87].mxu0  ;;  %v15498_v60 = vld [vmem:[%s15981_s12] ss:$0 sm:$0xff] }
 0xd39   : > { %v15458_v19 = vadd.f32 %v10207_v35, %v10206_v62  ;;  %v10613_v30 = vadd.f32 %v15498_v60, %v15421_v56 }
 0xd3b   : > { %v10151_v63 = vpop.f32.mrb[120].mxu1 }
 0xd3c   : > { %v10152_v31 = vpop.f32.mrb[121].mxu1 }
 0xd3d   : > { %v10153_v54 = vadd.f32 %v10152_v31, %v10151_v63  ;;  %v10154_v33 = vpop.f32.mrb[122].mxu1  ;;  %v10615_v31 = vadd.f32 %v15498_v60, %v15413_v26 }
 0xd3e   : > { %v10155_v1 = vpop.f32.mrb[123].mxu1 }
 0xd3f   : > { %v15464_v36 = vadd.f32 %v10153_v54, %v7388_v7  ;;  %v10156_v47 = vadd.f32 %v10155_v1, %v10154_v33  ;;  %v10209_v53 = vpop.f32.mrb[88].mxu0  ;;  %v10617_v1 = vadd.f32 %v15498_v60, %v15425_v25 }
 0xd40   : > { %v10210_v13 = vpop.f32.mrb[89].mxu0 }
 0xd41   : > { %v15466_v21 = vadd.f32 %v10156_v47, %v7391_v44  ;;  %v15468_v24 = vadd.f32 %v10210_v13, %v10209_v53  ;;  %v10212_v34 = vpop.f32.mrb[90].mxu0  ;;  %v10619_v53 = vadd.f32 %v15498_v60, %v15415_v8 }
 0xd42   : > { %v10213_v57 = vpop.f32.mrb[91].mxu0 }
 0xd43   : > { %v15470_v23 = vadd.f32 %v10213_v57, %v10212_v34 }
 0xd45   : > { %v10157_v42 = vpop.f32.mrb[124].mxu1 }
 0xd46   : > { %v10158_v52 = vpop.f32.mrb[125].mxu1 }
 0xd47   : > { %v10159_v41 = vadd.f32 %v10158_v52, %v10157_v42  ;;  %v10160_v38 = vpop.f32.mrb[126].mxu1 }
 0xd48   : > { %v10161_v48 = vpop.f32.mrb[127].mxu1 }
 0xd49   : > { %v15476_v58 = vadd.f32 %v10159_v41, %v7396_v61  ;;  %v10162_v43 = vadd.f32 %v10161_v48, %v10160_v38  ;;  %v10621_v61 = vadd.f32 %v15498_v60, %v15442_v16  ;;  %v10623_v38 = vadd.f32 %v15498_v60, %v15429_v17 }
 0xd4b   : > { %v15478_v18 = vadd.f32 %v10162_v43, %v7399_v22  ;;  %v10215_v59 = vpop.f32.mrb[92].mxu0  ;;  %v10625_v43 = vadd.f32 %v15498_v60, %v15446_v46 }
 0xd4c   : > { %v10216_v51 = vpop.f32.mrb[93].mxu0 }
 0xd4d   : > { %v15480_v37 = vadd.f32 %v10216_v51, %v10215_v59  ;;  %v10218_v40 = vpop.f32.mrb[94].mxu0 }
 0xd4e   : > { %v10219_v15 = vpop.f32.mrb[95].mxu0 }
 0xd4f   : > { %v15482_v27 = vadd.f32 %v10219_v15, %v10218_v40  ;;  %v10627_v40 = vadd.f32 %v15498_v60, %v15433_v6 }
 0xd50   : > { %v10163_v49 = vpop.f32.mrb[128].mxu1 }
 0xd51   : > { %v10164_v5 = vpop.f32.mrb[129].mxu1 }
 0xd52   : > { %v10165_v2 = vadd.f32 %v10164_v5, %v10163_v49  ;;  %v10166_v14 = vpop.f32.mrb[130].mxu1 }
 0xd53   : > { %v10167_v39 = vpop.f32.mrb[131].mxu1 }
 0xd54   : > { %v15488_v45 = vadd.f32 %v10165_v2, %v7404_v3  ;;  %v10168_v11 = vadd.f32 %v10167_v39, %v10166_v14  ;;  %v10629_v14 = vadd.f32 %v15498_v60, %v15464_v36 }
 0xd56   : > { %v15491_v20 = vadd.f32 %v10168_v11, %v7407_v9  ;;  %v10631_v9 = vadd.f32 %v15498_v60, %v15452_v32 }
 0xd57   : > { %v10221_v4 = vpop.f32.mrb[96].mxu0 }
 0xd58   : > { %v10222_v28 = vpop.f32.mrb[97].mxu0 }
 0xd59   : > { %v15500_v50 = vadd.f32 %v10222_v28, %v10221_v4  ;;  %v10224_v62 = vpop.f32.mrb[98].mxu0  ;;  %v10633_v28 = vadd.f32 %v15498_v60, %v15466_v21 }
 0xd5a   : > { %v10225_v35 = vpop.f32.mrb[99].mxu0  ;;  %v10511_v63 = vpop.f32.mrb[68].mxu1 }
 0xd5b   : > { %v15506_v7 = vadd.f32 %v10225_v35, %v10224_v62  ;;  %v10614_v54 = vadd.f32 %v10613_v30, %v10511_v63  ;;  %v7541_v33 = vpop.f32.mrb[69].mxu1  ;;  %v10635_v35 = vadd.f32 %v15498_v60, %v15456_v29  ;;  %v10637_v29 = vadd.f32 %v15498_v60, %v15488_v45 }
 0xd5c   : > { %v10616_v44 = vadd.f32 %v10615_v31, %v7541_v33  ;;  %v10512_v47 = vpop.f32.mrb[70].mxu1 }
 0xd5d   : > { %7622 = vst.msk [vmem:[%s15512_s15 + $0x10] sm:$0xff] %vm576_vm2, %v10614_v54  ;;  %v10618_v26 = vadd.f32 %v10617_v1, %v10512_v47  ;;  %v7544_v56 = vpop.f32.mrb[71].mxu1 }
 0xd5e   : > { %7620 = vst.msk [vmem:[%s15512_s15] sm:$0xff] %vm576_vm2, %v10616_v44  ;;  %v10620_v13 = vadd.f32 %v10619_v53, %v7544_v56  ;;  %v10639_v53 = vadd.f32 %v15498_v60, %v15476_v58 }
 0xd5f   : > { %7623 = vst.msk [vmem:[%s15512_s15 + $0x18] sm:$0xff] %vm576_vm2, %v10618_v26 }
 0xd60   : > { %7621 = vst.msk [vmem:[%s15512_s15 + $0x8] sm:$0xff] %vm576_vm2, %v10620_v13  ;;  %v10641_v13 = vadd.f32 %v15498_v60, %v15491_v20 }
 0xd61   : > { %v10227_v25 = vpop.f32.mrb[100].mxu0 }
 0xd62   : > { %v10228_v8 = vpop.f32.mrb[101].mxu0 }
 0xd63   : > { %v15522_v34 = vadd.f32 %v10228_v8, %v10227_v25  ;;  %v10230_v57 = vpop.f32.mrb[102].mxu0 }
 0xd64   : > { %v10231_v42 = vpop.f32.mrb[103].mxu0 }
 0xd65   : > { %v15524_v52 = vadd.f32 %v10231_v42, %v10230_v57  ;;  %v10643_v57 = vadd.f32 %v15498_v60, %v15478_v18 }
 0xd66   : > { %v10515_v41 = vpop.f32.mrb[72].mxu1 }
 0xd67   : > { %v10622_v48 = vadd.f32 %v10621_v61, %v10515_v41  ;;  %v7557_v22 = vpop.f32.mrb[73].mxu1 }
 0xd68   : > { %v10624_v59 = vadd.f32 %v10623_v38, %v7557_v22  ;;  %v10516_v51 = vpop.f32.mrb[74].mxu1  ;;  %v9207_v38 = vadd.f32 %v15438_v0, %v15405_v12  ;;  %v9210_v22 = vadd.f32 %v15444_v10, %v15405_v12 }
 0xd69   : > { %7626 = vst.msk [vmem:[%s15512_s15 + $0x30] sm:$0xff] %vm576_vm2, %v10622_v48  ;;  %v10626_v15 = vadd.f32 %v10625_v43, %v10516_v51  ;;  %v7560_v49 = vpop.f32.mrb[75].mxu1 }
 0xd6a   : > { %7624 = vst.msk [vmem:[%s15512_s15 + $0x20] sm:$0xff] %vm576_vm2, %v10624_v59  ;;  %v10628_v16 = vadd.f32 %v10627_v40, %v7560_v49 }
 0xd6b   : > { %7627 = vst.msk [vmem:[%s15512_s15 + $0x38] sm:$0xff] %vm576_vm2, %v10626_v15 }
 0xd6c   : > { %7625 = vst.msk [vmem:[%s15512_s15 + $0x28] sm:$0xff] %vm576_vm2, %v10628_v16  ;;  %v10233_v17 = vpop.f32.mrb[104].mxu0 }
 0xd6d   : > { %v10234_v5 = vpop.f32.mrb[105].mxu0 }
 0xd6e   : > { %v15542_v46 = vadd.f32 %v10234_v5, %v10233_v17  ;;  %v10236_v3 = vpop.f32.mrb[106].mxu0 }
 0xd6f   : > { %v10237_v2 = vpop.f32.mrb[107].mxu0 }
 0xd70   : > { %v15544_v6 = vadd.f32 %v10237_v2, %v10236_v3 }
 0xd71   : > { %v10519_v39 = vpop.f32.mrb[76].mxu1 }
 0xd72   : > { %v10630_v11 = vadd.f32 %v10629_v14, %v10519_v39  ;;  %v7573_v4 = vpop.f32.mrb[77].mxu1  ;;  %v9215_v14 = vadd.f32 %v15454_v55, %v15405_v12 }
 0xd73   : > { %v10632_v62 = vadd.f32 %v10631_v9, %v7573_v4  ;;  %v10520_v30 = vpop.f32.mrb[78].mxu1  ;;  %v9218_v4 = vadd.f32 %v15458_v19, %v15405_v12  ;;  %v9223_v19 = vadd.f32 %v15468_v24, %v15405_v12 }
 0xd74   : > { %7630 = vst.msk [vmem:[%s15512_s15 + $0x50] sm:$0xff] %vm576_vm2, %v10630_v11  ;;  %v10634_v63 = vadd.f32 %v10633_v28, %v10520_v30  ;;  %v7576_v31 = vpop.f32.mrb[79].mxu1 }
 0xd75   : > { %7628 = vst.msk [vmem:[%s15512_s15 + $0x40] sm:$0xff] %vm576_vm2, %v10632_v62  ;;  %v10636_v36 = vadd.f32 %v10635_v35, %v7576_v31 }
 0xd76   : > { %7631 = vst.msk [vmem:[%s15512_s15 + $0x58] sm:$0xff] %vm576_vm2, %v10634_v63 }
 0xd77   : > { %7629 = vst.msk [vmem:[%s15512_s15 + $0x48] sm:$0xff] %vm576_vm2, %v10636_v36 }
 0xd78   : > { %v10239_v32 = vpop.f32.mrb[108].mxu0 }
 0xd79   : > { %v10240_v54 = vpop.f32.mrb[109].mxu0 }
 0xd7a   : > { %v15562_v21 = vadd.f32 %v10240_v54, %v10239_v32  ;;  %v10242_v33 = vpop.f32.mrb[110].mxu0 }
 0xd7b   : > { %v10243_v1 = vpop.f32.mrb[111].mxu0 }
 0xd7c   : > { %v15566_v44 = vadd.f32 %v10243_v1, %v10242_v33  ;;  %v10523_v47 = vpop.f32.mrb[80].mxu1 }
 0xd7d   : > { %v10638_v26 = vadd.f32 %v10637_v29, %v10523_v47  ;;  %v7589_v56 = vpop.f32.mrb[81].mxu1 }
 0xd7e   : > { %v10640_v25 = vadd.f32 %v10639_v53, %v7589_v56  ;;  %v10524_v8 = vpop.f32.mrb[82].mxu1  ;;  %v9226_v56 = vadd.f32 %v15470_v23, %v15405_v12  ;;  %v9231_v23 = vadd.f32 %v15480_v37, %v15405_v12 }
 0xd7f   : > { %7634 = vst.msk [vmem:[%s15512_s15 + $0x70] sm:$0xff] %vm576_vm2, %v10638_v26  ;;  %v10642_v45 = vadd.f32 %v10641_v13, %v10524_v8  ;;  %v7592_v42 = vpop.f32.mrb[83].mxu1 }
 0xd80   : > { %7632 = vst.msk [vmem:[%s15512_s15 + $0x60] sm:$0xff] %vm576_vm2, %v10640_v25  ;;  %v10644_v61 = vadd.f32 %v10643_v57, %v7592_v42  ;;  %v10261_v41 = vpop.f32.mrb[112].mxu0 }
 0xd81   : > { %7635 = vst.msk [vmem:[%s15512_s15 + $0x78] sm:$0xff] %vm576_vm2, %v10642_v45  ;;  %v10262_v58 = vpop.f32.mrb[113].mxu0 }
 0xd82   : > { %7633 = vst.msk [vmem:[%s15512_s15 + $0x68] sm:$0xff] %vm576_vm2, %v10644_v61  ;;  %v10263_v20 = vadd.f32 %v10262_v58, %v10261_v41  ;;  %v10264_v48 = vpop.f32.mrb[114].mxu0 }
 0xd83   : > { %v10265_v18 = vpop.f32.mrb[115].mxu0 }
 0xd84   : > { %v9304_v43 = vadd.f32 %v10263_v20, %v9207_v38  ;;  %v10266_v59 = vadd.f32 %v10265_v18, %v10264_v48 }
 0xd85   : > { %v10535_v51 = vpop.f32.mrb[84].mxu1 }
 0xd86   : > { %v9307_v40 = vadd.f32 %v10266_v59, %v9210_v22  ;;  %v9400_v15 = vpop.f32.mrb[85].mxu1  ;;  %v10647_v49 = vadd.f32 %v15498_v60, %v9304_v43  ;;  %v9234_v59 = vadd.f32 %v15482_v27, %v15405_v12 }
 0xd87   : > { %v10536_v16 = vpop.f32.mrb[86].mxu1 }
 0xd88   : > { %v10648_v17 = vadd.f32 %v10647_v49, %v9400_v15  ;;  %v9403_v0 = vpop.f32.mrb[87].mxu1  ;;  %v10651_v5 = vadd.f32 %v15498_v60, %v9307_v40  ;;  %v10267_v3 = vpop.f32.mrb[116].mxu0 }
 0xd89   : > { %v10268_v2 = vpop.f32.mrb[117].mxu0 }
 0xd8a   : > { %9804 = vst.msk [vmem:[%s15512_s15 + $0x80] sm:$0xff] %vm576_vm2, %v10648_v17  ;;  %v10652_v10 = vadd.f32 %v10651_v5, %v9403_v0  ;;  %v10269_v39 = vadd.f32 %v10268_v2, %v10267_v3  ;;  %v10270_v9 = vpop.f32.mrb[118].mxu0  ;;  %v9239_v2 = vadd.f32 %v15500_v50, %v15405_v12 }
 0xd8b   : > { %v10271_v11 = vpop.f32.mrb[119].mxu0 }
 0xd8c   : > { %9805 = vst.msk [vmem:[%s15512_s15 + $0x88] sm:$0xff] %vm576_vm2, %v10652_v10  ;;  %v9312_v28 = vadd.f32 %v10269_v39, %v9215_v14  ;;  %v10272_v62 = vadd.f32 %v10271_v11, %v10270_v9 }
 0xd8e   : > { %v10645_v30 = vadd.f32 %v15498_v60, %v9312_v28  ;;  %v9315_v35 = vadd.f32 %v10272_v62, %v9218_v4  ;;  %v10539_v63 = vpop.f32.mrb[88].mxu1  ;;  %v9242_v4 = vadd.f32 %v15506_v7, %v15405_v12 }
 0xd8f   : > { %v9416_v55 = vpop.f32.mrb[89].mxu1 }
 0xd90   : > { %v10646_v31 = vadd.f32 %v10645_v30, %v10535_v51  ;;  %v10649_v36 = vadd.f32 %v15498_v60, %v9315_v35  ;;  %v10540_v32 = vpop.f32.mrb[90].mxu1  ;;  %v10273_v54 = vpop.f32.mrb[120].mxu0 }
 0xd91   : > { %v9419_v33 = vpop.f32.mrb[91].mxu1  ;;  %v10274_v1 = vpop.f32.mrb[121].mxu0 }
 0xd92   : > { %9806 = vst.msk [vmem:[%s15512_s15 + $0x90] sm:$0xff] %vm576_vm2, %v10646_v31  ;;  %v10650_v29 = vadd.f32 %v10649_v36, %v10536_v16  ;;  %v10275_v47 = vadd.f32 %v10274_v1, %v10273_v54  ;;  %v10276_v53 = vpop.f32.mrb[122].mxu0  ;;  %v9247_v36 = vadd.f32 %v15522_v34, %v15405_v12  ;;  %v9250_v1 = vadd.f32 %v15524_v52, %v15405_v12 }
 0xd93   : > { %v10277_v26 = vpop.f32.mrb[123].mxu0 }
 0xd94   : > { %9807 = vst.msk [vmem:[%s15512_s15 + $0x98] sm:$0xff] %vm576_vm2, %v10650_v29  ;;  %v9320_v13 = vadd.f32 %v10275_v47, %v9223_v19  ;;  %v10278_v25 = vadd.f32 %v10277_v26, %v10276_v53 }
 0xd96   : > { %v10655_v8 = vadd.f32 %v15498_v60, %v9320_v13  ;;  %v9323_v57 = vadd.f32 %v10278_v25, %v9226_v56  ;;  %v9255_v25 = vadd.f32 %v15542_v46, %v15405_v12 }
 0xd98   : > { %v10656_v45 = vadd.f32 %v10655_v8, %v9416_v55  ;;  %v10659_v24 = vadd.f32 %v15498_v60, %v9323_v57  ;;  %v10543_v42 = vpop.f32.mrb[92].mxu1 }
 0xd99   : > { %v9432_v61 = vpop.f32.mrb[93].mxu1  ;;  %v10279_v41 = vpop.f32.mrb[124].mxu0 }
 0xd9a   : > { %9808 = vst.msk [vmem:[%s15512_s15 + $0xa0] sm:$0xff] %vm576_vm2, %v10656_v45  ;;  %v10660_v58 = vadd.f32 %v10659_v24, %v9419_v33  ;;  %v10544_v38 = vpop.f32.mrb[94].mxu1  ;;  %v10280_v20 = vpop.f32.mrb[125].mxu0  ;;  %v9258_v24 = vadd.f32 %v15544_v6, %v15405_v12 }
 0xd9b   : > { %v9435_v48 = vpop.f32.mrb[95].mxu1  ;;  %v10281_v18 = vadd.f32 %v10280_v20, %v10279_v41  ;;  %v10282_v22 = vpop.f32.mrb[126].mxu0 }
 0xd9c   : > { %9809 = vst.msk [vmem:[%s15512_s15 + $0xa8] sm:$0xff] %vm576_vm2, %v10660_v58  ;;  %v10283_v43 = vpop.f32.mrb[127].mxu0 }
 0xd9d   : > { %v9328_v51 = vadd.f32 %v10281_v18, %v9231_v23  ;;  %v10284_v40 = vadd.f32 %v10283_v43, %v10282_v22 }
 0xd9f   : > { %v10653_v15 = vadd.f32 %v15498_v60, %v9328_v51  ;;  %v9331_v49 = vadd.f32 %v10284_v40, %v9234_v59  ;;  %v9266_v59 = vadd.f32 %v15566_v44, %v15405_v12 }
 0xda1   : > { %v10654_v16 = vadd.f32 %v10653_v15, %v10539_v63  ;;  %v10657_v17 = vadd.f32 %v15498_v60, %v9331_v49  ;;  %v15618_v37 = vpop.f32.mrb[96].mxu1  ;;  %v10285_v0 = vpop.f32.mrb[128].mxu0 }
 0xda2   : > { %v9448_v5 = vpop.f32.mrb[97].mxu1  ;;  %v10286_v3 = vpop.f32.mrb[129].mxu0 }
 0xda3   : > { %9810 = vst.msk [vmem:[%s15512_s15 + $0xb0] sm:$0xff] %vm576_vm2, %v10654_v16  ;;  %v10658_v27 = vadd.f32 %v10657_v17, %v10540_v32  ;;  %v15624_v14 = vpop.f32.mrb[98].mxu1  ;;  %v10287_v10 = vadd.f32 %v10286_v3, %v10285_v0  ;;  %v10288_v39 = vpop.f32.mrb[130].mxu0 }
 0xda4   : > { %v9451_v9 = vpop.f32.mrb[99].mxu1  ;;  %v10289_v11 = vpop.f32.mrb[131].mxu0 }
 0xda5   : > { %9811 = vst.msk [vmem:[%s15512_s15 + $0xb8] sm:$0xff] %vm576_vm2, %v10658_v27  ;;  %v9336_v28 = vadd.f32 %v10287_v10, %v9239_v2  ;;  %v10290_v62 = vadd.f32 %v10289_v11, %v10288_v39 }
 0xda7   : > { %v10663_v50 = vadd.f32 %v15498_v60, %v9336_v28  ;;  %v9339_v30 = vadd.f32 %v10290_v62, %v9242_v4 }
 0xda9   : > { %v10664_v35 = vadd.f32 %v10663_v50, %v9432_v61  ;;  %v10667_v63 = vadd.f32 %v15498_v60, %v9339_v30  ;;  %v10291_v55 = vpop.f32.mrb[132].mxu0 }
 0xdaa   : > { %v10292_v31 = vpop.f32.mrb[133].mxu0 }
 0xdab   : > { %9812 = vst.msk [vmem:[%s15512_s15 + $0xc0] sm:$0xff] %vm576_vm2, %v10664_v35  ;;  %v10668_v7 = vadd.f32 %v10667_v63, %v9435_v48  ;;  %v10293_v32 = vadd.f32 %v10292_v31, %v10291_v55  ;;  %v10294_v54 = vpop.f32.mrb[134].mxu0  ;;  %v9263_v48 = vadd.f32 %v15562_v21, %v15405_v12 }
 0xdac   : > { %v10295_v33 = vpop.f32.mrb[135].mxu0 }
 0xdad   : > { %9813 = vst.msk [vmem:[%s15512_s15 + $0xc8] sm:$0xff] %vm576_vm2, %v10668_v7  ;;  %v9344_v19 = vadd.f32 %v10293_v32, %v9247_v36  ;;  %v10296_v29 = vadd.f32 %v10295_v33, %v10294_v54 }
 0xdaf   : > { %v10661_v47 = vadd.f32 %v15498_v60, %v9344_v19  ;;  %v9347_v53 = vadd.f32 %v10296_v29, %v9250_v1 }
 0xdb1   : > { %v10662_v26 = vadd.f32 %v10661_v47, %v10543_v42  ;;  %v10665_v34 = vadd.f32 %v15498_v60, %v9347_v53  ;;  %v10297_v56 = vpop.f32.mrb[136].mxu0 }
 0xdb2   : > { %v10298_v13 = vpop.f32.mrb[137].mxu0 }
 0xdb3   : > { %9814 = vst.msk [vmem:[%s15512_s15 + $0xd0] sm:$0xff] %vm576_vm2, %v10662_v26  ;;  %v10666_v52 = vadd.f32 %v10665_v34, %v10544_v38  ;;  %v10299_v8 = vadd.f32 %v10298_v13, %v10297_v56  ;;  %v10300_v57 = vpop.f32.mrb[138].mxu0 }
 0xdb4   : > { %v10301_v45 = vpop.f32.mrb[139].mxu0 }
 0xdb5   : > { %9815 = vst.msk [vmem:[%s15512_s15 + $0xd8] sm:$0xff] %vm576_vm2, %v10666_v52  ;;  %v9352_v42 = vadd.f32 %v10299_v8, %v9255_v25  ;;  %v10302_v61 = vadd.f32 %v10301_v45, %v10300_v57 }
 0xdb7   : > { %v10671_v41 = vadd.f32 %v15498_v60, %v9352_v42  ;;  %v9355_v58 = vadd.f32 %v10302_v61, %v9258_v24 }
 0xdb9   : > { %v10672_v20 = vadd.f32 %v10671_v41, %v9448_v5  ;;  %v10675_v46 = vadd.f32 %v15498_v60, %v9355_v58  ;;  %v10303_v38 = vpop.f32.mrb[140].mxu0 }
 0xdba   : > { %v10304_v23 = vpop.f32.mrb[141].mxu0 }
 0xdbb   : > { %9816 = vst.msk [vmem:[%s15512_s15 + $0xe0] sm:$0xff] %vm576_vm2, %v10672_v20  ;;  %v10676_v6 = vadd.f32 %v10675_v46, %v9451_v9  ;;  %v10305_v18 = vadd.f32 %v10304_v23, %v10303_v38  ;;  %v10306_v22 = vpop.f32.mrb[142].mxu0 }
 0xdbc   : > { %v10307_v43 = vpop.f32.mrb[143].mxu0 }
 0xdbd   : > { %9817 = vst.msk [vmem:[%s15512_s15 + $0xe8] sm:$0xff] %vm576_vm2, %v10676_v6  ;;  %v9360_v51 = vadd.f32 %v10305_v18, %v9263_v48  ;;  %v10308_v40 = vadd.f32 %v10307_v43, %v10306_v22 }
 0xdbf   : > { %v10669_v15 = vadd.f32 %v15498_v60, %v9360_v51  ;;  %v9363_v21 = vadd.f32 %v10308_v40, %v9266_v59 }
 0xdc1   : > { %v10670_v49 = vadd.f32 %v10669_v15, %v15618_v37  ;;  %v10673_v16 = vadd.f32 %v15498_v60, %v9363_v21 }
 0xdc3   : > { %9818 = vst.msk [vmem:[%s15512_s15 + $0xf0] sm:$0xff] %vm576_vm2, %v10670_v49  ;;  %v10674_v12 = vadd.f32 %v10673_v16, %v15624_v14 }
 0xdc5   : > { %9819 = vst.msk [vmem:[%s15512_s15 + $0xf8] sm:$0xff] %vm576_vm2, %v10674_v12 }
 0xdc6   : > { %11422 = shalt.err (!%p11419_p2)
}
 0xdc7   : > { %s11423_s14 = scalar_lea.hbm %s15668_s21, 4096  ;;  %s11427_s29 = scalar_lea.hbm %s15983_s27, 8192 }
 0xdc8   : > { %p11424_p3 = scmp.ne.s32.totalorder %s15668_s21, %s11423_s14  ;;  %p11428_p7 = scmp.lt.u32.totalorder %s15668_s21, %s15983_s27 }
 0xdc9   : > { %p11429_p8 = scmp.lt.u32.totalorder %s11427_s29, %s11423_s14  ;;  %p11431_p13 = scmp.lt.u32.totalorder %s11423_s14, %s15668_s21 }
 0xdca   : > { %p11425_p4 = pnand %p11424_p3, %p15984_p1 }
 0xdcb   : > { %p11430_p11 = por %p11429_p8, %p11428_p7 }
 0xdcc   : > { %p11426_p12 = pneg %p11425_p4 }
 0xdcd   : > { %p11432_p6 = por %p11431_p13, %p11430_p11 }
 0xdcf   : > { %p11433_p9 = pnand %p11432_p6, %p11426_p12 }
 0xdd1   : > { %11436 = shalt.err (!%p11433_p9)
}
 0xdd2   : > { %s11505_s15 = smov 128   ;;  %s11506_s23 = smov 8  }
 0xdd3   : > { %10733 = dma.vmem_to_hbm [thread:$0]  (%p15984_p1), %s15670_s24, 4096, %s15668_s21, %s15679_s22, %s11505_s15, %s11505_s15, %s11506_s23  }
 0xdd4 PF: > { %s15985_s4 = sld [smem:[#allocation23_spill]]  ;;  %s15986_s25 = sld [smem:[#allocation20_spill]] }
 0xdd5   : > { %s15987_s19 = sld [smem:[#allocation27_spill]] }
 0xdda   : > { %p10770_p5 = scmp.ge.s32.totalorder %s15985_s4, 2  ;;  %s9525_s16 = sand.u32 1, %s15986_s25  }
 0xddb   : > { %p15988_p0 = scmp.ne.s32.totalorder %s15987_s19, 0  ;;  %s9526_s18 = scalar_lea.sflag [#allocation5], %s9525_s16 }
 0xddd   : > { %p10755_p10 = pnand %p10770_p5, %p15988_p0 }
 0xddf   : > { %11470 = dma.done.wait (!%p10755_p10), %s9526_s18, 4096  }
 0xde0   : > { %11472 = vsyncadd (!%p10755_p10), %s9526_s18, 4294963200  ;;  %s15989_s21 = sld [smem:[#allocation24_spill]]  ;;  %s15990_s18 = sld [smem:[#allocation21_spill]] }
 0xde1   : > { %s15991_s19 = sld [smem:[#allocation22_spill]]  ;;  %s15992_s20 = sld [smem:[#allocation25_spill]] }
 0xde6   : > { %p29_p2 = scmp.ge.s32.totalorder %s15989_s21, 4  }
 0xde8   :  { %31 = sbr.rel (!%p29_p2) target bundleno = 12 (0xc), region = 147 }
 0xdef   :  { %9531 = vsyncpa [#allocation4], 1 }
 0xdf0   :  { %9533 = vsyncpa [#allocation4 + $0x1], 1 }
 0xdf1   :  { %9534 = vsyncpa [#allocation7], 1 }
 0xdf2   :  { %9535 = vsyncpa [#allocation10], 1 }
 0xdf3   :  { %9536 = vsyncpa [#allocation13], 1 }
 0xdf4   :  { %9537 = vsyncpa [#allocation5], 1 }
 0xdf5   :  { %9539 = vsyncpa [#allocation5 + $0x1], 1 }

</bundles_post_ra>
